<compile_context>
chip_gen: v7x
topology: tpu7x:2x2x1
jax: 0.10.0
libtpu: 0.0.40
codegen_flags: <defaults>
</compile_context>

<pallas_src>
import functools

import jax
import jax.numpy as jnp
from jax import lax
from jax.experimental import pallas as pl
from jax.experimental.pallas import tpu as pltpu

# Full-precision f32 matmuls so the Pallas kernel and the pure-JAX reference agree.
# TODO(synk): relax to "high" (bf16_3x) for the hoisted projections once the 1e-3
# tolerance is re-verified on real checkpoints (halves MXU pass count per matmul).
jax.config.update("jax_default_matmul_precision", "highest")

CONV_ARCHS = ((1, 32), (1, 64))
HIDDEN_LAYER_SIZES = [64, 128]
INPUT_DIM = 23
OUTPUT_DIM = 1
OUTPUT_SIZE = 6
HEAD_PAD = 128  # lane-dense padding of the linear-head output


# ----------------------------- fused forward kernel --------------------------
def fused_kernel(
    x_ref, cw1_ref, cb1_ref, cw2_ref, cb2_ref,
    g1wi_ref, g1wh_ref, g1bi_ref, g1bh_ref,
    g2wi_ref, g2wh_ref, g2bi_ref, g2bh_ref,
    lw_ref, lb_ref,
    o_ref,
    c1out, c2out,
    *, batch, seq,
):
    f32 = jnp.float32
    B = batch
    S = seq                 # sequence length seen by conv1
    M1 = B * S              # batch-folded rows for conv1 (row = b*S + l)
    L1 = S // 2             # sequence length after pool1
    M2 = B * L1             # batch-folded rows for conv2
    T = L1 // 2             # GRU time steps (after pool2)
    H1 = g1wh_ref.shape[0]
    H2 = g2wh_ref.shape[0]

    def conv3_relu(x, w_ref, b_ref, length):
        # Conv1d(k=3, padding=1) + ReLU on batch-folded rows r = b*length + l.
        # prev/next taps come from XLU sublane rolls on the in-register value (no padded
        # scratch); select-style edge masks zero the circular wrap-around AND any
        # cross-batch leakage BEFORE the matmuls.  The three per-tap matmuls are
        # mutually independent, so the MXU pipelines their pushes back-to-back.
        rows = x.shape[0]
        pos = lax.broadcasted_iota(jnp.int32, (rows, 1), 0) % length
        prev = jnp.where(pos == 0, 0.0, pltpu.roll(x, 1, axis=0))            # x[r-1]
        nxt = jnp.where(pos == length - 1, 0.0, pltpu.roll(x, rows - 1, axis=0))  # x[r+1]
        acc = jnp.dot(x, w_ref[1], preferred_element_type=f32)
        acc = acc + jnp.dot(prev, w_ref[0], preferred_element_type=f32)
        acc = acc + jnp.dot(nxt, w_ref[2], preferred_element_type=f32)
        return jnp.maximum(acc + b_ref[...], 0.0)

    def gru_cell(gi, gh, h, hdim):
        # gi = x @ W_ih + b_ih, gh = h @ W_hh + b_hh, gate order (r, z, n) as in nn.GRU.
        # One EUP sigmoid over the concatenated (r, z) block.
        rz = jax.nn.sigmoid(gi[:, :2 * hdim] + gh[:, :2 * hdim])
        r = rz[:, :hdim]
        z = rz[:, hdim:]
        n = jnp.tanh(gi[:, 2 * hdim:] + r * gh[:, 2 * hdim:])
        return (1.0 - z) * n + z * h

    # ---- conv block 1: Conv1d(k=3, pad=1) + ReLU (in registers) ----
    c1out[...] = conv3_relu(x_ref[...], cw1_ref, cb1_ref, S)           # (M1, C1) staging
    # MaxPool1d(2, 2): pairwise max over sublane-strided reads of the staged output.
    pooled1 = jnp.maximum(c1out[pl.ds(0, M2, stride=2), :],
                          c1out[pl.ds(1, M2, stride=2), :])            # (M2, C1)

    # ---- conv block 2: Conv1d(k=3, pad=1) + ReLU ----
    c2out[...] = conv3_relu(pooled1, cw2_ref, cb2_ref, L1)             # (M2, C2) staging

    # Hoist all recurrence-invariant weight / bias loads out of the time loops
    # (JAX does not CSE broadcast_in_dim; keep them off the serial critical path).
    w1i = g1wi_ref[...]; b1i = g1bi_ref[...]
    w1h = g1wh_ref[...]; b1h = g1bh_ref[...]
    w2i = g2wi_ref[...]; b2i = g2bi_ref[...]
    w2h = g2wh_ref[...]; b2h = g2bh_ref[...]

    # ---- MaxPool1d(2, 2) + hoisted GRU1 input projection, per time step ----
    # The T projections are mutually independent, so the MXU pipelines them all
    # before the recurrence starts; only h @ W_hh stays on the serial chain.
    gi1_steps = []
    for t in range(T):
        p2_t = jnp.maximum(c2out[pl.ds(2 * t, B, stride=L1), :],
                           c2out[pl.ds(2 * t + 1, B, stride=L1), :])   # (B, C2) at time t
        gi1_steps.append(jnp.dot(p2_t, w1i, preferred_element_type=f32) + b1i)

    # ---- GRU1 and GRU2 recurrences with a 1-step software skew ----
    # GRU2 step t-1 depends only on h1[t-1] and h2[t-2], so it is data-independent of
    # GRU1 step t: the two serial matmul/sigmoid chains overlap instead of running
    # back-to-back (GRU2's input projection is per-step to avoid a full-sequence
    # barrier between the two layers).
    def gru2_step(x_in, h):
        gi2 = jnp.dot(x_in, w2i, preferred_element_type=f32) + b2i
        gh2 = jnp.dot(h, w2h, preferred_element_type=f32) + b2h
        return gru_cell(gi2, gh2, h, H2)

    h1 = jnp.zeros((B, H1), f32)
    h2 = jnp.zeros((B, H2), f32)
    h1_prev = None
    # TODO(synk): switch to lax.fori_loop(..., unroll=<small>) if T grows large.
    for t in range(T):
        gh1 = jnp.dot(h1, w1h, preferred_element_type=f32) + b1h
        h1_new = gru_cell(gi1_steps[t], gh1, h1, H1)
        if t > 0:
            h2 = gru2_step(h1_prev, h2)     # GRU2 step t-1, overlaps GRU1 step t
        h1 = h1_new
        h1_prev = h1_new
    h2 = gru2_step(h1_prev, h2)             # final GRU2 step (t = T-1)

    # ---- linear head (zero-lane-padded to 128 columns => lane-dense single store) ----
    o_ref[...] = jnp.dot(h2, lw_ref[...], preferred_element_type=f32) + lb_ref[...]


# ------------------------------ Python wrapper --------------------------------
def cnn_gru_forward(params, x):
    # x: (B, seq_len, input_dim) == PyTorch input_seq (batch_first)
    B, S, D = x.shape
    if S % 4 != 0:
        raise ValueError("seq_len must be divisible by 4 (two MaxPool1d(2,2) stages)")
    C1 = params["c1_w"].shape[-1]
    C2 = params["c2_w"].shape[-1]
    HEADN = params["lin_w"].shape[-1]          # lane-padded head width (128)
    M1 = B * S
    M2 = B * (S // 2)

    vmem = pl.BlockSpec(memory_space=pltpu.MemorySpace.VMEM)
    out = pl.pallas_call(
        functools.partial(fused_kernel, batch=B, seq=S),
        out_shape=jax.ShapeDtypeStruct((B, HEADN), jnp.float32),
        in_specs=[vmem] * 15,
        out_specs=vmem,
        scratch_shapes=[
            # Only two tiny staging buffers remain: the pooling stages need strided
            # even/odd row selection, which is done with strided ref reads.
            pltpu.VMEM((M1, C1), jnp.float32),   # conv1+relu output (pre-pool1)
            pltpu.VMEM((M2, C2), jnp.float32),   # conv2+relu output (pre-pool2)
        ],
        # Grid-less single call: at these shapes the whole forward is a handful of
        # vregs. TODO(synk): add a ("parallel",) batch-tile grid + explicit
        # vmem_limit_bytes once B*S grows (needed to use both v7x TensorCores and to
        # respect its 64 MiB VMEM / v5e's 16 MiB scoped default).
    )(
        x.reshape(M1, D),
        params["c1_w"], params["c1_b"], params["c2_w"], params["c2_b"],
        params["g1_wi"], params["g1_wh"], params["g1_bi"], params["g1_bh"],
        params["g2_wi"], params["g2_wh"], params["g2_bi"], params["g2_bh"],
        params["lin_w"], params["lin_b"],
    )
    return out[:, :OUTPUT_DIM * OUTPUT_SIZE]


# -------------------------- Pure-JAX reference check -------------------------
def ref_forward(params, x):
    B = x.shape[0]
    h = x
    for cw, cb in ((params["c1_w"], params["c1_b"]), (params["c2_w"], params["c2_b"])):
        L = h.shape[1]
        xp = jnp.pad(h, ((0, 0), (1, 1), (0, 0)))
        acc = sum(jnp.einsum("bld,do->blo", xp[:, k:k + L, :], cw[k]) for k in range(3))
        a = jnp.maximum(acc + cb, 0.0)
        h = a.reshape(B, L // 2, 2, a.shape[-1]).max(axis=2)       # MaxPool1d(2,2)
    for layer in ("g1", "g2"):
        wi, wh = params[layer + "_wi"], params[layer + "_wh"]
        bi, bh = params[layer + "_bi"], params[layer + "_bh"]
        H = wh.shape[0]
        T = h.shape[1]
        hs = jnp.zeros((B, H), jnp.float32)
        outs = []
        for t in range(T):
            gi = h[:, t, :] @ wi + bi
            gh = hs @ wh + bh
            r = jax.nn.sigmoid(gi[:, :H] + gh[:, :H])
            z = jax.nn.sigmoid(gi[:, H:2 * H] + gh[:, H:2 * H])
            n = jnp.tanh(gi[:, 2 * H:] + r * gh[:, 2 * H:])
            hs = (1.0 - z) * n + z * hs
            outs.append(hs)
        h = jnp.stack(outs, axis=1)
    out = h[:, -1, :] @ params["lin_w"] + params["lin_b"]
    return out[:, :OUTPUT_DIM * OUTPUT_SIZE]


# ------------------------------ Parameter init --------------------------------
def init_params(key):
    keys = iter(jax.random.split(key, 32))

    def nrm(shape, scale=0.1):
        return (scale * jax.random.normal(next(keys), shape)).astype(jnp.float32)

    c1, c2 = CONV_ARCHS[0][1], CONV_ARCHS[1][1]
    h1, h2 = HIDDEN_LAYER_SIZES
    out_n = OUTPUT_DIM * OUTPUT_SIZE
    # Linear head stored zero-padded to 128 lanes (columns >= out_n are exactly zero),
    # so slicing [:, :out_n] recovers the true nn.Linear output.
    lin_w = jnp.pad(nrm((h2, out_n)), ((0, 0), (0, HEAD_PAD - out_n)))
    lin_b = jnp.pad(nrm((1, out_n)), ((0, 0), (0, HEAD_PAD - out_n)))
    return {
        "c1_w": nrm((3, INPUT_DIM, c1)), "c1_b": nrm((1, c1)),
        "c2_w": nrm((3, c1, c2)), "c2_b": nrm((1, c2)),
        # GRU gate weights concatenated along the output dim, gate order (r, z, n).
        "g1_wi": nrm((c2, 3 * h1)), "g1_wh": nrm((h1, 3 * h1)),
        "g1_bi": nrm((1, 3 * h1)), "g1_bh": nrm((1, 3 * h1)),
        "g2_wi": nrm((h1, 3 * h2)), "g2_wh": nrm((h2, 3 * h2)),
        "g2_bi": nrm((1, 3 * h2)), "g2_bh": nrm((1, 3 * h2)),
        "lin_w": lin_w, "lin_b": lin_b,
    }


if __name__ == "__main__":
    key = jax.random.PRNGKey(0)
    pkey, xkey = jax.random.split(key)
    params = init_params(pkey)

    # Small shapes consistent with the module: batch=2, seq=16, features=23.
    B, S, D = 2, 16, INPUT_DIM
    x = jax.random.normal(xkey, (B, S, D), dtype=jnp.float32)

    out = jax.jit(cnn_gru_forward)(params, x)
    out = jax.block_until_ready(out)

    ref = ref_forward(params, x)
    assert out.shape == (B, OUTPUT_DIM * OUTPUT_SIZE), out.shape
    max_err = float(jnp.max(jnp.abs(out - ref)))
    assert jnp.allclose(out, ref, rtol=1e-3, atol=1e-3), max_err
    print("KERNEL_OK")
</pallas_src>

<mosaic_0001>
module attributes {stable_mosaic.version = 11 : i64} {
  func.func @fused_kernel(%arg0: memref<32x23xf32, #tpu.memory_space<vmem>>, %arg1: memref<3x23x32xf32, #tpu.memory_space<vmem>>, %arg2: memref<1x32xf32, #tpu.memory_space<vmem>>, %arg3: memref<3x32x64xf32, #tpu.memory_space<vmem>>, %arg4: memref<1x64xf32, #tpu.memory_space<vmem>>, %arg5: memref<64x192xf32, #tpu.memory_space<vmem>>, %arg6: memref<64x192xf32, #tpu.memory_space<vmem>>, %arg7: memref<1x192xf32, #tpu.memory_space<vmem>>, %arg8: memref<1x192xf32, #tpu.memory_space<vmem>>, %arg9: memref<64x384xf32, #tpu.memory_space<vmem>>, %arg10: memref<128x384xf32, #tpu.memory_space<vmem>>, %arg11: memref<1x384xf32, #tpu.memory_space<vmem>>, %arg12: memref<1x384xf32, #tpu.memory_space<vmem>>, %arg13: memref<128x128xf32, #tpu.memory_space<vmem>>, %arg14: memref<1x128xf32, #tpu.memory_space<vmem>>, %arg15: memref<2x128xf32, #tpu.memory_space<vmem>>, %arg16: memref<32x32xf32, #tpu.memory_space<vmem>>, %arg17: memref<16x64xf32, #tpu.memory_space<vmem>>) attributes {dimension_semantics = [], scalar_prefetch = 0 : i64, scratch_operands = 2 : i64, tpu.core_type = #tpu.core_type<tc>} {
    %c0 = arith.constant 0 : index
    %c0_0 = arith.constant 0 : index
    %0 = vector.load %arg0[%c0, %c0_0] : memref<32x23xf32, #tpu.memory_space<vmem>>, vector<32x23xf32>
    %1 = tpu.iota {dimensions = array<i32: 0>} : vector<32x1xi32>
    %c16_i32 = arith.constant 16 : i32
    %c0_i32 = arith.constant 0 : i32
    %2 = arith.cmpi eq, %c16_i32, %c0_i32 : i32
    %c1_i32 = arith.constant 1 : i32
    %3 = arith.select %2, %c1_i32, %c16_i32 : i32
    %4 = vector.broadcast %3 : i32 to vector<32x1xi32>
    %5 = arith.remsi %1, %4 : vector<32x1xi32>
    %c0_i32_1 = arith.constant 0 : i32
    %6 = vector.broadcast %c0_i32_1 : i32 to vector<32x1xi32>
    %7 = arith.cmpi ne, %5, %6 : vector<32x1xi32>
    %c0_i32_2 = arith.constant 0 : i32
    %8 = vector.broadcast %c0_i32_2 : i32 to vector<32x1xi32>
    %9 = arith.cmpi slt, %5, %8 : vector<32x1xi32>
    %c0_i32_3 = arith.constant 0 : i32
    %10 = arith.cmpi slt, %3, %c0_i32_3 : i32
    %11 = vector.broadcast %10 : i1 to vector<32x1xi1>
    %12 = vector.broadcast %11 : vector<32x1xi1> to vector<32x1xi1>
    %13 = arith.xori %9, %12 : vector<32x1xi1>
    %14 = arith.andi %13, %7 : vector<32x1xi1>
    %15 = vector.broadcast %3 : i32 to vector<32x1xi32>
    %16 = arith.addi %5, %15 : vector<32x1xi32>
    %17 = arith.select %14, %16, %5 : vector<32x1xi1>, vector<32x1xi32>
    %c0_i32_4 = arith.constant 0 : i32
    %18 = vector.broadcast %c0_i32_4 : i32 to vector<32x1xi32>
    %19 = arith.cmpi eq, %17, %18 : vector<32x1xi32>
    %c1_i32_5 = arith.constant 1 : i32
    %20 = tpu.dynamic_rotate %0 by %c1_i32_5 dim 0 : vector<32x23xf32>, i32 -> vector<32x23xf32>
    %cst = arith.constant 0.000000e+00 : f32
    %21 = vector.shape_cast %19 : vector<32x1xi1> to vector<32x1xi1>
    %22 = vector.broadcast %21 : vector<32x1xi1> to vector<32x23xi1>
    %23 = vector.broadcast %cst : f32 to vector<32x23xf32>
    %24 = arith.select %22, %23, %20 : vector<32x23xi1>, vector<32x23xf32>
    %c15_i32 = arith.constant 15 : i32
    %25 = vector.broadcast %c15_i32 : i32 to vector<32x1xi32>
    %26 = arith.cmpi eq, %17, %25 : vector<32x1xi32>
    %c31_i32 = arith.constant 31 : i32
    %27 = tpu.dynamic_rotate %0 by %c31_i32 dim 0 : vector<32x23xf32>, i32 -> vector<32x23xf32>
    %cst_6 = arith.constant 0.000000e+00 : f32
    %28 = vector.shape_cast %26 : vector<32x1xi1> to vector<32x1xi1>
    %29 = vector.broadcast %28 : vector<32x1xi1> to vector<32x23xi1>
    %30 = vector.broadcast %cst_6 : f32 to vector<32x23xf32>
    %31 = arith.select %29, %30, %27 : vector<32x23xi1>, vector<32x23xf32>
    %c1 = arith.constant 1 : index
    %c0_7 = arith.constant 0 : index
    %c0_8 = arith.constant 0 : index
    %32 = vector.load %arg1[%c1, %c0_7, %c0_8] : memref<3x23x32xf32, #tpu.memory_space<vmem>>, vector<1x23x32xf32>
    %33 = vector.shape_cast %32 : vector<1x23x32xf32> to vector<23x32xf32>
    %cst_9 = arith.constant dense<0.000000e+00> : vector<32x32xf32>
    %34 = tpu.matmul %0, %33, %cst_9 {dimension_numbers = #tpu.dot_dimension_numbers<[1], [0], [0], [1], [0, 0, 1, 1], [], []>, precision = #tpu.contract_precision<fp32>} : vector<32x23xf32>, vector<23x32xf32>, vector<32x32xf32> -> vector<32x32xf32>
    %c0_10 = arith.constant 0 : index
    %c0_11 = arith.constant 0 : index
    %c0_12 = arith.constant 0 : index
    %35 = vector.load %arg1[%c0_10, %c0_11, %c0_12] : memref<3x23x32xf32, #tpu.memory_space<vmem>>, vector<1x23x32xf32>
    %36 = vector.shape_cast %35 : vector<1x23x32xf32> to vector<23x32xf32>
    %cst_13 = arith.constant dense<0.000000e+00> : vector<32x32xf32>
    %37 = tpu.matmul %24, %36, %cst_13 {dimension_numbers = #tpu.dot_dimension_numbers<[1], [0], [0], [1], [0, 0, 1, 1], [], []>, precision = #tpu.contract_precision<fp32>} : vector<32x23xf32>, vector<23x32xf32>, vector<32x32xf32> -> vector<32x32xf32>
    %38 = arith.addf %34, %37 : vector<32x32xf32>
    %c2 = arith.constant 2 : index
    %c0_14 = arith.constant 0 : index
    %c0_15 = arith.constant 0 : index
    %39 = vector.load %arg1[%c2, %c0_14, %c0_15] : memref<3x23x32xf32, #tpu.memory_space<vmem>>, vector<1x23x32xf32>
    %40 = vector.shape_cast %39 : vector<1x23x32xf32> to vector<23x32xf32>
    %cst_16 = arith.constant dense<0.000000e+00> : vector<32x32xf32>
    %41 = tpu.matmul %31, %40, %cst_16 {dimension_numbers = #tpu.dot_dimension_numbers<[1], [0], [0], [1], [0, 0, 1, 1], [], []>, precision = #tpu.contract_precision<fp32>} : vector<32x23xf32>, vector<23x32xf32>, vector<32x32xf32> -> vector<32x32xf32>
    %42 = arith.addf %38, %41 : vector<32x32xf32>
    %c0_17 = arith.constant 0 : index
    %c0_18 = arith.constant 0 : index
    %43 = vector.load %arg2[%c0_17, %c0_18] : memref<1x32xf32, #tpu.memory_space<vmem>>, vector<1x32xf32>
    %44 = vector.broadcast %43 : vector<1x32xf32> to vector<32x32xf32>
    %45 = arith.addf %42, %44 : vector<32x32xf32>
    %cst_19 = arith.constant 0.000000e+00 : f32
    %46 = vector.broadcast %cst_19 : f32 to vector<32x32xf32>
    %47 = arith.maximumf %45, %46 : vector<32x32xf32>
    %c0_20 = arith.constant 0 : index
    %c0_21 = arith.constant 0 : index
    %48 = vector.load %arg16[%c0_20, %c0_21] : memref<32x32xf32, #tpu.memory_space<vmem>>, vector<32x32xf32>
    tpu.vector_store %arg16[%c0_20, %c0_21], %47 {strides = array<i32>} : memref<32x32xf32, #tpu.memory_space<vmem>>, vector<32x32xf32>,
    %c0_22 = arith.constant 0 : index
    %c0_23 = arith.constant 0 : index
    %49 = tpu.strided_load %arg16[%c0_22, %c0_23] {strides = array<i32: 2, 1>} : memref<32x32xf32, #tpu.memory_space<vmem>>, vector<16x32xf32>
    %c1_24 = arith.constant 1 : index
    %c0_25 = arith.constant 0 : index
    %50 = tpu.strided_load %arg16[%c1_24, %c0_25] {strides = array<i32: 2, 1>} : memref<32x32xf32, #tpu.memory_space<vmem>>, vector<16x32xf32>
    %51 = arith.maximumf %49, %50 : vector<16x32xf32>
    %52 = tpu.iota {dimensions = array<i32: 0>} : vector<16x1xi32>
    %c8_i32 = arith.constant 8 : i32
    %c0_i32_26 = arith.constant 0 : i32
    %53 = arith.cmpi eq, %c8_i32, %c0_i32_26 : i32
    %c1_i32_27 = arith.constant 1 : i32
    %54 = arith.select %53, %c1_i32_27, %c8_i32 : i32
    %55 = vector.broadcast %54 : i32 to vector<16x1xi32>
    %56 = arith.remsi %52, %55 : vector<16x1xi32>
    %c0_i32_28 = arith.constant 0 : i32
    %57 = vector.broadcast %c0_i32_28 : i32 to vector<16x1xi32>
    %58 = arith.cmpi ne, %56, %57 : vector<16x1xi32>
    %c0_i32_29 = arith.constant 0 : i32
    %59 = vector.broadcast %c0_i32_29 : i32 to vector<16x1xi32>
    %60 = arith.cmpi slt, %56, %59 : vector<16x1xi32>
    %c0_i32_30 = arith.constant 0 : i32
    %61 = arith.cmpi slt, %54, %c0_i32_30 : i32
    %62 = vector.broadcast %61 : i1 to vector<16x1xi1>
    %63 = vector.broadcast %62 : vector<16x1xi1> to vector<16x1xi1>
    %64 = arith.xori %60, %63 : vector<16x1xi1>
    %65 = arith.andi %64, %58 : vector<16x1xi1>
    %66 = vector.broadcast %54 : i32 to vector<16x1xi32>
    %67 = arith.addi %56, %66 : vector<16x1xi32>
    %68 = arith.select %65, %67, %56 : vector<16x1xi1>, vector<16x1xi32>
    %c0_i32_31 = arith.constant 0 : i32
    %69 = vector.broadcast %c0_i32_31 : i32 to vector<16x1xi32>
    %70 = arith.cmpi eq, %68, %69 : vector<16x1xi32>
    %c1_i32_32 = arith.constant 1 : i32
    %71 = tpu.dynamic_rotate %51 by %c1_i32_32 dim 0 : vector<16x32xf32>, i32 -> vector<16x32xf32>
    %cst_33 = arith.constant 0.000000e+00 : f32
    %72 = vector.shape_cast %70 : vector<16x1xi1> to vector<16x1xi1>
    %73 = vector.broadcast %72 : vector<16x1xi1> to vector<16x32xi1>
    %74 = vector.broadcast %cst_33 : f32 to vector<16x32xf32>
    %75 = arith.select %73, %74, %71 : vector<16x32xi1>, vector<16x32xf32>
    %c7_i32 = arith.constant 7 : i32
    %76 = vector.broadcast %c7_i32 : i32 to vector<16x1xi32>
    %77 = arith.cmpi eq, %68, %76 : vector<16x1xi32>
    %c15_i32_34 = arith.constant 15 : i32
    %78 = tpu.dynamic_rotate %51 by %c15_i32_34 dim 0 : vector<16x32xf32>, i32 -> vector<16x32xf32>
    %cst_35 = arith.constant 0.000000e+00 : f32
    %79 = vector.shape_cast %77 : vector<16x1xi1> to vector<16x1xi1>
    %80 = vector.broadcast %79 : vector<16x1xi1> to vector<16x32xi1>
    %81 = vector.broadcast %cst_35 : f32 to vector<16x32xf32>
    %82 = arith.select %80, %81, %78 : vector<16x32xi1>, vector<16x32xf32>
    %c1_36 = arith.constant 1 : index
    %c0_37 = arith.constant 0 : index
    %c0_38 = arith.constant 0 : index
    %83 = vector.load %arg3[%c1_36, %c0_37, %c0_38] : memref<3x32x64xf32, #tpu.memory_space<vmem>>, vector<1x32x64xf32>
    %84 = vector.shape_cast %83 : vector<1x32x64xf32> to vector<32x64xf32>
    %cst_39 = arith.constant dense<0.000000e+00> : vector<16x64xf32>
    %85 = tpu.matmul %51, %84, %cst_39 {dimension_numbers = #tpu.dot_dimension_numbers<[1], [0], [0], [1], [0, 0, 1, 1], [], []>, precision = #tpu.contract_precision<fp32>} : vector<16x32xf32>, vector<32x64xf32>, vector<16x64xf32> -> vector<16x64xf32>
    %c0_40 = arith.constant 0 : index
    %c0_41 = arith.constant 0 : index
    %c0_42 = arith.constant 0 : index
    %86 = vector.load %arg3[%c0_40, %c0_41, %c0_42] : memref<3x32x64xf32, #tpu.memory_space<vmem>>, vector<1x32x64xf32>
    %87 = vector.shape_cast %86 : vector<1x32x64xf32> to vector<32x64xf32>
    %cst_43 = arith.constant dense<0.000000e+00> : vector<16x64xf32>
    %88 = tpu.matmul %75, %87, %cst_43 {dimension_numbers = #tpu.dot_dimension_numbers<[1], [0], [0], [1], [0, 0, 1, 1], [], []>, precision = #tpu.contract_precision<fp32>} : vector<16x32xf32>, vector<32x64xf32>, vector<16x64xf32> -> vector<16x64xf32>
    %89 = arith.addf %85, %88 : vector<16x64xf32>
    %c2_44 = arith.constant 2 : index
    %c0_45 = arith.constant 0 : index
    %c0_46 = arith.constant 0 : index
    %90 = vector.load %arg3[%c2_44, %c0_45, %c0_46] : memref<3x32x64xf32, #tpu.memory_space<vmem>>, vector<1x32x64xf32>
    %91 = vector.shape_cast %90 : vector<1x32x64xf32> to vector<32x64xf32>
    %cst_47 = arith.constant dense<0.000000e+00> : vector<16x64xf32>
    %92 = tpu.matmul %82, %91, %cst_47 {dimension_numbers = #tpu.dot_dimension_numbers<[1], [0], [0], [1], [0, 0, 1, 1], [], []>, precision = #tpu.contract_precision<fp32>} : vector<16x32xf32>, vector<32x64xf32>, vector<16x64xf32> -> vector<16x64xf32>
    %93 = arith.addf %89, %92 : vector<16x64xf32>
    %c0_48 = arith.constant 0 : index
    %c0_49 = arith.constant 0 : index
    %94 = vector.load %arg4[%c0_48, %c0_49] : memref<1x64xf32, #tpu.memory_space<vmem>>, vector<1x64xf32>
    %95 = vector.broadcast %94 : vector<1x64xf32> to vector<16x64xf32>
    %96 = arith.addf %93, %95 : vector<16x64xf32>
    %cst_50 = arith.constant 0.000000e+00 : f32
    %97 = vector.broadcast %cst_50 : f32 to vector<16x64xf32>
    %98 = arith.maximumf %96, %97 : vector<16x64xf32>
    %c0_51 = arith.constant 0 : index
    %c0_52 = arith.constant 0 : index
    %99 = vector.load %arg17[%c0_51, %c0_52] : memref<16x64xf32, #tpu.memory_space<vmem>>, vector<16x64xf32>
    tpu.vector_store %arg17[%c0_51, %c0_52], %98 {strides = array<i32>} : memref<16x64xf32, #tpu.memory_space<vmem>>, vector<16x64xf32>,
    %c0_53 = arith.constant 0 : index
    %c0_54 = arith.constant 0 : index
    %100 = vector.load %arg5[%c0_53, %c0_54] : memref<64x192xf32, #tpu.memory_space<vmem>>, vector<64x192xf32>
    %c0_55 = arith.constant 0 : index
    %c0_56 = arith.constant 0 : index
    %101 = vector.load %arg7[%c0_55, %c0_56] : memref<1x192xf32, #tpu.memory_space<vmem>>, vector<1x192xf32>
    %c0_57 = arith.constant 0 : index
    %c0_58 = arith.constant 0 : index
    %102 = vector.load %arg6[%c0_57, %c0_58] : memref<64x192xf32, #tpu.memory_space<vmem>>, vector<64x192xf32>
    %c0_59 = arith.constant 0 : index
    %c0_60 = arith.constant 0 : index
    %103 = vector.load %arg8[%c0_59, %c0_60] : memref<1x192xf32, #tpu.memory_space<vmem>>, vector<1x192xf32>
    %c0_61 = arith.constant 0 : index
    %c0_62 = arith.constant 0 : index
    %104 = vector.load %arg9[%c0_61, %c0_62] : memref<64x384xf32, #tpu.memory_space<vmem>>, vector<64x384xf32>
    %c0_63 = arith.constant 0 : index
    %c0_64 = arith.constant 0 : index
    %105 = vector.load %arg11[%c0_63, %c0_64] : memref<1x384xf32, #tpu.memory_space<vmem>>, vector<1x384xf32>
    %c0_65 = arith.constant 0 : index
    %c0_66 = arith.constant 0 : index
    %106 = vector.load %arg10[%c0_65, %c0_66] : memref<128x384xf32, #tpu.memory_space<vmem>>, vector<128x384xf32>
    %c0_67 = arith.constant 0 : index
    %c0_68 = arith.constant 0 : index
    %107 = vector.load %arg12[%c0_67, %c0_68] : memref<1x384xf32, #tpu.memory_space<vmem>>, vector<1x384xf32>
    %c0_69 = arith.constant 0 : index
    %c0_70 = arith.constant 0 : index
    %108 = tpu.strided_load %arg17[%c0_69, %c0_70] {strides = array<i32: 8, 1>} : memref<16x64xf32, #tpu.memory_space<vmem>>, vector<2x64xf32>
    %c1_71 = arith.constant 1 : index
    %c0_72 = arith.constant 0 : index
    %109 = tpu.strided_load %arg17[%c1_71, %c0_72] {strides = array<i32: 8, 1>} : memref<16x64xf32, #tpu.memory_space<vmem>>, vector<2x64xf32>
    %110 = arith.maximumf %108, %109 : vector<2x64xf32>
    %cst_73 = arith.constant dense<0.000000e+00> : vector<2x192xf32>
    %111 = tpu.matmul %110, %100, %cst_73 {dimension_numbers = #tpu.dot_dimension_numbers<[1], [0], [0], [1], [0, 0, 1, 1], [], []>, precision = #tpu.contract_precision<fp32>} : vector<2x64xf32>, vector<64x192xf32>, vector<2x192xf32> -> vector<2x192xf32>
    %112 = vector.broadcast %101 : vector<1x192xf32> to vector<2x192xf32>
    %113 = arith.addf %111, %112 : vector<2x192xf32>
    %c2_74 = arith.constant 2 : index
    %c0_75 = arith.constant 0 : index
    %114 = tpu.strided_load %arg17[%c2_74, %c0_75] {strides = array<i32: 8, 1>} : memref<16x64xf32, #tpu.memory_space<vmem>>, vector<2x64xf32>
    %c3 = arith.constant 3 : index
    %c0_76 = arith.constant 0 : index
    %115 = tpu.strided_load %arg17[%c3, %c0_76] {strides = array<i32: 8, 1>} : memref<16x64xf32, #tpu.memory_space<vmem>>, vector<2x64xf32>
    %116 = arith.maximumf %114, %115 : vector<2x64xf32>
    %cst_77 = arith.constant dense<0.000000e+00> : vector<2x192xf32>
    %117 = tpu.matmul %116, %100, %cst_77 {dimension_numbers = #tpu.dot_dimension_numbers<[1], [0], [0], [1], [0, 0, 1, 1], [], []>, precision = #tpu.contract_precision<fp32>} : vector<2x64xf32>, vector<64x192xf32>, vector<2x192xf32> -> vector<2x192xf32>
    %118 = vector.broadcast %101 : vector<1x192xf32> to vector<2x192xf32>
    %119 = arith.addf %117, %118 : vector<2x192xf32>
    %c4 = arith.constant 4 : index
    %c0_78 = arith.constant 0 : index
    %120 = tpu.strided_load %arg17[%c4, %c0_78] {strides = array<i32: 8, 1>} : memref<16x64xf32, #tpu.memory_space<vmem>>, vector<2x64xf32>
    %c5 = arith.constant 5 : index
    %c0_79 = arith.constant 0 : index
    %121 = tpu.strided_load %arg17[%c5, %c0_79] {strides = array<i32: 8, 1>} : memref<16x64xf32, #tpu.memory_space<vmem>>, vector<2x64xf32>
    %122 = arith.maximumf %120, %121 : vector<2x64xf32>
    %cst_80 = arith.constant dense<0.000000e+00> : vector<2x192xf32>
    %123 = tpu.matmul %122, %100, %cst_80 {dimension_numbers = #tpu.dot_dimension_numbers<[1], [0], [0], [1], [0, 0, 1, 1], [], []>, precision = #tpu.contract_precision<fp32>} : vector<2x64xf32>, vector<64x192xf32>, vector<2x192xf32> -> vector<2x192xf32>
    %124 = vector.broadcast %101 : vector<1x192xf32> to vector<2x192xf32>
    %125 = arith.addf %123, %124 : vector<2x192xf32>
    %c6 = arith.constant 6 : index
    %c0_81 = arith.constant 0 : index
    %126 = tpu.strided_load %arg17[%c6, %c0_81] {strides = array<i32: 8, 1>} : memref<16x64xf32, #tpu.memory_space<vmem>>, vector<2x64xf32>
    %c7 = arith.constant 7 : index
    %c0_82 = arith.constant 0 : index
    %127 = tpu.strided_load %arg17[%c7, %c0_82] {strides = array<i32: 8, 1>} : memref<16x64xf32, #tpu.memory_space<vmem>>, vector<2x64xf32>
    %128 = arith.maximumf %126, %127 : vector<2x64xf32>
    %cst_83 = arith.constant dense<0.000000e+00> : vector<2x192xf32>
    %129 = tpu.matmul %128, %100, %cst_83 {dimension_numbers = #tpu.dot_dimension_numbers<[1], [0], [0], [1], [0, 0, 1, 1], [], []>, precision = #tpu.contract_precision<fp32>} : vector<2x64xf32>, vector<64x192xf32>, vector<2x192xf32> -> vector<2x192xf32>
    %130 = vector.broadcast %101 : vector<1x192xf32> to vector<2x192xf32>
    %131 = arith.addf %129, %130 : vector<2x192xf32>
    %cst_84 = arith.constant 0.000000e+00 : f32
    %132 = vector.broadcast %cst_84 : f32 to vector<2x64xf32>
    %cst_85 = arith.constant 0.000000e+00 : f32
    %133 = vector.broadcast %cst_85 : f32 to vector<2x128xf32>
    %cst_86 = arith.constant dense<0.000000e+00> : vector<2x192xf32>
    %134 = tpu.matmul %132, %102, %cst_86 {dimension_numbers = #tpu.dot_dimension_numbers<[1], [0], [0], [1], [0, 0, 1, 1], [], []>, precision = #tpu.contract_precision<fp32>} : vector<2x64xf32>, vector<64x192xf32>, vector<2x192xf32> -> vector<2x192xf32>
    %135 = vector.broadcast %103 : vector<1x192xf32> to vector<2x192xf32>
    %136 = arith.addf %134, %135 : vector<2x192xf32>
    %137 = vector.extract_strided_slice %113 {offsets = [0, 0], sizes = [2, 128], strides = [1, 1]} : vector<2x192xf32> to vector<2x128xf32>
    %138 = vector.extract_strided_slice %136 {offsets = [0, 0], sizes = [2, 128], strides = [1, 1]} : vector<2x192xf32> to vector<2x128xf32>
    %139 = arith.addf %137, %138 : vector<2x128xf32>
    %140 = arith.negf %139 : vector<2x128xf32>
    %141 = math.exp %140 : vector<2x128xf32>
    %cst_87 = arith.constant 1.000000e+00 : f32
    %142 = vector.broadcast %cst_87 : f32 to vector<2x128xf32>
    %143 = arith.addf %142, %141 : vector<2x128xf32>
    %144 = arith.divf %142, %143 : vector<2x128xf32>
    %145 = vector.extract_strided_slice %144 {offsets = [0, 0], sizes = [2, 64], strides = [1, 1]} : vector<2x128xf32> to vector<2x64xf32>
    %146 = vector.extract_strided_slice %144 {offsets = [0, 64], sizes = [2, 64], strides = [1, 1]} : vector<2x128xf32> to vector<2x64xf32>
    %147 = vector.extract_strided_slice %113 {offsets = [0, 128], sizes = [2, 64], strides = [1, 1]} : vector<2x192xf32> to vector<2x64xf32>
    %148 = vector.extract_strided_slice %136 {offsets = [0, 128], sizes = [2, 64], strides = [1, 1]} : vector<2x192xf32> to vector<2x64xf32>
    %149 = arith.mulf %145, %148 : vector<2x64xf32>
    %150 = arith.addf %147, %149 : vector<2x64xf32>
    %151 = math.tanh %150 : vector<2x64xf32>
    %cst_88 = arith.constant 1.000000e+00 : f32
    %152 = vector.broadcast %cst_88 : f32 to vector<2x64xf32>
    %153 = arith.subf %152, %146 : vector<2x64xf32>
    %154 = arith.mulf %153, %151 : vector<2x64xf32>
    %155 = arith.mulf %146, %132 : vector<2x64xf32>
    %156 = arith.addf %154, %155 : vector<2x64xf32>
    %cst_89 = arith.constant dense<0.000000e+00> : vector<2x192xf32>
    %157 = tpu.matmul %156, %102, %cst_89 {dimension_numbers = #tpu.dot_dimension_numbers<[1], [0], [0], [1], [0, 0, 1, 1], [], []>, precision = #tpu.contract_precision<fp32>} : vector<2x64xf32>, vector<64x192xf32>, vector<2x192xf32> -> vector<2x192xf32>
    %158 = vector.broadcast %103 : vector<1x192xf32> to vector<2x192xf32>
    %159 = arith.addf %157, %158 : vector<2x192xf32>
    %160 = vector.extract_strided_slice %119 {offsets = [0, 0], sizes = [2, 128], strides = [1, 1]} : vector<2x192xf32> to vector<2x128xf32>
    %161 = vector.extract_strided_slice %159 {offsets = [0, 0], sizes = [2, 128], strides = [1, 1]} : vector<2x192xf32> to vector<2x128xf32>
    %162 = arith.addf %160, %161 : vector<2x128xf32>
    %163 = arith.negf %162 : vector<2x128xf32>
    %164 = math.exp %163 : vector<2x128xf32>
    %cst_90 = arith.constant 1.000000e+00 : f32
    %165 = vector.broadcast %cst_90 : f32 to vector<2x128xf32>
    %166 = arith.addf %165, %164 : vector<2x128xf32>
    %167 = arith.divf %165, %166 : vector<2x128xf32>
    %168 = vector.extract_strided_slice %167 {offsets = [0, 0], sizes = [2, 64], strides = [1, 1]} : vector<2x128xf32> to vector<2x64xf32>
    %169 = vector.extract_strided_slice %167 {offsets = [0, 64], sizes = [2, 64], strides = [1, 1]} : vector<2x128xf32> to vector<2x64xf32>
    %170 = vector.extract_strided_slice %119 {offsets = [0, 128], sizes = [2, 64], strides = [1, 1]} : vector<2x192xf32> to vector<2x64xf32>
    %171 = vector.extract_strided_slice %159 {offsets = [0, 128], sizes = [2, 64], strides = [1, 1]} : vector<2x192xf32> to vector<2x64xf32>
    %172 = arith.mulf %168, %171 : vector<2x64xf32>
    %173 = arith.addf %170, %172 : vector<2x64xf32>
    %174 = math.tanh %173 : vector<2x64xf32>
    %cst_91 = arith.constant 1.000000e+00 : f32
    %175 = vector.broadcast %cst_91 : f32 to vector<2x64xf32>
    %176 = arith.subf %175, %169 : vector<2x64xf32>
    %177 = arith.mulf %176, %174 : vector<2x64xf32>
    %178 = arith.mulf %169, %156 : vector<2x64xf32>
    %179 = arith.addf %177, %178 : vector<2x64xf32>
    %cst_92 = arith.constant dense<0.000000e+00> : vector<2x384xf32>
    %180 = tpu.matmul %156, %104, %cst_92 {dimension_numbers = #tpu.dot_dimension_numbers<[1], [0], [0], [1], [0, 0, 1, 1], [], []>, precision = #tpu.contract_precision<fp32>} : vector<2x64xf32>, vector<64x384xf32>, vector<2x384xf32> -> vector<2x384xf32>
    %181 = vector.broadcast %105 : vector<1x384xf32> to vector<2x384xf32>
    %182 = arith.addf %180, %181 : vector<2x384xf32>
    %cst_93 = arith.constant dense<0.000000e+00> : vector<2x384xf32>
    %183 = tpu.matmul %133, %106, %cst_93 {dimension_numbers = #tpu.dot_dimension_numbers<[1], [0], [0], [1], [0, 0, 1, 1], [], []>, precision = #tpu.contract_precision<fp32>} : vector<2x128xf32>, vector<128x384xf32>, vector<2x384xf32> -> vector<2x384xf32>
    %184 = vector.broadcast %107 : vector<1x384xf32> to vector<2x384xf32>
    %185 = arith.addf %183, %184 : vector<2x384xf32>
    %186 = vector.extract_strided_slice %182 {offsets = [0, 0], sizes = [2, 256], strides = [1, 1]} : vector<2x384xf32> to vector<2x256xf32>
    %187 = vector.extract_strided_slice %185 {offsets = [0, 0], sizes = [2, 256], strides = [1, 1]} : vector<2x384xf32> to vector<2x256xf32>
    %188 = arith.addf %186, %187 : vector<2x256xf32>
    %189 = arith.negf %188 : vector<2x256xf32>
    %190 = math.exp %189 : vector<2x256xf32>
    %cst_94 = arith.constant 1.000000e+00 : f32
    %191 = vector.broadcast %cst_94 : f32 to vector<2x256xf32>
    %192 = arith.addf %191, %190 : vector<2x256xf32>
    %193 = arith.divf %191, %192 : vector<2x256xf32>
    %194 = vector.extract_strided_slice %193 {offsets = [0, 0], sizes = [2, 128], strides = [1, 1]} : vector<2x256xf32> to vector<2x128xf32>
    %195 = vector.extract_strided_slice %193 {offsets = [0, 128], sizes = [2, 128], strides = [1, 1]} : vector<2x256xf32> to vector<2x128xf32>
    %196 = vector.extract_strided_slice %182 {offsets = [0, 256], sizes = [2, 128], strides = [1, 1]} : vector<2x384xf32> to vector<2x128xf32>
    %197 = vector.extract_strided_slice %185 {offsets = [0, 256], sizes = [2, 128], strides = [1, 1]} : vector<2x384xf32> to vector<2x128xf32>
    %198 = arith.mulf %194, %197 : vector<2x128xf32>
    %199 = arith.addf %196, %198 : vector<2x128xf32>
    %200 = math.tanh %199 : vector<2x128xf32>
    %cst_95 = arith.constant 1.000000e+00 : f32
    %201 = vector.broadcast %cst_95 : f32 to vector<2x128xf32>
    %202 = arith.subf %201, %195 : vector<2x128xf32>
    %203 = arith.mulf %202, %200 : vector<2x128xf32>
    %204 = arith.mulf %195, %133 : vector<2x128xf32>
    %205 = arith.addf %203, %204 : vector<2x128xf32>
    %cst_96 = arith.constant dense<0.000000e+00> : vector<2x192xf32>
    %206 = tpu.matmul %179, %102, %cst_96 {dimension_numbers = #tpu.dot_dimension_numbers<[1], [0], [0], [1], [0, 0, 1, 1], [], []>, precision = #tpu.contract_precision<fp32>} : vector<2x64xf32>, vector<64x192xf32>, vector<2x192xf32> -> vector<2x192xf32>
    %207 = vector.broadcast %103 : vector<1x192xf32> to vector<2x192xf32>
    %208 = arith.addf %206, %207 : vector<2x192xf32>
    %209 = vector.extract_strided_slice %125 {offsets = [0, 0], sizes = [2, 128], strides = [1, 1]} : vector<2x192xf32> to vector<2x128xf32>
    %210 = vector.extract_strided_slice %208 {offsets = [0, 0], sizes = [2, 128], strides = [1, 1]} : vector<2x192xf32> to vector<2x128xf32>
    %211 = arith.addf %209, %210 : vector<2x128xf32>
    %212 = arith.negf %211 : vector<2x128xf32>
    %213 = math.exp %212 : vector<2x128xf32>
    %cst_97 = arith.constant 1.000000e+00 : f32
    %214 = vector.broadcast %cst_97 : f32 to vector<2x128xf32>
    %215 = arith.addf %214, %213 : vector<2x128xf32>
    %216 = arith.divf %214, %215 : vector<2x128xf32>
    %217 = vector.extract_strided_slice %216 {offsets = [0, 0], sizes = [2, 64], strides = [1, 1]} : vector<2x128xf32> to vector<2x64xf32>
    %218 = vector.extract_strided_slice %216 {offsets = [0, 64], sizes = [2, 64], strides = [1, 1]} : vector<2x128xf32> to vector<2x64xf32>
    %219 = vector.extract_strided_slice %125 {offsets = [0, 128], sizes = [2, 64], strides = [1, 1]} : vector<2x192xf32> to vector<2x64xf32>
    %220 = vector.extract_strided_slice %208 {offsets = [0, 128], sizes = [2, 64], strides = [1, 1]} : vector<2x192xf32> to vector<2x64xf32>
    %221 = arith.mulf %217, %220 : vector<2x64xf32>
    %222 = arith.addf %219, %221 : vector<2x64xf32>
    %223 = math.tanh %222 : vector<2x64xf32>
    %cst_98 = arith.constant 1.000000e+00 : f32
    %224 = vector.broadcast %cst_98 : f32 to vector<2x64xf32>
    %225 = arith.subf %224, %218 : vector<2x64xf32>
    %226 = arith.mulf %225, %223 : vector<2x64xf32>
    %227 = arith.mulf %218, %179 : vector<2x64xf32>
    %228 = arith.addf %226, %227 : vector<2x64xf32>
    %cst_99 = arith.constant dense<0.000000e+00> : vector<2x384xf32>
    %229 = tpu.matmul %179, %104, %cst_99 {dimension_numbers = #tpu.dot_dimension_numbers<[1], [0], [0], [1], [0, 0, 1, 1], [], []>, precision = #tpu.contract_precision<fp32>} : vector<2x64xf32>, vector<64x384xf32>, vector<2x384xf32> -> vector<2x384xf32>
    %230 = vector.broadcast %105 : vector<1x384xf32> to vector<2x384xf32>
    %231 = arith.addf %229, %230 : vector<2x384xf32>
    %cst_100 = arith.constant dense<0.000000e+00> : vector<2x384xf32>
    %232 = tpu.matmul %205, %106, %cst_100 {dimension_numbers = #tpu.dot_dimension_numbers<[1], [0], [0], [1], [0, 0, 1, 1], [], []>, precision = #tpu.contract_precision<fp32>} : vector<2x128xf32>, vector<128x384xf32>, vector<2x384xf32> -> vector<2x384xf32>
    %233 = vector.broadcast %107 : vector<1x384xf32> to vector<2x384xf32>
    %234 = arith.addf %232, %233 : vector<2x384xf32>
    %235 = vector.extract_strided_slice %231 {offsets = [0, 0], sizes = [2, 256], strides = [1, 1]} : vector<2x384xf32> to vector<2x256xf32>
    %236 = vector.extract_strided_slice %234 {offsets = [0, 0], sizes = [2, 256], strides = [1, 1]} : vector<2x384xf32> to vector<2x256xf32>
    %237 = arith.addf %235, %236 : vector<2x256xf32>
    %238 = arith.negf %237 : vector<2x256xf32>
    %239 = math.exp %238 : vector<2x256xf32>
    %cst_101 = arith.constant 1.000000e+00 : f32
    %240 = vector.broadcast %cst_101 : f32 to vector<2x256xf32>
    %241 = arith.addf %240, %239 : vector<2x256xf32>
    %242 = arith.divf %240, %241 : vector<2x256xf32>
    %243 = vector.extract_strided_slice %242 {offsets = [0, 0], sizes = [2, 128], strides = [1, 1]} : vector<2x256xf32> to vector<2x128xf32>
    %244 = vector.extract_strided_slice %242 {offsets = [0, 128], sizes = [2, 128], strides = [1, 1]} : vector<2x256xf32> to vector<2x128xf32>
    %245 = vector.extract_strided_slice %231 {offsets = [0, 256], sizes = [2, 128], strides = [1, 1]} : vector<2x384xf32> to vector<2x128xf32>
    %246 = vector.extract_strided_slice %234 {offsets = [0, 256], sizes = [2, 128], strides = [1, 1]} : vector<2x384xf32> to vector<2x128xf32>
    %247 = arith.mulf %243, %246 : vector<2x128xf32>
    %248 = arith.addf %245, %247 : vector<2x128xf32>
    %249 = math.tanh %248 : vector<2x128xf32>
    %cst_102 = arith.constant 1.000000e+00 : f32
    %250 = vector.broadcast %cst_102 : f32 to vector<2x128xf32>
    %251 = arith.subf %250, %244 : vector<2x128xf32>
    %252 = arith.mulf %251, %249 : vector<2x128xf32>
    %253 = arith.mulf %244, %205 : vector<2x128xf32>
    %254 = arith.addf %252, %253 : vector<2x128xf32>
    %cst_103 = arith.constant dense<0.000000e+00> : vector<2x192xf32>
    %255 = tpu.matmul %228, %102, %cst_103 {dimension_numbers = #tpu.dot_dimension_numbers<[1], [0], [0], [1], [0, 0, 1, 1], [], []>, precision = #tpu.contract_precision<fp32>} : vector<2x64xf32>, vector<64x192xf32>, vector<2x192xf32> -> vector<2x192xf32>
    %256 = vector.broadcast %103 : vector<1x192xf32> to vector<2x192xf32>
    %257 = arith.addf %255, %256 : vector<2x192xf32>
    %258 = vector.extract_strided_slice %131 {offsets = [0, 0], sizes = [2, 128], strides = [1, 1]} : vector<2x192xf32> to vector<2x128xf32>
    %259 = vector.extract_strided_slice %257 {offsets = [0, 0], sizes = [2, 128], strides = [1, 1]} : vector<2x192xf32> to vector<2x128xf32>
    %260 = arith.addf %258, %259 : vector<2x128xf32>
    %261 = arith.negf %260 : vector<2x128xf32>
    %262 = math.exp %261 : vector<2x128xf32>
    %cst_104 = arith.constant 1.000000e+00 : f32
    %263 = vector.broadcast %cst_104 : f32 to vector<2x128xf32>
    %264 = arith.addf %263, %262 : vector<2x128xf32>
    %265 = arith.divf %263, %264 : vector<2x128xf32>
    %266 = vector.extract_strided_slice %265 {offsets = [0, 0], sizes = [2, 64], strides = [1, 1]} : vector<2x128xf32> to vector<2x64xf32>
    %267 = vector.extract_strided_slice %265 {offsets = [0, 64], sizes = [2, 64], strides = [1, 1]} : vector<2x128xf32> to vector<2x64xf32>
    %268 = vector.extract_strided_slice %131 {offsets = [0, 128], sizes = [2, 64], strides = [1, 1]} : vector<2x192xf32> to vector<2x64xf32>
    %269 = vector.extract_strided_slice %257 {offsets = [0, 128], sizes = [2, 64], strides = [1, 1]} : vector<2x192xf32> to vector<2x64xf32>
    %270 = arith.mulf %266, %269 : vector<2x64xf32>
    %271 = arith.addf %268, %270 : vector<2x64xf32>
    %272 = math.tanh %271 : vector<2x64xf32>
    %cst_105 = arith.constant 1.000000e+00 : f32
    %273 = vector.broadcast %cst_105 : f32 to vector<2x64xf32>
    %274 = arith.subf %273, %267 : vector<2x64xf32>
    %275 = arith.mulf %274, %272 : vector<2x64xf32>
    %276 = arith.mulf %267, %228 : vector<2x64xf32>
    %277 = arith.addf %275, %276 : vector<2x64xf32>
    %cst_106 = arith.constant dense<0.000000e+00> : vector<2x384xf32>
    %278 = tpu.matmul %228, %104, %cst_106 {dimension_numbers = #tpu.dot_dimension_numbers<[1], [0], [0], [1], [0, 0, 1, 1], [], []>, precision = #tpu.contract_precision<fp32>} : vector<2x64xf32>, vector<64x384xf32>, vector<2x384xf32> -> vector<2x384xf32>
    %279 = vector.broadcast %105 : vector<1x384xf32> to vector<2x384xf32>
    %280 = arith.addf %278, %279 : vector<2x384xf32>
    %cst_107 = arith.constant dense<0.000000e+00> : vector<2x384xf32>
    %281 = tpu.matmul %254, %106, %cst_107 {dimension_numbers = #tpu.dot_dimension_numbers<[1], [0], [0], [1], [0, 0, 1, 1], [], []>, precision = #tpu.contract_precision<fp32>} : vector<2x128xf32>, vector<128x384xf32>, vector<2x384xf32> -> vector<2x384xf32>
    %282 = vector.broadcast %107 : vector<1x384xf32> to vector<2x384xf32>
    %283 = arith.addf %281, %282 : vector<2x384xf32>
    %284 = vector.extract_strided_slice %280 {offsets = [0, 0], sizes = [2, 256], strides = [1, 1]} : vector<2x384xf32> to vector<2x256xf32>
    %285 = vector.extract_strided_slice %283 {offsets = [0, 0], sizes = [2, 256], strides = [1, 1]} : vector<2x384xf32> to vector<2x256xf32>
    %286 = arith.addf %284, %285 : vector<2x256xf32>
    %287 = arith.negf %286 : vector<2x256xf32>
    %288 = math.exp %287 : vector<2x256xf32>
    %cst_108 = arith.constant 1.000000e+00 : f32
    %289 = vector.broadcast %cst_108 : f32 to vector<2x256xf32>
    %290 = arith.addf %289, %288 : vector<2x256xf32>
    %291 = arith.divf %289, %290 : vector<2x256xf32>
    %292 = vector.extract_strided_slice %291 {offsets = [0, 0], sizes = [2, 128], strides = [1, 1]} : vector<2x256xf32> to vector<2x128xf32>
    %293 = vector.extract_strided_slice %291 {offsets = [0, 128], sizes = [2, 128], strides = [1, 1]} : vector<2x256xf32> to vector<2x128xf32>
    %294 = vector.extract_strided_slice %280 {offsets = [0, 256], sizes = [2, 128], strides = [1, 1]} : vector<2x384xf32> to vector<2x128xf32>
    %295 = vector.extract_strided_slice %283 {offsets = [0, 256], sizes = [2, 128], strides = [1, 1]} : vector<2x384xf32> to vector<2x128xf32>
    %296 = arith.mulf %292, %295 : vector<2x128xf32>
    %297 = arith.addf %294, %296 : vector<2x128xf32>
    %298 = math.tanh %297 : vector<2x128xf32>
    %cst_109 = arith.constant 1.000000e+00 : f32
    %299 = vector.broadcast %cst_109 : f32 to vector<2x128xf32>
    %300 = arith.subf %299, %293 : vector<2x128xf32>
    %301 = arith.mulf %300, %298 : vector<2x128xf32>
    %302 = arith.mulf %293, %254 : vector<2x128xf32>
    %303 = arith.addf %301, %302 : vector<2x128xf32>
    %cst_110 = arith.constant dense<0.000000e+00> : vector<2x384xf32>
    %304 = tpu.matmul %277, %104, %cst_110 {dimension_numbers = #tpu.dot_dimension_numbers<[1], [0], [0], [1], [0, 0, 1, 1], [], []>, precision = #tpu.contract_precision<fp32>} : vector<2x64xf32>, vector<64x384xf32>, vector<2x384xf32> -> vector<2x384xf32>
    %305 = vector.broadcast %105 : vector<1x384xf32> to vector<2x384xf32>
    %306 = arith.addf %304, %305 : vector<2x384xf32>
    %cst_111 = arith.constant dense<0.000000e+00> : vector<2x384xf32>
    %307 = tpu.matmul %303, %106, %cst_111 {dimension_numbers = #tpu.dot_dimension_numbers<[1], [0], [0], [1], [0, 0, 1, 1], [], []>, precision = #tpu.contract_precision<fp32>} : vector<2x128xf32>, vector<128x384xf32>, vector<2x384xf32> -> vector<2x384xf32>
    %308 = vector.broadcast %107 : vector<1x384xf32> to vector<2x384xf32>
    %309 = arith.addf %307, %308 : vector<2x384xf32>
    %310 = vector.extract_strided_slice %306 {offsets = [0, 0], sizes = [2, 256], strides = [1, 1]} : vector<2x384xf32> to vector<2x256xf32>
    %311 = vector.extract_strided_slice %309 {offsets = [0, 0], sizes = [2, 256], strides = [1, 1]} : vector<2x384xf32> to vector<2x256xf32>
    %312 = arith.addf %310, %311 : vector<2x256xf32>
    %313 = arith.negf %312 : vector<2x256xf32>
    %314 = math.exp %313 : vector<2x256xf32>
    %cst_112 = arith.constant 1.000000e+00 : f32
    %315 = vector.broadcast %cst_112 : f32 to vector<2x256xf32>
    %316 = arith.addf %315, %314 : vector<2x256xf32>
    %317 = arith.divf %315, %316 : vector<2x256xf32>
    %318 = vector.extract_strided_slice %317 {offsets = [0, 0], sizes = [2, 128], strides = [1, 1]} : vector<2x256xf32> to vector<2x128xf32>
    %319 = vector.extract_strided_slice %317 {offsets = [0, 128], sizes = [2, 128], strides = [1, 1]} : vector<2x256xf32> to vector<2x128xf32>
    %320 = vector.extract_strided_slice %306 {offsets = [0, 256], sizes = [2, 128], strides = [1, 1]} : vector<2x384xf32> to vector<2x128xf32>
    %321 = vector.extract_strided_slice %309 {offsets = [0, 256], sizes = [2, 128], strides = [1, 1]} : vector<2x384xf32> to vector<2x128xf32>
    %322 = arith.mulf %318, %321 : vector<2x128xf32>
    %323 = arith.addf %320, %322 : vector<2x128xf32>
    %324 = math.tanh %323 : vector<2x128xf32>
    %cst_113 = arith.constant 1.000000e+00 : f32
    %325 = vector.broadcast %cst_113 : f32 to vector<2x128xf32>
    %326 = arith.subf %325, %319 : vector<2x128xf32>
    %327 = arith.mulf %326, %324 : vector<2x128xf32>
    %328 = arith.mulf %319, %303 : vector<2x128xf32>
    %329 = arith.addf %327, %328 : vector<2x128xf32>
    %c0_114 = arith.constant 0 : index
    %c0_115 = arith.constant 0 : index
    %330 = vector.load %arg13[%c0_114, %c0_115] : memref<128x128xf32, #tpu.memory_space<vmem>>, vector<128x128xf32>
    %cst_116 = arith.constant dense<0.000000e+00> : vector<2x128xf32>
    %331 = tpu.matmul %329, %330, %cst_116 {dimension_numbers = #tpu.dot_dimension_numbers<[1], [0], [0], [1], [0, 0, 1, 1], [], []>, precision = #tpu.contract_precision<fp32>} : vector<2x128xf32>, vector<128x128xf32>, vector<2x128xf32> -> vector<2x128xf32>
    %c0_117 = arith.constant 0 : index
    %c0_118 = arith.constant 0 : index
    %332 = vector.load %arg14[%c0_117, %c0_118] : memref<1x128xf32, #tpu.memory_space<vmem>>, vector<1x128xf32>
    %333 = vector.broadcast %332 : vector<1x128xf32> to vector<2x128xf32>
    %334 = arith.addf %331, %333 : vector<2x128xf32>
    %c0_119 = arith.constant 0 : index
    %c0_120 = arith.constant 0 : index
    %335 = vector.load %arg15[%c0_119, %c0_120] : memref<2x128xf32, #tpu.memory_space<vmem>>, vector<2x128xf32>
    tpu.vector_store %arg15[%c0_119, %c0_120], %334 {strides = array<i32>} : memref<2x128xf32, #tpu.memory_space<vmem>>, vector<2x128xf32>,
    return
  }
}

</mosaic_0001>

<bundles_post_ra>
// kernel: cnn_gru_forward.1
= control target key start
LH: loop header
LB: loop body
LE: loop exit
PB: predicated region body
PF: predicated region fallthrough
CT: control target
= control target key end

     0   :  { %20 = vsyncpa [#allocation5], 0  ;;  %s32270_s0 = inlined_call_operand.vmem [shape: f32[32,23], index: 0, kind: input, shape index: {}]   ;;  %s32271_s1 = inlined_call_operand.hbm [shape: f32[3,23,32], index: 1, kind: input, shape index: {}]   ;;  %s32272_s2 = inlined_call_operand.vmem [shape: f32[1,32], index: 2, kind: input, shape index: {}]   ;;  %s32273_s3 = inlined_call_operand.hbm [shape: f32[3,32,64], index: 3, kind: input, shape index: {}]   ;;  %s32274_s4 = inlined_call_operand.hbm [shape: f32[1,64], index: 4, kind: input, shape index: {}]   ;;  %s32275_s5 = inlined_call_operand.hbm [shape: f32[64,192], index: 5, kind: input, shape index: {}]   ;;  %s32276_s6 = inlined_call_operand.hbm [shape: f32[64,192], index: 6, kind: input, shape index: {}]   ;;  %s32277_s7 = inlined_call_operand.vmem [shape: f32[1,192], index: 7, kind: input, shape index: {}]   ;;  %s32278_s8 = inlined_call_operand.vmem [shape: f32[1,192], index: 8, kind: input, shape index: {}]   ;;  %s32279_s9 = inlined_call_operand.hbm [shape: f32[64,384], index: 9, kind: input, shape index: {}]   ;;  %s32280_s10 = inlined_call_operand.hbm [shape: f32[128,384], index: 10, kind: input, shape index: {}]   ;;  %s32281_s11 = inlined_call_operand.vmem [shape: f32[1,384], index: 11, kind: input, shape index: {}]   ;;  %s32282_s12 = inlined_call_operand.vmem [shape: f32[1,384], index: 12, kind: input, shape index: {}]   ;;  %s32283_s13 = inlined_call_operand.hbm [shape: f32[128,128], index: 13, kind: input, shape index: {}]   ;;  %s32284_s14 = inlined_call_operand.vmem [shape: f32[1,128], index: 14, kind: input, shape index: {}]   ;;  %s32285_s15 = inlined_call_operand.hbm [shape: f32[2,128], index: 15, kind: output, shape index: {}]  }
   0x1   :  { %21 = vsyncpa [#allocation8], 0 }
   0x2   :  { %22 = vsyncpa [#allocation11], 0 }
   0x3   :  { %23 = vsyncpa [#allocation14], 0 }
   0x4   :  { %24 = vsyncpa [#allocation17], 0 }
   0x5   :  { %25 = vsyncpa [#allocation6], 0  ;;  %s27454_s18 = smov [#allocation7]   ;;  %s27455_s20 = smov [#allocation10]  }
   0x6   :  { %s47_s19 = sshll.u32 %s27454_s18, 4  ;;  %s69_s21 = sshll.u32 %s27455_s20, 4  ;;  %s48_s19 = int_to_ptr.vmem [resolvable:$true] %s47_s19  ;;  %s27553_s21 = int_to_ptr.vmem [resolvable:$true] %s69_s21 }
   0x7   :  { %s27244_s24 = scalar_lea.hbm %s32273_s3, 1536 }
   0x8   :  { %p27245_p0 = scmp.ne.s32.totalorder %s32273_s3, %s27244_s24  ;;  %p27248_p1 = scmp.lt.u32.totalorder %s27244_s24, %s32273_s3 }
   0xa   :  { %p27250_p2 = pnand %p27248_p1, %p27245_p0 }
   0xc   :  { %27253 = shalt.err (!%p27250_p2)
}
   0xd   :  { %s27254_s29 = scalar_lea.vmem %s48_s19, 1536  ;;  %p27259_p4 = scmp.lt.s32.totalorder %s48_s19, %s48_s19 }
   0xe   :  { %p27255_p3 = scmp.ne.s32.totalorder %s48_s19, %s27254_s29  ;;  %p27260_p5 = scmp.lt.s32.totalorder %s27254_s29, %s27254_s29 }
  0x10   :  { %p27261_p6 = por %p27260_p5, %p27259_p4 }
  0x12   :  { %p27262_p7 = pnand %p27261_p6, %p27255_p3 }
  0x14   :  { %27265 = shalt.err (!%p27262_p7)
}
  0x15   :  { %s32286_s30 = smov 128   ;;  %s27457_s16 = smov 8  }
  0x16   :  { %53 = dma.hbm_to_vmem [thread:$0]  %s32273_s3, 1536, %s48_s19, [#allocation8], %s32286_s30, %s32286_s30, %s27457_s16  }
  0x17   :  { %s27266_s23 = scalar_lea.hbm %s32275_s5, 2048 }
  0x18   :  { %p27267_p8 = scmp.ne.s32.totalorder %s32275_s5, %s27266_s23  ;;  %p27270_p9 = scmp.lt.u32.totalorder %s27266_s23, %s32275_s5 }
  0x1a   :  { %p27272_p10 = pnand %p27270_p9, %p27267_p8 }
  0x1c   :  { %27275 = shalt.err (!%p27272_p10)
}
  0x1d   :  { %s27276_s28 = scalar_lea.vmem %s27553_s21, 2048  ;;  %p27281_p12 = scmp.lt.s32.totalorder %s27553_s21, %s27553_s21 }
  0x1e   :  { %p27277_p11 = scmp.ne.s32.totalorder %s27553_s21, %s27276_s28  ;;  %p27282_p13 = scmp.lt.s32.totalorder %s27276_s28, %s27276_s28 }
  0x20   :  { %p27283_p0 = por %p27282_p13, %p27281_p12 }
  0x22   :  { %p27284_p1 = pnand %p27283_p0, %p27277_p11 }
  0x24   :  { %27287 = shalt.err (!%p27284_p1)
}
  0x25   :  { %s32288_s3 = smov 256   ;;  %s32289_s19 = smov 16  }
  0x26   :  { %75 = dma.hbm_to_vmem [thread:$0]  %s32275_s5, 2048, %s27553_s21, [#allocation11], %s32288_s3, %s32288_s3, %s32289_s19  }
  0x27   :  { %s27460_s18 = smov [#allocation13]   ;;  %s27288_s24 = scalar_lea.hbm %s32279_s9, 3072 }
  0x28   :  { %s97_s20 = sshll.u32 %s27460_s18, 4  ;;  %p27289_p2 = scmp.ne.s32.totalorder %s32279_s9, %s27288_s24  ;;  %s98_s20 = int_to_ptr.vmem [resolvable:$true] %s97_s20 }
  0x29   :  { %p27292_p3 = scmp.lt.u32.totalorder %s27288_s24, %s32279_s9 }
  0x2b   :  { %p27294_p4 = pnand %p27292_p3, %p27289_p2 }
  0x2d   :  { %27297 = shalt.err (!%p27294_p4)
}
  0x2e   :  { %s27298_s30 = scalar_lea.vmem %s98_s20, 3072  ;;  %p27303_p6 = scmp.lt.s32.totalorder %s98_s20, %s98_s20 }
  0x2f   :  { %p27299_p5 = scmp.ne.s32.totalorder %s98_s20, %s27298_s30  ;;  %p27304_p7 = scmp.lt.s32.totalorder %s27298_s30, %s27298_s30 }
  0x31   :  { %p27305_p8 = por %p27304_p7, %p27303_p6 }
  0x33   :  { %p27306_p9 = pnand %p27305_p8, %p27299_p5 }
  0x35   :  { %27309 = shalt.err (!%p27306_p9)
}
  0x36   :  { %s27461_s5 = smov 384   ;;  %s27462_s21 = smov 24  }
  0x37   :  { %103 = dma.hbm_to_vmem [thread:$0]  %s32279_s9, 3072, %s98_s20, [#allocation14], %s27461_s5, %s27461_s5, %s27462_s21  }
  0x38   :  { %s27463_s18 = smov [#allocation4]   ;;  %s27464_s23 = smov [#allocation9]  }
  0x39   :  { %s33_s22 = sshll.u32 %s27463_s18, 4  ;;  %s60_s24 = sshll.u32 %s27464_s23, 4  ;;  %s34_s22 = int_to_ptr.vmem [resolvable:$true] %s33_s22  ;;  %s61_s24 = int_to_ptr.vmem [resolvable:$true] %s60_s24 }
  0x3a   :  { %s27310_s30 = scalar_lea.hbm %s32271_s1, 1152 }
  0x3b   :  { %p27311_p10 = scmp.ne.s32.totalorder %s32271_s1, %s27310_s30  ;;  %p27314_p11 = scmp.lt.u32.totalorder %s27310_s30, %s32271_s1 }
  0x3d   :  { %p27316_p12 = pnand %p27314_p11, %p27311_p10 }
  0x3f   :  { %27319 = shalt.err (!%p27316_p12)
}
  0x40   :  { %s27320_s9 = scalar_lea.vmem %s34_s22, 1152  ;;  %p27325_p0 = scmp.lt.s32.totalorder %s34_s22, %s34_s22 }
  0x41   :  { %p27321_p13 = scmp.ne.s32.totalorder %s34_s22, %s27320_s9  ;;  %p27326_p1 = scmp.lt.s32.totalorder %s27320_s9, %s27320_s9 }
  0x43   :  { %p27327_p2 = por %p27326_p1, %p27325_p0 }
  0x45   :  { %p27328_p3 = pnand %p27327_p2, %p27321_p13 }
  0x47   :  { %27331 = shalt.err (!%p27328_p3)
}
  0x48   :  { %s32765_s20 = smov 128   ;;  %s27332_s19 = scalar_lea.hbm %s32274_s4, 16 }
  0x49   :  { %39 = dma.hbm_to_vmem [thread:$0]  %s32271_s1, 1152, %s34_s22, [#allocation5], %s32765_s20, %s32765_s20, %s27457_s16  }
  0x4a   :  { %p27333_p4 = scmp.ne.s32.totalorder %s32274_s4, %s27332_s19  ;;  %p27336_p5 = scmp.lt.u32.totalorder %s27332_s19, %s32274_s4 }
  0x4c   :  { %p27338_p6 = pnand %p27336_p5, %p27333_p4 }
  0x4e   :  { %27341 = shalt.err (!%p27338_p6)
}
  0x4f   :  { %s27342_s27 = scalar_lea.vmem %s61_s24, 16  ;;  %s27346_s28 = scalar_lea.vmem %s61_s24, 32 }
  0x50   :  { %p27343_p7 = scmp.ne.s32.totalorder %s61_s24, %s27342_s27  ;;  %p27347_p8 = scmp.lt.s32.totalorder %s61_s24, %s61_s24 }
  0x51   :  { %p27348_p9 = scmp.lt.s32.totalorder %s27346_s28, %s27342_s27 }
  0x53   :  { %p27349_p10 = por %p27348_p9, %p27347_p8 }
  0x55   :  { %p27350_p11 = pnand %p27349_p10, %p27343_p7 }
  0x57   :  { %27353 = shalt.err (!%p27350_p11)
}
  0x58   :  { %63 = dma.hbm_to_vmem [thread:$0]  %s32274_s4, 16, %s61_s24, [#allocation8]  }
  0x59   :  { %s27465_s9 = smov [#allocation12]   ;;  %s27466_s17 = smov [#allocation15]  }
  0x5a   :  { %s81_s29 = sshll.u32 %s27465_s9, 4  ;;  %s109_s18 = sshll.u32 %s27466_s17, 4  ;;  %s82_s29 = int_to_ptr.vmem [resolvable:$true] %s81_s29  ;;  %s110_s18 = int_to_ptr.vmem [resolvable:$true] %s109_s18 }
  0x5b   :  { %s27354_s23 = scalar_lea.hbm %s32276_s6, 2048 }
  0x5c   :  { %p27355_p12 = scmp.ne.s32.totalorder %s32276_s6, %s27354_s23  ;;  %p27358_p13 = scmp.lt.u32.totalorder %s27354_s23, %s32276_s6 }
  0x5e   :  { %p27360_p0 = pnand %p27358_p13, %p27355_p12 }
  0x60   :  { %27363 = shalt.err (!%p27360_p0)
}
  0x61   :  { %s27364_s4 = scalar_lea.vmem %s82_s29, 2048  ;;  %p27369_p2 = scmp.lt.s32.totalorder %s82_s29, %s82_s29 }
  0x62   :  { %p27365_p1 = scmp.ne.s32.totalorder %s82_s29, %s27364_s4  ;;  %p27370_p3 = scmp.lt.s32.totalorder %s27364_s4, %s27364_s4 }
  0x64   :  { %p27371_p4 = por %p27370_p3, %p27369_p2 }
  0x66   :  { %p27372_p5 = pnand %p27371_p4, %p27365_p1 }
  0x68   :  { %27375 = shalt.err (!%p27372_p5)
}
  0x69   :  { %s32766_s24 = smov 16   ;;  %s32767_s28 = smov 256  }
  0x6a   :  { %87 = dma.hbm_to_vmem [thread:$0]  %s32276_s6, 2048, %s82_s29, [#allocation11], %s32767_s28, %s32767_s28, %s32766_s24  }
  0x6b   :  { %s27376_s3 = scalar_lea.hbm %s32280_s10, 6144 }
  0x6c   :  { %p27377_p6 = scmp.ne.s32.totalorder %s32280_s10, %s27376_s3  ;;  %p27380_p7 = scmp.lt.u32.totalorder %s27376_s3, %s32280_s10 }
  0x6e   :  { %p27382_p8 = pnand %p27380_p7, %p27377_p6 }
  0x70   :  { %27385 = shalt.err (!%p27382_p8)
}
  0x71   :  { %s27386_s30 = scalar_lea.vmem %s110_s18, 6144  ;;  %p27391_p10 = scmp.lt.s32.totalorder %s110_s18, %s110_s18 }
  0x72   :  { %p27387_p9 = scmp.ne.s32.totalorder %s110_s18, %s27386_s30  ;;  %p27392_p11 = scmp.lt.s32.totalorder %s27386_s30, %s27386_s30 }
  0x74   :  { %p27393_p12 = por %p27392_p11, %p27391_p10 }
  0x76   :  { %p27394_p13 = pnand %p27393_p12, %p27387_p9 }
  0x78   :  { %27397 = shalt.err (!%p27394_p13)
}
  0x79   :  { %115 = dma.hbm_to_vmem [thread:$0]  %s32280_s10, 6144, %s110_s18, [#allocation14], %s27461_s5, %s27461_s5, %s27462_s21  }
  0x7a   :  { %s27467_s27 = smov [#allocation16]   ;;  %s27398_s1 = scalar_lea.hbm %s32283_s13, 2048 }
  0x7b   :  { %s125_s4 = sshll.u32 %s27467_s27, 4  ;;  %p27399_p0 = scmp.ne.s32.totalorder %s32283_s13, %s27398_s1  ;;  %s126_s4 = int_to_ptr.vmem [resolvable:$true] %s125_s4 }
  0x7c   :  { %p27402_p1 = scmp.lt.u32.totalorder %s27398_s1, %s32283_s13 }
  0x7e   :  { %p27404_p2 = pnand %p27402_p1, %p27399_p0 }
  0x80   :  { %27407 = shalt.err (!%p27404_p2)
}
  0x81   :  { %s27408_s19 = scalar_lea.vmem %s126_s4, 2048  ;;  %p27413_p4 = scmp.lt.s32.totalorder %s126_s4, %s126_s4 }
  0x82   :  { %p27409_p3 = scmp.ne.s32.totalorder %s126_s4, %s27408_s19  ;;  %p27414_p5 = scmp.lt.s32.totalorder %s27408_s19, %s27408_s19 }
  0x84   :  { %p27415_p6 = por %p27414_p5, %p27413_p4 }
  0x86   :  { %p27416_p7 = pnand %p27415_p6, %p27409_p3 }
  0x88   :  { %27419 = shalt.err (!%p27416_p7)
}
  0x89   :  { %131 = dma.hbm_to_vmem [thread:$0]  %s32283_s13, 2048, %s126_s4, [#allocation17], %s32765_s20, %s32765_s20, %s27457_s16  }
  0x8a   :  { %27442 = dma.done.wait [#allocation5], 1152  }
  0x8b   :  { %27443 = vsyncadd [#allocation5], 4294966144 }
  0x8c   :  { %27444 = dma.done.wait [#allocation8], 1552  }
  0x8d   :  { %27445 = vsyncadd [#allocation8], 4294965744 }
  0x8e   :  { %27446 = dma.done.wait [#allocation11], 4096  }
  0x8f   :  { %27447 = vsyncadd [#allocation11], 4294963200 }
  0x90   :  { %27448 = dma.done.wait [#allocation14], 9216  }
  0x91   :  { %27449 = vsyncadd [#allocation14], 4294958080 }
  0x92   :  { %27450 = dma.done.wait [#allocation17], 2048  }
  0x93   :  { %27451 = vsyncadd [#allocation17], 4294965248  ;;  %v162_v0 = vlaneseq  ;;  %vm285_vm0 = vcmask 1046528   ;;  %vm272_vm2 = vcmask 187392   ;;  %v269_v4 = vld [vmem:[#allocation4] sm:$0xff]  ;;  %v270_v5 = vld [vmem:[#allocation4 + $0x8] sm:$0xff] }
  0x94   :  { %v271_v6 = vld [vmem:[#allocation4 + $0x10] sm:$0x7f]  ;;  %v290_v9 = vand.u32 4294901760, %v269_v4  ;;  %v293_v10 = vand.u32 4294901760, %v270_v5  ;;  %v27695_v13 = vld [vmem:[%s32270_s0 + $0x18] sm:$0xff]  ;;  %v27700_v14 = vld [vmem:[%s32270_s0 + $0x8] sm:$0xff] }
  0x95   :  { %v27677_v1 = vshrl.u32 %v162_v0, 7  ;;  %v287_v11 = vsel %vm285_vm0, %v271_v6, 0  ;;  %v27690_v12 = vld [vmem:[%s32270_s0] sm:$0xff]  ;;  %v222_v17 = vrot.slane %v27695_v13, 7  ;;  %v220_v18 = vrot.slane %v27700_v14, 7  ;;  %v27710_v19 = vld [vmem:[%s32270_s0 + $0x10] sm:$0xff] }
  0x96   :  { %v27702_v15 = vand.u32 4294901760, %v287_v11  ;;  %v219_v16 = vrot.slane %v27690_v12, 7  ;;  %v27712_v20 = vpack.c.bf16 %v293_v10, %v290_v9  ;;  %v27714_v21 = vsub.f32 %v269_v4, %v290_v9  ;;  %s27472_s1 = smov [#allocation18]  }
  0x97   :  { %32768 = vst [vmem:[#allocation25_spill] sm:$0xff] %v27677_v1  ;;  %v171_v2 = vand.u32 15, %v27677_v1  ;;  %v165_v3 = vadd.s32 16, %v27677_v1  ;;  %vm223_vm1 = vcmp.lt.s32.totalorder %v27677_v1, 1  ;;  %v27716_v22 = vsub.f32 %v270_v5, %v293_v10  ;;  %s20752_s22 = sshll.u32 %s27472_s1, 4  ;;  %s20753_s22 = int_to_ptr.vmem [resolvable:$true] %s20752_s22 }
  0x98   :  { %v227_v23 = vsel %vm223_vm1, %v222_v17, %v219_v16  ;;  %v226_v24 = vsel %vm223_vm1, %v219_v16, %v220_v18  ;;  %v221_v26 = vrot.slane %v27710_v19, 7  ;;  %23661 = vmatprep.subr.bf16.mxu0 %v27712_v20  ;;  %v400_v28 = vand.u32 4294901760, %v27714_v21  ;;  %s27420_s9 = scalar_lea.vmem %s20753_s22, 32  ;;  %p27425_p9 = scmp.lt.s32.totalorder %s20753_s22, %s20753_s22 }
  0x99   :  { %vm27682_vm3 = vcmp.eq.s32.totalorder %v171_v2, 0  ;;  %v185_v8 = vand.u32 15, %v165_v3  ;;  %v407_v29 = vand.u32 4294901760, %v27716_v22  ;;  %v277_v30 = vsel %vm272_vm2, %v226_v24, 0  ;;  %23663 = vmatpush3.bf16.msra.mxu0 %v27712_v20  ;;  %p27421_p8 = scmp.ne.s32.totalorder %s20753_s22, %s27420_s9  ;;  %p27426_p10 = scmp.lt.s32.totalorder %s27420_s9, %s27420_s9 }
  0x9a   :  { %v236_v27 = vsel %vm27682_vm3, 0.0, %v227_v23  ;;  %v27735_v32 = vand.u32 4294901760, %v277_v30  ;;  %v225_v33 = vsel %vm223_vm1, %v220_v18, %v221_v26  ;;  %v27740_v34 = vsub.f32 %v287_v11, %v27702_v15  ;;  %21744 = vmatprep.subr.mxu0 %v27702_v15 }
  0x9b   :  { %vm27722_vm4 = vcmp.eq.s32.totalorder %v185_v8, 0  ;;  %v274_v31 = vsel %vm272_vm2, %v236_v27, 0  ;;  %v401_v36 = vsub.f32 %v27714_v21, %v400_v28  ;;  %v408_v37 = vsub.f32 %v27716_v22, %v407_v29  ;;  %p27427_p11 = por %p27426_p10, %p27425_p9 }
  0x9c   :  { %v27743_v35 = vand.u32 4294901760, %v274_v31  ;;  %v238_v38 = vsel %vm27722_vm4, 0.0, %v225_v33  ;;  %v27754_v39 = vsub.f32 %v277_v30, %v27735_v32  ;;  %v27758_v41 = vand.u32 4294901760, %v27740_v34  ;;  %v266_v33 = vld [vmem:[#allocation4 + $0x18] sm:$0xff] }
  0x9d   :  { %v280_v40 = vsel %vm272_vm2, %v238_v38, 0  ;;  %v224_v42 = vsel %vm223_vm1, %v221_v26, %v222_v17  ;;  %v402_v44 = vand.u32 4294901760, %v401_v36  ;;  %v409_v45 = vand.u32 4294901760, %v408_v37  ;;  %21745 = vmatpush3.msra.mxu0 %v27702_v15  ;;  %p27428_p12 = pnand %p27427_p11, %p27421_p8 }
  0x9e   :  { %v27763_v43 = vsub.f32 %v274_v31, %v27743_v35  ;;  %v27765_v46 = vand.u32 4294901760, %v280_v40  ;;  %v369_v47 = vand.u32 4294901760, %v27754_v39  ;;  %v283_v48 = vsel %vm272_vm2, %v224_v42, 0 }
  0x9f   :  { %v23664_v50 = vpack.c.bf16 %v409_v45, %v402_v44  ;;  %v27774_v52 = vand.u32 4294901760, %v283_v48  ;;  %v415_v54 = vsub.f32 %v27740_v34, %v27758_v41  ;;  %v23668_v3 = vpack.c.bf16 %v27716_v22, %v27714_v21  ;;  %v268_v22 = vld [vmem:[#allocation4 + $0x28] sm:$0x7f] }
  0xa0   :  { %v359_v49 = vand.u32 4294901760, %v27763_v43  ;;  %v27772_v51 = vsub.f32 %v280_v40, %v27765_v46  ;;  %v370_v53 = vsub.f32 %v27754_v39, %v369_v47  ;;  %v27798_v4 = vadd.s32 8, %v27677_v1 }
  0xa1   :  { %23665 = vmatprep.subr.bf16.mxu0 %v23664_v50  ;;  %v27786_v57 = vsub.f32 %v283_v48, %v27774_v52  ;;  %v416_v62 = vand.u32 4294901760, %v415_v54  ;;  %v246_v6 = vrot.slane %v27710_v19, 1  ;;  %v166_v7 = vadd.s32 24, %v27677_v1 }
  0xa2   :  { %v360_v55 = vsub.f32 %v27763_v43, %v359_v49  ;;  %v379_v56 = vand.u32 4294901760, %v27772_v51  ;;  %v371_v58 = vand.u32 4294901760, %v370_v53  ;;  %v178_v5 = vand.u32 15, %v27798_v4 }
  0xa3   :  { %v389_v61 = vand.u32 4294901760, %v27786_v57  ;;  %v244_v8 = vrot.slane %v27690_v12, 1  ;;  %vm248_vm5 = vcmp.lt.s32.totalorder %v27677_v1, 7  ;;  %v245_v9 = vrot.slane %v27700_v14, 1 }
  0xa4   :  { %v361_v59 = vand.u32 4294901760, %v360_v55  ;;  %v380_v60 = vsub.f32 %v27772_v51, %v379_v56  ;;  %vm241_vm6 = vcmp.eq.s32.totalorder %v178_v5, 15  ;;  %v247_v10 = vrot.slane %v27695_v13, 1 }
  0xa5   :  { %v390_v0 = vsub.f32 %v27786_v57, %v389_v61  ;;  %v251_v11 = vsel %vm248_vm5, %v244_v8, %v245_v9  ;;  %v250_v16 = vsel %vm248_vm5, %v245_v9, %v246_v6  ;;  %v192_v17 = vand.u32 15, %v166_v7  ;;  %v1508_v9 = vld [vmem:[#allocation4 + $0x38] sm:$0xff] }
  0xa6   :  { %21746 = vmatprep.mubr.f32.mxu0 %v361_v59  ;;  %v381_v63 = vand.u32 4294901760, %v380_v60  ;;  %v27817_v18 = vsel %vm272_vm2, %v251_v11, 0  ;;  %v262_v23 = vsel %vm241_vm6, 0.0, %v250_v16  ;;  %v249_v24 = vsel %vm248_vm5, %v246_v6, %v247_v10  ;;  %v1509_v16 = vld [vmem:[#allocation4 + $0x40] sm:$0x7f] }
  0xa7   :  { %21747 = vmatmul.mubr.f32.vlgmr.msra.gmra.mrb[0].mxu0 %v371_v58  ;;  %v391_v2 = vand.u32 4294901760, %v390_v0  ;;  %v27824_v25 = vsel %vm272_vm2, %v262_v23, 0  ;;  %v27827_v26 = vsel %vm272_vm2, %v249_v24, 0  ;;  %vm243_vm7 = vcmp.eq.s32.totalorder %v192_v17, 15 }
  0xa8   :  { %23667 = vmatpush3.bf16.msra.mxu0 %v23664_v50  ;;  %21749 = vmatprep.mubr.f32.mxu0 %v381_v63  ;;  %v252_v27 = vsel %vm248_vm5, %v247_v10, %v244_v8  ;;  %v23676_v31 = vpack.c.bf16 %v407_v29, %v400_v28  ;;  %v906_v37 = vand.u32 4294901760, %v266_v33  ;;  %v891_v21 = vsel %vm272_vm2, %v27690_v12, 0  ;;  %v1507_v8 = vld [vmem:[#allocation4 + $0x30] sm:$0xff] }
  0xa9   :  { %21756 = vmatprep.subr.mxu0 %v416_v62  ;;  %v264_v30 = vsel %vm243_vm7, 0.0, %v252_v27  ;;  %v27853_v28 = vand.u32 4294901760, %v891_v21  ;;  %v894_v29 = vsel %vm272_vm2, %v27700_v14, 0  ;;  %v897_v12 = vsel %vm272_vm2, %v27710_v19, 0 }
  0xaa   :  { %v27841_v36 = vsel %vm272_vm2, %v264_v30, 0  ;;  %v27858_v40 = vsub.f32 %v266_v33, %v906_v37  ;;  %v27874_v44 = vand.u32 4294901760, %v897_v12  ;;  %v900_v45 = vsel %vm272_vm2, %v27695_v13, 0 }
  0xab   :  { %21750 = vmatmul.mubr.f32.gmra.mrb[2].mxu0 %v391_v2  ;;  %v27872_v14 = vsub.f32 %v891_v21, %v27853_v28  ;;  %v1526_v10 = vand.u32 4294901760, %v1507_v8  ;;  %v1529_v11 = vand.u32 4294901760, %v1508_v9  ;;  %v27944_v17 = vand.u32 4294901760, %v27817_v18 }
  0xac   :  { %21757 = vmatpush3.msra.mxu0 %v416_v62  ;;  %21758 = vmatprep.mubr.f32.mxu0 %v27743_v35  ;;  %v27893_v50 = vsub.f32 %v897_v12, %v27874_v44  ;;  %v1523_v27 = vsel %vm285_vm0, %v1509_v16, 0  ;;  %v27952_v30 = vand.u32 4294901760, %v27824_v25  ;;  %v27960_v33 = vand.u32 4294901760, %v27827_v26 }
  0xad   :  { %23669 = vmatprep.subr.bf16.mxu0 %v23668_v3  ;;  %v975_v13 = vand.u32 4294901760, %v27872_v14  ;;  %v27946_v23 = vsub.f32 %v1507_v8, %v1526_v10  ;;  %v27948_v24 = vsub.f32 %v1508_v9, %v1529_v11  ;;  %vm2145_vm8 = vcmask 261120  }
  0xae   :  { %v995_v58 = vand.u32 4294901760, %v27893_v50  ;;  %v27970_v21 = vsub.f32 %v27824_v25, %v27952_v30  ;;  %vm3836_vm13 = vcmask 523264   ;;  %vm27471_vm14 = vmmov 0  }
  0xaf   :  { %21759 = vmatmul.mubr.f32.vlgmr.msra.gmra.mrb[0].mxu0 %v27735_v32 }
  0xb0   :  { %23671 = vmatpush3.bf16.msra.mxu0 %v23668_v3  ;;  %21761 = vmatprep.mubr.f32.mxu0 %v27765_v46 }
  0xb1   :  { %21768 = vmatprep.subr.mxu0 %v27740_v34 }
  0xb3   :  { %21762 = vmatmul.mubr.f32.gmra.mrb[2].mxu0 %v27774_v52 }
  0xb4   :  { %21769 = vmatpush3.msra.mxu0 %v27740_v34  ;;  %21770 = vmatprep.mubr.f32.mxu0 %v27763_v43  ;;  %v267_v34 = vld [vmem:[#allocation4 + $0x20] sm:$0xff]  ;;  %v27867_v43 = vand.u32 4294901760, %v894_v29 }
  0xb5   :  { %23673 = vmatprep.subr.bf16.mxu0 %v27712_v20  ;;  %v909_v38 = vand.u32 4294901760, %v267_v34 }
  0xb7   :  { %21771 = vmatmul.mubr.f32.vlgmr.msra.gmra.mrb[0].mxu0 %v27754_v39  ;;  %v27860_v42 = vsub.f32 %v267_v34, %v909_v38  ;;  %v903_v39 = vsel %vm285_vm0, %v268_v22, 0  ;;  %v27963_v34 = vand.u32 4294901760, %v1523_v27 }
  0xb8   :  { %23675 = vmatpush3.bf16.msra.mxu0 %v27712_v20  ;;  %21773 = vmatprep.mubr.f32.mxu0 %v27772_v51  ;;  %v27879_v19 = vand.u32 4294901760, %v903_v39  ;;  %v27896_v51 = vpack.c.bf16 %v909_v38, %v906_v37  ;;  %v1636_v37 = vand.u32 4294901760, %v27946_v23  ;;  %v1643_v38 = vand.u32 4294901760, %v27948_v24 }
  0xb9   :  { %21780 = vmatprep.subr.mxu0 %v27702_v15  ;;  %v1023_v48 = vand.u32 4294901760, %v27860_v42  ;;  %v23692_v7 = vpack.c.bf16 %v27860_v42, %v27858_v40  ;;  %v1649_v12 = vsub.f32 %v1523_v27, %v27963_v34 }
  0xba   :  { %v1637_v25 = vsub.f32 %v27946_v23, %v1636_v37 }
  0xbb   :  { %21774 = vmatmul.mubr.f32.gmra.mrb[2].mxu0 %v27786_v57  ;;  %v1024_v54 = vsub.f32 %v27860_v42, %v1023_v48  ;;  %v976_v57 = vsub.f32 %v27872_v14, %v975_v13  ;;  %v1644_v42 = vsub.f32 %v27948_v24, %v1643_v38 }
  0xbc   :  { %21781 = vmatpush3.msra.mxu0 %v27702_v15  ;;  %21782 = vmatprep.mubr.f32.mxu0 %v359_v49  ;;  %v27887_v49 = vand.u32 4294901760, %v900_v45 }
  0xbd   :  { %23677 = vmatprep.subr.bf16.mxu0 %v23676_v31  ;;  %v1025_v60 = vand.u32 4294901760, %v1024_v54 }
  0xbf   :  { %21783 = vmatmul.mubr.f32.vlgmr.msra.gmra.mrb[0].mxu0 %v369_v47  ;;  %v1016_v47 = vand.u32 4294901760, %v27858_v40 }
  0xc0   :  { %23679 = vmatpush3.bf16.msra.mxu0 %v23676_v31  ;;  %21785 = vmatprep.mubr.f32.mxu0 %v379_v56  ;;  %v27908_v56 = vsub.f32 %v900_v45, %v27887_v49  ;;  %v27957_v31 = vsub.f32 %v27817_v18, %v27944_v17  ;;  %v27973_v18 = vand.u32 4294901760, %v27841_v36 }
  0xc1   :  { %21792 = vmatprep.subr.mxu0 %v27758_v41  ;;  %v1017_v53 = vsub.f32 %v27858_v40, %v1016_v47  ;;  %v27983_v40 = vpack.c.bf16 %v1529_v11, %v1526_v10 }
  0xc2   :  { %v1005_v63 = vand.u32 4294901760, %v27908_v56  ;;  %v1595_v22 = vand.u32 4294901760, %v27957_v31 }
  0xc3   :  { %21786 = vmatmul.mubr.f32.gmra.mrb[2].mxu0 %v389_v61  ;;  %v1018_v59 = vand.u32 4294901760, %v1017_v53 }
  0xc4   :  { %21793 = vmatpush3.msra.mxu0 %v27758_v41  ;;  %21794 = vmatprep.mubr.f32.mxu0 %v27743_v35  ;;  %v27885_v41 = vsub.f32 %v894_v29, %v27867_v43  ;;  %v27980_v29 = vsub.f32 %v27827_v26, %v27960_v33  ;;  %v1624_v26 = vsub.f32 %v27841_v36, %v27973_v18 }
  0xc5   :  { %23681 = vmatprep.subr.bf16.mxu0 %v27712_v20  ;;  %v23688_v0 = vpack.c.bf16 %v1025_v60, %v1018_v59 }
  0xc6   :  { %v985_v55 = vand.u32 4294901760, %v27885_v41  ;;  %v1615_v45 = vand.u32 4294901760, %v27980_v29 }
  0xc7   :  { %21795 = vmatmul.mubr.f32.vlgmr.msra.gmra.mrb[0].mxu0 %v27735_v32 }
  0xc8   :  { %23683 = vmatpush3.bf16.msra.mxu0 %v27712_v20  ;;  %21797 = vmatprep.mubr.f32.mxu0 %v27765_v46  ;;  %v1029_v20 = vsub.f32 %v903_v39, %v27879_v19  ;;  %v986_v62 = vsub.f32 %v27885_v41, %v985_v55  ;;  %v1605_v39 = vand.u32 4294901760, %v27970_v21 }
  0xc9   :  { %21804 = vmatprep.subr.mxu0 %v27702_v15 }
  0xca   :  { %v1030_v61 = vand.u32 4294901760, %v1029_v20  ;;  %v987_v3 = vand.u32 4294901760, %v986_v62 }
  0xcb   :  { %21798 = vmatmul.mubr.f32.gmra.mrb[2].mxu0 %v27774_v52 }
  0xcc   :  { %21805 = vmatpush3.msra.mxu0 %v27702_v15  ;;  %21806 = vmatprep.mubr.f32.mxu0 %v27743_v35  ;;  %v977_v15 = vand.u32 4294901760, %v976_v57  ;;  %v996_v35 = vsub.f32 %v27893_v50, %v995_v58  ;;  %v1031_v2 = vsub.f32 %v1029_v20, %v1030_v61  ;;  %v2213_v57 = vld [vmem:[#allocation7 + $0x8] sm:$0xff] }
  0xcd   :  { %23685 = vmatprep.subr.bf16.mxu0 %v27896_v51  ;;  %v2226_v60 = vand.u32 4294901760, %v2213_v57 }
  0xce   :  { %v997_v5 = vand.u32 4294901760, %v996_v35  ;;  %v1032_v6 = vand.u32 4294901760, %v1031_v2 }
  0xcf   :  { %21807 = vmatmul.mubr.f32.vlgmr.msra.gmra.mrb[0].mxu0 %v27735_v32  ;;  %v1006_v32 = vsub.f32 %v27908_v56, %v1005_v63  ;;  %v2320_v2 = vsub.f32 %v2213_v57, %v2226_v60 }
  0xd0   :  { %23687 = vmatpush3.bf16.msra.mxu0 %v27896_v51  ;;  %21809 = vmatprep.mubr.f32.mxu0 %v27765_v46 }
  0xd1   :  { %21816 = vmatprep.subr.mxu0 %v27879_v19  ;;  %v1007_v46 = vand.u32 4294901760, %v1006_v32  ;;  %v2321_v32 = vand.u32 4294901760, %v2320_v2 }
  0xd3   :  { %21810 = vmatmul.mubr.f32.gmra.mrb[2].mxu0 %v27774_v52  ;;  %v23700_v52 = vpack.c.bf16 %v1023_v48, %v1016_v47  ;;  %v1638_v47 = vand.u32 4294901760, %v1637_v25  ;;  %v1645_v48 = vand.u32 4294901760, %v1644_v42 }
  0xd4   :  { %21817 = vmatpush3.msra.mxu0 %v27879_v19  ;;  %21818 = vmatprep.mubr.f32.mxu0 %v977_v15 }
  0xd5   :  { %23689 = vmatprep.subr.bf16.mxu0 %v23688_v0 }
  0xd7   :  { %21819 = vmatmul.mubr.f32.vlgmr.msra.gmra.mrb[0].mxu0 %v987_v3 }
  0xd8   :  { %23691 = vmatpush3.bf16.msra.mxu0 %v23688_v0  ;;  %21821 = vmatprep.mubr.f32.mxu0 %v997_v5 }
  0xd9   :  { %21828 = vmatprep.subr.mxu0 %v1032_v6 }
  0xdb   :  { %21822 = vmatmul.mubr.f32.gmra.mrb[2].mxu0 %v1007_v46 }
  0xdc   :  { %21829 = vmatpush3.msra.mxu0 %v1032_v6  ;;  %21830 = vmatprep.mubr.f32.mxu0 %v27853_v28  ;;  %v2322_v6 = vsub.f32 %v2320_v2, %v2321_v32 }
  0xdd   :  { %23693 = vmatprep.subr.bf16.mxu0 %v23692_v7 }
  0xde   :  { %v2323_v8 = vand.u32 4294901760, %v2322_v6 }
  0xdf   :  { %21831 = vmatmul.mubr.f32.vlgmr.msra.gmra.mrb[0].mxu0 %v27867_v43 }
  0xe0   :  { %23695 = vmatpush3.bf16.msra.mxu0 %v23692_v7  ;;  %21833 = vmatprep.mubr.f32.mxu0 %v27874_v44 }
  0xe1   :  { %21840 = vmatprep.subr.mxu0 %v1029_v20 }
  0xe3   :  { %21834 = vmatmul.mubr.f32.gmra.mrb[2].mxu0 %v27887_v49 }
  0xe4   :  { %21841 = vmatpush3.msra.mxu0 %v1029_v20  ;;  %21842 = vmatprep.mubr.f32.mxu0 %v27872_v14  ;;  %v1596_v14 = vsub.f32 %v27957_v31, %v1595_v22 }
  0xe5   :  { %23697 = vmatprep.subr.bf16.mxu0 %v27896_v51 }
  0xe6   :  { %v1597_v36 = vand.u32 4294901760, %v1596_v14 }
  0xe7   :  { %21843 = vmatmul.mubr.f32.vlgmr.msra.gmra.mrb[0].mxu0 %v27885_v41  ;;  %v1650_v41 = vand.u32 4294901760, %v1649_v12 }
  0xe8   :  { %23699 = vmatpush3.bf16.msra.mxu0 %v27896_v51  ;;  %21845 = vmatprep.mubr.f32.mxu0 %v27893_v50  ;;  %v1625_v50 = vand.u32 4294901760, %v1624_v26 }
  0xe9   :  { %21852 = vmatprep.subr.mxu0 %v27879_v19 }
  0xea   :  { %v1626_v54 = vsub.f32 %v1624_v26, %v1625_v50 }
  0xeb   :  { %21846 = vmatmul.mubr.f32.gmra.mrb[2].mxu0 %v27908_v56  ;;  %v2212_v56 = vld [vmem:[#allocation7] sm:$0xff] }
  0xec   :  { %21853 = vmatpush3.msra.mxu0 %v27879_v19  ;;  %21854 = vmatprep.mubr.f32.mxu0 %v975_v13  ;;  %v1606_v13 = vsub.f32 %v27970_v21, %v1605_v39  ;;  %v2223_v59 = vand.u32 4294901760, %v2212_v56 }
  0xed   :  { %23701 = vmatprep.subr.bf16.mxu0 %v23700_v52 }
  0xee   :  { %v1607_v53 = vand.u32 4294901760, %v1606_v13  ;;  %v28038_v15 = vpack.c.bf16 %v2226_v60, %v2223_v59  ;;  %v2313_v0 = vsub.f32 %v2212_v56, %v2223_v59 }
  0xef   :  { %21855 = vmatmul.mubr.f32.vlgmr.msra.gmra.mrb[0].mxu0 %v985_v55  ;;  %v1627_v55 = vand.u32 4294901760, %v1626_v54 }
  0xf0   :  { %23703 = vmatpush3.bf16.msra.mxu0 %v23700_v52  ;;  %21857 = vmatprep.mubr.f32.mxu0 %v995_v58  ;;  %v2214_v58 = vld [vmem:[#allocation7 + $0x10] sm:$0xff]  ;;  %v2314_v3 = vand.u32 4294901760, %v2313_v0 }
  0xf1   :  { %21864 = vmatprep.subr.mxu0 %v1030_v61  ;;  %v2229_v62 = vand.u32 4294901760, %v2214_v58  ;;  %23733 = vmatprep.subr.bf16.mxu1 %v28038_v15 }
  0xf2   :  { %23735 = vmatpush3.bf16.msra.mxu1 %v28038_v15  ;;  %v2315_v5 = vsub.f32 %v2313_v0, %v2314_v3 }
  0xf3   :  { %21858 = vmatmul.mubr.f32.gmra.mrb[2].mxu0 %v1005_v63  ;;  %v2327_v46 = vsub.f32 %v2214_v58, %v2229_v62 }
  0xf4   :  { %21865 = vmatpush3.msra.mxu0 %v1030_v61  ;;  %21866 = vmatprep.mubr.f32.mxu0 %v27853_v28  ;;  %v2215_v61 = vld [vmem:[#allocation7 + $0x18] sm:$0xff]  ;;  %v2316_v52 = vand.u32 4294901760, %v2315_v5 }
  0xf5   :  { %23705 = vmatprep.subr.bf16.mxu0 %v27896_v51  ;;  %v2232_v63 = vand.u32 4294901760, %v2215_v61  ;;  %v2328_v9 = vand.u32 4294901760, %v2327_v46 }
  0xf6   :  { %v28046_v11 = vpack.c.bf16 %v2323_v8, %v2316_v52  ;;  %v2208_v52 = vld [vmem:[#allocation7 + $0x20] sm:$0xff]  ;;  %v2209_v8 = vld [vmem:[#allocation7 + $0x28] sm:$0xff] }
  0xf7   :  { %21867 = vmatmul.mubr.f32.vlgmr.msra.gmra.mrb[0].mxu0 %v27867_v43  ;;  %v28040_v35 = vpack.c.bf16 %v2232_v63, %v2229_v62  ;;  %v2334_v7 = vsub.f32 %v2215_v61, %v2232_v63  ;;  %v2329_v16 = vsub.f32 %v2327_v46, %v2328_v9 }
  0xf8   :  { %23707 = vmatpush3.bf16.msra.mxu0 %v27896_v51  ;;  %21869 = vmatprep.mubr.f32.mxu0 %v27874_v44  ;;  %v1651_v51 = vsub.f32 %v1649_v12, %v1650_v41 }
  0xf9   :  { %21876 = vmatprep.subr.mxu0 %v27879_v19  ;;  %23737 = vmatprep.subr.bf16.mxu1 %v28040_v35  ;;  %v2335_v10 = vand.u32 4294901760, %v2334_v7 }
  0xfa   :  { %v1652_v20 = vand.u32 4294901760, %v1651_v51  ;;  %23739 = vmatpush3.bf16.msra.mxu1 %v28040_v35 }
  0xfb   :  { %21870 = vmatmul.mubr.f32.gmra.mrb[2].mxu0 %v27887_v49  ;;  %23741 = vmatprep.subr.bf16.mxu1 %v28046_v11 }
  0xfc   :  { %21877 = vmatpush3.msra.mxu0 %v27879_v19  ;;  %21878 = vmatprep.mubr.f32.mxu0 %v27853_v28  ;;  %v1616_v28 = vsub.f32 %v27980_v29, %v1615_v45  ;;  %v23712_v19 = vpack.c.bf16 %v1645_v48, %v1638_v47  ;;  %v2163_v48 = vand.u32 7, %v27677_v1 }
  0xfd   :  { %23709 = vmatprep.subr.bf16.mxu0 %v27983_v40 }
  0xfe   :  { %vm2183_vm9 = vcmp.eq.s32.totalorder %v2163_v48, 0  ;;  %vm2195_vm11 = vcmp.eq.s32.totalorder %v2163_v48, 7 }
  0xff   :  { %21879 = vmatmul.mubr.f32.vlgmr.msra.gmra.mrb[0].mxu0 %v27867_v43  ;;  %v1617_v43 = vand.u32 4294901760, %v1616_v28 }
 0x100   :  { %23711 = vmatpush3.bf16.msra.mxu0 %v27983_v40  ;;  %21881 = vmatprep.mubr.f32.mxu0 %v27874_v44  ;;  %v23716_v44 = vpack.c.bf16 %v27948_v24, %v27946_v23  ;;  %v2330_v23 = vand.u32 4294901760, %v2329_v16 }
 0x101   :  { %21888 = vmatprep.subr.mxu0 %v27963_v34 }
 0x103   :  { %21882 = vmatmul.mubr.f32.gmra.mrb[2].mxu0 %v27887_v49  ;;  %v23724_v49 = vpack.c.bf16 %v1643_v38, %v1636_v37  ;;  %v20765_v37 = vld [vmem:[%s32272_s2] ss:$0 sm:$0xff] }
 0x104   :  { %21889 = vmatpush3.msra.mxu0 %v27963_v34  ;;  %21890 = vmatprep.mubr.f32.mxu0 %v1597_v36 }
 0x105   :  { %23713 = vmatprep.subr.bf16.mxu0 %v23712_v19 }
 0x107   :  { %21891 = vmatmul.mubr.f32.vlgmr.msra.gmra.mrb[0].mxu0 %v1607_v53 }
 0x108   :  { %23715 = vmatpush3.bf16.msra.mxu0 %v23712_v19  ;;  %21893 = vmatprep.mubr.f32.mxu0 %v1617_v43 }
 0x109   :  { %21900 = vmatprep.subr.mxu0 %v1652_v20 }
 0x10b   :  { %21894 = vmatmul.mubr.f32.gmra.mrb[2].mxu0 %v1627_v55 }
 0x10c   :  { %21901 = vmatpush3.msra.mxu0 %v1652_v20  ;;  %21902 = vmatprep.mubr.f32.mxu0 %v27944_v17 }
 0x10d   :  { %23717 = vmatprep.subr.bf16.mxu0 %v23716_v44 }
 0x10f   :  { %21903 = vmatmul.mubr.f32.vlgmr.msra.gmra.mrb[0].mxu0 %v27952_v30 }
 0x110   :  { %23719 = vmatpush3.bf16.msra.mxu0 %v23716_v44  ;;  %21905 = vmatprep.mubr.f32.mxu0 %v27960_v33 }
 0x111   :  { %21912 = vmatprep.subr.mxu0 %v1649_v12 }
 0x113   :  { %21906 = vmatmul.mubr.f32.gmra.mrb[2].mxu0 %v27973_v18 }
 0x114   :  { %21913 = vmatpush3.msra.mxu0 %v1649_v12  ;;  %21914 = vmatprep.mubr.f32.mxu0 %v27957_v31  ;;  %v28053_v31 = vpack.c.bf16 %v2334_v7, %v2327_v46 }
 0x115   :  { %23721 = vmatprep.subr.bf16.mxu0 %v27983_v40 }
 0x117   :  { %21915 = vmatmul.mubr.f32.vlgmr.msra.gmra.mrb[0].mxu0 %v27970_v21 }
 0x118   :  { %23723 = vmatpush3.bf16.msra.mxu0 %v27983_v40  ;;  %21917 = vmatprep.mubr.f32.mxu0 %v27980_v29 }
 0x119   :  { %21924 = vmatprep.subr.mxu0 %v27963_v34 }
 0x11b   :  { %21918 = vmatmul.mubr.f32.gmra.mrb[2].mxu0 %v1624_v26 }
 0x11c   :  { %21925 = vmatpush3.msra.mxu0 %v27963_v34  ;;  %21926 = vmatprep.mubr.f32.mxu0 %v1595_v22 }
 0x11d   :  { %23725 = vmatprep.subr.bf16.mxu0 %v23724_v49 }
 0x11f   :  { %21927 = vmatmul.mubr.f32.vlgmr.msra.gmra.mrb[0].mxu0 %v1605_v39 }
 0x120   :  { %23727 = vmatpush3.bf16.msra.mxu0 %v23724_v49  ;;  %21929 = vmatprep.mubr.f32.mxu0 %v1615_v45 }
 0x121   :  { %21936 = vmatprep.subr.mxu0 %v1650_v41 }
 0x123   :  { %21930 = vmatmul.mubr.f32.gmra.mrb[2].mxu0 %v1625_v50 }
 0x124   :  { %21937 = vmatpush3.msra.mxu0 %v1650_v41  ;;  %21938 = vmatprep.mubr.f32.mxu0 %v27944_v17  ;;  %v2170_v41 = vand.u32 7, %v27798_v4 }
 0x125   :  { %23729 = vmatprep.subr.bf16.mxu0 %v27983_v40 }
 0x126   :  { %vm2184_vm10 = vcmp.eq.s32.totalorder %v2170_v41, 0  ;;  %vm2196_vm12 = vcmp.eq.s32.totalorder %v2170_v41, 7 }
 0x127   :  { %21939 = vmatmul.mubr.f32.vlgmr.msra.gmra.mrb[0].mxu0 %v27952_v30 }
 0x128   :  { %23731 = vmatpush3.bf16.msra.mxu0 %v27983_v40  ;;  %21941 = vmatprep.mubr.f32.mxu0 %v27960_v33 }
 0x129   :  { %21948 = vmatprep.subr.mxu0 %v27963_v34 }
 0x12b   :  { %21942 = vmatmul.mubr.f32.gmra.mrb[2].mxu0 %v27973_v18 }
 0x12c   :  { %21949 = vmatpush3.msra.mxu0 %v27963_v34  ;;  %21950 = vmatprep.mubr.f32.mxu0 %v27944_v17  ;;  %v2336_v17 = vsub.f32 %v2334_v7, %v2335_v10  ;;  %v28057_v34 = vpack.c.bf16 %v2335_v10, %v2328_v9  ;;  %v2757_v10 = vand.u32 4294901760, %v2208_v52 }
 0x12e   :  { %v2337_v24 = vand.u32 4294901760, %v2336_v17  ;;  %v2210_v17 = vld [vmem:[#allocation7 + $0x30] sm:$0xff] }
 0x12f   :  { %21951 = vmatmul.mubr.f32.vlgmr.msra.gmra.mrb[0].mxu0 %v27952_v30  ;;  %v28051_v30 = vpack.c.bf16 %v2320_v2, %v2313_v0 }
 0x130   :  { %21953 = vmatprep.mubr.f32.mxu0 %v27960_v33  ;;  %v28049_v27 = vpack.c.bf16 %v2337_v24, %v2330_v23  ;;  %v28055_v33 = vpack.c.bf16 %v2321_v32, %v2314_v3  ;;  %v2211_v23 = vld [vmem:[#allocation7 + $0x38] sm:$0xff]  ;;  %v28108_v24 = vsub.f32 %v2208_v52, %v2757_v10 }
 0x133   :  { %21954 = vmatmul.mubr.f32.gmra.mrb[2].mxu0 %v27973_v18 }
 0x202   :  { %v21952_v38 = vpop.f32.mrb[0].mxu0 }
 0x203   :  { %v2138_v21 = vadd.f32 %v21952_v38, %v20765_v37  ;;  %v2104_v18 = vpop.f32.mrb[1].mxu0 }
 0x204   :  { %v2137_v22 = vadd.f32 %v20765_v37, %v2104_v18 }
 0x205   :  { %v2142_v29 = vmax.f32 %v2138_v21, 0.0  ;;  %v2848_v21 = vand.u32 4294901760, %v28108_v24 }
 0x206   :  { %v2141_v40 = vmax.f32 %v2137_v22, 0.0  ;;  %v21955_v25 = vpop.f32.mrb[2].mxu0 }
 0x207   :  { %2147 = vst.msk [vmem:[#allocation2 + $0x8] sm:$0xff] %vm2145_vm8, %v2142_v29  ;;  %v2140_v42 = vadd.f32 %v21955_v25, %v20765_v37  ;;  %v2116_v12 = vpop.f32.mrb[3].mxu0 }
 0x208   :  { %2146 = vst.msk [vmem:[#allocation2] sm:$0xff] %vm2145_vm8, %v2141_v40  ;;  %v2139_v39 = vadd.f32 %v20765_v37, %v2116_v12 }
 0x209   :  { %v2144_v26 = vmax.f32 %v2140_v42, 0.0  ;;  %v2849_v42 = vsub.f32 %v28108_v24, %v2848_v21 }
 0x20a   :  { %v2143_v14 = vmax.f32 %v2139_v39, 0.0 }
 0x20b   :  { %2149 = vst.msk [vmem:[#allocation2 + $0x18] sm:$0xff] %vm2145_vm8, %v2144_v26 }
 0x20c   :  { %2148 = vst.msk [vmem:[#allocation2 + $0x10] sm:$0xff] %vm2145_vm8, %v2143_v14 }
 0x20f   :  { %v2150_v45 = vld [vmem:[#allocation2] ss:$2 sm:$0xff]  ;;  %v2154_v47 = vld [vmem:[#allocation2 + $0x1] ss:$2 sm:$0xff] }
 0x210   :  { %v2157_v13 = vmax.f32 %v2150_v45, %v2154_v47  ;;  %v2850_v47 = vand.u32 4294901760, %v2849_v42 }
 0x212   :  { %v2185_v19 = vrot.slane %v2157_v13, 7  ;;  %v2197_v53 = vrot.slane %v2157_v13, 1  ;;  %v2751_v9 = vsel %vm2145_vm8, %v2157_v13, 0 }
 0x213   :  { %v2152_v50 = vld [vmem:[#allocation2 + $0x10] ss:$2 sm:$0xff]  ;;  %v2156_v36 = vld [vmem:[#allocation2 + $0x11] ss:$2 sm:$0xff]  ;;  %v28105_v16 = vand.u32 4294901760, %v2751_v9 }
 0x214   :  { %v28068_v28 = vmax.f32 %v2152_v50, %v2156_v36 }
 0x215   :  { %v2826_v37 = vsub.f32 %v2751_v9, %v28105_v16 }
 0x216   :  { %v2186_v51 = vrot.slane %v28068_v28, 7  ;;  %v2198_v54 = vrot.slane %v28068_v28, 1  ;;  %v2754_v38 = vsel %vm2145_vm8, %v28068_v28, 0 }
 0x217   :  { %v28117_v18 = vand.u32 4294901760, %v2754_v38  ;;  %v2827_v40 = vand.u32 4294901760, %v2826_v37 }
 0x218   :  { %v2188_v43 = vsel %vm223_vm1, %v2186_v51, %v2185_v19  ;;  %v2187_v4 = vsel %vm223_vm1, %v2185_v19, %v2186_v51  ;;  %v2199_v20 = vsel %vm248_vm5, %v2197_v53, %v2198_v54  ;;  %v2200_v55 = vsel %vm248_vm5, %v2198_v54, %v2197_v53 }
 0x219   :  { %v2193_v44 = vsel %vm2183_vm9, 0.0, %v2188_v43  ;;  %v2194_v49 = vsel %vm2184_vm10, 0.0, %v2187_v4  ;;  %v2205_v58 = vsel %vm2195_vm11, 0.0, %v2199_v20  ;;  %v2206_v59 = vsel %vm2196_vm12, 0.0, %v2200_v55  ;;  %v3285_v20 = vld [vmem:[#allocation7 + $0x40] sm:$0xff]  ;;  %v3286_v55 = vld [vmem:[#allocation7 + $0x48] sm:$0xff] }
 0x21a   :  { %v2217_v56 = vsel %vm2145_vm8, %v2193_v44, 0  ;;  %v2220_v57 = vsel %vm2145_vm8, %v2194_v49, 0  ;;  %v28085_v62 = vsel %vm2145_vm8, %v2205_v58, 0  ;;  %v28088_v63 = vsel %vm2145_vm8, %v2206_v59, 0  ;;  %v3287_v58 = vld [vmem:[#allocation7 + $0x50] sm:$0xff]  ;;  %v3288_v59 = vld [vmem:[#allocation7 + $0x58] sm:$0xff] }
 0x21b   :  { %v2291_v60 = vand.u32 4294901760, %v2217_v56  ;;  %v28082_v61 = vand.u32 4294901760, %v2220_v57  ;;  %v2836_v12 = vsub.f32 %v2754_v38, %v28117_v18  ;;  %v2828_v14 = vsub.f32 %v2826_v37, %v2827_v40 }
 0x21c   :  { %v3296_v44 = vand.u32 4294901760, %v3285_v20 }
 0x21d   :  { %v2292_v0 = vsub.f32 %v2217_v56, %v2291_v60  ;;  %v2302_v2 = vsub.f32 %v2220_v57, %v28082_v61  ;;  %v2837_v48 = vand.u32 4294901760, %v2836_v12  ;;  %v2829_v50 = vand.u32 4294901760, %v2828_v14 }
 0x21e   :  { %v3299_v56 = vand.u32 4294901760, %v3286_v55  ;;  %v28142_v57 = vand.u32 4294901760, %v28085_v62 }
 0x21f   :  { %v2293_v3 = vand.u32 4294901760, %v2292_v0  ;;  %v2303_v32 = vand.u32 4294901760, %v2302_v2  ;;  %v2838_v28 = vsub.f32 %v2836_v12, %v2837_v48 }
 0x221   :  { %v2294_v5 = vsub.f32 %v2292_v0, %v2293_v3  ;;  %v2304_v6 = vsub.f32 %v2302_v2, %v2303_v32  ;;  %v2839_v51 = vand.u32 4294901760, %v2838_v28 }
 0x223   :  { %v2295_v46 = vand.u32 4294901760, %v2294_v5  ;;  %v2305_v7 = vand.u32 4294901760, %v2304_v6  ;;  %v28152_v6 = vand.u32 4294901760, %v28088_v63 }
 0x225   :  { %21964 = vmatprep.mubr.f32.mxu1 %v2295_v46 }
 0x226   :  { %21965 = vmatmul.mubr.f32.vlgmr.msra.gmra.mrb[0].mxu1 %v2305_v7 }
 0x227   :  { %23743 = vmatpush3.bf16.msra.mxu1 %v28046_v11  ;;  %21975 = vmatprep.mubr.f32.mxu1 %v2291_v60  ;;  %v2760_v11 = vand.u32 4294901760, %v2209_v8 }
 0x228   :  { %23745 = vmatprep.subr.bf16.mxu1 %v28049_v27 }
 0x229   :  { %v28121_v25 = vpack.c.bf16 %v2760_v11, %v2757_v10  ;;  %v3375_v10 = vsub.f32 %v28088_v63, %v28152_v6 }
 0x22b   :  { %23747 = vmatpush3.bf16.msra.mxu1 %v28049_v27  ;;  %v2763_v27 = vand.u32 4294901760, %v2210_v17 }
 0x22c   :  { %23749 = vmatprep.subr.bf16.mxu1 %v28051_v30 }
 0x22d   :  { %v2861_v22 = vsub.f32 %v2210_v17, %v2763_v27 }
 0x22e   :  { %21976 = vmatmul.mubr.f32.vlgmr.msra.gmra.mrb[0].mxu1 %v28082_v61 }
 0x22f   :  { %23751 = vmatpush3.bf16.msra.mxu1 %v28051_v30  ;;  %21986 = vmatprep.mubr.f32.mxu1 %v2292_v0  ;;  %v2766_v30 = vand.u32 4294901760, %v2211_v23  ;;  %v2862_v39 = vand.u32 4294901760, %v2861_v22  ;;  %v3305_v0 = vand.u32 4294901760, %v3288_v59 }
 0x230   :  { %23753 = vmatprep.subr.bf16.mxu1 %v28053_v31 }
 0x231   :  { %v2868_v29 = vsub.f32 %v2211_v23, %v2766_v30  ;;  %v28127_v45 = vpack.c.bf16 %v2766_v30, %v2763_v27  ;;  %v2863_v41 = vsub.f32 %v2861_v22, %v2862_v39  ;;  %v3407_v7 = vsub.f32 %v3288_v59, %v3305_v0  ;;  %v28199_v59 = vld [vmem:[#allocation10 + $0x78] sm:$0xff] }
 0x233   :  { %23755 = vmatpush3.bf16.msra.mxu1 %v28053_v31  ;;  %v2854_v31 = vsub.f32 %v2209_v8, %v2760_v11  ;;  %v2869_v26 = vand.u32 4294901760, %v2868_v29  ;;  %v23800_v43 = vpack.c.bf16 %v2868_v29, %v2861_v22  ;;  %v23828_v8 = vpack.c.bf16 %v3299_v56, %v3296_v44 }
 0x234   :  { %23757 = vmatprep.subr.bf16.mxu1 %v28038_v15  ;;  %v3408_v17 = vand.u32 4294901760, %v3407_v7 }
 0x235   :  { %v2870_v13 = vsub.f32 %v2868_v29, %v2869_v26  ;;  %v23796_v54 = vpack.c.bf16 %v2854_v31, %v28108_v24  ;;  %v23816_v49 = vpack.c.bf16 %v2869_v26, %v2862_v39  ;;  %v3842_v39 = vld [vmem:[#allocation10 + $0x18] sm:$0xff]  ;;  %v3839_v26 = vld [vmem:[#allocation10] sm:$0xff] }
 0x236   :  { %21987 = vmatmul.mubr.f32.vlgmr.msra.gmra.mrb[0].mxu1 %v2302_v2  ;;  %v3393_v2 = vsub.f32 %v3286_v55, %v3299_v56  ;;  %v28188_v55 = vld [vmem:[#allocation10 + $0x40] sm:$0xff] }
 0x237   :  { %23759 = vmatpush3.bf16.msra.mxu1 %v28038_v15  ;;  %21997 = vmatprep.mubr.f32.mxu1 %v2293_v3  ;;  %v2871_v19 = vand.u32 4294901760, %v2870_v13  ;;  %v3365_v3 = vsub.f32 %v28085_v62, %v28142_v57  ;;  %v32290_v13 = vmov 0.0  }
 0x238   :  { %23761 = vmatprep.subr.bf16.mxu1 %v28040_v35  ;;  %v3394_v5 = vand.u32 4294901760, %v3393_v2  ;;  %4045 = vmatprep.mubr.f32.mxu0 %v32290_v13 }
 0x239   :  { %v3366_v52 = vand.u32 4294901760, %v3365_v3 }
 0x23a   :  { %v3395_v9 = vsub.f32 %v3393_v2, %v3394_v5 }
 0x23b   :  { %23763 = vmatpush3.bf16.msra.mxu1 %v28040_v35  ;;  %v3367_v23 = vsub.f32 %v3365_v3, %v3366_v52 }
 0x23c   :  { %23765 = vmatprep.subr.bf16.mxu1 %v28055_v33  ;;  %v3396_v30 = vand.u32 4294901760, %v3395_v9 }
 0x23d   :  { %v3368_v38 = vand.u32 4294901760, %v3367_v23 }
 0x23e   :  { %21998 = vmatmul.mubr.f32.vlgmr.msra.gmra.mrb[0].mxu1 %v2303_v32 }
 0x23f   :  { %23767 = vmatpush3.bf16.msra.mxu1 %v28055_v33  ;;  %22008 = vmatprep.mubr.f32.mxu1 %v2291_v60  ;;  %v2855_v33 = vand.u32 4294901760, %v2854_v31 }
 0x240   :  { %23769 = vmatprep.subr.bf16.mxu1 %v28057_v34 }
 0x241   :  { %v23812_v4 = vpack.c.bf16 %v2855_v33, %v2848_v21 }
 0x243   :  { %23771 = vmatpush3.bf16.msra.mxu1 %v28057_v34  ;;  %v2856_v34 = vsub.f32 %v2854_v31, %v2855_v33  ;;  %v3376_v31 = vand.u32 4294901760, %v3375_v10 }
 0x244   :  { %23773 = vmatprep.subr.bf16.mxu1 %v28038_v15 }
 0x245   :  { %v3377_v63 = vsub.f32 %v3375_v10, %v3376_v31 }
 0x246   :  { %22009 = vmatmul.mubr.f32.vlgmr.msra.gmra.mrb[0].mxu1 %v28082_v61 }
 0x247   :  { %23775 = vmatpush3.bf16.msra.mxu1 %v28038_v15  ;;  %22019 = vmatprep.mubr.f32.mxu1 %v2291_v60  ;;  %v2857_v15 = vand.u32 4294901760, %v2856_v34  ;;  %v28145_v60 = vsub.f32 %v3285_v20, %v3296_v44  ;;  %v3378_v29 = vand.u32 4294901760, %v3377_v63  ;;  %v28190_v44 = vld [vmem:[#allocation10 + $0x50] sm:$0xff] }
 0x248   :  { %23777 = vmatprep.subr.bf16.mxu1 %v28040_v35 }
 0x249   :  { %v23788_v36 = vpack.c.bf16 %v2857_v15, %v2850_v47  ;;  %v3387_v32 = vand.u32 4294901760, %v28145_v60  ;;  %v3841_v47 = vld [vmem:[#allocation10 + $0x10] sm:$0xff]  ;;  %v3967_v15 = vand.u32 4294901760, %v3839_v26 }
 0x24b   :  { %23779 = vmatpush3.bf16.msra.mxu1 %v28040_v35  ;;  %v2864_v35 = vand.u32 4294901760, %v2863_v41  ;;  %v3388_v62 = vsub.f32 %v28145_v60, %v3387_v32  ;;  %v23860_v42 = vpack.c.bf16 %v3394_v5, %v3387_v32  ;;  %v28172_v41 = vld [vmem:[#allocation10 + $0x38] sm:$0xff]  ;;  %v3993_v5 = vand.u32 4294901760, %v28199_v59 }
 0x24c   :  { %23781 = vmatprep.subr.bf16.mxu1 %v28121_v25  ;;  %v3977_v28 = vand.u32 4294901760, %v28172_v41 }
 0x24d   :  { %v23792_v53 = vpack.c.bf16 %v2871_v19, %v2864_v35  ;;  %v3389_v27 = vand.u32 4294901760, %v3388_v62  ;;  %v3843_v35 = vld [vmem:[#allocation10 + $0x20] sm:$0xff]  ;;  %v28178_v19 = vld [vmem:[#allocation10 + $0x30] sm:$0xff] }
 0x24e   :  { %22020 = vmatmul.mubr.f32.vlgmr.msra.gmra.mrb[0].mxu1 %v28082_v61  ;;  %v3302_v61 = vand.u32 4294901760, %v3287_v58 }
 0x24f   :  { %23783 = vmatpush3.bf16.msra.mxu1 %v28121_v25  ;;  %22030 = vmatprep.mubr.f32.mxu1 %v2829_v50  ;;  %v23836_v21 = vpack.c.bf16 %v3396_v30, %v3389_v27  ;;  %v3971_v50 = vand.u32 4294901760, %v3841_v47 }
 0x250   :  { %23785 = vmatprep.subr.bf16.mxu1 %v28127_v45  ;;  %v3400_v46 = vsub.f32 %v3287_v58, %v3302_v61  ;;  %v23832_v24 = vpack.c.bf16 %v3305_v0, %v3302_v61  ;;  %v28197_v58 = vld [vmem:[#allocation10 + $0x68] sm:$0xff]  ;;  %v3983_v61 = vand.u32 4294901760, %v28188_v55  ;;  %v3987_v0 = vand.u32 4294901760, %v28190_v44 }
 0x251   :  { %v3989_v32 = vand.u32 4294901760, %v28197_v58 }
 0x252   :  { %v3401_v11 = vand.u32 4294901760, %v3400_v46  ;;  %v28233_v62 = vpack.c.bf16 %v3987_v0, %v3983_v61 }
 0x253   :  { %23787 = vmatpush3.bf16.msra.mxu1 %v28127_v45 }
 0x254   :  { %23789 = vmatprep.subr.bf16.mxu1 %v23788_v36  ;;  %v23864_v34 = vpack.c.bf16 %v3408_v17, %v3401_v11 }
 0x256   :  { %22031 = vmatmul.mubr.f32.vlgmr.msra.gmra.mrb[0].mxu1 %v2839_v51  ;;  %v28180_v51 = vld [vmem:[#allocation10 + $0x48] sm:$0xff] }
 0x257   :  { %23791 = vmatpush3.bf16.msra.mxu1 %v23788_v36  ;;  %22041 = vmatprep.mubr.f32.mxu1 %v28105_v16  ;;  %v3981_v20 = vand.u32 4294901760, %v28180_v51 }
 0x258   :  { %23793 = vmatprep.subr.bf16.mxu1 %v23792_v53 }
 0x25b   :  { %23795 = vmatpush3.bf16.msra.mxu1 %v23792_v53 }
 0x25c   :  { %23797 = vmatprep.subr.bf16.mxu1 %v23796_v54 }
 0x25e   :  { %22042 = vmatmul.mubr.f32.vlgmr.msra.gmra.mrb[0].mxu1 %v28117_v18 }
 0x25f   :  { %23799 = vmatpush3.bf16.msra.mxu1 %v23796_v54  ;;  %22052 = vmatprep.mubr.f32.mxu1 %v2826_v37  ;;  %v3409_v37 = vsub.f32 %v3407_v7, %v3408_v17  ;;  %v3975_v54 = vand.u32 4294901760, %v3843_v35  ;;  %v28246_v17 = vpack.c.bf16 %v3993_v5, %v3989_v32 }
 0x260   :  { %23801 = vmatprep.subr.bf16.mxu1 %v23800_v43 }
 0x261   :  { %v3410_v22 = vand.u32 4294901760, %v3409_v37 }
 0x263   :  { %23803 = vmatpush3.bf16.msra.mxu1 %v23800_v43  ;;  %v3979_v43 = vand.u32 4294901760, %v28178_v19 }
 0x264   :  { %23805 = vmatprep.subr.bf16.mxu1 %v28121_v25 }
 0x266   :  { %22053 = vmatmul.mubr.f32.vlgmr.msra.gmra.mrb[0].mxu1 %v2836_v12  ;;  %v3840_v12 = vld [vmem:[#allocation10 + $0x8] sm:$0xff] }
 0x267   :  { %23807 = vmatpush3.bf16.msra.mxu1 %v28121_v25  ;;  %22063 = vmatprep.mubr.f32.mxu1 %v2827_v40  ;;  %v3965_v14 = vand.u32 4294901760, %v3840_v12 }
 0x268   :  { %23809 = vmatprep.subr.bf16.mxu1 %v28127_v45 }
 0x26b   :  { %23811 = vmatpush3.bf16.msra.mxu1 %v28127_v45 }
 0x26c   :  { %23813 = vmatprep.subr.bf16.mxu1 %v23812_v4 }
 0x26e   :  { %22064 = vmatmul.mubr.f32.vlgmr.msra.gmra.mrb[0].mxu1 %v2837_v48  ;;  %v28170_v48 = vld [vmem:[#allocation10 + $0x28] sm:$0xff] }
 0x26f   :  { %23815 = vmatpush3.bf16.msra.mxu1 %v23812_v4  ;;  %22074 = vmatprep.mubr.f32.mxu1 %v28105_v16  ;;  %v3973_v36 = vand.u32 4294901760, %v28170_v48  ;;  %v28185_v4 = vld [vmem:[#allocation10 + $0x58] sm:$0xff] }
 0x270   :  { %23817 = vmatprep.subr.bf16.mxu1 %v23816_v49 }
 0x271   :  { %v28194_v56 = vpack.c.bf16 %v3977_v28, %v3973_v36  ;;  %v28268_v63 = vsub.f32 %v28170_v48, %v3973_v36 }
 0x273   :  { %23819 = vmatpush3.bf16.msra.mxu1 %v23816_v49  ;;  %v28192_v49 = vpack.c.bf16 %v3971_v50, %v3967_v15 }
 0x274   :  { %23821 = vmatprep.subr.bf16.mxu1 %v28121_v25 }
 0x276   :  { %22075 = vmatmul.mubr.f32.vlgmr.msra.gmra.mrb[0].mxu1 %v28117_v18 }
 0x277   :  { %23823 = vmatpush3.bf16.msra.mxu1 %v28121_v25  ;;  %22085 = vmatprep.mubr.f32.mxu1 %v28105_v16  ;;  %v3402_v16 = vsub.f32 %v3400_v46, %v3401_v11  ;;  %v23844_v25 = vpack.c.bf16 %v3393_v2, %v28145_v60  ;;  %v28205_v60 = vpack.c.bf16 %v3979_v43, %v3975_v54 }
 0x278   :  { %23825 = vmatprep.subr.bf16.mxu1 %v28127_v45  ;;  %v28209_v2 = vsub.f32 %v3840_v12, %v3965_v14 }
 0x279   :  { %v3403_v33 = vand.u32 4294901760, %v3402_v16  ;;  %v28259_v16 = vsub.f32 %v3841_v47, %v3971_v50  ;;  %v4106_v47 = vsub.f32 %v28180_v51, %v3981_v20  ;;  %v4112_v50 = vsub.f32 %v28188_v55, %v3983_v61 }
 0x27a   :  { %v4124_v51 = vsub.f32 %v28190_v44, %v3987_v0 }
 0x27b   :  { %23827 = vmatpush3.bf16.msra.mxu1 %v28127_v45  ;;  %v23840_v40 = vpack.c.bf16 %v3410_v22, %v3403_v33  ;;  %v3969_v45 = vand.u32 4294901760, %v3842_v39  ;;  %v28271_v33 = vsub.f32 %v28172_v41, %v3977_v28 }
 0x27c   :  { %23829 = vmatprep.subr.bf16.mxu1 %v23828_v8  ;;  %v4125_v61 = vand.u32 4294901760, %v4124_v51 }
 0x27d   :  { %v28182_v53 = vpack.c.bf16 %v3969_v45, %v3965_v14 }
 0x27e   :  { %22086 = vmatmul.mubr.f32.vlgmr.msra.gmra.mrb[0].mxu1 %v28117_v18  ;;  %v23848_v18 = vpack.c.bf16 %v3407_v7, %v3400_v46  ;;  %v28223_v46 = vld [vmem:[#allocation10 + $0x70] sm:$0xff]  ;;  %v28225_v7 = vsub.f32 %v3842_v39, %v3969_v45 }
 0x27f   :  { %23831 = vmatpush3.bf16.msra.mxu1 %v23828_v8  ;;  %22096 = vmatprep.mubr.f32.mxu1 %v3368_v38 }
 0x280   :  { %23833 = vmatprep.subr.bf16.mxu1 %v23832_v24  ;;  %23877 = vmatprep.subr.bf16.mxu0 %v28182_v53 }
 0x281   :  { %23879 = vmatpush1.bf16.msra.mxu0 %v28192_v49 }
 0x282   :  { %23881 = vmatprep.subr.bf16.mxu0 %v28194_v56 }
 0x283   :  { %23835 = vmatpush3.bf16.msra.mxu1 %v23832_v24 }
 0x284   :  { %23837 = vmatprep.subr.bf16.mxu1 %v23836_v21 }
 0x285   :  { %23883 = vmatpush1.bf16.msra.mxu0 %v28205_v60 }
 0x286   :  { %22097 = vmatmul.mubr.f32.vlgmr.msra.gmra.mrb[0].mxu1 %v3378_v29 }
 0x287   :  { %23839 = vmatpush3.bf16.msra.mxu1 %v23836_v21  ;;  %22107 = vmatprep.mubr.f32.mxu1 %v28142_v57  ;;  %v4077_v21 = vand.u32 4294901760, %v28259_v16 }
 0x288   :  { %23841 = vmatprep.subr.bf16.mxu1 %v23840_v40 }
 0x289   :  { %v4078_v29 = vsub.f32 %v28259_v16, %v4077_v21 }
 0x28b   :  { %23843 = vmatpush3.bf16.msra.mxu1 %v23840_v40  ;;  %v28281_v40 = vsub.f32 %v3843_v35, %v3975_v54  ;;  %v4079_v12 = vand.u32 4294901760, %v4078_v29 }
 0x28c   :  { %23845 = vmatprep.subr.bf16.mxu1 %v23844_v25 }
 0x28d   :  { %v4089_v39 = vand.u32 4294901760, %v28281_v40 }
 0x28e   :  { %22108 = vmatmul.mubr.f32.vlgmr.msra.gmra.mrb[0].mxu1 %v28152_v6 }
 0x28f   :  { %23847 = vmatpush3.bf16.msra.mxu1 %v23844_v25  ;;  %22118 = vmatprep.mubr.f32.mxu1 %v3365_v3  ;;  %v4083_v25 = vand.u32 4294901760, %v28268_v63  ;;  %v4090_v48 = vsub.f32 %v28281_v40, %v4089_v39 }
 0x290   :  { %23849 = vmatprep.subr.bf16.mxu1 %v23848_v18 }
 0x291   :  { %v4091_v54 = vand.u32 4294901760, %v4090_v48 }
 0x293   :  { %23851 = vmatpush3.bf16.msra.mxu1 %v23848_v18  ;;  %v4095_v18 = vand.u32 4294901760, %v28271_v33 }
 0x294   :  { %23853 = vmatprep.subr.bf16.mxu1 %v23828_v8 }
 0x295   :  { %v4096_v14 = vsub.f32 %v28271_v33, %v4095_v18 }
 0x296   :  { %22119 = vmatmul.mubr.f32.vlgmr.msra.gmra.mrb[0].mxu1 %v3375_v10  ;;  %v3995_v10 = vand.u32 4294901760, %v28223_v46 }
 0x297   :  { %23855 = vmatpush3.bf16.msra.mxu1 %v23828_v8  ;;  %22129 = vmatprep.mubr.f32.mxu1 %v3366_v52  ;;  %v4059_v52 = vand.u32 4294901760, %v28209_v2  ;;  %v4097_v28 = vand.u32 4294901760, %v4096_v14 }
 0x298   :  { %23857 = vmatprep.subr.bf16.mxu1 %v23832_v24 }
 0x299   :  { %v4060_v11 = vsub.f32 %v28209_v2, %v4059_v52 }
 0x29b   :  { %23859 = vmatpush3.bf16.msra.mxu1 %v23832_v24 }
 0x29c   :  { %23861 = vmatprep.subr.bf16.mxu1 %v23860_v42 }
 0x29e   :  { %22130 = vmatmul.mubr.f32.vlgmr.msra.gmra.mrb[0].mxu1 %v3376_v31  ;;  %v28257_v31 = vsub.f32 %v3839_v26, %v3967_v15  ;;  %v4084_v26 = vsub.f32 %v28268_v63, %v4083_v25 }
 0x29f   :  { %23863 = vmatpush3.bf16.msra.mxu1 %v23860_v42  ;;  %22140 = vmatprep.mubr.f32.mxu1 %v28142_v57  ;;  %v28288_v42 = vsub.f32 %v28178_v19, %v3979_v43  ;;  %v4107_v19 = vand.u32 4294901760, %v4106_v47 }
 0x2a0   :  { %23865 = vmatprep.subr.bf16.mxu1 %v23864_v34  ;;  %v4065_v38 = vand.u32 4294901760, %v28257_v31  ;;  %v4085_v36 = vand.u32 4294901760, %v4084_v26  ;;  %v4126_v26 = vsub.f32 %v4124_v51, %v4125_v61 }
 0x2a1   :  { %v4101_v45 = vand.u32 4294901760, %v28288_v42 }
 0x2a2   :  { %v4066_v22 = vsub.f32 %v28257_v31, %v4065_v38 }
 0x2a3   :  { %23867 = vmatpush3.bf16.msra.mxu1 %v23864_v34  ;;  %v4102_v35 = vsub.f32 %v28288_v42, %v4101_v45 }
 0x2a4   :  { %23869 = vmatprep.subr.bf16.mxu1 %v23828_v8  ;;  %v4067_v34 = vand.u32 4294901760, %v4066_v22 }
 0x2a6   :  { %22141 = vmatmul.mubr.f32.vlgmr.msra.gmra.mrb[0].mxu1 %v28152_v6  ;;  %v28301_v15 = vpack.c.bf16 %v4079_v12, %v4067_v34 }
 0x2a7   :  { %23871 = vmatpush3.bf16.msra.mxu1 %v23828_v8  ;;  %22151 = vmatprep.mubr.f32.mxu1 %v28142_v57  ;;  %v3985_v57 = vand.u32 4294901760, %v28185_v4  ;;  %v4071_v8 = vand.u32 4294901760, %v28225_v7 }
 0x2a8   :  { %23873 = vmatprep.subr.bf16.mxu1 %v23832_v24 }
 0x2a9   :  { %v28217_v3 = vpack.c.bf16 %v3985_v57, %v3981_v20  ;;  %v4072_v23 = vsub.f32 %v28225_v7, %v4071_v8  ;;  %v4118_v41 = vsub.f32 %v28185_v4, %v3985_v57  ;;  %v28312_v20 = vpack.c.bf16 %v4097_v28, %v4085_v36 }
 0x2aa   :  { %v4130_v4 = vsub.f32 %v28197_v58, %v3989_v32  ;;  %v4148_v58 = vsub.f32 %v28223_v46, %v3995_v10  ;;  %v4127_v28 = vand.u32 4294901760, %v4126_v26  ;;  %v28336_v46 = vpack.c.bf16 %v28225_v7, %v28209_v2 }
 0x2ab   :  { %23875 = vmatpush3.bf16.msra.mxu1 %v23832_v24  ;;  %23885 = vmatprep.subr.bf16.mxu0 %v28217_v3  ;;  %v4061_v24 = vand.u32 4294901760, %v4060_v11  ;;  %v4073_v27 = vand.u32 4294901760, %v4072_v23  ;;  %v4119_v43 = vand.u32 4294901760, %v4118_v41  ;;  %v4113_v11 = vand.u32 4294901760, %v4112_v50 }
 0x2ac   :  { %23973 = vmatprep.subr.bf16.mxu1 %v28182_v53  ;;  %23887 = vmatpush1.bf16.msra.mxu0 %v28233_v62  ;;  %v4103_v23 = vand.u32 4294901760, %v4102_v35  ;;  %v4131_v34 = vand.u32 4294901760, %v4130_v4  ;;  %v28352_v26 = vpack.c.bf16 %v4124_v51, %v4112_v50 }
 0x2ad   :  { %23889 = vmatprep.subr.bf16.mxu0 %v28246_v17  ;;  %v28263_v37 = vpack.c.bf16 %v4073_v27, %v4061_v24  ;;  %v4108_v24 = vsub.f32 %v4106_v47, %v4107_v19  ;;  %v4120_v55 = vsub.f32 %v4118_v41, %v4119_v43  ;;  %v4114_v57 = vsub.f32 %v4112_v50, %v4113_v11 }
 0x2ae   :  { %22152 = vmatmul.mubr.f32.vlgmr.msra.gmra.mrb[0].mxu1 %v28152_v6  ;;  %v28221_v6 = vld [vmem:[#allocation10 + $0x60] sm:$0xff]  ;;  %v4142_v27 = vsub.f32 %v28199_v59, %v3993_v5  ;;  %v28320_v22 = vpack.c.bf16 %v4103_v23, %v4091_v54  ;;  %v4132_v48 = vsub.f32 %v4130_v4, %v4131_v34  ;;  %v4149_v54 = vand.u32 4294901760, %v4148_v58 }
 0x2af   :  { %4700 = vmatprep.mubr.f32.mxu1 %v32290_v13  ;;  %23975 = vmatpush1.bf16.msra.mxu1 %v28192_v49  ;;  %v3991_v9 = vand.u32 4294901760, %v28221_v6  ;;  %v4109_v29 = vand.u32 4294901760, %v4108_v24  ;;  %v4121_v0 = vand.u32 4294901760, %v4120_v55  ;;  %v4115_v12 = vand.u32 4294901760, %v4114_v57 }
 0x2b0   :  { %23977 = vmatprep.subr.bf16.mxu1 %v28194_v56  ;;  %v4143_v14 = vand.u32 4294901760, %v4142_v27  ;;  %v4133_v5 = vand.u32 4294901760, %v4132_v48  ;;  %v4150_v24 = vsub.f32 %v4148_v58, %v4149_v54  ;;  %v28354_v48 = vpack.c.bf16 %v4142_v27, %v4130_v4 }
 0x2b1   :  { %v28255_v30 = vpack.c.bf16 %v3995_v10, %v3991_v9  ;;  %v4136_v44 = vsub.f32 %v28221_v6, %v3991_v9  ;;  %v28326_v32 = vpack.c.bf16 %v4121_v0, %v4109_v29  ;;  %v28328_v23 = vpack.c.bf16 %v4127_v28, %v4115_v12 }
 0x2b2   :  { %v4144_v59 = vsub.f32 %v4142_v27, %v4143_v14  ;;  %v4151_v57 = vand.u32 4294901760, %v4150_v24  ;;  %v28340_v10 = vpack.c.bf16 %v28259_v16, %v28257_v31  ;;  %v28344_v29 = vpack.c.bf16 %v28271_v33, %v28268_v63 }
 0x2b3   :  { %23979 = vmatpush1.bf16.msra.mxu1 %v28205_v60  ;;  %23891 = vmatpush1.bf16.msra.mxu0 %v28255_v30  ;;  %v4137_v36 = vand.u32 4294901760, %v4136_v44  ;;  %v28348_v0 = vpack.c.bf16 %v28288_v42, %v28281_v40  ;;  %v28350_v12 = vpack.c.bf16 %v4118_v41, %v4106_v47  ;;  %v28356_v28 = vpack.c.bf16 %v4148_v58, %v4136_v44 }
 0x2b4   :  { %23981 = vmatprep.subr.bf16.mxu1 %v28217_v3  ;;  %23893 = vmatprep.subr.bf16.mxu0 %v28263_v37  ;;  %v4145_v6 = vand.u32 4294901760, %v4144_v59  ;;  %v28362_v59 = vpack.c.bf16 %v4071_v8, %v4059_v52  ;;  %v28368_v40 = vpack.c.bf16 %v4077_v21, %v4065_v38  ;;  %v28374_v42 = vpack.c.bf16 %v4095_v18, %v4083_v25  ;;  %v20766_v8 = vld [vmem:[#allocation9] ss:$0 sm:$0xff] }
 0x2b5   :  { %v4138_v35 = vsub.f32 %v4136_v44, %v4137_v36  ;;  %v28376_v47 = vpack.c.bf16 %v4101_v45, %v4089_v39  ;;  %v28378_v41 = vpack.c.bf16 %v4119_v43, %v4107_v19  ;;  %v28380_v2 = vpack.c.bf16 %v4125_v61, %v4113_v11 }
 0x2b6   :  { %v28330_v55 = vpack.c.bf16 %v4145_v6, %v4133_v5  ;;  %v28382_v7 = vpack.c.bf16 %v4143_v14, %v4131_v34  ;;  %v28384_v52 = vpack.c.bf16 %v4149_v54, %v4137_v36 }
 0x2b7   :  { %23983 = vmatpush1.bf16.msra.mxu1 %v28233_v62  ;;  %v4139_v9 = vand.u32 4294901760, %v4138_v35  ;;  %v32773_v35 = vmov 0.0  }
 0x2b8   :  { %23985 = vmatprep.subr.bf16.mxu1 %v28246_v17 }
 0x2b9   :  { %v28332_v13 = vpack.c.bf16 %v4151_v57, %v4139_v9 }
 0x2bb   :  { %23987 = vmatpush1.bf16.msra.mxu1 %v28255_v30 }
 0x2bc   :  { %23989 = vmatprep.subr.bf16.mxu1 %v28263_v37 }
 0x381   :  { %v22153_v31 = vpop.f32.mrb[0].mxu1 }
 0x382   :  { %v3833_v16 = vadd.f32 %v22153_v31, %v20766_v8  ;;  %v3813_v38 = vpop.f32.mrb[1].mxu1 }
 0x383   :  { %v3832_v21 = vadd.f32 %v20766_v8, %v3813_v38 }
 0x384   :  { %v3835_v63 = vmax.f32 %v3833_v16, 0.0 }
 0x385   :  { %v3834_v33 = vmax.f32 %v3832_v21, 0.0 }
 0x386   :  { %3838 = vst.msk [vmem:[#allocation3 + $0x8] sm:$0xff] %vm3836_vm13, %v3835_v63 }
 0x387   :  { %3837 = vst.msk [vmem:[#allocation3] sm:$0xff] %vm3836_vm13, %v3834_v33 }
 0x38e   :  { %v3947_v25 = vld [vmem:[#allocation3] ss:$8 sm:$0x3]  ;;  %v3949_v18 = vld [vmem:[#allocation3 + $0x1] ss:$8 sm:$0x3] }
 0x38f   :  { %v3950_v39 = vmax.f32 %v3947_v25, %v3949_v18  ;;  %v4613_v45 = vld [vmem:[#allocation3 + $0x2] ss:$8 sm:$0x3]  ;;  %v4615_v50 = vld [vmem:[#allocation3 + $0x3] ss:$8 sm:$0x3] }
 0x390   :  { %v4616_v19 = vmax.f32 %v4613_v45, %v4615_v50  ;;  %v5268_v54 = vld [vmem:[#allocation3 + $0x4] ss:$8 sm:$0x3]  ;;  %v5270_v6 = vld [vmem:[#allocation3 + $0x5] ss:$8 sm:$0x3] }
 0x391   :  { %v3963_v43 = vsel %vm3836_vm13, %v3950_v39, 0  ;;  %v5923_v9 = vld [vmem:[#allocation3 + $0x6] ss:$8 sm:$0x3]  ;;  %v5271_v57 = vmax.f32 %v5268_v54, %v5270_v6 }
 0x392   :  { %v28389_v11 = vand.u32 4294901760, %v3963_v43  ;;  %v4618_v51 = vsel %vm3836_vm13, %v4616_v19, 0  ;;  %v5925_v24 = vld [vmem:[#allocation3 + $0x7] ss:$8 sm:$0x3] }
 0x393   :  { %v28392_v4 = vand.u32 4294901760, %v4618_v51  ;;  %v5926_v8 = vmax.f32 %v5923_v9, %v5925_v24  ;;  %v5273_v31 = vsel %vm3836_vm13, %v5271_v57, 0 }
 0x394   :  { %v28395_v61 = vsub.f32 %v3963_v43, %v28389_v11  ;;  %v28509_v38 = vand.u32 4294901760, %v5273_v31 }
 0x395   :  { %v28398_v27 = vsub.f32 %v4618_v51, %v28392_v4  ;;  %v5928_v16 = vsel %vm3836_vm13, %v5926_v8, 0  ;;  %v3866_v51 = vld [vmem:[#allocation12 + $0x50] sm:$0xff] }
 0x396   :  { %v4048_v34 = vand.u32 4294901760, %v28395_v61  ;;  %v28512_v21 = vand.u32 4294901760, %v5928_v16  ;;  %v28520_v63 = vsub.f32 %v5273_v31, %v28509_v38  ;;  %v6613_v57 = vand.u32 4294901760, %v3866_v51 }
 0x397   :  { %v4703_v44 = vand.u32 4294901760, %v28398_v27 }
 0x398   :  { %v4049_v14 = vsub.f32 %v28395_v61, %v4048_v34  ;;  %v28525_v33 = vsub.f32 %v5928_v16, %v28512_v21  ;;  %v5358_v25 = vand.u32 4294901760, %v28520_v63 }
 0x399   :  { %v4704_v36 = vsub.f32 %v28398_v27, %v4703_v44 }
 0x39a   :  { %v4050_v58 = vand.u32 4294901760, %v4049_v14  ;;  %v6013_v18 = vand.u32 4294901760, %v28525_v33  ;;  %v5359_v39 = vsub.f32 %v28520_v63, %v5358_v25 }
 0x39b   :  { %v4705_v5 = vand.u32 4294901760, %v4704_v36 }
 0x39c   :  { %4051 = vmatmul.mubr.f32.vlgmr.msra.gmra.mrb[4].mxu0 %v4050_v58  ;;  %v6014_v45 = vsub.f32 %v28525_v33, %v6013_v18  ;;  %v5360_v50 = vand.u32 4294901760, %v5359_v39 }
 0x39d   :  { %23895 = vmatpush1.bf16.msra.mxu0 %v28301_v15  ;;  %4706 = vmatmul.mubr.f32.vlgmr.msra.gmra.mrb[2].mxu1 %v4705_v5 }
 0x39e   :  { %23991 = vmatpush1.bf16.msra.mxu1 %v28301_v15  ;;  %23897 = vmatprep.subr.bf16.mxu0 %v28312_v20  ;;  %v6015_v19 = vand.u32 4294901760, %v6014_v45 }
 0x39f   :  { %23993 = vmatprep.subr.bf16.mxu1 %v28312_v20  ;;  %4201 = vmatprep.mubr.f32.mxu0 %v32773_v35 }
 0x3a0   :  { %4856 = vmatprep.mubr.f32.mxu1 %v32773_v35 }
 0x3a1   :  { %23899 = vmatpush1.bf16.msra.mxu0 %v28320_v22 }
 0x3a2   :  { %23995 = vmatpush1.bf16.msra.mxu1 %v28320_v22  ;;  %23901 = vmatprep.subr.bf16.mxu0 %v28326_v32 }
 0x3a3   :  { %23997 = vmatprep.subr.bf16.mxu1 %v28326_v32 }
 0x3a5   :  { %23903 = vmatpush1.bf16.msra.mxu0 %v28328_v23 }
 0x3a6   :  { %23999 = vmatpush1.bf16.msra.mxu1 %v28328_v23  ;;  %23905 = vmatprep.subr.bf16.mxu0 %v28330_v55 }
 0x3a7   :  { %24001 = vmatprep.subr.bf16.mxu1 %v28330_v55 }
 0x3a9   :  { %23907 = vmatpush1.bf16.msra.mxu0 %v28332_v13 }
 0x3aa   :  { %24003 = vmatpush1.bf16.msra.mxu1 %v28332_v13  ;;  %23909 = vmatprep.subr.bf16.mxu0 %v28336_v46 }
 0x3ab   :  { %24005 = vmatprep.subr.bf16.mxu1 %v28336_v46 }
 0x3ac   :  { %4203 = vmatmul.mubr.f32.vlgmr.msra.gmra.mrb[4].mxu0 %v28389_v11 }
 0x3ad   :  { %4858 = vmatmul.mubr.f32.vlgmr.msra.gmra.mrb[2].mxu1 %v28392_v4  ;;  %23911 = vmatpush1.bf16.msra.mxu0 %v28340_v10 }
 0x3ae   :  { %24007 = vmatpush1.bf16.msra.mxu1 %v28340_v10  ;;  %23913 = vmatprep.subr.bf16.mxu0 %v28344_v29 }
 0x3af   :  { %24009 = vmatprep.subr.bf16.mxu1 %v28344_v29  ;;  %4305 = vmatprep.mubr.f32.mxu0 %v32773_v35 }
 0x3b0   :  { %4960 = vmatprep.mubr.f32.mxu1 %v32773_v35 }
 0x3b1   :  { %23915 = vmatpush1.bf16.msra.mxu0 %v28348_v0 }
 0x3b2   :  { %24011 = vmatpush1.bf16.msra.mxu1 %v28348_v0  ;;  %23917 = vmatprep.subr.bf16.mxu0 %v28350_v12 }
 0x3b3   :  { %24013 = vmatprep.subr.bf16.mxu1 %v28350_v12 }
 0x3b5   :  { %23919 = vmatpush1.bf16.msra.mxu0 %v28352_v26 }
 0x3b6   :  { %24015 = vmatpush1.bf16.msra.mxu1 %v28352_v26  ;;  %23921 = vmatprep.subr.bf16.mxu0 %v28354_v48 }
 0x3b7   :  { %24017 = vmatprep.subr.bf16.mxu1 %v28354_v48 }
 0x3b9   :  { %23923 = vmatpush1.bf16.msra.mxu0 %v28356_v28 }
 0x3ba   :  { %24019 = vmatpush1.bf16.msra.mxu1 %v28356_v28  ;;  %23925 = vmatprep.subr.bf16.mxu0 %v28182_v53 }
 0x3bb   :  { %24021 = vmatprep.subr.bf16.mxu1 %v28182_v53 }
 0x3bc   :  { %4308 = vmatmul.mubr.f32.vlgmr.msra.gmra.mrb[4].mxu0 %v28395_v61  ;;  %v3869_v61 = vld [vmem:[#allocation12 + $0x68] sm:$0xff] }
 0x3bd   :  { %4963 = vmatmul.mubr.f32.vlgmr.msra.gmra.mrb[2].mxu1 %v28398_v27  ;;  %23927 = vmatpush1.bf16.msra.mxu0 %v28192_v49  ;;  %v3871_v27 = vld [vmem:[#allocation12 + $0x78] sm:$0xff]  ;;  %v6615_v8 = vand.u32 4294901760, %v3869_v61 }
 0x3be   :  { %24023 = vmatpush1.bf16.msra.mxu1 %v28192_v49  ;;  %23929 = vmatprep.subr.bf16.mxu0 %v28194_v56  ;;  %v6619_v31 = vand.u32 4294901760, %v3871_v27 }
 0x3bf   :  { %24025 = vmatprep.subr.bf16.mxu1 %v28194_v56  ;;  %4394 = vmatprep.mubr.f32.mxu0 %v32773_v35 }
 0x3c0   :  { %5049 = vmatprep.mubr.f32.mxu1 %v32773_v35 }
 0x3c1   :  { %23931 = vmatpush1.bf16.msra.mxu0 %v28205_v60 }
 0x3c2   :  { %24027 = vmatpush1.bf16.msra.mxu1 %v28205_v60  ;;  %23933 = vmatprep.subr.bf16.mxu0 %v28217_v3 }
 0x3c3   :  { %24029 = vmatprep.subr.bf16.mxu1 %v28217_v3 }
 0x3c5   :  { %23935 = vmatpush1.bf16.msra.mxu0 %v28233_v62 }
 0x3c6   :  { %24031 = vmatpush1.bf16.msra.mxu1 %v28233_v62  ;;  %23937 = vmatprep.subr.bf16.mxu0 %v28246_v17 }
 0x3c7   :  { %24033 = vmatprep.subr.bf16.mxu1 %v28246_v17 }
 0x3c9   :  { %23939 = vmatpush1.bf16.msra.mxu0 %v28255_v30 }
 0x3ca   :  { %24035 = vmatpush1.bf16.msra.mxu1 %v28255_v30  ;;  %23941 = vmatprep.subr.bf16.mxu0 %v28362_v59 }
 0x3cb   :  { %24037 = vmatprep.subr.bf16.mxu1 %v28362_v59 }
 0x3cc   :  { %4398 = vmatmul.mubr.f32.vlgmr.msra.gmra.mrb[4].mxu0 %v4048_v34  ;;  %v3868_v34 = vld [vmem:[#allocation12 + $0x60] sm:$0xff] }
 0x3cd   :  { %5053 = vmatmul.mubr.f32.vlgmr.msra.gmra.mrb[2].mxu1 %v4703_v44  ;;  %23943 = vmatpush1.bf16.msra.mxu0 %v28368_v40  ;;  %v3870_v44 = vld [vmem:[#allocation12 + $0x70] sm:$0xff]  ;;  %v6617_v16 = vand.u32 4294901760, %v3868_v34 }
 0x3ce   :  { %24039 = vmatpush1.bf16.msra.mxu1 %v28368_v40  ;;  %23945 = vmatprep.subr.bf16.mxu0 %v28374_v42 }
 0x3cf   :  { %24041 = vmatprep.subr.bf16.mxu1 %v28374_v42  ;;  %4516 = vmatprep.mubr.f32.mxu0 %v32773_v35 }
 0x3d0   :  { %5171 = vmatprep.mubr.f32.mxu1 %v32773_v35 }
 0x3d1   :  { %23947 = vmatpush1.bf16.msra.mxu0 %v28376_v47 }
 0x3d2   :  { %24043 = vmatpush1.bf16.msra.mxu1 %v28376_v47  ;;  %23949 = vmatprep.subr.bf16.mxu0 %v28378_v41 }
 0x3d3   :  { %24045 = vmatprep.subr.bf16.mxu1 %v28378_v41 }
 0x3d5   :  { %23951 = vmatpush1.bf16.msra.mxu0 %v28380_v2 }
 0x3d6   :  { %24047 = vmatpush1.bf16.msra.mxu1 %v28380_v2  ;;  %23953 = vmatprep.subr.bf16.mxu0 %v28382_v7 }
 0x3d7   :  { %24049 = vmatprep.subr.bf16.mxu1 %v28382_v7 }
 0x3d9   :  { %23955 = vmatpush1.bf16.msra.mxu0 %v28384_v52 }
 0x3da   :  { %24051 = vmatpush1.bf16.msra.mxu1 %v28384_v52  ;;  %23957 = vmatprep.subr.bf16.mxu0 %v28182_v53 }
 0x3db   :  { %24053 = vmatprep.subr.bf16.mxu1 %v28182_v53 }
 0x3dc   :  { %4518 = vmatmul.mubr.f32.vlgmr.msra.gmra.mrb[4].mxu0 %v28389_v11 }
 0x3dd   :  { %5173 = vmatmul.mubr.f32.vlgmr.msra.gmra.mrb[2].mxu1 %v28392_v4  ;;  %23959 = vmatpush1.bf16.msra.mxu0 %v28192_v49 }
 0x3de   :  { %24055 = vmatpush1.bf16.msra.mxu1 %v28192_v49  ;;  %23961 = vmatprep.subr.bf16.mxu0 %v28194_v56 }
 0x3df   :  { %24057 = vmatprep.subr.bf16.mxu1 %v28194_v56  ;;  %4604 = vmatprep.mubr.f32.mxu0 %v32773_v35 }
 0x3e0   :  { %5259 = vmatprep.mubr.f32.mxu1 %v32773_v35 }
 0x3e1   :  { %23963 = vmatpush1.bf16.msra.mxu0 %v28205_v60 }
 0x3e2   :  { %24059 = vmatpush1.bf16.msra.mxu1 %v28205_v60  ;;  %23965 = vmatprep.subr.bf16.mxu0 %v28217_v3 }
 0x3e3   :  { %24061 = vmatprep.subr.bf16.mxu1 %v28217_v3 }
 0x3e5   :  { %23967 = vmatpush1.bf16.msra.mxu0 %v28233_v62 }
 0x3e6   :  { %24063 = vmatpush1.bf16.msra.mxu1 %v28233_v62  ;;  %23969 = vmatprep.subr.bf16.mxu0 %v28246_v17 }
 0x3e7   :  { %24065 = vmatprep.subr.bf16.mxu1 %v28246_v17 }
 0x3e9   :  { %23971 = vmatpush1.bf16.msra.mxu0 %v28255_v30 }
 0x3ea   :  { %24067 = vmatpush1.bf16.msra.mxu1 %v28255_v30  ;;  %24069 = vmatprep.subr.bf16.mxu0 %v28182_v53 }
 0x3eb   :  { %24165 = vmatprep.subr.bf16.mxu1 %v28182_v53 }
 0x3ec   :  { %4606 = vmatmul.mubr.f32.vlgmr.msra.gmra.mrb[4].mxu0 %v28389_v11 }
 0x3ed   :  { %5261 = vmatmul.mubr.f32.vlgmr.msra.gmra.mrb[2].mxu1 %v28392_v4  ;;  %24071 = vmatpush1.bf16.msra.mxu0 %v28192_v49 }
 0x3ee   :  { %24167 = vmatpush1.bf16.msra.mxu1 %v28192_v49  ;;  %24073 = vmatprep.subr.bf16.mxu0 %v28194_v56 }
 0x3ef   :  { %24169 = vmatprep.subr.bf16.mxu1 %v28194_v56  ;;  %5355 = vmatprep.mubr.f32.mxu0 %v32773_v35 }
 0x3f0   :  { %6010 = vmatprep.mubr.f32.mxu1 %v32773_v35 }
 0x3f1   :  { %24075 = vmatpush1.bf16.msra.mxu0 %v28205_v60 }
 0x3f2   :  { %24171 = vmatpush1.bf16.msra.mxu1 %v28205_v60  ;;  %24077 = vmatprep.subr.bf16.mxu0 %v28217_v3 }
 0x3f3   :  { %24173 = vmatprep.subr.bf16.mxu1 %v28217_v3 }
 0x3f5   :  { %24079 = vmatpush1.bf16.msra.mxu0 %v28233_v62 }
 0x3f6   :  { %24175 = vmatpush1.bf16.msra.mxu1 %v28233_v62  ;;  %24081 = vmatprep.subr.bf16.mxu0 %v28246_v17 }
 0x3f7   :  { %24177 = vmatprep.subr.bf16.mxu1 %v28246_v17 }
 0x3f9   :  { %24083 = vmatpush1.bf16.msra.mxu0 %v28255_v30 }
 0x3fa   :  { %24179 = vmatpush1.bf16.msra.mxu1 %v28255_v30  ;;  %24085 = vmatprep.subr.bf16.mxu0 %v28263_v37 }
 0x3fb   :  { %24181 = vmatprep.subr.bf16.mxu1 %v28263_v37  ;;  %v3859_v37 = vld [vmem:[#allocation12 + $0x18] sm:$0xff] }
 0x3fc   :  { %5361 = vmatmul.mubr.f32.vlgmr.msra.gmra.mrb[6].mxu0 %v5360_v50 }
 0x3fd   :  { %6016 = vmatmul.mubr.f32.vlgmr.msra.gmra.mrb[4].mxu1 %v6015_v19  ;;  %24087 = vmatpush1.bf16.msra.mxu0 %v28301_v15 }
 0x3fe   :  { %24183 = vmatpush1.bf16.msra.mxu1 %v28301_v15  ;;  %24089 = vmatprep.subr.bf16.mxu0 %v28312_v20  ;;  %v6595_v15 = vand.u32 4294901760, %v3859_v37 }
 0x3ff   :  { %24185 = vmatprep.subr.bf16.mxu1 %v28312_v20  ;;  %5511 = vmatprep.mubr.f32.mxu0 %v32773_v35  ;;  %v3856_v20 = vld [vmem:[#allocation12] sm:$0xff] }
 0x400   :  { %6166 = vmatprep.mubr.f32.mxu1 %v32773_v35 }
 0x401   :  { %24091 = vmatpush1.bf16.msra.mxu0 %v28320_v22 }
 0x402   :  { %24187 = vmatpush1.bf16.msra.mxu1 %v28320_v22  ;;  %24093 = vmatprep.subr.bf16.mxu0 %v28326_v32  ;;  %v3861_v22 = vld [vmem:[#allocation12 + $0x28] sm:$0xff] }
 0x403   :  { %24189 = vmatprep.subr.bf16.mxu1 %v28326_v32  ;;  %v3863_v32 = vld [vmem:[#allocation12 + $0x38] sm:$0xff] }
 0x405   :  { %24095 = vmatpush1.bf16.msra.mxu0 %v28328_v23 }
 0x406   :  { %24191 = vmatpush1.bf16.msra.mxu1 %v28328_v23  ;;  %24097 = vmatprep.subr.bf16.mxu0 %v28330_v55  ;;  %v3860_v23 = vld [vmem:[#allocation12 + $0x20] sm:$0xff] }
 0x407   :  { %24193 = vmatprep.subr.bf16.mxu1 %v28330_v55 }
 0x409   :  { %24099 = vmatpush1.bf16.msra.mxu0 %v28332_v13 }
 0x40a   :  { %24195 = vmatpush1.bf16.msra.mxu1 %v28332_v13  ;;  %24101 = vmatprep.subr.bf16.mxu0 %v28336_v46  ;;  %v3857_v13 = vld [vmem:[#allocation12 + $0x8] sm:$0xff] }
 0x40b   :  { %24197 = vmatprep.subr.bf16.mxu1 %v28336_v46  ;;  %v28642_v46 = vsub.f32 %v3859_v37, %v6595_v15 }
 0x40c   :  { %5513 = vmatmul.mubr.f32.vlgmr.msra.gmra.mrb[6].mxu0 %v28509_v38 }
 0x40d   :  { %6168 = vmatmul.mubr.f32.vlgmr.msra.gmra.mrb[4].mxu1 %v28512_v21  ;;  %24103 = vmatpush1.bf16.msra.mxu0 %v28340_v10 }
 0x40e   :  { %24199 = vmatpush1.bf16.msra.mxu1 %v28340_v10  ;;  %24105 = vmatprep.subr.bf16.mxu0 %v28344_v29 }
 0x40f   :  { %24201 = vmatprep.subr.bf16.mxu1 %v28344_v29  ;;  %5615 = vmatprep.mubr.f32.mxu0 %v32773_v35  ;;  %v6593_v29 = vand.u32 4294901760, %v3856_v20 }
 0x410   :  { %6270 = vmatprep.mubr.f32.mxu1 %v32773_v35 }
 0x411   :  { %24107 = vmatpush1.bf16.msra.mxu0 %v28348_v0 }
 0x412   :  { %24203 = vmatpush1.bf16.msra.mxu1 %v28348_v0  ;;  %24109 = vmatprep.subr.bf16.mxu0 %v28350_v12  ;;  %v6599_v0 = vand.u32 4294901760, %v3861_v22 }
 0x413   :  { %24205 = vmatprep.subr.bf16.mxu1 %v28350_v12  ;;  %v6603_v12 = vand.u32 4294901760, %v3863_v32 }
 0x415   :  { %24111 = vmatpush1.bf16.msra.mxu0 %v28352_v26 }
 0x416   :  { %24207 = vmatpush1.bf16.msra.mxu1 %v28352_v26  ;;  %24113 = vmatprep.subr.bf16.mxu0 %v28354_v48 }
 0x417   :  { %24209 = vmatprep.subr.bf16.mxu1 %v28354_v48  ;;  %v3865_v48 = vld [vmem:[#allocation12 + $0x48] sm:$0xff] }
 0x419   :  { %24115 = vmatpush1.bf16.msra.mxu0 %v28356_v28 }
 0x41a   :  { %24211 = vmatpush1.bf16.msra.mxu1 %v28356_v28  ;;  %24117 = vmatprep.subr.bf16.mxu0 %v28182_v53  ;;  %v3867_v28 = vld [vmem:[#allocation12 + $0x58] sm:$0xff] }
 0x41b   :  { %24213 = vmatprep.subr.bf16.mxu1 %v28182_v53  ;;  %v6611_v43 = vand.u32 4294901760, %v3867_v28 }
 0x41c   :  { %5618 = vmatmul.mubr.f32.vlgmr.msra.gmra.mrb[6].mxu0 %v28520_v63 }
 0x41d   :  { %6273 = vmatmul.mubr.f32.vlgmr.msra.gmra.mrb[4].mxu1 %v28525_v33  ;;  %24119 = vmatpush1.bf16.msra.mxu0 %v28192_v49  ;;  %v28693_v33 = vsub.f32 %v3867_v28, %v6611_v43 }
 0x41e   :  { %24215 = vmatpush1.bf16.msra.mxu1 %v28192_v49  ;;  %24121 = vmatprep.subr.bf16.mxu0 %v28194_v56 }
 0x41f   :  { %24217 = vmatprep.subr.bf16.mxu1 %v28194_v56  ;;  %5704 = vmatprep.mubr.f32.mxu0 %v32773_v35 }
 0x420   :  { %6359 = vmatprep.mubr.f32.mxu1 %v32773_v35 }
 0x421   :  { %24123 = vmatpush1.bf16.msra.mxu0 %v28205_v60 }
 0x422   :  { %24219 = vmatpush1.bf16.msra.mxu1 %v28205_v60  ;;  %24125 = vmatprep.subr.bf16.mxu0 %v28217_v3 }
 0x423   :  { %24221 = vmatprep.subr.bf16.mxu1 %v28217_v3 }
 0x425   :  { %24127 = vmatpush1.bf16.msra.mxu0 %v28233_v62 }
 0x426   :  { %24223 = vmatpush1.bf16.msra.mxu1 %v28233_v62  ;;  %24129 = vmatprep.subr.bf16.mxu0 %v28246_v17 }
 0x427   :  { %24225 = vmatprep.subr.bf16.mxu1 %v28246_v17 }
 0x429   :  { %24131 = vmatpush1.bf16.msra.mxu0 %v28255_v30 }
 0x42a   :  { %24227 = vmatpush1.bf16.msra.mxu1 %v28255_v30  ;;  %24133 = vmatprep.subr.bf16.mxu0 %v28362_v59 }
 0x42b   :  { %24229 = vmatprep.subr.bf16.mxu1 %v28362_v59  ;;  %v3864_v59 = vld [vmem:[#allocation12 + $0x40] sm:$0xff] }
 0x42c   :  { %5708 = vmatmul.mubr.f32.vlgmr.msra.gmra.mrb[6].mxu0 %v5358_v25  ;;  %v6609_v4 = vand.u32 4294901760, %v3864_v59 }
 0x42d   :  { %6363 = vmatmul.mubr.f32.vlgmr.msra.gmra.mrb[4].mxu1 %v6013_v18  ;;  %24135 = vmatpush1.bf16.msra.mxu0 %v28368_v40 }
 0x42e   :  { %24231 = vmatpush1.bf16.msra.mxu1 %v28368_v40  ;;  %24137 = vmatprep.subr.bf16.mxu0 %v28374_v42  ;;  %v28713_v37 = vpack.c.bf16 %v6613_v57, %v6609_v4 }
 0x42f   :  { %24233 = vmatprep.subr.bf16.mxu1 %v28374_v42  ;;  %5826 = vmatprep.mubr.f32.mxu0 %v32773_v35  ;;  %v6697_v42 = vand.u32 4294901760, %v28642_v46 }
 0x430   :  { %6481 = vmatprep.mubr.f32.mxu1 %v32773_v35  ;;  %32779 = vst [vmem:[#allocation31_spill] sm:$0xff] %v28713_v37 }
 0x431   :  { %24139 = vmatpush1.bf16.msra.mxu0 %v28376_v47 }
 0x432   :  { %24235 = vmatpush1.bf16.msra.mxu1 %v28376_v47  ;;  %24141 = vmatprep.subr.bf16.mxu0 %v28378_v41  ;;  %v28652_v47 = vsub.f32 %v3856_v20, %v6593_v29  ;;  %v28719_v20 = vsub.f32 %v3866_v51, %v6613_v57 }
 0x433   :  { %24237 = vmatprep.subr.bf16.mxu1 %v28378_v41 }
 0x434   :  { %v6691_v36 = vand.u32 4294901760, %v28652_v47 }
 0x435   :  { %24143 = vmatpush1.bf16.msra.mxu0 %v28380_v2 }
 0x436   :  { %24239 = vmatpush1.bf16.msra.mxu1 %v28380_v2  ;;  %24145 = vmatprep.subr.bf16.mxu0 %v28382_v7  ;;  %v28658_v2 = vsub.f32 %v3863_v32, %v6603_v12  ;;  %v28724_v32 = vsub.f32 %v3869_v61, %v6615_v8 }
 0x437   :  { %24241 = vmatprep.subr.bf16.mxu1 %v28382_v7 }
 0x438   :  { %v6721_v54 = vand.u32 4294901760, %v28658_v2  ;;  %v6757_v61 = vand.u32 4294901760, %v28724_v32 }
 0x439   :  { %24147 = vmatpush1.bf16.msra.mxu0 %v28384_v52 }
 0x43a   :  { %24243 = vmatpush1.bf16.msra.mxu1 %v28384_v52  ;;  %24149 = vmatprep.subr.bf16.mxu0 %v28182_v53  ;;  %v6607_v52 = vand.u32 4294901760, %v3865_v48  ;;  %v6722_v50 = vsub.f32 %v28658_v2, %v6721_v54 }
 0x43b   :  { %24245 = vmatprep.subr.bf16.mxu1 %v28182_v53  ;;  %v6591_v53 = vand.u32 4294901760, %v3857_v13 }
 0x43c   :  { %5828 = vmatmul.mubr.f32.vlgmr.msra.gmra.mrb[6].mxu0 %v28509_v38  ;;  %v28687_v24 = vpack.c.bf16 %v6611_v43, %v6607_v52  ;;  %v28691_v63 = vsub.f32 %v3865_v48, %v6607_v52  ;;  %v28743_v52 = vsub.f32 %v3868_v34, %v6617_v16 }
 0x43d   :  { %6483 = vmatmul.mubr.f32.vlgmr.msra.gmra.mrb[4].mxu1 %v28512_v21  ;;  %24151 = vmatpush1.bf16.msra.mxu0 %v28192_v49  ;;  %v28640_v55 = vsub.f32 %v3857_v13, %v6591_v53  ;;  %v28645_v10 = vpack.c.bf16 %v6595_v15, %v6591_v53  ;;  %v28715_v53 = vpack.c.bf16 %v6619_v31, %v6615_v8 }
 0x43e   :  { %24247 = vmatpush1.bf16.msra.mxu1 %v28192_v49  ;;  %24153 = vmatprep.subr.bf16.mxu0 %v28194_v56  ;;  %v3858_v49 = vld [vmem:[#allocation12 + $0x10] sm:$0xff]  ;;  %32778 = vst [vmem:[#allocation30_spill] sm:$0xff] %v28687_v24  ;;  %v28717_v15 = vsub.f32 %v3864_v59, %v6609_v4  ;;  %v6751_v59 = vand.u32 4294901760, %v28719_v20 }
 0x43f   :  { %24249 = vmatprep.subr.bf16.mxu1 %v28194_v56  ;;  %5914 = vmatprep.mubr.f32.mxu0 %v32773_v35  ;;  %v3862_v56 = vld [vmem:[#allocation12 + $0x30] sm:$0xff]  ;;  %32774 = vst [vmem:[#allocation26_spill] sm:$0xff] %v28645_v10  ;;  %v6685_v40 = vand.u32 4294901760, %v28640_v55  ;;  %32780 = vst [vmem:[#allocation32_spill] sm:$0xff] %v28715_v53 }
 0x440   :  { %6569 = vmatprep.mubr.f32.mxu1 %v32773_v35  ;;  %v6605_v26 = vand.u32 4294901760, %v3862_v56  ;;  %v6739_v28 = vand.u32 4294901760, %v28717_v15  ;;  %v6752_v8 = vsub.f32 %v28719_v20, %v6751_v59 }
 0x441   :  { %24155 = vmatpush1.bf16.msra.mxu0 %v28205_v60  ;;  %v6686_v14 = vsub.f32 %v28640_v55, %v6685_v40 }
 0x442   :  { %24251 = vmatpush1.bf16.msra.mxu1 %v28205_v60  ;;  %24157 = vmatprep.subr.bf16.mxu0 %v28217_v3  ;;  %v6597_v60 = vand.u32 4294901760, %v3858_v49  ;;  %v28683_v9 = vsub.f32 %v3862_v56, %v6605_v26  ;;  %v6740_v57 = vsub.f32 %v28717_v15, %v6739_v28 }
 0x443   :  { %24253 = vmatprep.subr.bf16.mxu1 %v28217_v3  ;;  %v6601_v3 = vand.u32 4294901760, %v3860_v23  ;;  %v6687_v25 = vand.u32 4294901760, %v6686_v14 }
 0x444   :  { %v28654_v41 = vsub.f32 %v3858_v49, %v6597_v60  ;;  %v28661_v7 = vpack.c.bf16 %v6597_v60, %v6593_v29  ;;  %v6727_v13 = vand.u32 4294901760, %v28683_v9  ;;  %v6733_v49 = vand.u32 4294901760, %v28691_v63 }
 0x445   :  { %24159 = vmatpush1.bf16.msra.mxu0 %v28233_v62  ;;  %v28667_v11 = vpack.c.bf16 %v6605_v26, %v6601_v3  ;;  %v28681_v6 = vsub.f32 %v3860_v23, %v6601_v3  ;;  %v28726_v23 = vsub.f32 %v3871_v27, %v6619_v31  ;;  %v6723_v3 = vand.u32 4294901760, %v6722_v50 }
 0x446   :  { %24255 = vmatpush1.bf16.msra.mxu1 %v28233_v62  ;;  %24161 = vmatprep.subr.bf16.mxu0 %v28246_v17  ;;  %v28656_v62 = vsub.f32 %v3861_v22, %v6599_v0  ;;  %32775 = vst [vmem:[#allocation27_spill] sm:$0xff] %v28661_v7  ;;  %v6703_v58 = vand.u32 4294901760, %v28654_v41  ;;  %v6745_v22 = vand.u32 4294901760, %v28693_v33  ;;  %v6728_v48 = vsub.f32 %v28683_v9, %v6727_v13 }
 0x447   :  { %24257 = vmatprep.subr.bf16.mxu1 %v28246_v17  ;;  %v28665_v17 = vpack.c.bf16 %v6603_v12, %v6599_v0  ;;  %32777 = vst [vmem:[#allocation29_spill] sm:$0xff] %v28667_v11  ;;  %v6715_v19 = vand.u32 4294901760, %v28681_v6  ;;  %v6734_v51 = vsub.f32 %v28691_v63, %v6733_v49  ;;  %v6769_v27 = vand.u32 4294901760, %v28726_v23 }
 0x448   :  { %v6709_v5 = vand.u32 4294901760, %v28656_v62  ;;  %v6704_v39 = vsub.f32 %v28654_v41, %v6703_v58  ;;  %v6746_v4 = vsub.f32 %v28693_v33, %v6745_v22  ;;  %v6763_v31 = vand.u32 4294901760, %v28743_v52 }
 0x449   :  { %24163 = vmatpush1.bf16.msra.mxu0 %v28255_v30  ;;  %32776 = vst [vmem:[#allocation28_spill] sm:$0xff] %v28665_v17  ;;  %v6716_v26 = vsub.f32 %v28681_v6, %v6715_v19  ;;  %v6753_v50 = vand.u32 4294901760, %v6752_v8  ;;  %v28811_v8 = vpack.c.bf16 %v28654_v41, %v28652_v47 }
 0x44a   :  { %24259 = vmatpush1.bf16.msra.mxu1 %v28255_v30  ;;  %24261 = vmatprep.subr.bf16.mxu0 %v28645_v10  ;;  %v6698_v30 = vsub.f32 %v28642_v46, %v6697_v42  ;;  %v6710_v45 = vsub.f32 %v28656_v62, %v6709_v5  ;;  %v6705_v0 = vand.u32 4294901760, %v6704_v39 }
 0x44b   :  { %24357 = vmatprep.subr.bf16.mxu1 %v28645_v10  ;;  %v6717_v14 = vand.u32 4294901760, %v6716_v26  ;;  %32791 = vst [vmem:[#allocation43_spill] sm:$0xff] %v28811_v8 }
 0x44c   :  { %5916 = vmatmul.mubr.f32.vlgmr.msra.gmra.mrb[6].mxu0 %v28509_v38  ;;  %v6621_v38 = vand.u32 4294901760, %v3870_v44  ;;  %v6699_v18 = vand.u32 4294901760, %v6698_v30  ;;  %v6711_v12 = vand.u32 4294901760, %v6710_v45  ;;  %v6729_v30 = vand.u32 4294901760, %v6728_v48 }
 0x44d   :  { %6571 = vmatmul.mubr.f32.vlgmr.msra.gmra.mrb[4].mxu1 %v28512_v21  ;;  %24263 = vmatpush1.bf16.msra.mxu0 %v28661_v7  ;;  %v6692_v21 = vsub.f32 %v28652_v47, %v6691_v36  ;;  %v6741_v45 = vand.u32 4294901760, %v6740_v57  ;;  %v28806_v57 = vpack.c.bf16 %v28642_v46, %v28640_v55  ;;  %v28882_v55 = vpack.c.bf16 %v6727_v13, %v6715_v19 }
 0x44e   :  { %24265 = vmatprep.subr.bf16.mxu0 %v28665_v17  ;;  %6671 = vmatprep.mubr.f32.mxu0 %v32773_v35  ;;  %v28728_v56 = vpack.c.bf16 %v6621_v38, %v6617_v16  ;;  %v28730_v29 = vpack.c.bf16 %v6699_v18, %v6687_v25  ;;  %v28745_v43 = vsub.f32 %v3870_v44, %v6621_v38  ;;  %v6735_v38 = vand.u32 4294901760, %v6734_v51 }
 0x44f   :  { %24359 = vmatpush1.bf16.msra.mxu1 %v28661_v7  ;;  %7341 = vmatprep.mubr.f32.mxu1 %v32773_v35  ;;  %v6693_v60 = vand.u32 4294901760, %v6692_v21  ;;  %v28759_v44 = vpack.c.bf16 %v6723_v3, %v6711_v12  ;;  %v6747_v25 = vand.u32 4294901760, %v6746_v4  ;;  %v6758_v18 = vsub.f32 %v28724_v32, %v6757_v61  ;;  %32790 = vst [vmem:[#allocation42_spill] sm:$0xff] %v28806_v57 }
 0x450   :  { %24361 = vmatprep.subr.bf16.mxu1 %v28665_v17  ;;  %32781 = vst [vmem:[#allocation33_spill] sm:$0xff] %v28728_v56  ;;  %32782 = vst [vmem:[#allocation34_spill] sm:$0xff] %v28730_v29  ;;  %v6775_v16 = vand.u32 4294901760, %v28745_v43  ;;  %v6770_v21 = vsub.f32 %v28726_v23, %v6769_v27  ;;  %v28780_v39 = vpack.c.bf16 %v6729_v30, %v6717_v14 }
 0x451   :  { %24267 = vmatpush1.bf16.msra.mxu0 %v28667_v11  ;;  %v28757_v34 = vpack.c.bf16 %v6705_v0, %v6693_v60  ;;  %32784 = vst [vmem:[#allocation36_spill] sm:$0xff] %v28759_v44  ;;  %v6764_v60 = vsub.f32 %v28743_v52, %v6763_v31  ;;  %v28792_v12 = vpack.c.bf16 %v6747_v25, %v6735_v38  ;;  %v6759_v3 = vand.u32 4294901760, %v6758_v18 }
 0x452   :  { %24269 = vmatprep.subr.bf16.mxu0 %v28687_v24  ;;  %32785 = vst [vmem:[#allocation37_spill] sm:$0xff] %v28780_v39  ;;  %v6776_v0 = vsub.f32 %v28745_v43, %v6775_v16  ;;  %v6771_v26 = vand.u32 4294901760, %v6770_v21  ;;  %v28795_v48 = vpack.c.bf16 %v6753_v50, %v6741_v45  ;;  %v28816_v38 = vpack.c.bf16 %v28658_v2, %v28656_v62 }
 0x453   :  { %24363 = vmatpush1.bf16.msra.mxu1 %v28667_v11  ;;  %32783 = vst [vmem:[#allocation35_spill] sm:$0xff] %v28757_v34  ;;  %32786 = vst [vmem:[#allocation38_spill] sm:$0xff] %v28792_v12  ;;  %v6765_v51 = vand.u32 4294901760, %v6764_v60  ;;  %v28822_v25 = vpack.c.bf16 %v28683_v9, %v28681_v6  ;;  %v28828_v18 = vpack.c.bf16 %v28693_v33, %v28691_v63  ;;  %v28940_v9 = vsub.s32 0, %v27677_v1  ;;  %v3855_v63 = vld [vmem:[%s32277_s7] sm:$0x3] }
 0x454   :  { %24365 = vmatprep.subr.bf16.mxu1 %v28687_v24  ;;  %32787 = vst [vmem:[#allocation39_spill] sm:$0xff] %v28795_v48  ;;  %v6777_v4 = vand.u32 4294901760, %v6776_v0  ;;  %v28798_v14 = vpack.c.bf16 %v6771_v26, %v6759_v3  ;;  %32792 = vst [vmem:[#allocation44_spill] sm:$0xff] %v28816_v38  ;;  %v28833_v21 = vpack.c.bf16 %v28719_v20, %v28717_v15  ;;  %v3872_v33 = vld [vmem:[%s32278_s8] sm:$0x3]  ;;  %s27469_s7 = smov 64  }
 0x455   :  { %24271 = vmatpush1.bf16.msra.mxu0 %v28713_v37  ;;  %32793 = vst [vmem:[#allocation45_spill] sm:$0xff] %v28822_v25  ;;  %32794 = vst [vmem:[#allocation46_spill] sm:$0xff] %v28828_v18  ;;  %v28838_v45 = vpack.c.bf16 %v28726_v23, %v28724_v32  ;;  %v28843_v50 = vpack.c.bf16 %v28745_v43, %v28743_v52  ;;  %v28860_v60 = vpack.c.bf16 %v6697_v42, %v6685_v40 }
 0x456   :  { %24273 = vmatprep.subr.bf16.mxu0 %v28715_v53  ;;  %32788 = vst [vmem:[#allocation40_spill] sm:$0xff] %v28798_v14  ;;  %v28801_v30 = vpack.c.bf16 %v6777_v4, %v6765_v51  ;;  %32795 = vst [vmem:[#allocation47_spill] sm:$0xff] %v28833_v21  ;;  %v28867_v0 = vpack.c.bf16 %v6703_v58, %v6691_v36  ;;  %v28874_v3 = vpack.c.bf16 %v6721_v54, %v6709_v5  ;;  %v3874_v4 = vld [vmem:[#allocation13 + $0x8] sm:$0xff] }
 0x457   :  { %24367 = vmatpush1.bf16.msra.mxu1 %v28713_v37  ;;  %32796 = vst [vmem:[#allocation48_spill] sm:$0xff] %v28838_v45  ;;  %32797 = vst [vmem:[#allocation49_spill] sm:$0xff] %v28843_v50  ;;  %v28890_v46 = vpack.c.bf16 %v6745_v22, %v6733_v49  ;;  %v28897_v40 = vpack.c.bf16 %v6751_v59, %v6739_v28  ;;  %v28904_v42 = vpack.c.bf16 %v6769_v27, %v6757_v61 }
 0x458   :  { %24369 = vmatprep.subr.bf16.mxu1 %v28715_v53  ;;  %32789 = vst [vmem:[#allocation41_spill] sm:$0xff] %v28801_v30  ;;  %32798 = vst [vmem:[#allocation50_spill] sm:$0xff] %v28860_v60  ;;  %v28911_v47 = vpack.c.bf16 %v6775_v16, %v6763_v31  ;;  %v28949_v19 = vrot.slane %v3855_v63, %v28940_v9  ;;  %v28952_v13 = vrot.slane %v3872_v33, %v28940_v9 }
 0x459   :  { %24275 = vmatpush1.bf16.msra.mxu0 %v28728_v56  ;;  %32799 = vst [vmem:[#allocation51_spill] sm:$0xff] %v28867_v0  ;;  %32800 = vst [vmem:[#allocation52_spill] sm:$0xff] %v28874_v3  ;;  %v28957_v52 = vsub.s32 1, %v27677_v1 }
 0x45a   :  { %24277 = vmatprep.subr.bf16.mxu0 %v28730_v29  ;;  %32801 = vst [vmem:[#allocation53_spill] sm:$0xff] %v28882_v55  ;;  %32802 = vst [vmem:[#allocation54_spill] sm:$0xff] %v28890_v46 }
 0x45b   :  { %24371 = vmatpush1.bf16.msra.mxu1 %v28728_v56  ;;  %32803 = vst [vmem:[#allocation55_spill] sm:$0xff] %v28897_v40  ;;  %32804 = vst [vmem:[#allocation56_spill] sm:$0xff] %v28904_v42  ;;  %v28960_v43 = vrot.slane %v3872_v33, %v28957_v52  ;;  %v28963_v61 = vrot.slane %v3855_v63, %v28957_v52 }
 0x45c   :  { %6677 = vmatmul.mubr.f32.vlgmr.msra.gmra.mrb[8].mxu0 %v32773_v35  ;;  %24373 = vmatprep.subr.bf16.mxu1 %v28730_v29  ;;  %32805 = vst [vmem:[#allocation57_spill] sm:$0xff] %v28911_v47  ;;  %32812 = vst [vmem:[#allocation64_spill] sm:$0xff] %v28940_v9  ;;  %v3888_v9 = vld [vmem:[#allocation13 + $0x78] sm:$0xff]  ;;  %v3891_v29 = vld [vmem:[#allocation13 + $0x90] sm:$0xff] }
 0x45d   :  { %24279 = vmatpush1.bf16.msra.mxu0 %v28757_v34  ;;  %6827 = vmatprep.mubr.f32.mxu0 %v32773_v35  ;;  %32813 = vst [vmem:[#allocation65_spill] sm:$0xff] %v28949_v19  ;;  %32814 = vst [vmem:[#allocation66_spill] sm:$0xff] %v28952_v13 }
 0x45e   :  { %24281 = vmatprep.subr.bf16.mxu0 %v28759_v44  ;;  %32815 = vst [vmem:[#allocation67_spill] sm:$0xff] %v28957_v52  ;;  %32816 = vst [vmem:[#allocation68_spill] sm:$0xff] %v28960_v43  ;;  %v3885_v52 = vld [vmem:[#allocation13 + $0x60] sm:$0xff] }
 0x45f   :  { %32817 = vst [vmem:[#allocation69_spill] sm:$0xff] %v28963_v61 }
 0x461   :  { %24283 = vmatpush1.bf16.msra.mxu0 %v28780_v39 }
 0x462   :  { %24285 = vmatprep.subr.bf16.mxu0 %v28792_v12 }
 0x465   :  { %24287 = vmatpush1.bf16.msra.mxu0 %v28795_v48 }
 0x466   :  { %24289 = vmatprep.subr.bf16.mxu0 %v28798_v14 }
 0x469   :  { %24291 = vmatpush1.bf16.msra.mxu0 %v28801_v30 }
 0x46a   :  { %24293 = vmatprep.subr.bf16.mxu0 %v28806_v57 }
 0x46c   :  { %6829 = vmatmul.mubr.f32.vlgmr.msra.gmra.mrb[8].mxu0 %v32773_v35 }
 0x46d   :  { %24295 = vmatpush1.bf16.msra.mxu0 %v28811_v8  ;;  %6931 = vmatprep.mubr.f32.mxu0 %v32773_v35 }
 0x46e   :  { %24297 = vmatprep.subr.bf16.mxu0 %v28816_v38 }
 0x471   :  { %24299 = vmatpush1.bf16.msra.mxu0 %v28822_v25 }
 0x472   :  { %24301 = vmatprep.subr.bf16.mxu0 %v28828_v18 }
 0x475   :  { %24303 = vmatpush1.bf16.msra.mxu0 %v28833_v21 }
 0x476   :  { %24305 = vmatprep.subr.bf16.mxu0 %v28838_v45 }
 0x479   :  { %24307 = vmatpush1.bf16.msra.mxu0 %v28843_v50 }
 0x47a   :  { %24309 = vmatprep.subr.bf16.mxu0 %v28645_v10 }
 0x47c   :  { %6934 = vmatmul.mubr.f32.vlgmr.msra.gmra.mrb[8].mxu0 %v32773_v35 }
 0x47d   :  { %24311 = vmatpush1.bf16.msra.mxu0 %v28661_v7  ;;  %7020 = vmatprep.mubr.f32.mxu0 %v32773_v35 }
 0x47e   :  { %24313 = vmatprep.subr.bf16.mxu0 %v28665_v17 }
 0x481   :  { %24315 = vmatpush1.bf16.msra.mxu0 %v28667_v11 }
 0x482   :  { %24317 = vmatprep.subr.bf16.mxu0 %v28687_v24 }
 0x485   :  { %24319 = vmatpush1.bf16.msra.mxu0 %v28713_v37 }
 0x486   :  { %24321 = vmatprep.subr.bf16.mxu0 %v28715_v53 }
 0x489   :  { %24323 = vmatpush1.bf16.msra.mxu0 %v28728_v56 }
 0x48a   :  { %24325 = vmatprep.subr.bf16.mxu0 %v28860_v60 }
 0x48c   :  { %7024 = vmatmul.mubr.f32.vlgmr.msra.gmra.mrb[8].mxu0 %v32773_v35 }
 0x48d   :  { %24327 = vmatpush1.bf16.msra.mxu0 %v28867_v0  ;;  %7142 = vmatprep.mubr.f32.mxu0 %v32773_v35 }
 0x48e   :  { %24329 = vmatprep.subr.bf16.mxu0 %v28874_v3 }
 0x491   :  { %24331 = vmatpush1.bf16.msra.mxu0 %v28882_v55 }
 0x492   :  { %24333 = vmatprep.subr.bf16.mxu0 %v28890_v46 }
 0x495   :  { %24335 = vmatpush1.bf16.msra.mxu0 %v28897_v40 }
 0x496   :  { %24337 = vmatprep.subr.bf16.mxu0 %v28904_v42 }
 0x499   :  { %24339 = vmatpush1.bf16.msra.mxu0 %v28911_v47  ;;  %v3894_v47 = vld [vmem:[#allocation13 + $0xa8] sm:$0xff] }
 0x49a   :  { %24341 = vmatprep.subr.bf16.mxu0 %v28645_v10 }
 0x49c   :  { %7144 = vmatmul.mubr.f32.vlgmr.msra.gmra.mrb[8].mxu0 %v32773_v35 }
 0x49d   :  { %24343 = vmatpush1.bf16.msra.mxu0 %v28661_v7  ;;  %7230 = vmatprep.mubr.f32.mxu0 %v32773_v35 }
 0x49e   :  { %24345 = vmatprep.subr.bf16.mxu0 %v28665_v17 }
 0x4a1   :  { %24347 = vmatpush1.bf16.msra.mxu0 %v28667_v11 }
 0x4a2   :  { %24349 = vmatprep.subr.bf16.mxu0 %v28687_v24 }
 0x4a5   :  { %24351 = vmatpush1.bf16.msra.mxu0 %v28713_v37 }
 0x4a6   :  { %24353 = vmatprep.subr.bf16.mxu0 %v28715_v53 }
 0x4a9   :  { %24355 = vmatpush1.bf16.msra.mxu0 %v28728_v56 }
 0x4ac   :  { %7232 = vmatmul.mubr.f32.vlgmr.msra.gmra.mrb[8].mxu0 %v32773_v35 }
 0x4ad   :  { %8022 = vmatprep.mubr.f32.mxu0 %v32773_v35 }
 0x4bf   :  { %v4607_v41 = vpop.f32.mrb[4].mxu0 }
 0x4c0   :  { %v28927_v62 = vpop.f32.mrb[2].mxu1  ;;  %v4609_v2 = vpop.f32.mrb[5].mxu0  ;;  %v26804_v20 = vadd.f32 %v4607_v41, %v28949_v19  ;;  %v3877_v41 = vld [vmem:[#allocation13 + $0x20] sm:$0xff] }
 0x4c1   :  { %32806 = vst [vmem:[#allocation58_spill] sm:$0xff] %v28927_v62  ;;  %v28929_v36 = vpop.f32.mrb[3].mxu1  ;;  %v26805_v16 = vadd.f32 %v4609_v2, %v28963_v61  ;;  %v7946_v33 = vand.u32 4294901760, %v3877_v41  ;;  %v7964_v61 = vand.u32 4294901760, %v3888_v9 }
 0x4c2   :  { %32807 = vst [vmem:[#allocation59_spill] sm:$0xff] %v28929_v36  ;;  %v7960_v36 = vand.u32 4294901760, %v3885_v52 }
 0x4c4   :  { %v29019_v1 = vpack.c.bf16 %v7964_v61, %v7960_v36  ;;  %v8089_v11 = vsub.f32 %v3885_v52, %v7960_v36 }
 0x4c6   :  { %32823 = vst [vmem:[#allocation75_spill] sm:$0xff] %v29019_v1 }
 0x51f   :  { %v28931_v58 = vpop.f32.mrb[6].mxu0 }
 0x520   :  { %32808 = vst [vmem:[#allocation60_spill] sm:$0xff] %v28931_v58  ;;  %v28933_v5 = vpop.f32.mrb[4].mxu1  ;;  %v28935_v54 = vpop.f32.mrb[7].mxu0 }
 0x521   :  { %32809 = vst [vmem:[#allocation61_spill] sm:$0xff] %v28933_v5  ;;  %32810 = vst [vmem:[#allocation62_spill] sm:$0xff] %v28935_v54  ;;  %v28937_v6 = vpop.f32.mrb[5].mxu1 }
 0x522   :  { %32811 = vst [vmem:[#allocation63_spill] sm:$0xff] %v28937_v6 }
 0x57f   :  { %v7233_v15 = vpop.f32.mrb[8].mxu0 }
 0x580   :  { %v26812_v49 = vadd.f32 %v7233_v15, %v28952_v13  ;;  %v7235_v22 = vpop.f32.mrb[9].mxu0  ;;  %v28970_v15 = vld [vmem:[#allocation13] sm:$0xff]  ;;  %v3892_v13 = vld [vmem:[#allocation13 + $0x98] sm:$0xff] }
 0x581   :  { %v26813_v27 = vadd.f32 %v7235_v22, %v28960_v43  ;;  %v32295_v63 = vand.u32 4294901760, %v28970_v15  ;;  %v28977_v22 = vld [vmem:[#allocation13 + $0x50] sm:$0xff]  ;;  %v7966_v62 = vand.u32 4294901760, %v3892_v13 }
 0x582   :  { %v7238_v32 = vadd.f32 %v26812_v49, %v26804_v20  ;;  %v7942_v20 = vand.u32 4294901760, %v3874_v4  ;;  %v28972_v49 = vld [vmem:[#allocation13 + $0x18] sm:$0xff] }
 0x583   :  { %v32292_v2 = vand.u32 4294901760, %v28972_v49 }
 0x584   :  { %v20767_v23 = vmul.f32 -1.442695, %v7238_v32  ;;  %v28975_v32 = vld [vmem:[#allocation13 + $0x38] sm:$0xff] }
 0x585   :  { %v28994_v6 = vpack.c.bf16 %v32292_v2, %v32295_v63 }
 0x586   :  { %27180 = vpow2.f32 %v20767_v23  ;;  %v32294_v23 = vand.u32 4294901760, %v28975_v32 }
 0x587   :  { %32819 = vst [vmem:[#allocation71_spill] sm:$0xff] %v28994_v6 }
 0x590   :  { %v27181_v28 = vpop.eup %27180 }
 0x591   :  { %v7242_v59 = vadd.f32 1.0, %v27181_v28  ;;  %v32293_v28 = vand.u32 4294901760, %v28977_v22 }
 0x593   :  { %27182 = vrcp.f32 %v7242_v59  ;;  %v28982_v59 = vld [vmem:[#allocation13 + $0x30] sm:$0xff]  ;;  %v29000_v5 = vpack.c.bf16 %v32293_v28, %v32294_v23  ;;  %v3886_v28 = vld [vmem:[#allocation13 + $0x68] sm:$0xff]  ;;  %v3889_v23 = vld [vmem:[#allocation13 + $0x80] sm:$0xff] }
 0x594   :  { %v7958_v63 = vand.u32 4294901760, %v3886_v28  ;;  %v7962_v58 = vand.u32 4294901760, %v3889_v23 }
 0x595   :  { %32820 = vst [vmem:[#allocation72_spill] sm:$0xff] %v29000_v5 }
 0x596   :  { %v29013_v43 = vpack.c.bf16 %v7962_v58, %v7958_v63  ;;  %v8083_v24 = vsub.f32 %v3886_v28, %v7958_v63 }
 0x598   :  { %32822 = vst [vmem:[#allocation74_spill] sm:$0xff] %v29013_v43 }
 0x59d   :  { %v28966_v31 = vpop.eup %27182 }
 0x59e   :  { %v7245_v26 = vmul.f32 %v28966_v31, %v26813_v27  ;;  %v28984_v27 = vld [vmem:[#allocation13 + $0x48] sm:$0xff]  ;;  %v7254_v60 = vmul.f32 0.0, %v28966_v31 }
 0x5a0   :  { %v7246_v51 = vadd.f32 %v26805_v16, %v7245_v26  ;;  %v28986_v16 = vpack.c.bf16 %v7946_v33, %v7942_v20  ;;  %v32305_v26 = vand.u32 4294901760, %v28982_v59 }
 0x5a2   :  { %27184 = vtanh.f32 %v7246_v51  ;;  %32818 = vst [vmem:[#allocation70_spill] sm:$0xff] %v28986_v16  ;;  %v32304_v51 = vand.u32 4294901760, %v28984_v27  ;;  %24453 = vmatprep.subr.bf16.mxu0 %v28986_v16 }
 0x5a3   :  { %24455 = vmatpush1.bf16.msra.mxu0 %v28994_v6 }
 0x5a4   :  { %v29008_v54 = vpack.c.bf16 %v32304_v51, %v32305_v26  ;;  %24457 = vmatprep.subr.bf16.mxu0 %v29000_v5  ;;  %v29015_v51 = vsub.f32 %v3874_v4, %v7942_v20  ;;  %v29017_v26 = vsub.f32 %v3877_v41, %v7946_v33  ;;  %v7968_v4 = vand.u32 4294901760, %v3891_v29 }
 0x5a5   :  { %v7972_v20 = vand.u32 4294901760, %v3894_v47  ;;  %v7248_v41 = vsub.f32 1.0, %v28966_v31  ;;  %v8084_v31 = vand.u32 4294901760, %v8083_v24 }
 0x5a6   :  { %32821 = vst [vmem:[#allocation73_spill] sm:$0xff] %v29008_v54  ;;  %v8036_v42 = vand.u32 4294901760, %v29015_v51  ;;  %v8048_v40 = vand.u32 4294901760, %v29017_v26  ;;  %v8113_v28 = vsub.f32 %v3891_v29, %v7968_v4 }
 0x5a7   :  { %24459 = vmatpush1.bf16.msra.mxu0 %v29008_v54  ;;  %v29030_v0 = vpack.c.bf16 %v7972_v20, %v7968_v4  ;;  %v8095_v54 = vsub.f32 %v3889_v23, %v7962_v58  ;;  %v8125_v52 = vsub.f32 %v3894_v47, %v7972_v20 }
 0x5a8   :  { %24461 = vmatprep.subr.bf16.mxu0 %v29013_v43  ;;  %v8037_v46 = vsub.f32 %v29015_v51, %v8036_v42  ;;  %v8049_v55 = vsub.f32 %v29017_v26, %v8048_v40  ;;  %v8114_v36 = vand.u32 4294901760, %v8113_v28 }
 0x5a9   :  { %32825 = vst [vmem:[#allocation77_spill] sm:$0xff] %v29030_v0  ;;  %v8126_v7 = vand.u32 4294901760, %v8125_v52 }
 0x5aa   :  { %v8038_v53 = vand.u32 4294901760, %v8037_v46  ;;  %v8107_v46 = vsub.f32 %v3892_v13, %v7966_v62  ;;  %v8115_v23 = vsub.f32 %v8113_v28, %v8114_v36 }
 0x5ab   :  { %24463 = vmatpush1.bf16.msra.mxu0 %v29019_v1  ;;  %v8050_v1 = vand.u32 4294901760, %v8049_v55  ;;  %v8085_v55 = vsub.f32 %v8083_v24, %v8084_v31  ;;  %v8127_v10 = vsub.f32 %v8125_v52, %v8126_v7 }
 0x5ac   :  { %v27185_v2 = vpop.eup %27184 }
 0x5ad   :  { %7250 = vrot.lane.b32.xlu0 %v27185_v2, %s27469_s7  ;;  %v3895_v2 = vld [vmem:[#allocation13 + $0xb0] sm:$0xff]  ;;  %v29037_v43 = vpack.c.bf16 %v8050_v1, %v8038_v53  ;;  %v8086_v1 = vand.u32 4294901760, %v8085_v55  ;;  %v8116_v55 = vand.u32 4294901760, %v8115_v23  ;;  %v8128_v29 = vand.u32 4294901760, %v8127_v10 }
 0x5ae   :  { %v7970_v19 = vand.u32 4294901760, %v3895_v2 }
 0x5af   :  { %32827 = vst [vmem:[#allocation79_spill] sm:$0xff] %v29037_v43 }
 0x5b0   :  { %v29026_v33 = vpack.c.bf16 %v7970_v19, %v7966_v62  ;;  %v8119_v63 = vsub.f32 %v3895_v2, %v7970_v19  ;;  %v29052_v2 = vpack.c.bf16 %v8128_v29, %v8116_v55 }
 0x5b2   :  { %32824 = vst [vmem:[#allocation76_spill] sm:$0xff] %v29026_v33  ;;  %24465 = vmatprep.subr.bf16.mxu0 %v29026_v33  ;;  %v8090_v33 = vand.u32 4294901760, %v8089_v11  ;;  %v8120_v58 = vand.u32 4294901760, %v8119_v63  ;;  %32832 = vst [vmem:[#allocation84_spill] sm:$0xff] %v29052_v2 }
 0x5b3   :  { %24467 = vmatpush1.bf16.msra.mxu0 %v29030_v0 }
 0x5b4   :  { %24469 = vmatprep.subr.bf16.mxu0 %v29037_v43  ;;  %v8121_v13 = vsub.f32 %v8119_v63, %v8120_v58 }
 0x5b6   :  { %v8122_v16 = vand.u32 4294901760, %v8121_v13 }
 0x61f   :  { %v7251_v3 = vpop.permute.xlu0 %7250 }
 0x620   :  { %v7253_v56 = vmul.f32 %v7251_v3, %v7248_v41  ;;  %v8101_v3 = vsub.f32 %v3888_v9, %v7964_v61  ;;  %v8096_v41 = vand.u32 4294901760, %v8095_v54 }
 0x622   :  { %v29035_v37 = vadd.f32 %v7254_v60, %v7253_v56  ;;  %v8102_v5 = vand.u32 4294901760, %v8101_v3  ;;  %v8097_v0 = vsub.f32 %v8095_v54, %v8096_v41  ;;  %v8091_v56 = vsub.f32 %v8089_v11, %v8090_v33 }
 0x623   :  { %v8108_v60 = vand.u32 4294901760, %v8107_v46  ;;  %v29056_v47 = vpack.c.bf16 %v8101_v3, %v8089_v11  ;;  %v29064_v4 = vpack.c.bf16 %v8096_v41, %v8084_v31  ;;  %v32843_v11 = vand.u32 4294901760, %v28972_v49 }
 0x624   :  { %32826 = vst [vmem:[#allocation78_spill] sm:$0xff] %v29035_v37  ;;  %7257 = vrot.lane.b32.xlu0 %v29035_v37, %s27469_s7  ;;  %v8103_v53 = vsub.f32 %v8101_v3, %v8102_v5  ;;  %v8098_v17 = vand.u32 4294901760, %v8097_v0  ;;  %v8092_v37 = vand.u32 4294901760, %v8091_v56  ;;  %v29050_v0 = vpack.c.bf16 %v29017_v26, %v29015_v51 }
 0x625   :  { %v8109_v6 = vsub.f32 %v8107_v46, %v8108_v60  ;;  %32834 = vst [vmem:[#allocation86_spill] sm:$0xff] %v29056_v47  ;;  %32838 = vst [vmem:[#allocation90_spill] sm:$0xff] %v29064_v4  ;;  %v29068_v10 = vpack.c.bf16 %v8120_v58, %v8108_v60  ;;  %v29070_v26 = vpack.c.bf16 %v8126_v7, %v8114_v36  ;;  %v32842_v51 = vand.u32 4294901760, %v28970_v15 }
 0x626   :  { %v8104_v43 = vand.u32 4294901760, %v8103_v53  ;;  %v29042_v9 = vpack.c.bf16 %v8098_v17, %v8086_v1  ;;  %32831 = vst [vmem:[#allocation83_spill] sm:$0xff] %v29050_v0  ;;  %v29054_v17 = vpack.c.bf16 %v8095_v54, %v8083_v24  ;;  %v29080_v54 = vsub.f32 %v28972_v49, %v32843_v11 }
 0x627   :  { %v8110_v61 = vand.u32 4294901760, %v8109_v6  ;;  %v29060_v6 = vpack.c.bf16 %v8125_v52, %v8113_v28  ;;  %32840 = vst [vmem:[#allocation92_spill] sm:$0xff] %v29068_v10  ;;  %32841 = vst [vmem:[#allocation93_spill] sm:$0xff] %v29070_v26  ;;  %v29075_v24 = vsub.f32 %v28970_v15, %v32842_v51  ;;  %v32847_v49 = vand.u32 4294901760, %v28984_v27 }
 0x628   :  { %32828 = vst [vmem:[#allocation80_spill] sm:$0xff] %v29042_v9  ;;  %v29044_v62 = vpack.c.bf16 %v8104_v43, %v8092_v37  ;;  %32833 = vst [vmem:[#allocation85_spill] sm:$0xff] %v29054_v17  ;;  %v29058_v37 = vpack.c.bf16 %v8119_v63, %v8107_v46  ;;  %v29062_v43 = vpack.c.bf16 %v8048_v40, %v8036_v42  ;;  %v32844_v40 = vand.u32 4294901760, %v28975_v32 }
 0x629   :  { %v29046_v19 = vpack.c.bf16 %v8122_v16, %v8110_v61  ;;  %32836 = vst [vmem:[#allocation88_spill] sm:$0xff] %v29060_v6  ;;  %v29066_v16 = vpack.c.bf16 %v8102_v5, %v8090_v33  ;;  %v32845_v5 = vand.u32 4294901760, %v28977_v22  ;;  %v32370_v20 = vand.u32 4294901760, %v29075_v24 }
 0x62a   :  { %32829 = vst [vmem:[#allocation81_spill] sm:$0xff] %v29044_v62  ;;  %32835 = vst [vmem:[#allocation87_spill] sm:$0xff] %v29058_v37  ;;  %v29085_v42 = vsub.f32 %v28975_v32, %v32844_v40  ;;  %v32369_v15 = vand.u32 4294901760, %v29080_v54  ;;  %v32846_v33 = vand.u32 4294901760, %v28982_v59  ;;  %v29102_v3 = vsub.f32 %v28984_v27, %v32847_v49 }
 0x62b   :  { %32830 = vst [vmem:[#allocation82_spill] sm:$0xff] %v29046_v19  ;;  %32837 = vst [vmem:[#allocation89_spill] sm:$0xff] %v29062_v43  ;;  %v29090_v7 = vsub.f32 %v28977_v22, %v32845_v5  ;;  %v8043_v46 = vsub.f32 %v29075_v24, %v32370_v20  ;;  %v32870_v20 = vld [vmem:[#allocation33_spill] sm:$0xff] }
 0x62c   :  { %32839 = vst [vmem:[#allocation91_spill] sm:$0xff] %v29066_v16  ;;  %v29097_v31 = vsub.f32 %v28982_v59, %v32846_v33  ;;  %v32368_v32 = vand.u32 4294901760, %v29085_v42  ;;  %v8055_v59 = vsub.f32 %v29080_v54, %v32369_v15  ;;  %v32365_v27 = vand.u32 4294901760, %v29102_v3  ;;  %v29217_v15 = vld [vmem:[#allocation13 + $0x40] sm:$0xff] }
 0x62d   :  { %v32367_v41 = vand.u32 4294901760, %v29090_v7  ;;  %v8044_v58 = vand.u32 4294901760, %v8043_v46  ;;  %v29171_v46 = vpack.c.bf16 %v29090_v7, %v29085_v42 }
 0x62e   :  { %v32366_v60 = vand.u32 4294901760, %v29097_v31  ;;  %v8061_v53 = vsub.f32 %v29085_v42, %v32368_v32  ;;  %v8056_v36 = vand.u32 4294901760, %v8055_v59  ;;  %v8079_v61 = vsub.f32 %v29102_v3, %v32365_v27  ;;  %v32856_v59 = vld [vmem:[#allocation26_spill] sm:$0xff]  ;;  %v32868_v27 = vld [vmem:[#allocation32_spill] sm:$0xff] }
 0x62f   :  { %v8073_v63 = vsub.f32 %v29090_v7, %v32367_v41  ;;  %32854 = vst [vmem:[#allocation100_spill] sm:$0xff] %v29171_v46  ;;  %v29213_v41 = vld [vmem:[#allocation13 + $0x10] sm:$0xff]  ;;  %v29215_v32 = vld [vmem:[#allocation13 + $0x28] sm:$0xff] }
 0x630   :  { %v8067_v52 = vsub.f32 %v29097_v31, %v32366_v60  ;;  %v8062_v23 = vand.u32 4294901760, %v8061_v53  ;;  %v29137_v51 = vpack.c.bf16 %v8056_v36, %v8044_v58  ;;  %v8080_v40 = vand.u32 4294901760, %v8079_v61  ;;  %v32857_v53 = vld [vmem:[#allocation70_spill] sm:$0xff]  ;;  %v32859_v58 = vld [vmem:[#allocation71_spill] sm:$0xff]  ;;  %v32860_v36 = vld [vmem:[#allocation28_spill] sm:$0xff] }
 0x631   :  { %v8074_v55 = vand.u32 4294901760, %v8073_v63  ;;  %v32858_v63 = vld [vmem:[#allocation27_spill] sm:$0xff]  ;;  %v32862_v61 = vld [vmem:[#allocation29_spill] sm:$0xff]  ;;  %v32869_v60 = vld [vmem:[#allocation76_spill] sm:$0xff] }
 0x632   :  { %32850 = vst [vmem:[#allocation96_spill] sm:$0xff] %v29137_v51  ;;  %v8068_v11 = vand.u32 4294901760, %v8067_v52  ;;  %v32861_v52 = vld [vmem:[#allocation72_spill] sm:$0xff] }
 0x633   :  { %v29141_v33 = vpack.c.bf16 %v8074_v55, %v8062_v23  ;;  %v32863_v23 = vld [vmem:[#allocation73_spill] sm:$0xff]  ;;  %v32864_v55 = vld [vmem:[#allocation30_spill] sm:$0xff] }
 0x634   :  { %v29147_v49 = vpack.c.bf16 %v8080_v40, %v8068_v11  ;;  %v32866_v11 = vld [vmem:[#allocation31_spill] sm:$0xff] }
 0x635   :  { %32851 = vst [vmem:[#allocation97_spill] sm:$0xff] %v29141_v33  ;;  %v32867_v40 = vld [vmem:[#allocation75_spill] sm:$0xff] }
 0x636   :  { %32852 = vst [vmem:[#allocation98_spill] sm:$0xff] %v29147_v49 }
 0x696   :  { %v7258_v22 = vpop.permute.xlu0 %7257 }
 0x697   :  { %v7259_v56 = vsel %vm3836_vm13, %v7258_v22, 0  ;;  %v29165_v22 = vpack.c.bf16 %v29080_v54, %v29075_v24 }
 0x698   :  { %v29115_v1 = vand.u32 4294901760, %v7259_v56 }
 0x699   :  { %32853 = vst [vmem:[#allocation99_spill] sm:$0xff] %v29165_v22 }
 0x69a   :  { %v29124_v28 = vsub.f32 %v7259_v56, %v29115_v1  ;;  %v29179_v56 = vpack.c.bf16 %v29102_v3, %v29097_v31 }
 0x69c   :  { %32848 = vst [vmem:[#allocation94_spill] sm:$0xff] %v29124_v28  ;;  %v29133_v13 = vand.u32 4294901760, %v29124_v28  ;;  %32855 = vst [vmem:[#allocation101_spill] sm:$0xff] %v29179_v56 }
 0x69e   :  { %32849 = vst [vmem:[#allocation95_spill] sm:$0xff] %v29133_v13  ;;  %v7345_v29 = vsub.f32 %v29124_v28, %v29133_v13 }
 0x6a0   :  { %v29139_v5 = vand.u32 4294901760, %v7345_v29  ;;  %v32865_v29 = vld [vmem:[#allocation74_spill] sm:$0xff] }
 0x6a2   :  { %7347 = vmatmul.mubr.f32.vlgmr.msra.gmra.mrb[6].mxu1 %v29139_v5  ;;  %8028 = vmatmul.mubr.f32.vlgmr.msra.gmra.mrb[10].mxu0 %v29139_v5 }
 0x6a3   :  { %24375 = vmatpush1.bf16.msra.mxu1 %v28757_v34  ;;  %24471 = vmatpush1.bf16.msra.mxu0 %v29137_v51  ;;  %v29381_v51 = vld [vmem:[#allocation15 + $0x80] sm:$0xff]  ;;  %v29385_v34 = vld [vmem:[#allocation15 + $0x78] sm:$0xff] }
 0x6a4   :  { %24377 = vmatprep.subr.bf16.mxu1 %v28759_v44  ;;  %24473 = vmatprep.subr.bf16.mxu0 %v29141_v33  ;;  %v29397_v33 = vld [vmem:[#allocation15 + $0xb0] sm:$0xff] }
 0x6a5   :  { %7497 = vmatprep.mubr.f32.mxu1 %v32773_v35  ;;  %8178 = vmatprep.mubr.f32.mxu0 %v32773_v35 }
 0x6a7   :  { %24379 = vmatpush1.bf16.msra.mxu1 %v28780_v39  ;;  %24475 = vmatpush1.bf16.msra.mxu0 %v29147_v49 }
 0x6a8   :  { %24381 = vmatprep.subr.bf16.mxu1 %v28792_v12  ;;  %24477 = vmatprep.subr.bf16.mxu0 %v29042_v9  ;;  %v29347_v9 = vld [vmem:[#allocation15 + $0x38] sm:$0xff] }
 0x6ab   :  { %24383 = vmatpush1.bf16.msra.mxu1 %v28795_v48  ;;  %24479 = vmatpush1.bf16.msra.mxu0 %v29044_v62  ;;  %v29343_v48 = vld [vmem:[#allocation15] sm:$0xff] }
 0x6ac   :  { %24385 = vmatprep.subr.bf16.mxu1 %v28798_v14  ;;  %24481 = vmatprep.subr.bf16.mxu0 %v29046_v19  ;;  %v29337_v19 = vld [vmem:[#allocation15 + $0x20] sm:$0xff] }
 0x6af   :  { %24387 = vmatpush1.bf16.msra.mxu1 %v28801_v30  ;;  %24483 = vmatpush1.bf16.msra.mxu0 %v29052_v2  ;;  %v32895_v2 = vld [vmem:[#allocation55_spill] sm:$0xff]  ;;  %v29335_v30 = vld [vmem:[#allocation15 + $0x8] sm:$0xff] }
 0x6b0   :  { %24389 = vmatprep.subr.bf16.mxu1 %v28806_v57  ;;  %24485 = vmatprep.subr.bf16.mxu0 %v29050_v0  ;;  %v32886_v0 = vld [vmem:[#allocation52_spill] sm:$0xff]  ;;  %v9142_v39 = vand.u32 4294901760, %v29335_v30 }
 0x6b2   :  { %7499 = vmatmul.mubr.f32.vlgmr.msra.gmra.mrb[6].mxu1 %v29115_v1  ;;  %8180 = vmatmul.mubr.f32.vlgmr.msra.gmra.mrb[10].mxu0 %v29115_v1 }
 0x6b3   :  { %24391 = vmatpush1.bf16.msra.mxu1 %v28811_v8  ;;  %24487 = vmatpush1.bf16.msra.mxu0 %v29165_v22 }
 0x6b4   :  { %24393 = vmatprep.subr.bf16.mxu1 %v28816_v38  ;;  %24489 = vmatprep.subr.bf16.mxu0 %v29171_v46  ;;  %v32880_v38 = vand.u32 4294901760, %v29102_v3  ;;  %v32883_v3 = vld [vmem:[#allocation51_spill] sm:$0xff] }
 0x6b5   :  { %7601 = vmatprep.mubr.f32.mxu1 %v32773_v35  ;;  %8282 = vmatprep.mubr.f32.mxu0 %v32773_v35 }
 0x6b7   :  { %24395 = vmatpush1.bf16.msra.mxu1 %v28822_v25  ;;  %24491 = vmatpush1.bf16.msra.mxu0 %v29179_v56  ;;  %v32876_v56 = vand.u32 4294901760, %v29085_v42  ;;  %v32877_v25 = vand.u32 4294901760, %v29090_v7  ;;  %v8596_v42 = vand.u32 4294901760, %v29217_v15 }
 0x6b8   :  { %24397 = vmatprep.subr.bf16.mxu1 %v28828_v18  ;;  %24493 = vmatprep.subr.bf16.mxu0 %v29054_v17  ;;  %v29231_v17 = vld [vmem:[#allocation13 + $0x88] sm:$0xff] }
 0x6b9   :  { %v32875_v18 = vld [vmem:[#allocation50_spill] sm:$0xff]  ;;  %v29239_v46 = vpack.c.bf16 %v32877_v25, %v32876_v56  ;;  %v8605_v56 = vand.u32 4294901760, %v29231_v17  ;;  %v29270_v8 = vsub.f32 %v29217_v15, %v8596_v42 }
 0x6bb   :  { %24399 = vmatpush1.bf16.msra.mxu1 %v28833_v21  ;;  %24495 = vmatpush1.bf16.msra.mxu0 %v29056_v47  ;;  %v29227_v47 = vld [vmem:[#allocation13 + $0x58] sm:$0xff]  ;;  %v29229_v21 = vld [vmem:[#allocation13 + $0x70] sm:$0xff]  ;;  %32878 = vst [vmem:[#allocation103_spill] sm:$0xff] %v29239_v46  ;;  %32885 = vst [vmem:[#allocation107_spill] sm:$0xff] %v29270_v8  ;;  %v32896_v57 = vand.u32 4294901760, %v29270_v8 }
 0x6bc   :  { %24401 = vmatprep.subr.bf16.mxu1 %v28838_v45  ;;  %24497 = vmatprep.subr.bf16.mxu0 %v29058_v37  ;;  %v32873_v37 = vand.u32 4294901760, %v29080_v54  ;;  %v32879_v54 = vand.u32 4294901760, %v29097_v31  ;;  %v8599_v25 = vand.u32 4294901760, %v29227_v47  ;;  %v8602_v7 = vand.u32 4294901760, %v29229_v21 }
 0x6be   :  { %v29250_v22 = vpack.c.bf16 %v32880_v38, %v32879_v54  ;;  %v29281_v38 = vsub.f32 %v29231_v17, %v8605_v56 }
 0x6bf   :  { %24403 = vmatpush1.bf16.msra.mxu1 %v28843_v50  ;;  %24499 = vmatpush1.bf16.msra.mxu0 %v29060_v6  ;;  %v32871_v6 = vld [vmem:[#allocation77_spill] sm:$0xff]  ;;  %v32872_v50 = vand.u32 4294901760, %v29075_v24  ;;  %v8590_v24 = vand.u32 4294901760, %v29213_v41 }
 0x6c0   :  { %24405 = vmatprep.subr.bf16.mxu1 %v32856_v59  ;;  %24501 = vmatprep.subr.bf16.mxu0 %v32857_v53  ;;  %32881 = vst [vmem:[#allocation104_spill] sm:$0xff] %v29250_v22  ;;  %32889 = vst [vmem:[#allocation110_spill] sm:$0xff] %v29281_v38 }
 0x6c1   :  { %v29225_v45 = vpack.c.bf16 %v32873_v37, %v32872_v50  ;;  %v29242_v50 = vld [vmem:[#allocation13 + $0xa0] sm:$0xff]  ;;  %v29244_v37 = vld [vmem:[#allocation13 + $0xb8] sm:$0xff]  ;;  %v29260_v31 = vsub.f32 %v29213_v41, %v8590_v24  ;;  %v29275_v41 = vsub.f32 %v29227_v47, %v8599_v25 }
 0x6c2   :  { %7604 = vmatmul.mubr.f32.vlgmr.msra.gmra.mrb[6].mxu1 %v29124_v28  ;;  %8285 = vmatmul.mubr.f32.vlgmr.msra.gmra.mrb[10].mxu0 %v29124_v28  ;;  %v32409_v54 = vand.u32 4294901760, %v29244_v37  ;;  %v32890_v15 = vand.u32 4294901760, %v29242_v50 }
 0x6c3   :  { %24407 = vmatpush1.bf16.msra.mxu1 %v32858_v63  ;;  %24503 = vmatpush1.bf16.msra.mxu0 %v32859_v58  ;;  %32874 = vst [vmem:[#allocation102_spill] sm:$0xff] %v29225_v45  ;;  %32882 = vst [vmem:[#allocation105_spill] sm:$0xff] %v29260_v31 }
 0x6c4   :  { %24409 = vmatprep.subr.bf16.mxu1 %v32860_v36  ;;  %24505 = vmatprep.subr.bf16.mxu0 %v32861_v52  ;;  %32887 = vst [vmem:[#allocation108_spill] sm:$0xff] %v29275_v41  ;;  %v29293_v47 = vsub.f32 %v29244_v37, %v32409_v54  ;;  %v8690_v54 = vsub.f32 %v29270_v8, %v32896_v57 }
 0x6c5   :  { %7690 = vmatprep.mubr.f32.mxu1 %v32773_v35  ;;  %8371 = vmatprep.mubr.f32.mxu0 %v32773_v35 }
 0x6c6   :  { %32892 = vst [vmem:[#allocation112_spill] sm:$0xff] %v29293_v47  ;;  %v8691_v62 = vand.u32 4294901760, %v8690_v54  ;;  %v29359_v54 = vpack.c.bf16 %v8605_v56, %v8602_v7 }
 0x6c7   :  { %24411 = vmatpush1.bf16.msra.mxu1 %v32862_v61  ;;  %24507 = vmatpush1.bf16.msra.mxu0 %v32863_v23 }
 0x6c8   :  { %24413 = vmatprep.subr.bf16.mxu1 %v32864_v55  ;;  %24509 = vmatprep.subr.bf16.mxu0 %v32865_v29  ;;  %32906 = vst [vmem:[#allocation115_spill] sm:$0xff] %v29359_v54 }
 0x6cb   :  { %24415 = vmatpush1.bf16.msra.mxu1 %v32866_v11  ;;  %24511 = vmatpush1.bf16.msra.mxu0 %v32867_v40 }
 0x6cc   :  { %24417 = vmatprep.subr.bf16.mxu1 %v32868_v27  ;;  %24513 = vmatprep.subr.bf16.mxu0 %v32869_v60 }
 0x6cf   :  { %24419 = vmatpush1.bf16.msra.mxu1 %v32870_v20  ;;  %24515 = vmatpush1.bf16.msra.mxu0 %v32871_v6 }
 0x6d0   :  { %24421 = vmatprep.subr.bf16.mxu1 %v32875_v18  ;;  %24517 = vmatprep.subr.bf16.mxu0 %v29062_v43  ;;  %v8593_v43 = vand.u32 4294901760, %v29215_v32 }
 0x6d2   :  { %7694 = vmatmul.mubr.f32.vlgmr.msra.gmra.mrb[6].mxu1 %v29133_v13  ;;  %8375 = vmatmul.mubr.f32.vlgmr.msra.gmra.mrb[10].mxu0 %v29133_v13  ;;  %v29267_v18 = vsub.f32 %v29215_v32, %v8593_v43  ;;  %v29288_v32 = vsub.f32 %v29242_v50, %v32890_v15 }
 0x6d3   :  { %24423 = vmatpush1.bf16.msra.mxu1 %v32883_v3  ;;  %24519 = vmatpush1.bf16.msra.mxu0 %v29225_v45  ;;  %v29278_v3 = vsub.f32 %v29229_v21, %v8602_v7  ;;  %v32418_v21 = vand.u32 4294901760, %v29260_v31  ;;  %v32894_v45 = vld [vmem:[#allocation54_spill] sm:$0xff]  ;;  %v32908_v7 = vand.u32 4294901760, %v29244_v37 }
 0x6d4   :  { %32884 = vst [vmem:[#allocation106_spill] sm:$0xff] %v29267_v18  ;;  %24425 = vmatprep.subr.bf16.mxu1 %v32886_v0  ;;  %24521 = vmatprep.subr.bf16.mxu0 %v29239_v46  ;;  %32891 = vst [vmem:[#allocation111_spill] sm:$0xff] %v29288_v32  ;;  %v32893_v46 = vld [vmem:[#allocation53_spill] sm:$0xff]  ;;  %v32419_v17 = vand.u32 4294901760, %v29267_v18 }
 0x6d5   :  { %32888 = vst [vmem:[#allocation109_spill] sm:$0xff] %v29278_v3  ;;  %7812 = vmatprep.mubr.f32.mxu1 %v32773_v35  ;;  %8493 = vmatprep.mubr.f32.mxu0 %v32773_v35  ;;  %v8676_v0 = vsub.f32 %v29260_v31, %v32418_v21 }
 0x6d6   :  { %v8683_v15 = vsub.f32 %v29267_v18, %v32419_v17 }
 0x6d7   :  { %24427 = vmatpush1.bf16.msra.mxu1 %v32893_v46  ;;  %24523 = vmatpush1.bf16.msra.mxu0 %v29250_v22  ;;  %v32898_v22 = vand.u32 4294901760, %v29275_v41  ;;  %v8677_v14 = vand.u32 4294901760, %v8676_v0  ;;  %v29355_v0 = vld [vmem:[#allocation15 + $0x30] sm:$0xff] }
 0x6d8   :  { %24429 = vmatprep.subr.bf16.mxu1 %v32894_v45  ;;  %24525 = vmatprep.subr.bf16.mxu0 %v29064_v4  ;;  %v32897_v4 = vld [vmem:[#allocation56_spill] sm:$0xff]  ;;  %v32901_v45 = vand.u32 4294901760, %v29288_v32 }
 0x6d9   :  { %v8697_v46 = vsub.f32 %v29275_v41, %v32898_v22  ;;  %v32903_v22 = vld [vmem:[#allocation57_spill] sm:$0xff] }
 0x6da   :  { %v8718_v57 = vsub.f32 %v29288_v32, %v32901_v45  ;;  %v29345_v45 = vld [vmem:[#allocation15 + $0x18] sm:$0xff] }
 0x6db   :  { %24431 = vmatpush1.bf16.msra.mxu1 %v32895_v2  ;;  %24527 = vmatpush1.bf16.msra.mxu0 %v29066_v16  ;;  %v32899_v16 = vand.u32 4294901760, %v29278_v3  ;;  %v32900_v2 = vand.u32 4294901760, %v29281_v38 }
 0x6dc   :  { %24433 = vmatprep.subr.bf16.mxu1 %v32897_v4  ;;  %24529 = vmatprep.subr.bf16.mxu0 %v29068_v10  ;;  %v32902_v4 = vand.u32 4294901760, %v29293_v47 }
 0x6dd   :  { %v8704_v21 = vsub.f32 %v29278_v3, %v32899_v16  ;;  %v8711_v17 = vsub.f32 %v29281_v38, %v32900_v2  ;;  %v29341_v16 = vpack.c.bf16 %v8593_v43, %v8590_v24  ;;  %v8684_v2 = vand.u32 4294901760, %v8683_v15  ;;  %v29353_v43 = vld [vmem:[#allocation15 + $0x50] sm:$0xff]  ;;  %v29357_v24 = vld [vmem:[#allocation15 + $0x48] sm:$0xff] }
 0x6de   :  { %v8725_v10 = vsub.f32 %v29293_v47, %v32902_v4  ;;  %v29351_v4 = vpack.c.bf16 %v8599_v25, %v8596_v42  ;;  %v8719_v15 = vand.u32 4294901760, %v8718_v57  ;;  %v9144_v42 = vand.u32 4294901760, %v29343_v48 }
 0x6df   :  { %24435 = vmatpush1.bf16.msra.mxu1 %v32903_v22  ;;  %24531 = vmatpush1.bf16.msra.mxu0 %v29070_v26  ;;  %32904 = vst [vmem:[#allocation113_spill] sm:$0xff] %v29341_v16  ;;  %v8698_v22 = vand.u32 4294901760, %v8697_v46  ;;  %v8705_v12 = vand.u32 4294901760, %v8704_v21  ;;  %v8712_v26 = vand.u32 4294901760, %v8711_v17  ;;  %v9146_v46 = vand.u32 4294901760, %v29337_v19  ;;  %v29368_v17 = vld [vmem:[#allocation15 + $0x68] sm:$0xff] }
 0x6e0   :  { %24437 = vmatprep.subr.bf16.mxu1 %v32856_v59  ;;  %24533 = vmatprep.subr.bf16.mxu0 %v32857_v53  ;;  %32905 = vst [vmem:[#allocation114_spill] sm:$0xff] %v29351_v4  ;;  %v8726_v49 = vand.u32 4294901760, %v8725_v10  ;;  %v9148_v25 = vand.u32 4294901760, %v29345_v45  ;;  %v32907_v10 = vand.u32 4294901760, %v29242_v50  ;;  %v29383_v21 = vld [vmem:[#allocation15 + $0x60] sm:$0xff]  ;;  %v29389_v50 = vpack.c.bf16 %v8684_v2, %v8677_v14 }
 0x6e1   :  { %v29391_v37 = vpack.c.bf16 %v8698_v22, %v8691_v62  ;;  %v29405_v57 = vpack.c.bf16 %v29267_v18, %v29260_v31  ;;  %v29409_v14 = vpack.c.bf16 %v29275_v41, %v29270_v8  ;;  %v29412_v62 = vld [vmem:[#allocation15 + $0x90] sm:$0xff]  ;;  %v29416_v22 = vld [vmem:[#allocation15 + $0xc8] sm:$0xff]  ;;  %v29418_v2 = vpack.c.bf16 %v9146_v46, %v9142_v39  ;;  %v29425_v53 = vld [vmem:[#allocation15 + $0xc0] sm:$0xff] }
 0x6e2   :  { %7814 = vmatmul.mubr.f32.vlgmr.msra.gmra.mrb[6].mxu1 %v29115_v1  ;;  %8495 = vmatmul.mubr.f32.vlgmr.msra.gmra.mrb[10].mxu0 %v29115_v1  ;;  %v29376_v56 = vpack.c.bf16 %v32908_v7, %v32907_v10  ;;  %32910 = vst [vmem:[#allocation117_spill] sm:$0xff] %v29389_v50  ;;  %v29393_v10 = vpack.c.bf16 %v8712_v26, %v8705_v12  ;;  %v29395_v7 = vld [vmem:[#allocation15 + $0x98] sm:$0xff]  ;;  %v29414_v26 = vld [vmem:[#allocation15 + $0xa8] sm:$0xff]  ;;  %v32927_v13 = vand.u32 4294901760, %v29383_v21  ;;  %v32928_v8 = vand.u32 4294901760, %v29385_v34 }
 0x6e3   :  { %24439 = vmatpush1.bf16.msra.mxu1 %v32858_v63  ;;  %24535 = vmatpush1.bf16.msra.mxu0 %v32859_v58  ;;  %32911 = vst [vmem:[#allocation118_spill] sm:$0xff] %v29391_v37  ;;  %v29401_v44 = vpack.c.bf16 %v8726_v49, %v8719_v15  ;;  %32914 = vst [vmem:[#allocation121_spill] sm:$0xff] %v29405_v57  ;;  %v29423_v58 = vld [vmem:[#allocation15 + $0xe0] sm:$0xff]  ;;  %v29431_v12 = vpack.c.bf16 %v9148_v25, %v9144_v42  ;;  %v32918_v63 = vand.u32 4294901760, %v29347_v9 }
 0x6e4   :  { %32909 = vst [vmem:[#allocation116_spill] sm:$0xff] %v29376_v56  ;;  %24441 = vmatprep.subr.bf16.mxu1 %v32860_v36  ;;  %24537 = vmatprep.subr.bf16.mxu0 %v32861_v52  ;;  %32912 = vst [vmem:[#allocation119_spill] sm:$0xff] %v29393_v10  ;;  %v29427_v36 = vld [vmem:[#allocation15 + $0xd8] sm:$0xff]  ;;  %v32919_v49 = vand.u32 4294901760, %v29353_v43  ;;  %v32921_v52 = vand.u32 4294901760, %v29355_v0  ;;  %v32922_v15 = vand.u32 4294901760, %v29357_v24  ;;  %v29469_v31 = vpack.c.bf16 %v32928_v8, %v32927_v13 }
 0x6e5   :  { %7900 = vmatprep.mubr.f32.mxu1 %v32773_v35  ;;  %8581 = vmatprep.mubr.f32.mxu0 %v32773_v35  ;;  %32913 = vst [vmem:[#allocation120_spill] sm:$0xff] %v29401_v44  ;;  %32915 = vst [vmem:[#allocation122_spill] sm:$0xff] %v29409_v14  ;;  %v29472_v18 = vsub.f32 %v29335_v30, %v9142_v39  ;;  %v29487_v8 = vsub.f32 %v29345_v45, %v9148_v25  ;;  %v32930_v39 = vand.u32 4294901760, %v29395_v7 }
 0x6e6   :  { %32916 = vst [vmem:[#allocation123_spill] sm:$0xff] %v29418_v2  ;;  %32917 = vst [vmem:[#allocation124_spill] sm:$0xff] %v29431_v12  ;;  %v29437_v59 = vpack.c.bf16 %v32919_v49, %v32918_v63  ;;  %v29443_v41 = vpack.c.bf16 %v32922_v15, %v32921_v52  ;;  %v29451_v63 = vld [vmem:[#allocation15 + $0xf8] sm:$0xff]  ;;  %v29453_v49 = vld [vmem:[#allocation15 + $0x110] sm:$0xff]  ;;  %v29475_v52 = vsub.f32 %v29337_v19, %v9146_v46  ;;  %v32931_v30 = vand.u32 4294901760, %v29397_v33 }
 0x6e7   :  { %24443 = vmatpush1.bf16.msra.mxu1 %v32862_v61  ;;  %24539 = vmatpush1.bf16.msra.mxu0 %v32863_v23  ;;  %v32924_v23 = vand.u32 4294901760, %v29368_v17  ;;  %v32925_v61 = vand.u32 4294901760, %v29381_v51  ;;  %32929 = vst [vmem:[#allocation128_spill] sm:$0xff] %v29469_v31  ;;  %v29484_v15 = vsub.f32 %v29343_v48, %v9144_v42  ;;  %v32933_v13 = vand.u32 4294901760, %v29412_v62  ;;  %v29503_v48 = vld [vmem:[#allocation15 + $0x108] sm:$0xff] }
 0x6e8   :  { %32920 = vst [vmem:[#allocation125_spill] sm:$0xff] %v29437_v59  ;;  %32923 = vst [vmem:[#allocation126_spill] sm:$0xff] %v29443_v41  ;;  %24445 = vmatprep.subr.bf16.mxu1 %v32864_v55  ;;  %24541 = vmatprep.subr.bf16.mxu0 %v32865_v29  ;;  %v29495_v19 = vpack.c.bf16 %v32931_v30, %v32930_v39  ;;  %v32934_v46 = vand.u32 4294901760, %v29414_v26  ;;  %v32936_v25 = vand.u32 4294901760, %v29416_v22  ;;  %v32937_v29 = vand.u32 4294901760, %v29423_v58 }
 0x6e9   :  { %v29463_v55 = vpack.c.bf16 %v32925_v61, %v32924_v23  ;;  %v29481_v23 = vld [vmem:[#allocation15 + $0xf0] sm:$0xff]  ;;  %v32939_v39 = vand.u32 4294901760, %v29425_v53  ;;  %v32940_v30 = vand.u32 4294901760, %v29427_v36  ;;  %v32942_v42 = vand.u32 4294901760, %v29472_v18 }
 0x6ea   :  { %32932 = vst [vmem:[#allocation129_spill] sm:$0xff] %v29495_v19  ;;  %v29501_v61 = vpack.c.bf16 %v32934_v46, %v32933_v13  ;;  %v32474_v13 = vand.u32 4294901760, %v29484_v15  ;;  %v32477_v46 = vand.u32 4294901760, %v29487_v8 }
 0x6eb   :  { %32926 = vst [vmem:[#allocation127_spill] sm:$0xff] %v29463_v55  ;;  %24447 = vmatpush1.bf16.msra.mxu1 %v32866_v11  ;;  %24543 = vmatpush1.bf16.msra.mxu0 %v32867_v40  ;;  %v29517_v40 = vpack.c.bf16 %v32940_v30, %v32939_v39  ;;  %v32943_v11 = vand.u32 4294901760, %v29475_v52  ;;  %v32945_v39 = vand.u32 4294901760, %v29451_v63  ;;  %v32946_v30 = vand.u32 4294901760, %v29453_v49 }
 0x6ec   :  { %24449 = vmatprep.subr.bf16.mxu1 %v32868_v27  ;;  %24545 = vmatprep.subr.bf16.mxu0 %v32869_v60  ;;  %32935 = vst [vmem:[#allocation130_spill] sm:$0xff] %v29501_v61  ;;  %v29511_v60 = vpack.c.bf16 %v32937_v29, %v32936_v25  ;;  %v9248_v27 = vsub.f32 %v29472_v18, %v32942_v42  ;;  %v32944_v25 = vand.u32 4294901760, %v29347_v9  ;;  %v32948_v42 = vand.u32 4294901760, %v29353_v43 }
 0x6ed   :  { %32941 = vst [vmem:[#allocation132_spill] sm:$0xff] %v29517_v40  ;;  %v9260_v29 = vsub.f32 %v29475_v52, %v32943_v11  ;;  %v29539_v45 = vpack.c.bf16 %v32946_v30, %v32945_v39  ;;  %v9254_v11 = vsub.f32 %v29484_v15, %v32474_v13 }
 0x6ee   :  { %32938 = vst [vmem:[#allocation131_spill] sm:$0xff] %v29511_v60  ;;  %v29531_v28 = vsub.f32 %v29347_v9, %v32944_v25  ;;  %v9266_v9 = vsub.f32 %v29487_v8, %v32477_v46  ;;  %v32480_v25 = vmov 0.0|0.0   ;;  %v29556_v47 = vsub.f32 %v29353_v43, %v32948_v42 }
 0x6ef   :  { %24451 = vmatpush1.bf16.msra.mxu1 %v32870_v20  ;;  %24547 = vmatpush1.bf16.msra.mxu0 %v32871_v6  ;;  %32947 = vst [vmem:[#allocation133_spill] sm:$0xff] %v29539_v45  ;;  %v29550_v6 = vld [vmem:[#allocation15 + $0x128] sm:$0xff]  ;;  %v9249_v20 = vand.u32 4294901760, %v9248_v27  ;;  %v9261_v39 = vand.u32 4294901760, %v9260_v29  ;;  %v9255_v13 = vand.u32 4294901760, %v9254_v11  ;;  %v32949_v46 = vand.u32 4294901760, %v29355_v0 }
 0x6f0   :  { %24548 = vmatprep.subr.bf16.mxu1 %v32480_v25  ;;  %24717 = vmatprep.subr.bf16.mxu0 %v29418_v2  ;;  %v32484_v30 = vand.u32 4294901760, %v29531_v28  ;;  %v9267_v32 = vand.u32 4294901760, %v9266_v9  ;;  %v32950_v25 = vand.u32 4294901760, %v29357_v24  ;;  %v29570_v27 = vld [vmem:[#allocation15 + $0x140] sm:$0xff] }
 0x6f1   :  { %v29561_v38 = vsub.f32 %v29355_v0, %v32949_v46  ;;  %v29572_v43 = vpack.c.bf16 %v9261_v39, %v9249_v20  ;;  %v32952_v46 = vand.u32 4294901760, %v29368_v17  ;;  %v32953_v20 = vand.u32 4294901760, %v29481_v23 }
 0x6f2   :  { %v29566_v2 = vsub.f32 %v29357_v24, %v32950_v25  ;;  %7902 = vmatmul.mubr.f32.vlgmr.msra.gmra.mrb[6].mxu1 %v29115_v1  ;;  %8583 = vmatmul.mubr.f32.vlgmr.msra.gmra.mrb[10].mxu0 %v29115_v1  ;;  %v9272_v29 = vsub.f32 %v29531_v28, %v32484_v30  ;;  %v32954_v24 = vand.u32 4294901760, %v29503_v48  ;;  %v29593_v25 = vpack.c.bf16 %v9267_v32, %v9255_v13  ;;  %v29600_v30 = vld [vmem:[#allocation15 + $0x138] sm:$0xff] }
 0x6f3   :  { %32951 = vst [vmem:[#allocation134_spill] sm:$0xff] %v29572_v43  ;;  %v29581_v42 = vsub.f32 %v29368_v17, %v32952_v46  ;;  %24550 = vmatpush3.bf16.msra.mxu1 %v29341_v16  ;;  %22170 = vmatprep.mubr.msk.f32.mxu1 %vm27471_vm14, %v32773_v35  ;;  %v32493_v39 = vand.u32 4294901760, %v29561_v38  ;;  %v32957_v17 = vmov 0.0|0.0   ;;  %v29598_v46 = vld [vmem:[#allocation15 + $0x120] sm:$0xff]  ;;  %v32958_v43 = vand.u32 4294901760, %v29556_v47 }
 0x6f4   :  { %v29590_v11 = vpack.c.bf16 %v32954_v24, %v32953_v20  ;;  %32956 = vst [vmem:[#allocation136_spill] sm:$0xff] %v29593_v25  ;;  %24551 = vmatprep.subr.bf16.mxu1 %v32957_v17  ;;  %24719 = vmatpush1.bf16.msra.mxu0 %v29431_v12  ;;  %v9273_v0 = vand.u32 4294901760, %v9272_v29  ;;  %v32959_v29 = vand.u32 4294901760, %v29381_v51 }
 0x6f5   :  { %v9284_v20 = vsub.f32 %v29556_v47, %v32958_v43  ;;  %24721 = vmatprep.subr.bf16.mxu0 %v29437_v59  ;;  %9707 = vmatprep.mubr.f32.mxu0 %v32773_v35  ;;  %v9278_v9 = vsub.f32 %v29561_v38, %v32493_v39  ;;  %v32960_v43 = vand.u32 4294901760, %v29383_v21  ;;  %v32961_v59 = vand.u32 4294901760, %v29566_v2 }
 0x6f6   :  { %32955 = vst [vmem:[#allocation135_spill] sm:$0xff] %v29590_v11  ;;  %v29616_v25 = vsub.f32 %v29381_v51, %v32959_v29  ;;  %v32962_v12 = vand.u32 4294901760, %v29581_v42  ;;  %v32963_v39 = vand.u32 4294901760, %v29385_v34 }
 0x6f7   :  { %v29621_v24 = vsub.f32 %v29383_v21, %v32960_v43  ;;  %v9285_v32 = vand.u32 4294901760, %v9284_v20  ;;  %v9290_v13 = vsub.f32 %v29566_v2, %v32961_v59  ;;  %24553 = vmatpush3.bf16.msra.mxu1 %v29351_v4  ;;  %v9279_v20 = vand.u32 4294901760, %v9278_v9 }
 0x6f8   :  { %v9296_v16 = vsub.f32 %v29581_v42, %v32962_v12  ;;  %v29632_v3 = vsub.f32 %v29385_v34, %v32963_v39  ;;  %v32496_v29 = vand.u32 4294901760, %v29616_v25  ;;  %24554 = vmatprep.subr.bf16.mxu1 %v32957_v17  ;;  %24723 = vmatpush1.bf16.msra.mxu0 %v29443_v41  ;;  %v32965_v21 = vand.u32 4294901760, %v29395_v7 }
 0x6f9   :  { %v29640_v59 = vpack.c.bf16 %v9285_v32, %v9273_v0  ;;  %v9291_v12 = vand.u32 4294901760, %v9290_v13  ;;  %v32498_v34 = vand.u32 4294901760, %v29621_v24  ;;  %24725 = vmatprep.subr.bf16.mxu0 %v29463_v55  ;;  %v32966_v0 = vand.u32 4294901760, %v29397_v33 }
 0x6fa   :  { %v9297_v43 = vand.u32 4294901760, %v9296_v16  ;;  %v9308_v39 = vsub.f32 %v29616_v25, %v32496_v29  ;;  %v29651_v51 = vsub.f32 %v29395_v7, %v32965_v21  ;;  %v32968_v29 = vand.u32 4294901760, %v29412_v62 }
 0x6fb   :  { %32964 = vst [vmem:[#allocation137_spill] sm:$0xff] %v29640_v59  ;;  %v29656_v32 = vsub.f32 %v29397_v33, %v32966_v0  ;;  %v29658_v16 = vpack.c.bf16 %v9291_v12, %v9279_v20  ;;  %v9302_v13 = vsub.f32 %v29621_v24, %v32498_v34  ;;  %v32969_v59 = vand.u32 4294901760, %v29414_v26  ;;  %24556 = vmatpush3.bf16.msra.mxu1 %v29359_v54 }
 0x6fc   :  { %v29666_v9 = vsub.f32 %v29412_v62, %v32968_v29  ;;  %v32970_v33 = vand.u32 4294901760, %v29550_v6  ;;  %v32971_v21 = vand.u32 4294901760, %v29570_v27  ;;  %v32973_v12 = vand.u32 4294901760, %v29598_v46  ;;  %24557 = vmatprep.subr.bf16.mxu1 %v32957_v17  ;;  %24727 = vmatpush1.bf16.msra.mxu0 %v29469_v31 }
 0x6fd   :  { %32967 = vst [vmem:[#allocation138_spill] sm:$0xff] %v29658_v16  ;;  %v29671_v7 = vsub.f32 %v29414_v26, %v32969_v59  ;;  %v32974_v0 = vand.u32 4294901760, %v29600_v30  ;;  %v9309_v62 = vand.u32 4294901760, %v9308_v39  ;;  %v32976_v29 = vand.u32 4294901760, %v29632_v3  ;;  %v29691_v59 = vld [vmem:[#allocation15 + $0x158] sm:$0xff]  ;;  %v29693_v16 = vld [vmem:[#allocation15 + $0x170] sm:$0xff]  ;;  %24729 = vmatprep.subr.bf16.mxu0 %v29495_v19 }
 0x6fe   :  { %v29678_v20 = vpack.c.bf16 %v32971_v21, %v32970_v33  ;;  %v9303_v33 = vand.u32 4294901760, %v9302_v13  ;;  %v32508_v21 = vand.u32 4294901760, %v29651_v51  ;;  %v32509_v55 = vand.u32 4294901760, %v29656_v32 }
 0x6ff   :  { %v29684_v34 = vpack.c.bf16 %v32974_v0, %v32973_v12  ;;  %v9314_v26 = vsub.f32 %v29632_v3, %v32976_v29  ;;  %v29699_v39 = vpack.c.bf16 %v9309_v62, %v9297_v43  ;;  %v32511_v29 = vand.u32 4294901760, %v29671_v7  ;;  %24559 = vmatpush3.bf16.msra.mxu1 %v29376_v56 }
 0x700   :  { %32972 = vst [vmem:[#allocation139_spill] sm:$0xff] %v29678_v20  ;;  %v32978_v31 = vand.u32 4294901760, %v29416_v22  ;;  %v9320_v13 = vsub.f32 %v29651_v51, %v32508_v21  ;;  %v9332_v12 = vsub.f32 %v29656_v32, %v32509_v55  ;;  %v32979_v19 = vand.u32 4294901760, %v29666_v9  ;;  %24560 = vmatprep.subr.bf16.mxu1 %v32957_v17  ;;  %24731 = vmatpush1.bf16.msra.mxu0 %v29501_v61 }
 0x701   :  { %32975 = vst [vmem:[#allocation140_spill] sm:$0xff] %v29684_v34  ;;  %32977 = vst [vmem:[#allocation141_spill] sm:$0xff] %v29699_v39  ;;  %v9315_v0 = vand.u32 4294901760, %v9314_v26  ;;  %v32980_v62 = vand.u32 4294901760, %v29423_v58  ;;  %v9338_v55 = vsub.f32 %v29671_v7, %v32511_v29  ;;  %24733 = vmatprep.subr.bf16.mxu0 %v29511_v60 }
 0x702   :  { %v29705_v41 = vsub.f32 %v29416_v22, %v32978_v31  ;;  %v9326_v43 = vsub.f32 %v29666_v9, %v32979_v19  ;;  %v9321_v19 = vand.u32 4294901760, %v9320_v13  ;;  %v9333_v39 = vand.u32 4294901760, %v9332_v12  ;;  %v29733_v31 = vld [vmem:[#allocation15 + $0x150] sm:$0xff]  ;;  %22171 = vmatmul.mubr.f32.vlgmr.msra.gmra.mrb[8].mxu1 %v29139_v5  ;;  %v29747_v12 = vld [vmem:[#allocation15 + $0x168] sm:$0xff] }
 0x703   :  { %v29719_v26 = vsub.f32 %v29423_v58, %v32980_v62  ;;  %v29724_v21 = vpack.c.bf16 %v9315_v0, %v9303_v33  ;;  %v9339_v22 = vand.u32 4294901760, %v9338_v55  ;;  %v32982_v0 = vand.u32 4294901760, %v29425_v53  ;;  %24562 = vmatpush3.bf16.msra.mxu1 %v29389_v50  ;;  %22189 = vmatprep.mubr.msk.f32.mxu1 %vm27471_vm14, %v32773_v35 }
 0x704   :  { %v9327_v58 = vand.u32 4294901760, %v9326_v43  ;;  %v32513_v62 = vand.u32 4294901760, %v29705_v41  ;;  %v29749_v43 = vpack.c.bf16 %v9333_v39, %v9321_v19  ;;  %v32985_v33 = vand.u32 4294901760, %v29451_v63  ;;  %24563 = vmatprep.subr.bf16.mxu1 %v32957_v17  ;;  %24735 = vmatpush1.bf16.msra.mxu0 %v29517_v40 }
 0x705   :  { %32981 = vst [vmem:[#allocation142_spill] sm:$0xff] %v29724_v21  ;;  %v29739_v29 = vsub.f32 %v29425_v53, %v32982_v0  ;;  %v32983_v21 = vand.u32 4294901760, %v29427_v36  ;;  %v32986_v0 = vand.u32 4294901760, %v29453_v49  ;;  %24737 = vmatprep.subr.bf16.mxu0 %v29539_v45 }
 0x706   :  { %32984 = vst [vmem:[#allocation143_spill] sm:$0xff] %v29749_v43  ;;  %v9344_v55 = vsub.f32 %v29705_v41, %v32513_v62  ;;  %v29757_v53 = vsub.f32 %v29451_v63, %v32985_v33  ;;  %v29767_v5 = vpack.c.bf16 %v9339_v22, %v9327_v58  ;;  %v9204_v58 = vand.u32 4294901760, %v29747_v12 }
 0x707   :  { %v29744_v13 = vsub.f32 %v29427_v36, %v32983_v21  ;;  %v29762_v36 = vsub.f32 %v29453_v49, %v32986_v0  ;;  %v32988_v21 = vand.u32 4294901760, %v29719_v26  ;;  %v32518_v19 = vand.u32 4294901760, %v29739_v29  ;;  %24565 = vmatpush3.bf16.msra.mxu1 %v29391_v37 }
 0x708   :  { %32987 = vst [vmem:[#allocation144_spill] sm:$0xff] %v29767_v5  ;;  %v9345_v33 = vand.u32 4294901760, %v9344_v55  ;;  %v32520_v0 = vand.u32 4294901760, %v29757_v53  ;;  %v32989_v5 = vand.u32 4294901760, %v29481_v23  ;;  %v32990_v43 = vand.u32 4294901760, %v29503_v48  ;;  %24566 = vmatprep.subr.bf16.mxu1 %v32957_v17  ;;  %24739 = vmatpush1.bf16.msra.mxu0 %v29590_v11 }
 0x709   :  { %v9356_v39 = vsub.f32 %v29719_v26, %v32988_v21  ;;  %v32519_v63 = vand.u32 4294901760, %v29744_v13  ;;  %v32525_v22 = vand.u32 4294901760, %v29762_v36  ;;  %v9350_v62 = vsub.f32 %v29739_v29, %v32518_v19  ;;  %24741 = vmatprep.subr.bf16.mxu0 %v29678_v20 }
 0x70a   :  { %v9368_v55 = vsub.f32 %v29757_v53, %v32520_v0  ;;  %v29801_v19 = vsub.f32 %v29503_v48, %v32990_v43  ;;  %v32992_v0 = vand.u32 4294901760, %v29693_v16 }
 0x70b   :  { %v9357_v21 = vand.u32 4294901760, %v9356_v39  ;;  %v9362_v50 = vsub.f32 %v29744_v13, %v32519_v63  ;;  %v9380_v49 = vsub.f32 %v29762_v36, %v32525_v22  ;;  %v29796_v39 = vsub.f32 %v29481_v23, %v32989_v5  ;;  %24568 = vmatpush3.bf16.msra.mxu1 %v29393_v10 }
 0x70c   :  { %v32991_v63 = vand.u32 4294901760, %v29691_v59  ;;  %v9351_v22 = vand.u32 4294901760, %v9350_v62  ;;  %v9369_v23 = vand.u32 4294901760, %v9368_v55  ;;  %v32530_v43 = vand.u32 4294901760, %v29801_v19  ;;  %24569 = vmatprep.subr.bf16.mxu1 %v32957_v17  ;;  %24743 = vmatpush1.bf16.msra.mxu0 %v29684_v34 }
 0x70d   :  { %v29810_v40 = vpack.c.bf16 %v9357_v21, %v9345_v33  ;;  %v9363_v60 = vand.u32 4294901760, %v9362_v50  ;;  %v9381_v5 = vand.u32 4294901760, %v9380_v49  ;;  %v32531_v48 = vand.u32 4294901760, %v29796_v39 }
 0x70e   :  { %v29808_v45 = vpack.c.bf16 %v32992_v0, %v32991_v63  ;;  %v32996_v63 = vand.u32 4294901760, %v29550_v6  ;;  %v32997_v50 = vand.u32 4294901760, %v29570_v27  ;;  %v32998_v49 = vand.u32 4294901760, %v29598_v46 }
 0x70f   :  { %32994 = vst [vmem:[#allocation146_spill] sm:$0xff] %v29810_v40  ;;  %v29817_v37 = vpack.c.bf16 %v9363_v60, %v9351_v22  ;;  %v32999_v21 = vand.u32 4294901760, %v29472_v18  ;;  %v33000_v60 = vand.u32 4294901760, %v29475_v52  ;;  %v29840_v55 = vpack.c.bf16 %v9381_v5, %v9369_v23  ;;  %24571 = vmatpush3.bf16.msra.mxu1 %v29401_v44 }
 0x710   :  { %32993 = vst [vmem:[#allocation145_spill] sm:$0xff] %v29808_v45  ;;  %v29822_v33 = vsub.f32 %v29550_v6, %v32996_v63  ;;  %v29827_v62 = vsub.f32 %v29570_v27, %v32997_v50  ;;  %v29832_v0 = vsub.f32 %v29598_v46, %v32998_v49  ;;  %v9374_v6 = vsub.f32 %v29796_v39, %v32531_v48 }
 0x711   :  { %32995 = vst [vmem:[#allocation147_spill] sm:$0xff] %v29817_v37  ;;  %v29838_v22 = vpack.c.bf16 %v33000_v60, %v32999_v21  ;;  %33002 = vst [vmem:[#allocation149_spill] sm:$0xff] %v29840_v55  ;;  %v9386_v27 = vsub.f32 %v29801_v19, %v32530_v43  ;;  %v33003_v49 = vand.u32 4294901760, %v29600_v30  ;;  %v33004_v60 = vand.u32 4294901760, %v29691_v59  ;;  %24745 = vmatprep.subr.bf16.mxu0 %v29808_v45 }
 0x712   :  { %v32534_v46 = vand.u32 4294901760, %v29822_v33  ;;  %v32536_v63 = vand.u32 4294901760, %v29827_v62  ;;  %v9375_v5 = vand.u32 4294901760, %v9374_v6  ;;  %v33005_v48 = vand.u32 4294901760, %v29693_v16  ;;  %24572 = vmatprep.subr.bf16.mxu1 %v32957_v17  ;;  %22190 = vmatmul.mubr.f32.vlgmr.msra.gmra.mrb[10].mxu1 %v29115_v1 }
 0x713   :  { %33001 = vst [vmem:[#allocation148_spill] sm:$0xff] %v29838_v22  ;;  %v29855_v23 = vsub.f32 %v29600_v30, %v33003_v49  ;;  %v9387_v21 = vand.u32 4294901760, %v9386_v27  ;;  %v29862_v43 = vsub.f32 %v29691_v59, %v33004_v60  ;;  %v33006_v27 = vand.u32 4294901760, %v29832_v0  ;;  %24574 = vmatpush3.bf16.msra.mxu1 %v29405_v57  ;;  %22208 = vmatprep.mubr.msk.f32.mxu1 %vm27471_vm14, %v32773_v35 }
 0x714   :  { %v29867_v50 = vsub.f32 %v29693_v16, %v33005_v48  ;;  %v9392_v30 = vsub.f32 %v29822_v33, %v32534_v46  ;;  %v9404_v6 = vsub.f32 %v29827_v62, %v32536_v63  ;;  %v33007_v60 = vand.u32 4294901760, %v29733_v31  ;;  %24575 = vmatprep.subr.bf16.mxu1 %v32957_v17 }
 0x715   :  { %v9398_v59 = vsub.f32 %v29832_v0, %v33006_v27  ;;  %v32538_v49 = vand.u32 4294901760, %v29855_v23  ;;  %v29884_v48 = vpack.c.bf16 %v9387_v21, %v9375_v5  ;;  %v32542_v10 = vand.u32 4294901760, %v29862_v43 }
 0x716   :  { %v29882_v16 = vpack.c.bf16 %v9204_v58, %v33007_v60  ;;  %v32543_v46 = vand.u32 4294901760, %v29867_v50  ;;  %v9393_v55 = vand.u32 4294901760, %v9392_v30  ;;  %v9405_v63 = vand.u32 4294901760, %v9404_v6 }
 0x717   :  { %33009 = vst [vmem:[#allocation151_spill] sm:$0xff] %v29884_v48  ;;  %v9399_v37 = vand.u32 4294901760, %v9398_v59  ;;  %v9410_v27 = vsub.f32 %v29855_v23, %v32538_v49  ;;  %v33010_v5 = vand.u32 4294901760, %v29484_v15  ;;  %v33011_v21 = vand.u32 4294901760, %v29487_v8  ;;  %24577 = vmatpush3.bf16.msra.mxu1 %v29409_v14 }
 0x718   :  { %33008 = vst [vmem:[#allocation150_spill] sm:$0xff] %v29882_v16  ;;  %24747 = vmatpush1.bf16.msra.mxu0 %v29882_v16  ;;  %v9416_v30 = vsub.f32 %v29862_v43, %v32542_v10  ;;  %v9428_v6 = vsub.f32 %v29867_v50, %v32543_v46  ;;  %v29907_v59 = vpack.c.bf16 %v9405_v63, %v9393_v55  ;;  %v33014_v44 = vand.u32 4294901760, %v29733_v31 }
 0x719   :  { %v29898_v60 = vpack.c.bf16 %v33011_v21, %v33010_v5  ;;  %24749 = vmatprep.subr.bf16.mxu0 %v29838_v22  ;;  %v9411_v49 = vand.u32 4294901760, %v9410_v27  ;;  %v29915_v5 = vsub.f32 %v29747_v12, %v9204_v58  ;;  %v33015_v21 = vand.u32 4294901760, %v29531_v28  ;;  %v33031_v27 = vld [vmem:[#allocation110_spill] sm:$0xff]  ;;  %24578 = vmatprep.subr.bf16.mxu1 %v32957_v17 }
 0x71a   :  { %33013 = vst [vmem:[#allocation153_spill] sm:$0xff] %v29907_v59  ;;  %v29912_v48 = vsub.f32 %v29733_v31, %v33014_v44  ;;  %v33016_v10 = vand.u32 4294901760, %v29556_v47  ;;  %v9417_v22 = vand.u32 4294901760, %v9416_v30  ;;  %v9429_v55 = vand.u32 4294901760, %v9428_v6 }
 0x71b   :  { %33012 = vst [vmem:[#allocation152_spill] sm:$0xff] %v29898_v60  ;;  %v29926_v63 = vpack.c.bf16 %v29475_v52, %v29472_v18  ;;  %v29931_v44 = vpack.c.bf16 %v9411_v49, %v9399_v37  ;;  %v32546_v12 = vand.u32 4294901760, %v29915_v5  ;;  %9708 = vmatmul.mubr.f32.vlgmr.msra.gmra.mrb[12].mxu0 %v32773_v35  ;;  %v29945_v52 = vpack.c.bf16 %v29556_v47, %v29531_v28 }
 0x71c   :  { %v29922_v46 = vpack.c.bf16 %v33016_v10, %v33015_v21  ;;  %v32547_v31 = vand.u32 4294901760, %v29912_v48  ;;  %v29937_v10 = vpack.c.bf16 %v29487_v8, %v29484_v15  ;;  %v29941_v18 = vpack.c.bf16 %v9429_v55, %v9417_v22  ;;  %24751 = vmatpush1.bf16.msra.mxu0 %v29898_v60  ;;  %9874 = vmatprep.mubr.f32.mxu0 %v32773_v35  ;;  %v33124_v60 = vld [vmem:[#allocation141_spill] sm:$0xff] }
 0x71d   :  { %33018 = vst [vmem:[#allocation155_spill] sm:$0xff] %v29926_v63  ;;  %33019 = vst [vmem:[#allocation156_spill] sm:$0xff] %v29931_v44  ;;  %v29949_v37 = vpack.c.bf16 %v29566_v2, %v29561_v38  ;;  %v33024_v58 = vand.u32 4294901760, %v29561_v38  ;;  %v33025_v15 = vand.u32 4294901760, %v29566_v2  ;;  %v9434_v28 = vsub.f32 %v29915_v5, %v32546_v12  ;;  %v33030_v2 = vld [vmem:[#allocation109_spill] sm:$0xff]  ;;  %v33042_v12 = vld [vmem:[#allocation111_spill] sm:$0xff] }
 0x71e   :  { %33017 = vst [vmem:[#allocation154_spill] sm:$0xff] %v29922_v46  ;;  %33020 = vst [vmem:[#allocation157_spill] sm:$0xff] %v29937_v10  ;;  %v9422_v22 = vsub.f32 %v29912_v48, %v32547_v31  ;;  %24753 = vmatprep.subr.bf16.mxu0 %v29922_v46  ;;  %v33027_v47 = vand.u32 4294901760, %v29581_v42  ;;  %v33028_v38 = vand.u32 4294901760, %v29616_v25  ;;  %v29975_v30 = vpack.c.bf16 %v33031_v27, %v33030_v2  ;;  %v33043_v31 = vld [vmem:[#allocation112_spill] sm:$0xff]  ;;  %v33123_v46 = vld [vmem:[#allocation138_spill] sm:$0xff] }
 0x71f   :  { %33021 = vst [vmem:[#allocation158_spill] sm:$0xff] %v29941_v18  ;;  %33022 = vst [vmem:[#allocation159_spill] sm:$0xff] %v29945_v52  ;;  %v29956_v8 = vpack.c.bf16 %v33025_v15, %v33024_v58  ;;  %v9435_v21 = vand.u32 4294901760, %v9434_v28  ;;  %v29979_v55 = vpack.c.bf16 %v29616_v25, %v29581_v42  ;;  %v29984_v58 = vpack.c.bf16 %v29632_v3, %v29621_v24 }
 0x720   :  { %33023 = vst [vmem:[#allocation160_spill] sm:$0xff] %v29949_v37  ;;  %v29970_v49 = vpack.c.bf16 %v33028_v38, %v33027_v47  ;;  %33032 = vst [vmem:[#allocation109_spill] sm:$0xff] %v29975_v30  ;;  %v9423_v6 = vand.u32 4294901760, %v9422_v22  ;;  %v33035_v15 = vand.u32 4294901760, %v29621_v24  ;;  %v33036_v47 = vand.u32 4294901760, %v29632_v3  ;;  %24580 = vmatpush3.bf16.msra.mxu1 %v29975_v30 }
 0x721   :  { %33026 = vst [vmem:[#allocation161_spill] sm:$0xff] %v29956_v8  ;;  %33033 = vst [vmem:[#allocation110_spill] sm:$0xff] %v29979_v55  ;;  %24755 = vmatpush1.bf16.msra.mxu0 %v29956_v8  ;;  %v33039_v42 = vand.u32 4294901760, %v29651_v51  ;;  %v33040_v25 = vand.u32 4294901760, %v29656_v32  ;;  %v30005_v8 = vpack.c.bf16 %v33043_v31, %v33042_v12  ;;  %v30009_v3 = vpack.c.bf16 %v29656_v32, %v29651_v51 }
 0x722   :  { %33029 = vst [vmem:[#allocation162_spill] sm:$0xff] %v29970_v49  ;;  %33034 = vst [vmem:[#allocation163_spill] sm:$0xff] %v29984_v58  ;;  %v29991_v38 = vpack.c.bf16 %v33036_v47, %v33035_v15  ;;  %v29993_v22 = vpack.c.bf16 %v9435_v21, %v9423_v6  ;;  %24757 = vmatprep.subr.bf16.mxu0 %v29970_v49  ;;  %24581 = vmatprep.subr.bf16.mxu1 %v32957_v17  ;;  %v33047_v6 = vand.u32 4294901760, %v29666_v9  ;;  %v33121_v49 = vld [vmem:[#allocation136_spill] sm:$0xff] }
 0x723   :  { %v30000_v28 = vpack.c.bf16 %v33040_v25, %v33039_v42  ;;  %33044 = vst [vmem:[#allocation111_spill] sm:$0xff] %v30005_v8  ;;  %33045 = vst [vmem:[#allocation112_spill] sm:$0xff] %v30009_v3  ;;  %v30014_v24 = vpack.c.bf16 %v29671_v7, %v29666_v9  ;;  %v33048_v21 = vand.u32 4294901760, %v29671_v7  ;;  %v33050_v47 = vand.u32 4294901760, %v29705_v41 }
 0x724   :  { %33037 = vst [vmem:[#allocation164_spill] sm:$0xff] %v29991_v38  ;;  %33038 = vst [vmem:[#allocation165_spill] sm:$0xff] %v29993_v22  ;;  %v33051_v51 = vand.u32 4294901760, %v29719_v26  ;;  %24583 = vmatpush3.bf16.msra.mxu1 %v30005_v8  ;;  %v30033_v42 = vpack.c.bf16 %v29719_v26, %v29705_v41  ;;  %v30038_v9 = vpack.c.bf16 %v29744_v13, %v29739_v29  ;;  %v33055_v7 = vand.u32 4294901760, %v29739_v29 }
 0x725   :  { %33041 = vst [vmem:[#allocation166_spill] sm:$0xff] %v30000_v28  ;;  %33046 = vst [vmem:[#allocation167_spill] sm:$0xff] %v30014_v24  ;;  %24759 = vmatpush1.bf16.msra.mxu0 %v29991_v38  ;;  %v30021_v15 = vpack.c.bf16 %v33048_v21, %v33047_v6  ;;  %24584 = vmatprep.subr.bf16.mxu1 %v32957_v17  ;;  %v33056_v25 = vand.u32 4294901760, %v29744_v13  ;;  %v33058_v21 = vld [vmem:[#allocation94_spill] sm:$0xff]  ;;  %v33059_v41 = vand.u32 4294901760, %v29757_v53  ;;  %v33060_v26 = vand.u32 4294901760, %v29762_v36 }
 0x726   :  { %24761 = vmatprep.subr.bf16.mxu0 %v30000_v28  ;;  %v30028_v32 = vpack.c.bf16 %v33051_v51, %v33050_v47  ;;  %33053 = vst [vmem:[#allocation170_spill] sm:$0xff] %v30033_v42  ;;  %33054 = vst [vmem:[#allocation171_spill] sm:$0xff] %v30038_v9  ;;  %v33062_v51 = vld [vmem:[#allocation113_spill] sm:$0xff]  ;;  %v30060_v29 = vpack.c.bf16 %v29762_v36, %v29757_v53  ;;  %v30065_v13 = vpack.c.bf16 %v29801_v19, %v29796_v39  ;;  %v33119_v28 = vld [vmem:[#allocation34_spill] sm:$0xff] }
 0x727   :  { %33049 = vst [vmem:[#allocation168_spill] sm:$0xff] %v30021_v15  ;;  %v30045_v6 = vpack.c.bf16 %v33056_v25, %v33055_v7  ;;  %22209 = vmatmul.mubr.f32.vlgmr.msra.gmra.mrb[12].mxu1 %v33058_v21  ;;  %v30053_v47 = vpack.c.bf16 %v33060_v26, %v33059_v41  ;;  %v33065_v7 = vand.u32 4294901760, %v29796_v39  ;;  %v33066_v25 = vand.u32 4294901760, %v29801_v19  ;;  %v33120_v38 = vld [vmem:[#allocation134_spill] sm:$0xff] }
 0x728   :  { %33052 = vst [vmem:[#allocation169_spill] sm:$0xff] %v30028_v32  ;;  %24586 = vmatpush3.bf16.msra.mxu1 %v33062_v51  ;;  %22227 = vmatprep.mubr.msk.f32.mxu1 %vm27471_vm14, %v32773_v35  ;;  %33063 = vst [vmem:[#allocation173_spill] sm:$0xff] %v30060_v29  ;;  %v33068_v41 = vand.u32 4294901760, %v29822_v33  ;;  %v33069_v53 = vand.u32 4294901760, %v29827_v62  ;;  %v30084_v26 = vpack.c.bf16 %v29827_v62, %v29822_v33  ;;  %v33073_v39 = vand.u32 4294901760, %v29832_v0 }
 0x729   :  { %24763 = vmatpush1.bf16.msra.mxu0 %v30021_v15  ;;  %33057 = vst [vmem:[#allocation172_spill] sm:$0xff] %v30045_v6  ;;  %33061 = vst [vmem:[#allocation94_spill] sm:$0xff] %v30053_v47  ;;  %24587 = vmatprep.subr.bf16.mxu1 %v32957_v17  ;;  %v30072_v21 = vpack.c.bf16 %v33066_v25, %v33065_v7  ;;  %v30089_v19 = vpack.c.bf16 %v29855_v23, %v29832_v0  ;;  %v33074_v7 = vand.u32 4294901760, %v29855_v23  ;;  %v33118_v15 = vld [vmem:[#allocation33_spill] sm:$0xff] }
 0x72a   :  { %24765 = vmatprep.subr.bf16.mxu0 %v30028_v32  ;;  %33064 = vst [vmem:[#allocation174_spill] sm:$0xff] %v30065_v13  ;;  %v30079_v36 = vpack.c.bf16 %v33069_v53, %v33068_v41  ;;  %33071 = vst [vmem:[#allocation177_spill] sm:$0xff] %v30084_v26  ;;  %v33076_v41 = vand.u32 4294901760, %v29862_v43  ;;  %v33077_v33 = vand.u32 4294901760, %v29867_v50  ;;  %v30108_v53 = vpack.c.bf16 %v29867_v50, %v29862_v43  ;;  %v33084_v43 = vld [vmem:[#allocation105_spill] sm:$0xff]  ;;  %v33117_v32 = vld [vmem:[#allocation32_spill] sm:$0xff] }
 0x72b   :  { %33067 = vst [vmem:[#allocation175_spill] sm:$0xff] %v30072_v21  ;;  %33072 = vst [vmem:[#allocation178_spill] sm:$0xff] %v30089_v19  ;;  %v30096_v25 = vpack.c.bf16 %v33074_v7, %v33073_v39  ;;  %v30113_v0 = vpack.c.bf16 %v29915_v5, %v29912_v48  ;;  %v33081_v23 = vand.u32 4294901760, %v29912_v48  ;;  %v33082_v39 = vand.u32 4294901760, %v29915_v5  ;;  %v33090_v48 = vld [vmem:[#allocation123_spill] sm:$0xff] }
 0x72c   :  { %33070 = vst [vmem:[#allocation176_spill] sm:$0xff] %v30079_v36  ;;  %24589 = vmatpush3.bf16.msra.mxu1 %v29351_v4  ;;  %v30103_v62 = vpack.c.bf16 %v33077_v33, %v33076_v41  ;;  %33079 = vst [vmem:[#allocation181_spill] sm:$0xff] %v30108_v53  ;;  %v33085_v50 = vand.u32 4294901760, %v33084_v43  ;;  %v33086_v41 = vld [vmem:[#allocation106_spill] sm:$0xff]  ;;  %v33091_v5 = vld [vmem:[#allocation107_spill] sm:$0xff] }
 0x72d   :  { %24767 = vmatpush1.bf16.msra.mxu0 %v30045_v6  ;;  %24590 = vmatprep.subr.bf16.mxu1 %v32957_v17  ;;  %33075 = vst [vmem:[#allocation179_spill] sm:$0xff] %v30096_v25  ;;  %33080 = vst [vmem:[#allocation182_spill] sm:$0xff] %v30113_v0  ;;  %v30120_v7 = vpack.c.bf16 %v33082_v39, %v33081_v23  ;;  %v33087_v33 = vand.u32 4294901760, %v33086_v41  ;;  %v33092_v23 = vand.u32 4294901760, %v33091_v5  ;;  %v33093_v39 = vld [vmem:[#allocation108_spill] sm:$0xff]  ;;  %v33102_v5 = vld [vmem:[#allocation127_spill] sm:$0xff] }
 0x72e   :  { %24769 = vmatprep.subr.bf16.mxu0 %v30053_v47  ;;  %33078 = vst [vmem:[#allocation180_spill] sm:$0xff] %v30103_v62  ;;  %v33096_v43 = vld [vmem:[#allocation124_spill] sm:$0xff]  ;;  %v33115_v47 = vld [vmem:[#allocation30_spill] sm:$0xff]  ;;  %v33116_v6 = vld [vmem:[#allocation31_spill] sm:$0xff] }
 0x72f   :  { %33083 = vst [vmem:[#allocation183_spill] sm:$0xff] %v30120_v7 }
 0x730   :  { %24592 = vmatpush3.bf16.msra.mxu1 %v29359_v54 }
 0x731   :  { %24771 = vmatpush1.bf16.msra.mxu0 %v30072_v21  ;;  %24593 = vmatprep.subr.bf16.mxu1 %v32957_v17 }
 0x732   :  { %24773 = vmatprep.subr.bf16.mxu0 %v30079_v36  ;;  %v30128_v36 = vpack.c.bf16 %v33087_v33, %v33085_v50  ;;  %v33098_v50 = vand.u32 4294901760, %v33030_v2  ;;  %v33101_v33 = vld [vmem:[#allocation126_spill] sm:$0xff]  ;;  %v33106_v2 = vld [vmem:[#allocation128_spill] sm:$0xff] }
 0x734   :  { %24595 = vmatpush3.bf16.msra.mxu1 %v29376_v56  ;;  %33088 = vst [vmem:[#allocation105_spill] sm:$0xff] %v30128_v36 }
 0x735   :  { %24775 = vmatpush1.bf16.msra.mxu0 %v30096_v25  ;;  %24596 = vmatprep.subr.bf16.mxu1 %v32957_v17  ;;  %v33089_v25 = vld [vmem:[#allocation95_spill] sm:$0xff] }
 0x736   :  { %24777 = vmatprep.subr.bf16.mxu0 %v30103_v62  ;;  %v33094_v62 = vand.u32 4294901760, %v33093_v39  ;;  %v33104_v39 = vand.u32 4294901760, %v33043_v31  ;;  %v33109_v31 = vld [vmem:[#allocation132_spill] sm:$0xff] }
 0x737   :  { %22228 = vmatmul.mubr.f32.vlgmr.msra.gmra.mrb[14].mxu1 %v33089_v25  ;;  %v33097_v25 = vld [vmem:[#allocation125_spill] sm:$0xff] }
 0x738   :  { %24598 = vmatpush3.bf16.msra.mxu1 %v30128_v36  ;;  %v30139_v21 = vpack.c.bf16 %v33094_v62, %v33092_v23  ;;  %22246 = vmatprep.mubr.msk.f32.mxu1 %vm27471_vm14, %v32773_v35  ;;  %v33099_v62 = vand.u32 4294901760, %v33031_v27  ;;  %v33103_v23 = vand.u32 4294901760, %v33042_v12  ;;  %v33107_v27 = vld [vmem:[#allocation129_spill] sm:$0xff] }
 0x739   :  { %24779 = vmatpush1.bf16.msra.mxu0 %v30120_v7  ;;  %24599 = vmatprep.subr.bf16.mxu1 %v32957_v17  ;;  %v33110_v12 = vld [vmem:[#allocation133_spill] sm:$0xff] }
 0x73a   :  { %24781 = vmatprep.subr.bf16.mxu0 %v33090_v48  ;;  %33095 = vst [vmem:[#allocation106_spill] sm:$0xff] %v30139_v21  ;;  %v30153_v41 = vpack.c.bf16 %v33099_v62, %v33098_v50  ;;  %v30163_v7 = vpack.c.bf16 %v33104_v39, %v33103_v23  ;;  %v33108_v50 = vld [vmem:[#allocation131_spill] sm:$0xff]  ;;  %v33111_v62 = vld [vmem:[#allocation26_spill] sm:$0xff]  ;;  %v33113_v39 = vld [vmem:[#allocation28_spill] sm:$0xff] }
 0x73b   :  { %v33112_v23 = vld [vmem:[#allocation27_spill] sm:$0xff] }
 0x73c   :  { %9875 = vmatmul.mubr.f32.vlgmr.msra.gmra.mrb[12].mxu0 %v32773_v35  ;;  %24601 = vmatpush3.bf16.msra.mxu1 %v30139_v21  ;;  %33100 = vst [vmem:[#allocation95_spill] sm:$0xff] %v30153_v41  ;;  %33105 = vst [vmem:[#allocation107_spill] sm:$0xff] %v30163_v7 }
 0x73d   :  { %24783 = vmatpush1.bf16.msra.mxu0 %v33096_v43  ;;  %9977 = vmatprep.mubr.f32.mxu0 %v32773_v35 }
 0x73e   :  { %24785 = vmatprep.subr.bf16.mxu0 %v33097_v25  ;;  %24602 = vmatprep.subr.bf16.mxu1 %v32957_v17 }
 0x740   :  { %24604 = vmatpush3.bf16.msra.mxu1 %v30153_v41 }
 0x741   :  { %24787 = vmatpush1.bf16.msra.mxu0 %v33101_v33  ;;  %24605 = vmatprep.subr.bf16.mxu1 %v32957_v17 }
 0x742   :  { %24789 = vmatprep.subr.bf16.mxu0 %v33102_v5 }
 0x744   :  { %24607 = vmatpush3.bf16.msra.mxu1 %v30163_v7 }
 0x745   :  { %24791 = vmatpush1.bf16.msra.mxu0 %v33106_v2  ;;  %24608 = vmatprep.subr.bf16.mxu1 %v32957_v17 }
 0x746   :  { %24793 = vmatprep.subr.bf16.mxu0 %v33107_v27 }
 0x747   :  { %22247 = vmatmul.mubr.f32.vlgmr.msra.gmra.mrb[16].mxu1 %v29115_v1 }
 0x748   :  { %24610 = vmatpush3.bf16.msra.mxu1 %v33062_v51  ;;  %22265 = vmatprep.mubr.msk.f32.mxu1 %vm27471_vm14, %v32773_v35 }
 0x749   :  { %24795 = vmatpush1.bf16.msra.mxu0 %v29501_v61  ;;  %24611 = vmatprep.subr.bf16.mxu1 %v32957_v17 }
 0x74a   :  { %24797 = vmatprep.subr.bf16.mxu0 %v33108_v50 }
 0x74c   :  { %24613 = vmatpush3.bf16.msra.mxu1 %v29351_v4 }
 0x74d   :  { %24799 = vmatpush1.bf16.msra.mxu0 %v33109_v31  ;;  %24614 = vmatprep.subr.bf16.mxu1 %v32957_v17 }
 0x74e   :  { %24801 = vmatprep.subr.bf16.mxu0 %v33110_v12 }
 0x750   :  { %24616 = vmatpush3.bf16.msra.mxu1 %v29359_v54 }
 0x751   :  { %24803 = vmatpush1.bf16.msra.mxu0 %v29590_v11  ;;  %24617 = vmatprep.subr.bf16.mxu1 %v32957_v17 }
 0x752   :  { %24805 = vmatprep.subr.bf16.mxu0 %v29678_v20 }
 0x754   :  { %24619 = vmatpush3.bf16.msra.mxu1 %v29376_v56 }
 0x755   :  { %24807 = vmatpush1.bf16.msra.mxu0 %v29684_v34  ;;  %24621 = vmatprep.subr.bf16.mxu1 %v33090_v48 }
 0x756   :  { %24809 = vmatprep.subr.bf16.mxu0 %v29808_v45 }
 0x757   :  { %22266 = vmatmul.mubr.f32.vlgmr.msra.gmra.mrb[18].mxu1 %v29115_v1  ;;  %v33114_v1 = vld [vmem:[#allocation29_spill] sm:$0xff] }
 0x758   :  { %24623 = vmatpush1.bf16.msra.mxu1 %v33096_v43  ;;  %9238 = vmatprep.mubr.f32.mxu1 %v32773_v35 }
 0x759   :  { %24811 = vmatpush1.bf16.msra.mxu0 %v29882_v16  ;;  %24625 = vmatprep.subr.bf16.mxu1 %v33097_v25 }
 0x75a   :  { %24957 = vmatprep.subr.bf16.mxu0 %v33111_v62 }
 0x75c   :  { %9978 = vmatmul.mubr.f32.vlgmr.msra.gmra.mrb[12].mxu0 %v32773_v35  ;;  %24627 = vmatpush1.bf16.msra.mxu1 %v33101_v33 }
 0x75d   :  { %24959 = vmatpush1.bf16.msra.mxu0 %v33112_v23  ;;  %10718 = vmatprep.mubr.f32.mxu0 %v32773_v35 }
 0x75e   :  { %24961 = vmatprep.subr.bf16.mxu0 %v33113_v39  ;;  %24629 = vmatprep.subr.bf16.mxu1 %v33102_v5 }
 0x760   :  { %24631 = vmatpush1.bf16.msra.mxu1 %v33106_v2 }
 0x761   :  { %24963 = vmatpush1.bf16.msra.mxu0 %v33114_v1  ;;  %24633 = vmatprep.subr.bf16.mxu1 %v33107_v27  ;;  %v30298_v27 = vld [vmem:[#allocation15 + $0x160] sm:$0xff] }
 0x762   :  { %24965 = vmatprep.subr.bf16.mxu0 %v33115_v47 }
 0x764   :  { %24635 = vmatpush1.bf16.msra.mxu1 %v29501_v61  ;;  %v33133_v61 = vld [vmem:[#allocation58_spill] sm:$0xff] }
 0x765   :  { %24967 = vmatpush1.bf16.msra.mxu0 %v33116_v6  ;;  %24637 = vmatprep.subr.bf16.mxu1 %v33108_v50  ;;  %v33132_v50 = vld [vmem:[#allocation65_spill] sm:$0xff] }
 0x766   :  { %24969 = vmatprep.subr.bf16.mxu0 %v33117_v32  ;;  %v26806_v33 = vadd.f32 %v33133_v61, %v33132_v50 }
 0x768   :  { %24639 = vmatpush1.bf16.msra.mxu1 %v33109_v31 }
 0x769   :  { %24971 = vmatpush1.bf16.msra.mxu0 %v33118_v15  ;;  %24641 = vmatprep.subr.bf16.mxu1 %v33110_v12 }
 0x76a   :  { %24973 = vmatprep.subr.bf16.mxu0 %v33119_v28  ;;  %v33122_v28 = vld [vmem:[#allocation137_spill] sm:$0xff] }
 0x76c   :  { %24643 = vmatpush1.bf16.msra.mxu1 %v29590_v11 }
 0x76d   :  { %24645 = vmatprep.subr.bf16.mxu1 %v29678_v20  ;;  %v33125_v20 = vld [vmem:[#allocation142_spill] sm:$0xff] }
 0x770   :  { %24647 = vmatpush1.bf16.msra.mxu1 %v29684_v34  ;;  %v33126_v34 = vld [vmem:[#allocation143_spill] sm:$0xff] }
 0x771   :  { %24649 = vmatprep.subr.bf16.mxu1 %v29808_v45  ;;  %v33127_v45 = vld [vmem:[#allocation144_spill] sm:$0xff] }
 0x774   :  { %24651 = vmatpush1.bf16.msra.mxu1 %v29882_v16  ;;  %v33129_v16 = vld [vmem:[#allocation149_spill] sm:$0xff] }
 0x775   :  { %24653 = vmatprep.subr.bf16.mxu1 %v33120_v38  ;;  %v33128_v38 = vld [vmem:[#allocation147_spill] sm:$0xff] }
 0x777   :  { %9239 = vmatmul.mubr.f32.vlgmr.msra.gmra.mrb[20].mxu1 %v32773_v35 }
 0x778   :  { %24655 = vmatpush1.bf16.msra.mxu1 %v33121_v49  ;;  %9469 = vmatprep.mubr.f32.mxu1 %v32773_v35  ;;  %v33130_v49 = vld [vmem:[#allocation151_spill] sm:$0xff] }
 0x779   :  { %24657 = vmatprep.subr.bf16.mxu1 %v33122_v28 }
 0x77c   :  { %24659 = vmatpush1.bf16.msra.mxu1 %v33123_v46 }
 0x77d   :  { %24661 = vmatprep.subr.bf16.mxu1 %v33124_v60  ;;  %v30284_v60 = vld [vmem:[#allocation15 + $0x148] sm:$0xff] }
 0x780   :  { %24663 = vmatpush1.bf16.msra.mxu1 %v33125_v20  ;;  %v30282_v20 = vld [vmem:[#allocation15 + $0x130] sm:$0xff] }
 0x781   :  { %24665 = vmatprep.subr.bf16.mxu1 %v33126_v34  ;;  %v30280_v34 = vld [vmem:[#allocation15 + $0x118] sm:$0xff] }
 0x782   :  { %v10018_v31 = vand.u32 4294901760, %v30280_v34 }
 0x784   :  { %24667 = vmatpush1.bf16.msra.mxu1 %v33127_v45  ;;  %v30278_v45 = vld [vmem:[#allocation15 + $0x100] sm:$0xff] }
 0x785   :  { %24669 = vmatprep.subr.bf16.mxu1 %v29810_v40  ;;  %v10015_v12 = vand.u32 4294901760, %v30278_v45 }
 0x788   :  { %24671 = vmatpush1.bf16.msra.mxu1 %v33128_v38 }
 0x789   :  { %24673 = vmatprep.subr.bf16.mxu1 %v33129_v16 }
 0x78c   :  { %24675 = vmatpush1.bf16.msra.mxu1 %v33130_v49  ;;  %v30270_v49 = vld [vmem:[#allocation15 + $0xe8] sm:$0xff] }
 0x78d   :  { %24677 = vmatprep.subr.bf16.mxu1 %v29907_v59  ;;  %v30268_v59 = vld [vmem:[#allocation15 + $0xd0] sm:$0xff]  ;;  %v10012_v40 = vand.u32 4294901760, %v30270_v49 }
 0x78e   :  { %v10009_v38 = vand.u32 4294901760, %v30268_v59 }
 0x790   :  { %24679 = vmatpush1.bf16.msra.mxu1 %v29931_v44  ;;  %v30291_v11 = vpack.c.bf16 %v10012_v40, %v10009_v38 }
 0x791   :  { %24681 = vmatprep.subr.bf16.mxu1 %v29941_v18 }
 0x794   :  { %24683 = vmatpush1.bf16.msra.mxu1 %v29993_v22 }
 0x795   :  { %24685 = vmatprep.subr.bf16.mxu1 %v29926_v63  ;;  %v3921_v63 = vld [vmem:[#allocation15 + $0xb8] sm:$0xff] }
 0x796   :  { %v10006_v44 = vand.u32 4294901760, %v3921_v63 }
 0x797   :  { %9470 = vmatmul.mubr.f32.vlgmr.msra.gmra.mrb[20].mxu1 %v32773_v35 }
 0x798   :  { %24687 = vmatpush1.bf16.msra.mxu1 %v29937_v10  ;;  %9604 = vmatprep.mubr.f32.mxu1 %v32773_v35 }
 0x799   :  { %24689 = vmatprep.subr.bf16.mxu1 %v29945_v52  ;;  %v3900_v52 = vld [vmem:[#allocation15 + $0x10] sm:$0xff] }
 0x79c   :  { %24691 = vmatpush1.bf16.msra.mxu1 %v29949_v37  ;;  %v3903_v37 = vld [vmem:[#allocation15 + $0x28] sm:$0xff] }
 0x79d   :  { %24693 = vmatprep.subr.bf16.mxu1 %v29979_v55  ;;  %v9985_v55 = vand.u32 4294901760, %v3900_v52 }
 0x79f   :  { %v30286_v46 = vsub.f32 %v3900_v52, %v9985_v55  ;;  %v33135_v52 = vand.u32 4294901760, %v30284_v60 }
 0x7a0   :  { %24695 = vmatpush1.bf16.msra.mxu1 %v29984_v58  ;;  %v9988_v58 = vand.u32 4294901760, %v3903_v37 }
 0x7a1   :  { %24697 = vmatprep.subr.bf16.mxu1 %v30009_v3  ;;  %v3906_v3 = vld [vmem:[#allocation15 + $0x40] sm:$0xff]  ;;  %v33138_v61 = vand.u32 4294901760, %v30286_v46 }
 0x7a2   :  { %v30288_v28 = vsub.f32 %v3903_v37, %v9988_v58  ;;  %v33134_v37 = vand.u32 4294901760, %v30282_v20 }
 0x7a3   :  { %v10074_v50 = vsub.f32 %v30286_v46, %v33138_v61  ;;  %v30345_v61 = vsub.f32 %v3921_v63, %v10006_v44 }
 0x7a4   :  { %24699 = vmatpush1.bf16.msra.mxu1 %v30014_v24  ;;  %v3909_v24 = vld [vmem:[#allocation15 + $0x58] sm:$0xff]  ;;  %v30320_v48 = vpack.c.bf16 %v33135_v52, %v33134_v37  ;;  %v33139_v21 = vand.u32 4294901760, %v30288_v28 }
 0x7a5   :  { %24701 = vmatprep.subr.bf16.mxu1 %v30033_v42  ;;  %v30254_v42 = vpack.c.bf16 %v9988_v58, %v9985_v55  ;;  %v30303_v55 = vpack.c.bf16 %v10018_v31, %v10015_v12  ;;  %v30305_v58 = vld [vmem:[#allocation15 + $0x178] sm:$0xff]  ;;  %v10075_v52 = vand.u32 4294901760, %v10074_v50 }
 0x7a6   :  { %33136 = vst [vmem:[#allocation26_spill] sm:$0xff] %v30320_v48  ;;  %v10081_v36 = vsub.f32 %v30288_v28, %v33139_v21  ;;  %v33140_v21 = vand.u32 4294901760, %v30298_v27  ;;  %v33141_v30 = vand.u32 4294901760, %v30305_v58 }
 0x7a7   :  { %33131 = vst [vmem:[#allocation108_spill] sm:$0xff] %v30303_v55 }
 0x7a8   :  { %24703 = vmatpush1.bf16.msra.mxu1 %v30038_v9  ;;  %v9991_v9 = vand.u32 4294901760, %v3906_v3  ;;  %v30351_v14 = vpack.c.bf16 %v33141_v30, %v33140_v21 }
 0x7a9   :  { %24705 = vmatprep.subr.bf16.mxu1 %v30060_v29  ;;  %v9994_v29 = vand.u32 4294901760, %v3909_v24 }
 0x7aa   :  { %v30307_v2 = vsub.f32 %v3906_v3, %v9991_v9  ;;  %v33137_v3 = vld [vmem:[#allocation66_spill] sm:$0xff]  ;;  %33142 = vst [vmem:[#allocation27_spill] sm:$0xff] %v30351_v14 }
 0x7ab   :  { %v30309_v5 = vsub.f32 %v3909_v24, %v9994_v29 }
 0x7ac   :  { %24707 = vmatpush1.bf16.msra.mxu1 %v30065_v13  ;;  %v3912_v13 = vld [vmem:[#allocation15 + $0x70] sm:$0xff] }
 0x7ad   :  { %24709 = vmatprep.subr.bf16.mxu1 %v30084_v26  ;;  %v3915_v26 = vld [vmem:[#allocation15 + $0x88] sm:$0xff]  ;;  %v9997_v10 = vand.u32 4294901760, %v3912_v13 }
 0x7af   :  { %v30338_v37 = vsub.f32 %v3912_v13, %v9997_v10 }
 0x7b0   :  { %24711 = vmatpush1.bf16.msra.mxu1 %v30089_v19  ;;  %v30259_v19 = vpack.c.bf16 %v9994_v29, %v9991_v9 }
 0x7b1   :  { %24713 = vmatprep.subr.bf16.mxu1 %v30108_v53  ;;  %v10000_v53 = vand.u32 4294901760, %v3915_v26 }
 0x7b3   :  { %v30265_v22 = vpack.c.bf16 %v10000_v53, %v9997_v10  ;;  %v30340_v7 = vsub.f32 %v3915_v26, %v10000_v53  ;;  %v33143_v10 = vand.u32 4294901760, %v30307_v2 }
 0x7b4   :  { %24715 = vmatpush1.bf16.msra.mxu1 %v30113_v0  ;;  %v3918_v0 = vld [vmem:[#allocation15 + $0xa0] sm:$0xff] }
 0x7b5   :  { %24812 = vmatprep.subr.bf16.mxu1 %v32957_v17  ;;  %v10003_v18 = vand.u32 4294901760, %v3918_v0  ;;  %v10088_v13 = vsub.f32 %v30307_v2, %v33143_v10  ;;  %v32662_v26 = vand.u32 4294901760, %v30340_v7 }
 0x7b7   :  { %9605 = vmatmul.mubr.f32.vlgmr.msra.gmra.mrb[20].mxu1 %v32773_v35  ;;  %v30273_v16 = vpack.c.bf16 %v10006_v44, %v10003_v18  ;;  %v30343_v41 = vsub.f32 %v3918_v0, %v10003_v18  ;;  %v33144_v18 = vand.u32 4294901760, %v30309_v5  ;;  %v32665_v44 = vand.u32 4294901760, %v30338_v37 }
 0x7b8   :  { %24814 = vmatpush3.bf16.msra.mxu1 %v30254_v42  ;;  %22300 = vmatprep.mubr.msk.f32.mxu1 %vm27471_vm14, %v32773_v35  ;;  %v30368_v0 = vsub.f32 %v30268_v59, %v10009_v38  ;;  %v10089_v50 = vand.u32 4294901760, %v10088_v13 }
 0x7b9   :  { %24815 = vmatprep.subr.bf16.mxu1 %v32957_v17  ;;  %v10095_v63 = vsub.f32 %v30309_v5, %v33144_v18  ;;  %v32657_v30 = vand.u32 4294901760, %v30343_v41 }
 0x7bb   :  { %v10116_v59 = vsub.f32 %v30343_v41, %v32657_v30 }
 0x7bc   :  { %24817 = vmatpush3.bf16.msra.mxu1 %v30259_v19 }
 0x7bd   :  { %24818 = vmatprep.subr.bf16.mxu1 %v32957_v17 }
 0x7c0   :  { %24820 = vmatpush3.bf16.msra.mxu1 %v30265_v22 }
 0x7c1   :  { %24821 = vmatprep.subr.bf16.mxu1 %v32957_v17 }
 0x7c4   :  { %24823 = vmatpush3.bf16.msra.mxu1 %v30273_v16 }
 0x7c5   :  { %24824 = vmatprep.subr.bf16.mxu1 %v32957_v17  ;;  %v7903_v25 = vpop.f32.mrb[6].mxu1  ;;  %v30314_v43 = vpop.f32.mrb[10].mxu0 }
 0x7c6   :  { %v26814_v9 = vadd.f32 %v7903_v25, %v33137_v3  ;;  %v30324_v24 = vpop.f32.mrb[7].mxu1  ;;  %v30326_v29 = vpop.f32.mrb[11].mxu0  ;;  %v10082_v25 = vand.u32 4294901760, %v10081_v36  ;;  %v32656_v36 = vand.u32 4294901760, %v30345_v61 }
 0x7c8   :  { %24826 = vmatpush3.bf16.msra.mxu1 %v30291_v11  ;;  %v7908_v3 = vadd.f32 %v26814_v9, %v26806_v33  ;;  %v30365_v53 = vpack.c.bf16 %v10082_v25, %v10075_v52  ;;  %v30371_v33 = vsub.f32 %v30270_v49, %v10012_v40  ;;  %v10109_v9 = vsub.f32 %v30340_v7, %v32662_v26  ;;  %v30452_v26 = vld [vmem:[%s32281_s11] sm:$0x7] }
 0x7c9   :  { %24827 = vmatprep.subr.bf16.mxu1 %v32957_v17  ;;  %v10123_v40 = vsub.f32 %v30345_v61, %v32656_v36  ;;  %v32659_v49 = vand.u32 4294901760, %v30368_v0  ;;  %v30391_v52 = vsub.f32 %v30278_v45, %v10015_v12  ;;  %v30394_v25 = vsub.f32 %v30280_v34, %v10018_v31 }
 0x7ca   :  { %v20768_v8 = vmul.f32 -1.442695, %v7908_v3  ;;  %33145 = vst [vmem:[#allocation28_spill] sm:$0xff] %v30365_v53  ;;  %v10096_v3 = vand.u32 4294901760, %v10095_v63  ;;  %v32658_v38 = vand.u32 4294901760, %v30371_v33  ;;  %v10110_v13 = vand.u32 4294901760, %v10109_v9 }
 0x7cb   :  { %v10117_v63 = vand.u32 4294901760, %v10116_v59  ;;  %v10124_v36 = vand.u32 4294901760, %v10123_v40  ;;  %v10130_v34 = vsub.f32 %v30368_v0, %v32659_v49  ;;  %v32661_v12 = vand.u32 4294901760, %v30391_v52 }
 0x7cc   :  { %24829 = vmatpush3.bf16.msra.mxu1 %v30303_v55  ;;  %27186 = vpow2.f32 %v20768_v8  ;;  %v10102_v8 = vsub.f32 %v30338_v37, %v32665_v44  ;;  %v30397_v21 = vpack.c.bf16 %v10096_v3, %v10089_v50  ;;  %v10137_v31 = vsub.f32 %v30371_v33, %v32658_v38 }
 0x7cd   :  { %24830 = vmatprep.subr.bf16.mxu1 %v32957_v17  ;;  %v32660_v50 = vand.u32 4294901760, %v30394_v25  ;;  %v33148_v9 = vand.u32 4294901760, %v30282_v20  ;;  %v33149_v40 = vand.u32 4294901760, %v30284_v60  ;;  %v30424_v38 = vpack.c.bf16 %v10124_v36, %v10117_v63 }
 0x7ce   :  { %33146 = vst [vmem:[#allocation29_spill] sm:$0xff] %v30397_v21  ;;  %v10103_v10 = vand.u32 4294901760, %v10102_v8  ;;  %v10138_v49 = vand.u32 4294901760, %v10137_v31  ;;  %v33152_v63 = vand.u32 4294901760, %v30305_v58  ;;  %v33153_v31 = vld [vmem:[#allocation25_spill] sm:$0xff] }
 0x7cf   :  { %v30416_v59 = vsub.f32 %v30282_v20, %v33148_v9  ;;  %33150 = vst [vmem:[#allocation31_spill] sm:$0xff] %v30424_v38  ;;  %v10151_v20 = vsub.f32 %v30394_v25, %v32660_v50  ;;  %v32666_v9 = vsub.s32 2, %v33153_v31 }
 0x7d0   :  { %24832 = vmatpush3.bf16.msra.mxu1 %v30320_v48  ;;  %v30411_v8 = vpack.c.bf16 %v10110_v13, %v10103_v10  ;;  %v10144_v10 = vsub.f32 %v30391_v52, %v32661_v12 }
 0x7d1   :  { %24833 = vmatprep.subr.bf16.mxu1 %v32957_v17  ;;  %v10152_v12 = vand.u32 4294901760, %v10151_v20  ;;  %v33156_v20 = vld [vmem:[#allocation68_spill] sm:$0xff] }
 0x7d2   :  { %33147 = vst [vmem:[#allocation30_spill] sm:$0xff] %v30411_v8  ;;  %v10145_v50 = vand.u32 4294901760, %v10144_v10  ;;  %v30466_v10 = vrot.slane %v30452_v26, %v32666_v9 }
 0x7d4   :  { %24835 = vmatpush3.bf16.msra.mxu1 %v30351_v14  ;;  %33155 = vst [vmem:[#allocation58_spill] sm:$0xff] %v30466_v10 }
 0x7d5   :  { %24836 = vmatprep.subr.bf16.mxu1 %v32957_v17  ;;  %v8668_v18 = vpop.f32.mrb[8].mxu1 }
 0x7d6   :  { %v27187_v30 = vpop.eup %27186  ;;  %v22172_v45 = vpop.f32.mrb[9].mxu1 }
 0x7d7   :  { %22301 = vmatmul.mubr.f32.vlgmr.msra.gmra.mrb[22].mxu1 %v32773_v35  ;;  %v7912_v3 = vadd.f32 1.0, %v27187_v30  ;;  %v30421_v45 = vsub.f32 %v30284_v60, %v33149_v40  ;;  %v10131_v30 = vand.u32 4294901760, %v10130_v34  ;;  %v32663_v60 = vand.u32 4294901760, %v30416_v59 }
 0x7d8   :  { %24838 = vmatpush3.bf16.msra.mxu1 %v30365_v53  ;;  %22335 = vmatprep.mubr.msk.f32.mxu1 %vm27471_vm14, %v32773_v35  ;;  %v30443_v34 = vsub.f32 %v30305_v58, %v33152_v63  ;;  %v30471_v63 = vpack.c.bf16 %v10152_v12, %v10145_v50  ;;  %v8669_v12 = vadd.f32 %v8668_v18, %v30466_v10  ;;  %v33210_v10 = vld [vmem:[#allocation79_spill] sm:$0xff] }
 0x7d9   :  { %24839 = vmatprep.subr.bf16.mxu1 %v32957_v17  ;;  %27188 = vrcp.f32 %v7912_v3  ;;  %v32664_v13 = vand.u32 4294901760, %v30421_v45  ;;  %v33151_v3 = vand.u32 4294901760, %v30298_v27  ;;  %v30447_v40 = vpack.c.bf16 %v10138_v49, %v10131_v30 }
 0x7da   :  { %33157 = vst [vmem:[#allocation25_spill] sm:$0xff] %v30471_v63  ;;  %v33158_v9 = vand.u32 4294901760, %v30443_v34 }
 0x7db   :  { %v30438_v36 = vsub.f32 %v30298_v27, %v33151_v3  ;;  %33154 = vst [vmem:[#allocation32_spill] sm:$0xff] %v30447_v40  ;;  %v10158_v27 = vsub.f32 %v30416_v59, %v32663_v60  ;;  %v10165_v58 = vsub.f32 %v30421_v45, %v32664_v13  ;;  %v26815_v3 = vadd.f32 %v30324_v24, %v33156_v20 }
 0x7dc   :  { %24841 = vmatpush3.bf16.msra.mxu1 %v30397_v21  ;;  %v33160_v21 = vld [vmem:[#allocation59_spill] sm:$0xff] }
 0x7dd   :  { %24842 = vmatprep.subr.bf16.mxu1 %v32957_v17  ;;  %v32675_v49 = vand.u32 4294901760, %v30438_v36  ;;  %v10159_v13 = vand.u32 4294901760, %v10158_v27  ;;  %v10166_v44 = vand.u32 4294901760, %v10165_v58 }
 0x7df   :  { %v10172_v30 = vsub.f32 %v30438_v36, %v32675_v49  ;;  %v30488_v49 = vpack.c.bf16 %v10166_v44, %v10159_v13 }
 0x7e0   :  { %24844 = vmatpush3.bf16.msra.mxu1 %v30411_v8  ;;  %v33159_v8 = vld [vmem:[#allocation69_spill] sm:$0xff] }
 0x7e1   :  { %24845 = vmatprep.subr.bf16.mxu1 %v32957_v17  ;;  %v26807_v53 = vadd.f32 %v33160_v21, %v33159_v8  ;;  %33161 = vst [vmem:[#allocation59_spill] sm:$0xff] %v30488_v49 }
 0x7e3   :  { %v30473_v60 = vpop.eup %27188 }
 0x7e4   :  { %24847 = vmatpush3.bf16.msra.mxu1 %v30424_v38  ;;  %v10179_v38 = vsub.f32 %v30443_v34, %v33158_v9  ;;  %v7915_v24 = vmul.f32 %v30473_v60, %v26815_v3  ;;  %v30514_v9 = vpack.c.bf16 %v30340_v7, %v30338_v37 }
 0x7e5   :  { %24848 = vmatprep.subr.bf16.mxu1 %v32957_v17  ;;  %v8779_v50 = vpop.f32.mrb[10].mxu1 }
 0x7e6   :  { %v7916_v27 = vadd.f32 %v26807_v53, %v7915_v24  ;;  %v8780_v58 = vadd.f32 %v8779_v50, %v8669_v12  ;;  %v22191_v20 = vpop.f32.mrb[11].mxu1  ;;  %v10180_v57 = vand.u32 4294901760, %v10179_v38  ;;  %v30498_v53 = vpack.c.bf16 %v30288_v28, %v30286_v46  ;;  %33165 = vst [vmem:[#allocation187_spill] sm:$0xff] %v30514_v9 }
 0x7e7   :  { %v30532_v20 = vpack.c.bf16 %v30394_v25, %v30391_v52  ;;  %v30538_v50 = vpack.c.bf16 %v30421_v45, %v30416_v59 }
 0x7e8   :  { %24850 = vmatpush3.bf16.msra.mxu1 %v30447_v40  ;;  %v10173_v40 = vand.u32 4294901760, %v10172_v30  ;;  %27190 = vtanh.f32 %v7916_v27  ;;  %33163 = vst [vmem:[#allocation185_spill] sm:$0xff] %v30498_v53  ;;  %v30526_v30 = vpack.c.bf16 %v30371_v33, %v30368_v0  ;;  %v30544_v27 = vpack.c.bf16 %v30443_v34, %v30438_v36 }
 0x7e9   :  { %24851 = vmatprep.subr.bf16.mxu1 %v32957_v17  ;;  %33168 = vst [vmem:[#allocation190_spill] sm:$0xff] %v30532_v20  ;;  %33169 = vst [vmem:[#allocation191_spill] sm:$0xff] %v30538_v50 }
 0x7ea   :  { %v30492_v21 = vpack.c.bf16 %v10180_v57, %v10173_v40  ;;  %v30506_v57 = vpack.c.bf16 %v30309_v5, %v30307_v2  ;;  %v30520_v40 = vpack.c.bf16 %v30345_v61, %v30343_v41  ;;  %33167 = vst [vmem:[#allocation189_spill] sm:$0xff] %v30526_v30  ;;  %33170 = vst [vmem:[#allocation192_spill] sm:$0xff] %v30544_v27 }
 0x7ec   :  { %24853 = vmatpush3.bf16.msra.mxu1 %v30471_v63  ;;  %33162 = vst [vmem:[#allocation184_spill] sm:$0xff] %v30492_v21  ;;  %33164 = vst [vmem:[#allocation186_spill] sm:$0xff] %v30506_v57 }
 0x7ed   :  { %24854 = vmatprep.subr.bf16.mxu1 %v32957_v17  ;;  %33166 = vst [vmem:[#allocation188_spill] sm:$0xff] %v30520_v40 }
 0x7f0   :  { %24856 = vmatpush3.bf16.msra.mxu1 %v30488_v49 }
 0x7f1   :  { %24857 = vmatprep.subr.bf16.mxu1 %v32957_v17 }
 0x7f2   :  { %v27191_v44 = vpop.eup %27190 }
 0x7f3   :  { %7920 = vrot.lane.b32.xlu1 %v27191_v44, %s27469_s7 }
 0x7f4   :  { %24859 = vmatpush3.bf16.msra.mxu1 %v30492_v21 }
 0x7f5   :  { %24860 = vmatprep.subr.bf16.mxu1 %v32957_v17 }
 0x7f7   :  { %22336 = vmatmul.mubr.f32.vlgmr.msra.gmra.mrb[22].mxu1 %v32773_v35 }
 0x7f8   :  { %24862 = vmatpush3.bf16.msra.mxu1 %v30498_v53  ;;  %22370 = vmatprep.mubr.msk.f32.mxu1 %vm27471_vm14, %v32773_v35 }
 0x7f9   :  { %24863 = vmatprep.subr.bf16.mxu1 %v32957_v17 }
 0x7fa   :  { %v8867_v38 = vpop.f32.mrb[12].mxu1 }
 0x7fb   :  { %v8868_v18 = vadd.f32 %v8867_v38, %v8780_v58  ;;  %v22210_v13 = vpop.f32.mrb[13].mxu1 }
 0x7fc   :  { %24865 = vmatpush3.bf16.msra.mxu1 %v30506_v57 }
 0x7fd   :  { %24866 = vmatprep.subr.bf16.mxu1 %v32957_v17 }
 0x800   :  { %24868 = vmatpush3.bf16.msra.mxu1 %v30514_v9 }
 0x801   :  { %24869 = vmatprep.subr.bf16.mxu1 %v32957_v17 }
 0x804   :  { %24871 = vmatpush3.bf16.msra.mxu1 %v30520_v40 }
 0x805   :  { %24872 = vmatprep.subr.bf16.mxu1 %v32957_v17 }
 0x808   :  { %24874 = vmatpush3.bf16.msra.mxu1 %v30526_v30 }
 0x809   :  { %24875 = vmatprep.subr.bf16.mxu1 %v32957_v17 }
 0x80a   :  { %v8948_v3 = vpop.f32.mrb[14].mxu1 }
 0x80b   :  { %v8949_v24 = vadd.f32 %v8948_v3, %v8868_v18  ;;  %v22229_v12 = vpop.f32.mrb[15].mxu1 }
 0x80c   :  { %24877 = vmatpush3.bf16.msra.mxu1 %v30532_v20 }
 0x80d   :  { %24878 = vmatprep.subr.bf16.mxu1 %v32957_v17 }
 0x810   :  { %24880 = vmatpush3.bf16.msra.mxu1 %v30538_v50 }
 0x811   :  { %24881 = vmatprep.subr.bf16.mxu1 %v32957_v17 }
 0x814   :  { %24883 = vmatpush3.bf16.msra.mxu1 %v30544_v27 }
 0x815   :  { %24884 = vmatprep.subr.bf16.mxu1 %v32957_v17 }
 0x817   :  { %22371 = vmatmul.mubr.f32.vlgmr.msra.gmra.mrb[22].mxu1 %v32773_v35 }
 0x818   :  { %24886 = vmatpush3.bf16.msra.mxu1 %v30254_v42  ;;  %22405 = vmatprep.mubr.msk.f32.mxu1 %vm27471_vm14, %v32773_v35 }
 0x819   :  { %24887 = vmatprep.subr.bf16.mxu1 %v32957_v17 }
 0x81a   :  { %v9043_v58 = vpop.f32.mrb[16].mxu1 }
 0x81b   :  { %v9044_v44 = vadd.f32 %v9043_v58, %v8949_v24  ;;  %v22248_v38 = vpop.f32.mrb[17].mxu1  ;;  %v33171_v58 = vand.u32 4294901760, %v30286_v46  ;;  %v33177_v46 = vand.u32 4294901760, %v30338_v37  ;;  %v33183_v37 = vand.u32 4294901760, %v30368_v0 }
 0x81c   :  { %24889 = vmatpush3.bf16.msra.mxu1 %v30259_v19  ;;  %v33189_v0 = vand.u32 4294901760, %v30416_v59  ;;  %v7918_v59 = vsub.f32 1.0, %v30473_v60 }
 0x81d   :  { %24890 = vmatprep.subr.bf16.mxu1 %v32957_v17 }
 0x820   :  { %24892 = vmatpush3.bf16.msra.mxu1 %v30265_v22 }
 0x821   :  { %24893 = vmatprep.subr.bf16.mxu1 %v32957_v17 }
 0x824   :  { %24895 = vmatpush3.bf16.msra.mxu1 %v30273_v16 }
 0x825   :  { %24896 = vmatprep.subr.bf16.mxu1 %v32957_v17 }
 0x828   :  { %24898 = vmatpush3.bf16.msra.mxu1 %v30291_v11 }
 0x829   :  { %24899 = vmatprep.subr.bf16.mxu1 %v32957_v17 }
 0x82a   :  { %v9122_v18 = vpop.f32.mrb[18].mxu1 }
 0x82b   :  { %v30562_v13 = vadd.f32 %v9122_v18, %v9044_v44  ;;  %v22267_v3 = vpop.f32.mrb[19].mxu1  ;;  %v33172_v44 = vand.u32 4294901760, %v30288_v28  ;;  %v33174_v18 = vand.u32 4294901760, %v30307_v2  ;;  %v33178_v28 = vand.u32 4294901760, %v30340_v7 }
 0x82c   :  { %24901 = vmatpush3.bf16.msra.mxu1 %v30303_v55  ;;  %v33175_v3 = vand.u32 4294901760, %v30309_v5  ;;  %v33180_v5 = vand.u32 4294901760, %v30343_v41  ;;  %v33181_v2 = vand.u32 4294901760, %v30345_v61  ;;  %v33184_v7 = vand.u32 4294901760, %v30371_v33 }
 0x82d   :  { %24902 = vmatprep.subr.bf16.mxu1 %v32957_v17  ;;  %v30577_v38 = vpack.c.bf16 %v33172_v44, %v33171_v58  ;;  %v30596_v58 = vpack.c.bf16 %v33178_v28, %v33177_v46  ;;  %v33186_v41 = vand.u32 4294901760, %v30391_v52  ;;  %v33187_v61 = vand.u32 4294901760, %v30394_v25 }
 0x82e   :  { %v30586_v8 = vpack.c.bf16 %v33175_v3, %v33174_v18  ;;  %v30604_v44 = vpack.c.bf16 %v33181_v2, %v33180_v5  ;;  %v30612_v18 = vpack.c.bf16 %v33184_v7, %v33183_v37  ;;  %v33190_v33 = vand.u32 4294901760, %v30421_v45  ;;  %v33197_v37 = vld [vmem:[#allocation70_spill] sm:$0xff]  ;;  %v33199_v7 = vld [vmem:[#allocation72_spill] sm:$0xff] }
 0x82f   :  { %v30565_v24 = vpop.f32.mrb[12].mxu0  ;;  %33173 = vst [vmem:[#allocation193_spill] sm:$0xff] %v30577_v38  ;;  %33179 = vst [vmem:[#allocation195_spill] sm:$0xff] %v30596_v58  ;;  %v30620_v3 = vpack.c.bf16 %v33187_v61, %v33186_v41  ;;  %v33192_v52 = vand.u32 4294901760, %v30438_v36  ;;  %v33193_v25 = vand.u32 4294901760, %v30443_v34  ;;  %v33195_v36 = vld [vmem:[#allocation78_spill] sm:$0xff] }
 0x830   :  { %v30568_v12 = vpop.f32.mrb[13].mxu0  ;;  %24904 = vmatpush3.bf16.msra.mxu1 %v30320_v48  ;;  %33176 = vst [vmem:[#allocation194_spill] sm:$0xff] %v30586_v8  ;;  %33182 = vst [vmem:[#allocation196_spill] sm:$0xff] %v30604_v44  ;;  %v30628_v46 = vpack.c.bf16 %v33190_v33, %v33189_v0  ;;  %v7924_v34 = vmul.f32 %v30473_v60, %v33195_v36  ;;  %v33198_v60 = vld [vmem:[#allocation71_spill] sm:$0xff]  ;;  %v33200_v41 = vld [vmem:[#allocation73_spill] sm:$0xff] }
 0x831   :  { %24905 = vmatprep.subr.bf16.mxu1 %v32957_v17  ;;  %33185 = vst [vmem:[#allocation197_spill] sm:$0xff] %v30612_v18  ;;  %33188 = vst [vmem:[#allocation198_spill] sm:$0xff] %v30620_v3  ;;  %v30636_v28 = vpack.c.bf16 %v33193_v25, %v33192_v52  ;;  %v33201_v61 = vld [vmem:[#allocation74_spill] sm:$0xff]  ;;  %v33202_v0 = vld [vmem:[#allocation75_spill] sm:$0xff] }
 0x832   :  { %33191 = vst [vmem:[#allocation199_spill] sm:$0xff] %v30628_v46  ;;  %v33203_v33 = vld [vmem:[#allocation64_spill] sm:$0xff] }
 0x833   :  { %33194 = vst [vmem:[#allocation200_spill] sm:$0xff] %v30636_v28  ;;  %v30676_v52 = vrot.slane %v30452_v26, %v33203_v33  ;;  %v33205_v25 = vld [vmem:[#allocation76_spill] sm:$0xff] }
 0x834   :  { %24907 = vmatpush3.bf16.msra.mxu1 %v30351_v14 }
 0x835   :  { %24908 = vmatprep.subr.bf16.mxu1 %v32957_v17  ;;  %33204 = vst [vmem:[#allocation70_spill] sm:$0xff] %v30676_v52 }
 0x837   :  { %22406 = vmatmul.mubr.f32.vlgmr.msra.gmra.mrb[22].mxu1 %v32773_v35 }
 0x838   :  { %24910 = vmatpush3.bf16.msra.mxu1 %v30577_v38  ;;  %22440 = vmatprep.mubr.msk.f32.mxu1 %vm27471_vm14, %v32773_v35 }
 0x839   :  { %24911 = vmatprep.subr.bf16.mxu1 %v32957_v17 }
 0x83c   :  { %24913 = vmatpush3.bf16.msra.mxu1 %v30586_v8 }
 0x83d   :  { %24914 = vmatprep.subr.bf16.mxu1 %v32957_v17 }
 0x840   :  { %24916 = vmatpush3.bf16.msra.mxu1 %v30596_v58 }
 0x841   :  { %24917 = vmatprep.subr.bf16.mxu1 %v32957_v17 }
 0x844   :  { %24919 = vmatpush3.bf16.msra.mxu1 %v30604_v44 }
 0x845   :  { %24920 = vmatprep.subr.bf16.mxu1 %v32957_v17 }
 0x848   :  { %24922 = vmatpush3.bf16.msra.mxu1 %v30612_v18 }
 0x849   :  { %24923 = vmatprep.subr.bf16.mxu1 %v32957_v17 }
 0x84c   :  { %24925 = vmatpush3.bf16.msra.mxu1 %v30620_v3 }
 0x84d   :  { %24926 = vmatprep.subr.bf16.mxu1 %v32957_v17 }
 0x850   :  { %24928 = vmatpush3.bf16.msra.mxu1 %v30628_v46 }
 0x851   :  { %24929 = vmatprep.subr.bf16.mxu1 %v32957_v17 }
 0x854   :  { %24931 = vmatpush3.bf16.msra.mxu1 %v30636_v28 }
 0x855   :  { %24932 = vmatprep.subr.bf16.mxu1 %v32957_v17 }
 0x857   :  { %22441 = vmatmul.mubr.f32.vlgmr.msra.gmra.mrb[22].mxu1 %v32773_v35 }
 0x858   :  { %24934 = vmatpush3.bf16.msra.mxu1 %v30254_v42  ;;  %22475 = vmatprep.mubr.msk.f32.mxu1 %vm27471_vm14, %v32773_v35 }
 0x859   :  { %24935 = vmatprep.subr.bf16.mxu1 %v32957_v17 }
 0x85c   :  { %24937 = vmatpush3.bf16.msra.mxu1 %v30259_v19 }
 0x85d   :  { %24938 = vmatprep.subr.bf16.mxu1 %v32957_v17 }
 0x860   :  { %24940 = vmatpush3.bf16.msra.mxu1 %v30265_v22 }
 0x861   :  { %24941 = vmatprep.subr.bf16.mxu1 %v32957_v17 }
 0x864   :  { %24943 = vmatpush3.bf16.msra.mxu1 %v30273_v16 }
 0x865   :  { %24944 = vmatprep.subr.bf16.mxu1 %v32957_v17  ;;  %v7921_v45 = vpop.permute.xlu1 %7920 }
 0x866   :  { %v7923_v5 = vmul.f32 %v7921_v45, %v7918_v59  ;;  %v30682_v59 = vld [vmem:[%s32282_s12] sm:$0x7]  ;;  %v33206_v45 = vld [vmem:[#allocation67_spill] sm:$0xff] }
 0x867   :  { %v30686_v36 = vrot.slane %v30452_v26, %v33206_v45  ;;  %v30698_v28 = vrot.slane %v30682_v59, %v33206_v45 }
 0x868   :  { %24946 = vmatpush3.bf16.msra.mxu1 %v30291_v11  ;;  %v30658_v2 = vadd.f32 %v7924_v34, %v7923_v5  ;;  %v33208_v34 = vld [vmem:[#allocation77_spill] sm:$0xff]  ;;  %v30691_v5 = vrot.slane %v30682_v59, %v33203_v33 }
 0x869   :  { %24947 = vmatprep.subr.bf16.mxu1 %v32957_v17  ;;  %33207 = vst [vmem:[#allocation71_spill] sm:$0xff] %v30686_v36  ;;  %33211 = vst [vmem:[#allocation73_spill] sm:$0xff] %v30698_v28  ;;  %v26820_v46 = vadd.f32 %v30326_v29, %v30686_v36  ;;  %v33292_v36 = vld [vmem:[#allocation137_spill] sm:$0xff] }
 0x86a   :  { %33196 = vst [vmem:[#allocation78_spill] sm:$0xff] %v30658_v2  ;;  %10634 = vrot.lane.b32.xlu1 %v30658_v2, %s27469_s7  ;;  %33209 = vst [vmem:[#allocation72_spill] sm:$0xff] %v30691_v5  ;;  %v26816_v2 = vadd.f32 %v30314_v43, %v30676_v52 }
 0x86b   :  { %v26821_v18 = vadd.f32 %v26820_v46, %v30698_v28  ;;  %v33216_v46 = vld [vmem:[#allocation37_spill] sm:$0xff]  ;;  %v33226_v28 = vld [vmem:[#allocation42_spill] sm:$0xff] }
 0x86c   :  { %24949 = vmatpush3.bf16.msra.mxu1 %v30303_v55  ;;  %v26817_v26 = vadd.f32 %v26816_v2, %v30691_v5  ;;  %v33295_v5 = vld [vmem:[#allocation141_spill] sm:$0xff] }
 0x86d   :  { %24950 = vmatprep.subr.bf16.mxu1 %v32957_v17 }
 0x870   :  { %24952 = vmatpush3.bf16.msra.mxu1 %v30320_v48 }
 0x871   :  { %24953 = vmatprep.subr.bf16.mxu1 %v32957_v17 }
 0x874   :  { %24955 = vmatpush3.bf16.msra.mxu1 %v30351_v14 }
 0x875   :  { %25053 = vmatprep.subr.bf16.mxu1 %v33197_v37 }
 0x877   :  { %22476 = vmatmul.mubr.f32.vlgmr.msra.gmra.mrb[22].mxu1 %v32773_v35 }
 0x878   :  { %25055 = vmatpush1.bf16.msra.mxu1 %v33198_v60  ;;  %11383 = vmatprep.mubr.f32.mxu1 %v32773_v35 }
 0x879   :  { %25057 = vmatprep.subr.bf16.mxu1 %v33199_v7 }
 0x87c   :  { %25059 = vmatpush1.bf16.msra.mxu1 %v33200_v41 }
 0x87d   :  { %25061 = vmatprep.subr.bf16.mxu1 %v33201_v61 }
 0x880   :  { %25063 = vmatpush1.bf16.msra.mxu1 %v33202_v0 }
 0x881   :  { %25065 = vmatprep.subr.bf16.mxu1 %v33205_v25 }
 0x884   :  { %25067 = vmatpush1.bf16.msra.mxu1 %v33208_v34 }
 0x885   :  { %25069 = vmatprep.subr.bf16.mxu1 %v33210_v10 }
 0x88a   :  { %v9606_v3 = vpop.f32.mrb[20].mxu1 }
 0x88b   :  { %v26818_v44 = vadd.f32 %v26817_v26, %v9606_v3  ;;  %v9608_v33 = vpop.f32.mrb[21].mxu1  ;;  %v33218_v26 = vld [vmem:[#allocation38_spill] sm:$0xff] }
 0x88c   :  { %v26822_v58 = vadd.f32 %v26821_v18, %v9608_v33  ;;  %v33219_v33 = vld [vmem:[#allocation80_spill] sm:$0xff] }
 0x88d   :  { %v30705_v8 = vadd.f32 %v26818_v44, %v30565_v24  ;;  %v33212_v24 = vld [vmem:[#allocation35_spill] sm:$0xff]  ;;  %v33215_v44 = vld [vmem:[#allocation97_spill] sm:$0xff] }
 0x88e   :  { %v30708_v43 = vadd.f32 %v26822_v58, %v30568_v12  ;;  %v33213_v12 = vld [vmem:[#allocation96_spill] sm:$0xff] }
 0x88f   :  { %v33214_v58 = vld [vmem:[#allocation36_spill] sm:$0xff] }
 0x8dc   :  { %v10635_v52 = vpop.permute.xlu1 %10634 }
 0x8dd   :  { %v10636_v45 = vsel %vm3836_vm13, %v10635_v52, 0  ;;  %v33217_v52 = vld [vmem:[#allocation98_spill] sm:$0xff] }
 0x8de   :  { %v30711_v10 = vand.u32 4294901760, %v10636_v45 }
 0x8e0   :  { %v30714_v29 = vsub.f32 %v10636_v45, %v30711_v10  ;;  %v33220_v45 = vld [vmem:[#allocation39_spill] sm:$0xff] }
 0x8e2   :  { %v30717_v2 = vand.u32 4294901760, %v30714_v29 }
 0x8e4   :  { %v10722_v18 = vsub.f32 %v30714_v29, %v30717_v2 }
 0x8e6   :  { %v30721_v3 = vand.u32 4294901760, %v10722_v18  ;;  %v33221_v18 = vld [vmem:[#allocation81_spill] sm:$0xff] }
 0x8e8   :  { %10724 = vmatmul.mubr.f32.vlgmr.msra.gmra.mrb[14].mxu0 %v30721_v3  ;;  %11389 = vmatmul.mubr.f32.vlgmr.msra.gmra.mrb[24].mxu1 %v30721_v3 }
 0x8e9   :  { %24975 = vmatpush1.bf16.msra.mxu0 %v33212_v24  ;;  %25071 = vmatpush1.bf16.msra.mxu1 %v33213_v12  ;;  %v33222_v12 = vld [vmem:[#allocation40_spill] sm:$0xff] }
 0x8ea   :  { %24977 = vmatprep.subr.bf16.mxu0 %v33214_v58  ;;  %25073 = vmatprep.subr.bf16.mxu1 %v33215_v44  ;;  %v33223_v58 = vld [vmem:[#allocation82_spill] sm:$0xff]  ;;  %v33224_v44 = vld [vmem:[#allocation41_spill] sm:$0xff]  ;;  %v33225_v24 = vld [vmem:[#allocation84_spill] sm:$0xff] }
 0x8eb   :  { %10874 = vmatprep.mubr.f32.mxu0 %v32773_v35  ;;  %11539 = vmatprep.mubr.f32.mxu1 %v32773_v35 }
 0x8ed   :  { %24979 = vmatpush1.bf16.msra.mxu0 %v33216_v46  ;;  %25075 = vmatpush1.bf16.msra.mxu1 %v33217_v52  ;;  %v33227_v46 = vld [vmem:[#allocation83_spill] sm:$0xff]  ;;  %v33289_v52 = vld [vmem:[#allocation134_spill] sm:$0xff] }
 0x8ee   :  { %24981 = vmatprep.subr.bf16.mxu0 %v33218_v26  ;;  %25077 = vmatprep.subr.bf16.mxu1 %v33219_v33  ;;  %v33228_v33 = vld [vmem:[#allocation43_spill] sm:$0xff]  ;;  %v33241_v26 = vld [vmem:[#allocation88_spill] sm:$0xff] }
 0x8f1   :  { %24983 = vmatpush1.bf16.msra.mxu0 %v33220_v45  ;;  %25079 = vmatpush1.bf16.msra.mxu1 %v33221_v18  ;;  %v33229_v45 = vld [vmem:[#allocation99_spill] sm:$0xff]  ;;  %v33230_v18 = vld [vmem:[#allocation44_spill] sm:$0xff] }
 0x8f2   :  { %24985 = vmatprep.subr.bf16.mxu0 %v33222_v12  ;;  %25081 = vmatprep.subr.bf16.mxu1 %v33223_v58  ;;  %v33231_v12 = vld [vmem:[#allocation100_spill] sm:$0xff]  ;;  %v33236_v58 = vld [vmem:[#allocation47_spill] sm:$0xff] }
 0x8f5   :  { %24987 = vmatpush1.bf16.msra.mxu0 %v33224_v44  ;;  %25083 = vmatpush1.bf16.msra.mxu1 %v33225_v24  ;;  %v33232_v24 = vld [vmem:[#allocation45_spill] sm:$0xff] }
 0x8f6   :  { %24989 = vmatprep.subr.bf16.mxu0 %v33226_v28  ;;  %25085 = vmatprep.subr.bf16.mxu1 %v33227_v46  ;;  %v33233_v28 = vld [vmem:[#allocation101_spill] sm:$0xff]  ;;  %v33234_v46 = vld [vmem:[#allocation46_spill] sm:$0xff] }
 0x8f7   :  { %v33235_v44 = vld [vmem:[#allocation85_spill] sm:$0xff] }
 0x8f8   :  { %10876 = vmatmul.mubr.f32.vlgmr.msra.gmra.mrb[14].mxu0 %v30711_v10  ;;  %11541 = vmatmul.mubr.f32.vlgmr.msra.gmra.mrb[24].mxu1 %v30711_v10 }
 0x8f9   :  { %24991 = vmatpush1.bf16.msra.mxu0 %v33228_v33  ;;  %25087 = vmatpush1.bf16.msra.mxu1 %v33229_v45  ;;  %v33237_v33 = vld [vmem:[#allocation86_spill] sm:$0xff]  ;;  %v33238_v45 = vld [vmem:[#allocation48_spill] sm:$0xff] }
 0x8fa   :  { %24993 = vmatprep.subr.bf16.mxu0 %v33230_v18  ;;  %25089 = vmatprep.subr.bf16.mxu1 %v33231_v12  ;;  %v33239_v18 = vld [vmem:[#allocation87_spill] sm:$0xff]  ;;  %v33240_v12 = vld [vmem:[#allocation49_spill] sm:$0xff] }
 0x8fb   :  { %10978 = vmatprep.mubr.f32.mxu0 %v32773_v35  ;;  %11643 = vmatprep.mubr.f32.mxu1 %v32773_v35 }
 0x8fd   :  { %24995 = vmatpush1.bf16.msra.mxu0 %v33232_v24  ;;  %25091 = vmatpush1.bf16.msra.mxu1 %v33233_v28  ;;  %v33252_v28 = vld [vmem:[#allocation55_spill] sm:$0xff]  ;;  %v33257_v24 = vld [vmem:[#allocation93_spill] sm:$0xff] }
 0x8fe   :  { %24997 = vmatprep.subr.bf16.mxu0 %v33234_v46  ;;  %25093 = vmatprep.subr.bf16.mxu1 %v33235_v44  ;;  %v33248_v44 = vld [vmem:[#allocation53_spill] sm:$0xff]  ;;  %v33251_v46 = vld [vmem:[#allocation90_spill] sm:$0xff] }
 0x901   :  { %24999 = vmatpush1.bf16.msra.mxu0 %v33236_v58  ;;  %25095 = vmatpush1.bf16.msra.mxu1 %v33237_v33  ;;  %v33246_v33 = vld [vmem:[#allocation52_spill] sm:$0xff]  ;;  %v33247_v58 = vld [vmem:[#allocation103_spill] sm:$0xff] }
 0x902   :  { %25001 = vmatprep.subr.bf16.mxu0 %v33238_v45  ;;  %25097 = vmatprep.subr.bf16.mxu1 %v33239_v18  ;;  %v33244_v18 = vld [vmem:[#allocation51_spill] sm:$0xff]  ;;  %v33245_v45 = vld [vmem:[#allocation102_spill] sm:$0xff] }
 0x905   :  { %25003 = vmatpush1.bf16.msra.mxu0 %v33240_v12  ;;  %25099 = vmatpush1.bf16.msra.mxu1 %v33241_v26  ;;  %v33242_v26 = vld [vmem:[#allocation50_spill] sm:$0xff]  ;;  %v33243_v12 = vld [vmem:[#allocation89_spill] sm:$0xff] }
 0x906   :  { %25005 = vmatprep.subr.bf16.mxu0 %v33111_v62  ;;  %25101 = vmatprep.subr.bf16.mxu1 %v33197_v37 }
 0x908   :  { %10981 = vmatmul.mubr.f32.vlgmr.msra.gmra.mrb[14].mxu0 %v30714_v29  ;;  %11646 = vmatmul.mubr.f32.vlgmr.msra.gmra.mrb[24].mxu1 %v30714_v29 }
 0x909   :  { %25007 = vmatpush1.bf16.msra.mxu0 %v33112_v23  ;;  %25103 = vmatpush1.bf16.msra.mxu1 %v33198_v60 }
 0x90a   :  { %25009 = vmatprep.subr.bf16.mxu0 %v33113_v39  ;;  %25105 = vmatprep.subr.bf16.mxu1 %v33199_v7 }
 0x90b   :  { %11067 = vmatprep.mubr.f32.mxu0 %v32773_v35  ;;  %11732 = vmatprep.mubr.f32.mxu1 %v32773_v35 }
 0x90d   :  { %25011 = vmatpush1.bf16.msra.mxu0 %v33114_v1  ;;  %25107 = vmatpush1.bf16.msra.mxu1 %v33200_v41 }
 0x90e   :  { %25013 = vmatprep.subr.bf16.mxu0 %v33115_v47  ;;  %25109 = vmatprep.subr.bf16.mxu1 %v33201_v61 }
 0x911   :  { %25015 = vmatpush1.bf16.msra.mxu0 %v33116_v6  ;;  %25111 = vmatpush1.bf16.msra.mxu1 %v33202_v0 }
 0x912   :  { %25017 = vmatprep.subr.bf16.mxu0 %v33117_v32  ;;  %25113 = vmatprep.subr.bf16.mxu1 %v33205_v25 }
 0x915   :  { %25019 = vmatpush1.bf16.msra.mxu0 %v33118_v15  ;;  %25115 = vmatpush1.bf16.msra.mxu1 %v33208_v34 }
 0x916   :  { %25021 = vmatprep.subr.bf16.mxu0 %v33242_v26  ;;  %25117 = vmatprep.subr.bf16.mxu1 %v33243_v12  ;;  %v33249_v26 = vld [vmem:[#allocation104_spill] sm:$0xff]  ;;  %v33250_v12 = vld [vmem:[#allocation54_spill] sm:$0xff] }
 0x918   :  { %11071 = vmatmul.mubr.f32.vlgmr.msra.gmra.mrb[14].mxu0 %v30717_v2  ;;  %11736 = vmatmul.mubr.f32.vlgmr.msra.gmra.mrb[24].mxu1 %v30717_v2 }
 0x919   :  { %25023 = vmatpush1.bf16.msra.mxu0 %v33244_v18  ;;  %25119 = vmatpush1.bf16.msra.mxu1 %v33245_v45  ;;  %v33253_v18 = vld [vmem:[#allocation91_spill] sm:$0xff]  ;;  %v33254_v45 = vld [vmem:[#allocation56_spill] sm:$0xff] }
 0x91a   :  { %25025 = vmatprep.subr.bf16.mxu0 %v33246_v33  ;;  %25121 = vmatprep.subr.bf16.mxu1 %v33247_v58  ;;  %v33255_v33 = vld [vmem:[#allocation92_spill] sm:$0xff]  ;;  %v33256_v58 = vld [vmem:[#allocation57_spill] sm:$0xff] }
 0x91b   :  { %11189 = vmatprep.mubr.f32.mxu0 %v32773_v35  ;;  %11854 = vmatprep.mubr.f32.mxu1 %v32773_v35 }
 0x91d   :  { %25027 = vmatpush1.bf16.msra.mxu0 %v33248_v44  ;;  %25123 = vmatpush1.bf16.msra.mxu1 %v33249_v26  ;;  %v33288_v26 = vld [vmem:[#allocation150_spill] sm:$0xff] }
 0x91e   :  { %25029 = vmatprep.subr.bf16.mxu0 %v33250_v12  ;;  %25125 = vmatprep.subr.bf16.mxu1 %v33251_v46  ;;  %v20769_v12 = vmul.f32 -1.442695, %v30705_v8  ;;  %v20770_v8 = vmul.f32 -1.442695, %v30708_v43  ;;  %v33259_v43 = vld [vmem:[#allocation118_spill] sm:$0xff] }
 0x920   :  { %27192 = vpow2.f32 %v20769_v12 }
 0x921   :  { %25031 = vmatpush1.bf16.msra.mxu0 %v33252_v28  ;;  %25127 = vmatpush1.bf16.msra.mxu1 %v33253_v18  ;;  %27194 = vpow2.f32 %v20770_v8 }
 0x922   :  { %25033 = vmatprep.subr.bf16.mxu0 %v33254_v45  ;;  %25129 = vmatprep.subr.bf16.mxu1 %v33255_v33 }
 0x925   :  { %25035 = vmatpush1.bf16.msra.mxu0 %v33256_v58  ;;  %25131 = vmatpush1.bf16.msra.mxu1 %v33257_v24  ;;  %v33258_v58 = vld [vmem:[#allocation117_spill] sm:$0xff] }
 0x926   :  { %25037 = vmatprep.subr.bf16.mxu0 %v33111_v62  ;;  %25133 = vmatprep.subr.bf16.mxu1 %v33197_v37 }
 0x928   :  { %11191 = vmatmul.mubr.f32.vlgmr.msra.gmra.mrb[14].mxu0 %v30711_v10  ;;  %11856 = vmatmul.mubr.f32.vlgmr.msra.gmra.mrb[24].mxu1 %v30711_v10 }
 0x929   :  { %25039 = vmatpush1.bf16.msra.mxu0 %v33112_v23  ;;  %25135 = vmatpush1.bf16.msra.mxu1 %v33198_v60 }
 0x92a   :  { %25041 = vmatprep.subr.bf16.mxu0 %v33113_v39  ;;  %25137 = vmatprep.subr.bf16.mxu1 %v33199_v7  ;;  %v27193_v12 = vpop.eup %27192 }
 0x92b   :  { %11277 = vmatprep.mubr.f32.mxu0 %v32773_v35  ;;  %11942 = vmatprep.mubr.f32.mxu1 %v32773_v35  ;;  %v10620_v24 = vadd.f32 1.0, %v27193_v12  ;;  %v27195_v8 = vpop.eup %27194  ;;  %v33260_v12 = vld [vmem:[#allocation119_spill] sm:$0xff] }
 0x92c   :  { %v10621_v33 = vadd.f32 1.0, %v27195_v8 }
 0x92d   :  { %25043 = vmatpush1.bf16.msra.mxu0 %v33114_v1  ;;  %25139 = vmatpush1.bf16.msra.mxu1 %v33200_v41  ;;  %27196 = vrcp.f32 %v10620_v24 }
 0x92e   :  { %25045 = vmatprep.subr.bf16.mxu0 %v33115_v47  ;;  %25141 = vmatprep.subr.bf16.mxu1 %v33201_v61  ;;  %27198 = vrcp.f32 %v10621_v33 }
 0x931   :  { %25047 = vmatpush1.bf16.msra.mxu0 %v33116_v6  ;;  %25143 = vmatpush1.bf16.msra.mxu1 %v33202_v0 }
 0x932   :  { %25049 = vmatprep.subr.bf16.mxu0 %v33117_v32  ;;  %25145 = vmatprep.subr.bf16.mxu1 %v33205_v25 }
 0x935   :  { %25051 = vmatpush1.bf16.msra.mxu0 %v33118_v15  ;;  %25147 = vmatpush1.bf16.msra.mxu1 %v33208_v34  ;;  %v33300_v34 = vld [vmem:[#allocation31_spill] sm:$0xff]  ;;  %v33301_v15 = vld [vmem:[#allocation146_spill] sm:$0xff] }
 0x936   :  { %25148 = vmatprep.subr.bf16.mxu0 %v32957_v17  ;;  %25160 = vmatprep.subr.bf16.mxu1 %v32957_v17 }
 0x937   :  { %v27197_v28 = vpop.eup %27196 }
 0x938   :  { %11279 = vmatmul.mubr.f32.vlgmr.msra.gmra.mrb[14].mxu0 %v30711_v10  ;;  %11944 = vmatmul.mubr.f32.vlgmr.msra.gmra.mrb[24].mxu1 %v30711_v10 }
 0x939   :  { %25150 = vmatpush3.bf16.msra.mxu0 %v33062_v51  ;;  %25162 = vmatpush3.bf16.msra.mxu1 %v33258_v58  ;;  %v33261_v58 = vsub.s32 2, %v33153_v31  ;;  %v33264_v31 = vld [vmem:[#allocation121_spill] sm:$0xff] }
 0x93a   :  { %25151 = vmatprep.subr.bf16.mxu0 %v32957_v17  ;;  %25163 = vmatprep.subr.bf16.mxu1 %v32957_v17 }
 0x93b   :  { %22494 = vmatprep.mubr.msk.f32.mxu0 %vm27471_vm14, %v32773_v35  ;;  %22513 = vmatprep.mubr.msk.f32.mxu1 %vm27471_vm14, %v32773_v35  ;;  %v30846_v24 = vrot.slane %v30682_v59, %v33261_v58 }
 0x93d   :  { %25153 = vmatpush3.bf16.msra.mxu0 %v29351_v4  ;;  %25165 = vmatpush3.bf16.msra.mxu1 %v33259_v43  ;;  %33262 = vst [vmem:[#allocation74_spill] sm:$0xff] %v30846_v24  ;;  %v33263_v43 = vld [vmem:[#allocation120_spill] sm:$0xff] }
 0x93e   :  { %25154 = vmatprep.subr.bf16.mxu0 %v32957_v17  ;;  %25166 = vmatprep.subr.bf16.mxu1 %v32957_v17 }
 0x941   :  { %25156 = vmatpush3.bf16.msra.mxu0 %v29359_v54  ;;  %25168 = vmatpush3.bf16.msra.mxu1 %v33260_v12 }
 0x942   :  { %25157 = vmatprep.subr.bf16.mxu0 %v32957_v17  ;;  %25169 = vmatprep.subr.bf16.mxu1 %v32957_v17 }
 0x945   :  { %25159 = vmatpush3.bf16.msra.mxu0 %v29376_v56  ;;  %25171 = vmatpush3.bf16.msra.mxu1 %v33263_v43  ;;  %v33285_v43 = vld [vmem:[#allocation139_spill] sm:$0xff] }
 0x946   :  { %25172 = vmatprep.subr.bf16.mxu0 %v32957_v17  ;;  %25184 = vmatprep.subr.bf16.mxu1 %v32957_v17 }
 0x948   :  { %22495 = vmatmul.mubr.f32.vlgmr.msra.gmra.mrb[16].mxu0 %v30721_v3  ;;  %22514 = vmatmul.mubr.f32.vlgmr.msra.gmra.mrb[26].mxu1 %v30711_v10  ;;  %v27199_v3 = vpop.eup %27198 }
 0x949   :  { %25174 = vmatpush3.bf16.msra.mxu0 %v33264_v31  ;;  %25186 = vmatpush3.bf16.msra.mxu1 %v33062_v51  ;;  %v10629_v58 = vsub.f32 1.0, %v27199_v3  ;;  %v33284_v31 = vld [vmem:[#allocation135_spill] sm:$0xff] }
 0x94a   :  { %v10608_v45 = vpop.f32.mrb[22].mxu1  ;;  %25175 = vmatprep.subr.bf16.mxu0 %v32957_v17  ;;  %25187 = vmatprep.subr.bf16.mxu1 %v32957_v17 }
 0x94b   :  { %v26824_v18 = vadd.f32 %v10608_v45, %v30846_v24  ;;  %v22477_v12 = vpop.f32.mrb[23].mxu1  ;;  %22532 = vmatprep.mubr.msk.f32.mxu0 %vm27471_vm14, %v32773_v35  ;;  %22551 = vmatprep.mubr.msk.f32.mxu1 %vm27471_vm14, %v32773_v35  ;;  %v10631_v45 = vmul.f32 0.0, %v27199_v3  ;;  %v33273_v3 = vld [vmem:[#allocation123_spill] sm:$0xff]  ;;  %v33291_v24 = vld [vmem:[#allocation28_spill] sm:$0xff] }
 0x94c   :  { %v33269_v12 = vld [vmem:[#allocation105_spill] sm:$0xff] }
 0x94d   :  { %v10626_v46 = vmul.f32 %v27197_v28, %v26824_v18  ;;  %v33265_v28 = vld [vmem:[#allocation122_spill] sm:$0xff]  ;;  %25189 = vmatpush3.bf16.msra.mxu1 %v29351_v4 }
 0x94e   :  { %25177 = vmatpush3.bf16.msra.mxu0 %v33265_v28  ;;  %25190 = vmatprep.subr.bf16.mxu1 %v32957_v17 }
 0x94f   :  { %v10627_v59 = vadd.f32 %v10626_v46, %v30562_v13  ;;  %25178 = vmatprep.subr.bf16.mxu0 %v32957_v17  ;;  %v33266_v13 = vld [vmem:[#allocation109_spill] sm:$0xff]  ;;  %v33267_v46 = vld [vmem:[#allocation111_spill] sm:$0xff] }
 0x951   :  { %27200 = vtanh.f32 %v10627_v59  ;;  %25192 = vmatpush3.bf16.msra.mxu1 %v29359_v54  ;;  %v33270_v59 = vld [vmem:[#allocation106_spill] sm:$0xff] }
 0x952   :  { %25180 = vmatpush3.bf16.msra.mxu0 %v33266_v13  ;;  %25193 = vmatprep.subr.bf16.mxu1 %v32957_v17  ;;  %v33283_v13 = vld [vmem:[#allocation133_spill] sm:$0xff] }
 0x953   :  { %25181 = vmatprep.subr.bf16.mxu0 %v32957_v17 }
 0x955   :  { %25195 = vmatpush3.bf16.msra.mxu1 %v29376_v56 }
 0x956   :  { %25183 = vmatpush3.bf16.msra.mxu0 %v33267_v46  ;;  %25208 = vmatprep.subr.bf16.mxu1 %v32957_v17  ;;  %v33282_v46 = vld [vmem:[#allocation132_spill] sm:$0xff] }
 0x957   :  { %25196 = vmatprep.subr.bf16.mxu0 %v32957_v17 }
 0x958   :  { %22552 = vmatmul.mubr.f32.vlgmr.msra.gmra.mrb[28].mxu1 %v30717_v2  ;;  %v33272_v2 = vld [vmem:[#allocation107_spill] sm:$0xff] }
 0x959   :  { %22533 = vmatmul.mubr.f32.vlgmr.msra.gmra.mrb[18].mxu0 %v30714_v29  ;;  %25210 = vmatpush3.bf16.msra.mxu1 %v33062_v51  ;;  %v33271_v29 = vld [vmem:[#allocation95_spill] sm:$0xff] }
 0x95a   :  { %25198 = vmatpush3.bf16.msra.mxu0 %v33269_v12  ;;  %25211 = vmatprep.subr.bf16.mxu1 %v32957_v17  ;;  %v33281_v12 = vld [vmem:[#allocation131_spill] sm:$0xff] }
 0x95b   :  { %v27201_v33 = vpop.eup %27200  ;;  %25199 = vmatprep.subr.bf16.mxu0 %v32957_v17  ;;  %22570 = vmatprep.mubr.msk.f32.mxu0 %vm27471_vm14, %v32773_v35 }
 0x95c   :  { %v10630_v18 = vmul.f32 %v27201_v33, %v10629_v58  ;;  %22589 = vmatprep.mubr.msk.f32.mxu1 %vm27471_vm14, %v32773_v35  ;;  %v33274_v58 = vld [vmem:[#allocation124_spill] sm:$0xff]  ;;  %v33275_v33 = vld [vmem:[#allocation125_spill] sm:$0xff] }
 0x95d   :  { %25213 = vmatpush3.bf16.msra.mxu1 %v29351_v4  ;;  %v33287_v4 = vld [vmem:[#allocation145_spill] sm:$0xff] }
 0x95e   :  { %v30878_v8 = vadd.f32 %v10631_v45, %v10630_v18  ;;  %25201 = vmatpush3.bf16.msra.mxu0 %v33270_v59  ;;  %25214 = vmatprep.subr.bf16.mxu1 %v32957_v17  ;;  %v33276_v45 = vld [vmem:[#allocation126_spill] sm:$0xff]  ;;  %v33277_v18 = vld [vmem:[#allocation127_spill] sm:$0xff] }
 0x95f   :  { %25202 = vmatprep.subr.bf16.mxu0 %v32957_v17 }
 0x960   :  { %33268 = vst [vmem:[#allocation75_spill] sm:$0xff] %v30878_v8  ;;  %v30920_v59 = vand.u32 4294901760, %v30878_v8 }
 0x961   :  { %25216 = vmatpush3.bf16.msra.mxu1 %v29359_v54  ;;  %v33286_v54 = vld [vmem:[#allocation140_spill] sm:$0xff] }
 0x962   :  { %25204 = vmatpush3.bf16.msra.mxu0 %v33271_v29  ;;  %25217 = vmatprep.subr.bf16.mxu1 %v32957_v17  ;;  %v33280_v29 = vld [vmem:[#allocation130_spill] sm:$0xff]  ;;  %v30930_v28 = vsub.f32 %v30878_v8, %v30920_v59  ;;  %v33290_v8 = vld [vmem:[#allocation136_spill] sm:$0xff] }
 0x963   :  { %25205 = vmatprep.subr.bf16.mxu0 %v32957_v17 }
 0x965   :  { %25219 = vmatpush3.bf16.msra.mxu1 %v29376_v56  ;;  %v30937_v56 = vand.u32 4294901760, %v30930_v28 }
 0x966   :  { %25207 = vmatpush3.bf16.msra.mxu0 %v33272_v2  ;;  %25221 = vmatprep.subr.bf16.mxu1 %v33273_v3  ;;  %v33279_v2 = vld [vmem:[#allocation129_spill] sm:$0xff] }
 0x967   :  { %25412 = vmatprep.subr.bf16.mxu0 %v32957_v17  ;;  %v12587_v51 = vsub.f32 %v30930_v28, %v30937_v56 }
 0x968   :  { %22590 = vmatmul.mubr.f32.vlgmr.msra.gmra.mrb[30].mxu1 %v30711_v10 }
 0x969   :  { %22571 = vmatmul.mubr.f32.vlgmr.msra.gmra.mrb[20].mxu0 %v30711_v10  ;;  %25223 = vmatpush1.bf16.msra.mxu1 %v33274_v58  ;;  %v33278_v10 = vld [vmem:[#allocation128_spill] sm:$0xff]  ;;  %v12588_v44 = vand.u32 4294901760, %v12587_v51  ;;  %v33293_v51 = vld [vmem:[#allocation138_spill] sm:$0xff] }
 0x96a   :  { %25414 = vmatpush3.bf16.msra.mxu0 %v30254_v42  ;;  %25225 = vmatprep.subr.bf16.mxu1 %v33275_v33 }
 0x96b   :  { %25415 = vmatprep.subr.bf16.mxu0 %v32957_v17  ;;  %12583 = vmatprep.mubr.f32.mxu1 %v32773_v35 }
 0x96c   :  { %22624 = vmatprep.mubr.msk.f32.mxu0 %vm27471_vm14, %v32773_v35 }
 0x96d   :  { %25227 = vmatpush1.bf16.msra.mxu1 %v33276_v45 }
 0x96e   :  { %25417 = vmatpush3.bf16.msra.mxu0 %v30259_v19  ;;  %25229 = vmatprep.subr.bf16.mxu1 %v33277_v18 }
 0x96f   :  { %25418 = vmatprep.subr.bf16.mxu0 %v32957_v17 }
 0x971   :  { %25231 = vmatpush1.bf16.msra.mxu1 %v33278_v10 }
 0x972   :  { %25420 = vmatpush3.bf16.msra.mxu0 %v30265_v22  ;;  %25233 = vmatprep.subr.bf16.mxu1 %v33279_v2 }
 0x973   :  { %25421 = vmatprep.subr.bf16.mxu0 %v32957_v17 }
 0x975   :  { %25235 = vmatpush1.bf16.msra.mxu1 %v33280_v29 }
 0x976   :  { %25423 = vmatpush3.bf16.msra.mxu0 %v30273_v16  ;;  %25237 = vmatprep.subr.bf16.mxu1 %v33281_v12 }
 0x977   :  { %25424 = vmatprep.subr.bf16.mxu0 %v32957_v17 }
 0x979   :  { %25239 = vmatpush1.bf16.msra.mxu1 %v33282_v46 }
 0x97a   :  { %25426 = vmatpush3.bf16.msra.mxu0 %v30291_v11  ;;  %25241 = vmatprep.subr.bf16.mxu1 %v33283_v13 }
 0x97b   :  { %25427 = vmatprep.subr.bf16.mxu0 %v32957_v17 }
 0x97d   :  { %25243 = vmatpush1.bf16.msra.mxu1 %v33284_v31 }
 0x97e   :  { %25429 = vmatpush3.bf16.msra.mxu0 %v30303_v55  ;;  %25245 = vmatprep.subr.bf16.mxu1 %v33285_v43 }
 0x97f   :  { %25430 = vmatprep.subr.bf16.mxu0 %v32957_v17 }
 0x981   :  { %25247 = vmatpush1.bf16.msra.mxu1 %v33286_v54 }
 0x982   :  { %25432 = vmatpush3.bf16.msra.mxu0 %v30320_v48  ;;  %25249 = vmatprep.subr.bf16.mxu1 %v33287_v4 }
 0x983   :  { %25433 = vmatprep.subr.bf16.mxu0 %v32957_v17 }
 0x985   :  { %25251 = vmatpush1.bf16.msra.mxu1 %v33288_v26 }
 0x986   :  { %25435 = vmatpush3.bf16.msra.mxu0 %v30351_v14  ;;  %25253 = vmatprep.subr.bf16.mxu1 %v33289_v52  ;;  %v33294_v52 = vld [vmem:[#allocation29_spill] sm:$0xff] }
 0x987   :  { %25436 = vmatprep.subr.bf16.mxu0 %v32957_v17 }
 0x988   :  { %12589 = vmatmul.mubr.f32.vlgmr.msra.gmra.mrb[24].mxu1 %v12588_v44 }
 0x989   :  { %22625 = vmatmul.mubr.f32.vlgmr.msra.gmra.mrb[22].mxu0 %v12588_v44  ;;  %25255 = vmatpush1.bf16.msra.mxu1 %v33290_v8  ;;  %v33296_v44 = vld [vmem:[#allocation142_spill] sm:$0xff]  ;;  %v33299_v8 = vld [vmem:[#allocation144_spill] sm:$0xff] }
 0x98a   :  { %25438 = vmatpush3.bf16.msra.mxu0 %v33291_v24  ;;  %25257 = vmatprep.subr.bf16.mxu1 %v33292_v36  ;;  %v33297_v24 = vld [vmem:[#allocation30_spill] sm:$0xff]  ;;  %v33298_v36 = vld [vmem:[#allocation143_spill] sm:$0xff] }
 0x98b   :  { %25439 = vmatprep.subr.bf16.mxu0 %v32957_v17  ;;  %12819 = vmatprep.mubr.f32.mxu1 %v32773_v35 }
 0x98c   :  { %22659 = vmatprep.mubr.msk.f32.mxu0 %vm27471_vm14, %v32773_v35 }
 0x98d   :  { %25259 = vmatpush1.bf16.msra.mxu1 %v33293_v51  ;;  %v33304_v51 = vld [vmem:[#allocation149_spill] sm:$0xff] }
 0x98e   :  { %25441 = vmatpush3.bf16.msra.mxu0 %v33294_v52  ;;  %25261 = vmatprep.subr.bf16.mxu1 %v33295_v5  ;;  %v33302_v52 = vld [vmem:[#allocation147_spill] sm:$0xff]  ;;  %v33303_v5 = vld [vmem:[#allocation32_spill] sm:$0xff] }
 0x98f   :  { %25442 = vmatprep.subr.bf16.mxu0 %v32957_v17 }
 0x991   :  { %25263 = vmatpush1.bf16.msra.mxu1 %v33296_v44 }
 0x992   :  { %25444 = vmatpush3.bf16.msra.mxu0 %v33297_v24  ;;  %25265 = vmatprep.subr.bf16.mxu1 %v33298_v36  ;;  %v33305_v24 = vld [vmem:[#allocation151_spill] sm:$0xff]  ;;  %v33306_v36 = vld [vmem:[#allocation153_spill] sm:$0xff] }
 0x993   :  { %25445 = vmatprep.subr.bf16.mxu0 %v32957_v17 }
 0x995   :  { %25267 = vmatpush1.bf16.msra.mxu1 %v33299_v8 }
 0x996   :  { %25447 = vmatpush3.bf16.msra.mxu0 %v33300_v34  ;;  %25269 = vmatprep.subr.bf16.mxu1 %v33301_v15  ;;  %v33307_v34 = vld [vmem:[#allocation156_spill] sm:$0xff]  ;;  %v33308_v15 = vld [vmem:[#allocation158_spill] sm:$0xff] }
 0x997   :  { %25448 = vmatprep.subr.bf16.mxu0 %v32957_v17 }
 0x999   :  { %25271 = vmatpush1.bf16.msra.mxu1 %v33302_v52 }
 0x99a   :  { %25450 = vmatpush3.bf16.msra.mxu0 %v33303_v5  ;;  %25273 = vmatprep.subr.bf16.mxu1 %v33304_v51  ;;  %v33309_v5 = vld [vmem:[#allocation165_spill] sm:$0xff]  ;;  %v33310_v51 = vld [vmem:[#allocation155_spill] sm:$0xff] }
 0x99b   :  { %25451 = vmatprep.subr.bf16.mxu0 %v32957_v17 }
 0x99d   :  { %25275 = vmatpush1.bf16.msra.mxu1 %v33305_v24  ;;  %v33365_v24 = vld [vmem:[#allocation73_spill] sm:$0xff] }
 0x99e   :  { %25453 = vmatpush3.bf16.msra.mxu0 %v30471_v63  ;;  %25277 = vmatprep.subr.bf16.mxu1 %v33306_v36  ;;  %v33311_v36 = vld [vmem:[#allocation157_spill] sm:$0xff] }
 0x99f   :  { %25454 = vmatprep.subr.bf16.mxu0 %v32957_v17 }
 0x9a1   :  { %25279 = vmatpush1.bf16.msra.mxu1 %v33307_v34 }
 0x9a2   :  { %25456 = vmatpush3.bf16.msra.mxu0 %v30488_v49  ;;  %25281 = vmatprep.subr.bf16.mxu1 %v33308_v15  ;;  %v33312_v49 = vld [vmem:[#allocation159_spill] sm:$0xff] }
 0x9a3   :  { %25457 = vmatprep.subr.bf16.mxu0 %v32957_v17 }
 0x9a5   :  { %25283 = vmatpush1.bf16.msra.mxu1 %v33309_v5  ;;  %v33318_v5 = vld [vmem:[#allocation170_spill] sm:$0xff] }
 0x9a6   :  { %25459 = vmatpush3.bf16.msra.mxu0 %v30492_v21  ;;  %25285 = vmatprep.subr.bf16.mxu1 %v33310_v51  ;;  %v33313_v51 = vld [vmem:[#allocation160_spill] sm:$0xff]  ;;  %v33314_v21 = vld [vmem:[#allocation110_spill] sm:$0xff] }
 0x9a7   :  { %25460 = vmatprep.subr.bf16.mxu0 %v32957_v17 }
 0x9a8   :  { %12821 = vmatmul.mubr.f32.vlgmr.msra.gmra.mrb[24].mxu1 %v30920_v59 }
 0x9a9   :  { %22660 = vmatmul.mubr.f32.vlgmr.msra.gmra.mrb[22].mxu0 %v30920_v59  ;;  %25287 = vmatpush1.bf16.msra.mxu1 %v33311_v36  ;;  %v33315_v36 = vld [vmem:[#allocation163_spill] sm:$0xff] }
 0x9aa   :  { %25462 = vmatpush3.bf16.msra.mxu0 %v30498_v53  ;;  %25289 = vmatprep.subr.bf16.mxu1 %v33312_v49  ;;  %v33316_v49 = vld [vmem:[#allocation112_spill] sm:$0xff]  ;;  %v33317_v53 = vld [vmem:[#allocation167_spill] sm:$0xff] }
 0x9ab   :  { %25463 = vmatprep.subr.bf16.mxu0 %v32957_v17  ;;  %12955 = vmatprep.mubr.f32.mxu1 %v32773_v35 }
 0x9ac   :  { %22694 = vmatprep.mubr.msk.f32.mxu0 %vm27471_vm14, %v32773_v35 }
 0x9ad   :  { %25291 = vmatpush1.bf16.msra.mxu1 %v33313_v51 }
 0x9ae   :  { %25465 = vmatpush3.bf16.msra.mxu0 %v30506_v57  ;;  %25293 = vmatprep.subr.bf16.mxu1 %v33314_v21  ;;  %v33319_v57 = vld [vmem:[#allocation171_spill] sm:$0xff]  ;;  %v33320_v21 = vld [vmem:[#allocation173_spill] sm:$0xff] }
 0x9af   :  { %25466 = vmatprep.subr.bf16.mxu0 %v32957_v17 }
 0x9b1   :  { %25295 = vmatpush1.bf16.msra.mxu1 %v33315_v36  ;;  %v33360_v36 = vld [vmem:[#allocation78_spill] sm:$0xff] }
 0x9b2   :  { %25468 = vmatpush3.bf16.msra.mxu0 %v30514_v9  ;;  %25297 = vmatprep.subr.bf16.mxu1 %v33316_v49  ;;  %v33321_v9 = vld [vmem:[#allocation174_spill] sm:$0xff]  ;;  %v33322_v49 = vld [vmem:[#allocation177_spill] sm:$0xff] }
 0x9b3   :  { %25469 = vmatprep.subr.bf16.mxu0 %v32957_v17 }
 0x9b5   :  { %25299 = vmatpush1.bf16.msra.mxu1 %v33317_v53 }
 0x9b6   :  { %25471 = vmatpush3.bf16.msra.mxu0 %v30520_v40  ;;  %25301 = vmatprep.subr.bf16.mxu1 %v33318_v5  ;;  %v33323_v40 = vld [vmem:[#allocation178_spill] sm:$0xff]  ;;  %v33324_v5 = vld [vmem:[#allocation181_spill] sm:$0xff] }
 0x9b7   :  { %25472 = vmatprep.subr.bf16.mxu0 %v32957_v17 }
 0x9b9   :  { %25303 = vmatpush1.bf16.msra.mxu1 %v33319_v57 }
 0x9ba   :  { %25474 = vmatpush3.bf16.msra.mxu0 %v30526_v30  ;;  %25305 = vmatprep.subr.bf16.mxu1 %v33320_v21  ;;  %v33325_v30 = vld [vmem:[#allocation182_spill] sm:$0xff] }
 0x9bb   :  { %25475 = vmatprep.subr.bf16.mxu0 %v32957_v17 }
 0x9bd   :  { %25307 = vmatpush1.bf16.msra.mxu1 %v33321_v9 }
 0x9be   :  { %25477 = vmatpush3.bf16.msra.mxu0 %v30532_v20  ;;  %25309 = vmatprep.subr.bf16.mxu1 %v33322_v49  ;;  %v33337_v49 = vld [vmem:[#allocation169_spill] sm:$0xff] }
 0x9bf   :  { %25478 = vmatprep.subr.bf16.mxu0 %v32957_v17 }
 0x9c1   :  { %25311 = vmatpush1.bf16.msra.mxu1 %v33323_v40  ;;  %v33336_v40 = vld [vmem:[#allocation196_spill] sm:$0xff] }
 0x9c2   :  { %25480 = vmatpush3.bf16.msra.mxu0 %v30538_v50  ;;  %25313 = vmatprep.subr.bf16.mxu1 %v33324_v5  ;;  %v33330_v5 = vld [vmem:[#allocation194_spill] sm:$0xff] }
 0x9c3   :  { %25481 = vmatprep.subr.bf16.mxu0 %v32957_v17  ;;  %v33331_v50 = vld [vmem:[#allocation162_spill] sm:$0xff] }
 0x9c5   :  { %25315 = vmatpush1.bf16.msra.mxu1 %v33325_v30  ;;  %v33328_v30 = vld [vmem:[#allocation154_spill] sm:$0xff] }
 0x9c6   :  { %25483 = vmatpush3.bf16.msra.mxu0 %v30544_v27  ;;  %25317 = vmatprep.subr.bf16.mxu1 %v33273_v3  ;;  %v33327_v27 = vld [vmem:[#allocation152_spill] sm:$0xff] }
 0x9c7   :  { %25484 = vmatprep.subr.bf16.mxu0 %v32957_v17 }
 0x9c8   :  { %12958 = vmatmul.mubr.f32.vlgmr.msra.gmra.mrb[24].mxu1 %v30930_v28 }
 0x9c9   :  { %22695 = vmatmul.mubr.f32.vlgmr.msra.gmra.mrb[22].mxu0 %v30930_v28  ;;  %25319 = vmatpush1.bf16.msra.mxu1 %v33274_v58  ;;  %v33326_v28 = vld [vmem:[#allocation148_spill] sm:$0xff] }
 0x9ca   :  { %25486 = vmatpush3.bf16.msra.mxu0 %v30254_v42  ;;  %25321 = vmatprep.subr.bf16.mxu1 %v33275_v33 }
 0x9cb   :  { %25487 = vmatprep.subr.bf16.mxu0 %v32957_v17  ;;  %13060 = vmatprep.mubr.f32.mxu1 %v32773_v35 }
 0x9cc   :  { %22729 = vmatprep.mubr.msk.f32.mxu0 %vm27471_vm14, %v32773_v35 }
 0x9cd   :  { %25323 = vmatpush1.bf16.msra.mxu1 %v33276_v45 }
 0x9ce   :  { %25489 = vmatpush3.bf16.msra.mxu0 %v30259_v19  ;;  %25325 = vmatprep.subr.bf16.mxu1 %v33277_v18 }
 0x9cf   :  { %25490 = vmatprep.subr.bf16.mxu0 %v32957_v17 }
 0x9d1   :  { %25327 = vmatpush1.bf16.msra.mxu1 %v33278_v10 }
 0x9d2   :  { %25492 = vmatpush3.bf16.msra.mxu0 %v30265_v22  ;;  %25329 = vmatprep.subr.bf16.mxu1 %v33279_v2 }
 0x9d3   :  { %25493 = vmatprep.subr.bf16.mxu0 %v32957_v17 }
 0x9d5   :  { %25331 = vmatpush1.bf16.msra.mxu1 %v33280_v29 }
 0x9d6   :  { %25495 = vmatpush3.bf16.msra.mxu0 %v30273_v16  ;;  %25333 = vmatprep.subr.bf16.mxu1 %v33281_v12 }
 0x9d7   :  { %25496 = vmatprep.subr.bf16.mxu0 %v32957_v17 }
 0x9d9   :  { %25335 = vmatpush1.bf16.msra.mxu1 %v33282_v46 }
 0x9da   :  { %25498 = vmatpush3.bf16.msra.mxu0 %v30291_v11  ;;  %25337 = vmatprep.subr.bf16.mxu1 %v33283_v13 }
 0x9db   :  { %25499 = vmatprep.subr.bf16.mxu0 %v32957_v17 }
 0x9dd   :  { %25339 = vmatpush1.bf16.msra.mxu1 %v33284_v31 }
 0x9de   :  { %25501 = vmatpush3.bf16.msra.mxu0 %v30303_v55  ;;  %25341 = vmatprep.subr.bf16.mxu1 %v33285_v43 }
 0x9df   :  { %25502 = vmatprep.subr.bf16.mxu0 %v32957_v17 }
 0x9e1   :  { %25343 = vmatpush1.bf16.msra.mxu1 %v33286_v54 }
 0x9e2   :  { %25504 = vmatpush3.bf16.msra.mxu0 %v30320_v48  ;;  %25345 = vmatprep.subr.bf16.mxu1 %v33287_v4 }
 0x9e3   :  { %25505 = vmatprep.subr.bf16.mxu0 %v32957_v17 }
 0x9e5   :  { %25347 = vmatpush1.bf16.msra.mxu1 %v33288_v26 }
 0x9e6   :  { %25507 = vmatpush3.bf16.msra.mxu0 %v30351_v14  ;;  %25349 = vmatprep.subr.bf16.mxu1 %v33326_v28  ;;  %v33329_v28 = vld [vmem:[#allocation161_spill] sm:$0xff] }
 0x9e7   :  { %25508 = vmatprep.subr.bf16.mxu0 %v32957_v17 }
 0x9e8   :  { %13064 = vmatmul.mubr.f32.vlgmr.msra.gmra.mrb[24].mxu1 %v30937_v56 }
 0x9e9   :  { %22730 = vmatmul.mubr.f32.vlgmr.msra.gmra.mrb[22].mxu0 %v30937_v56  ;;  %25351 = vmatpush1.bf16.msra.mxu1 %v33327_v27  ;;  %v33332_v56 = vld [vmem:[#allocation164_spill] sm:$0xff] }
 0x9ea   :  { %25510 = vmatpush3.bf16.msra.mxu0 %v30577_v38  ;;  %25353 = vmatprep.subr.bf16.mxu1 %v33328_v30  ;;  %v33333_v38 = vld [vmem:[#allocation195_spill] sm:$0xff]  ;;  %v33334_v30 = vld [vmem:[#allocation166_spill] sm:$0xff]  ;;  %v33335_v27 = vld [vmem:[#allocation168_spill] sm:$0xff] }
 0x9eb   :  { %25511 = vmatprep.subr.bf16.mxu0 %v32957_v17  ;;  %13230 = vmatprep.mubr.f32.mxu1 %v32773_v35 }
 0x9ec   :  { %22764 = vmatprep.mubr.msk.f32.mxu0 %vm27471_vm14, %v32773_v35 }
 0x9ed   :  { %25355 = vmatpush1.bf16.msra.mxu1 %v33329_v28  ;;  %v33340_v28 = vld [vmem:[#allocation94_spill] sm:$0xff] }
 0x9ee   :  { %25513 = vmatpush3.bf16.msra.mxu0 %v33330_v5  ;;  %25357 = vmatprep.subr.bf16.mxu1 %v33331_v50  ;;  %v33338_v5 = vld [vmem:[#allocation172_spill] sm:$0xff]  ;;  %v33339_v50 = vld [vmem:[#allocation197_spill] sm:$0xff] }
 0x9ef   :  { %25514 = vmatprep.subr.bf16.mxu0 %v32957_v17 }
 0x9f1   :  { %25359 = vmatpush1.bf16.msra.mxu1 %v33332_v56  ;;  %v33343_v56 = vld [vmem:[#allocation176_spill] sm:$0xff] }
 0x9f2   :  { %25516 = vmatpush3.bf16.msra.mxu0 %v33333_v38  ;;  %25361 = vmatprep.subr.bf16.mxu1 %v33334_v30  ;;  %v33341_v38 = vld [vmem:[#allocation175_spill] sm:$0xff]  ;;  %v33342_v30 = vld [vmem:[#allocation198_spill] sm:$0xff] }
 0x9f3   :  { %25517 = vmatprep.subr.bf16.mxu0 %v32957_v17 }
 0x9f5   :  { %25363 = vmatpush1.bf16.msra.mxu1 %v33335_v27  ;;  %v33346_v27 = vld [vmem:[#allocation180_spill] sm:$0xff] }
 0x9f6   :  { %25519 = vmatpush3.bf16.msra.mxu0 %v33336_v40  ;;  %25365 = vmatprep.subr.bf16.mxu1 %v33337_v49  ;;  %v33344_v40 = vld [vmem:[#allocation179_spill] sm:$0xff] }
 0x9f7   :  { %25520 = vmatprep.subr.bf16.mxu0 %v32957_v17  ;;  %v33345_v49 = vld [vmem:[#allocation199_spill] sm:$0xff] }
 0x9f9   :  { %25367 = vmatpush1.bf16.msra.mxu1 %v33338_v5 }
 0x9fa   :  { %25522 = vmatpush3.bf16.msra.mxu0 %v33339_v50  ;;  %25369 = vmatprep.subr.bf16.mxu1 %v33340_v28  ;;  %v33347_v50 = vld [vmem:[#allocation183_spill] sm:$0xff]  ;;  %v33348_v28 = vld [vmem:[#allocation200_spill] sm:$0xff] }
 0x9fb   :  { %25523 = vmatprep.subr.bf16.mxu0 %v32957_v17 }
 0x9fd   :  { %25371 = vmatpush1.bf16.msra.mxu1 %v33341_v38 }
 0x9fe   :  { %25525 = vmatpush3.bf16.msra.mxu0 %v33342_v30  ;;  %25373 = vmatprep.subr.bf16.mxu1 %v33343_v56 }
 0x9ff   :  { %25526 = vmatprep.subr.bf16.mxu0 %v32957_v17 }
 0xa01   :  { %25375 = vmatpush1.bf16.msra.mxu1 %v33344_v40  ;;  %v33351_v40 = vld [vmem:[#allocation66_spill] sm:$0xff] }
 0xa02   :  { %25528 = vmatpush3.bf16.msra.mxu0 %v33345_v49  ;;  %25377 = vmatprep.subr.bf16.mxu1 %v33346_v27 }
 0xa03   :  { %25529 = vmatprep.subr.bf16.mxu0 %v32957_v17 }
 0xa05   :  { %25379 = vmatpush1.bf16.msra.mxu1 %v33347_v50  ;;  %v33350_v50 = vld [vmem:[#allocation60_spill] sm:$0xff] }
 0xa06   :  { %25531 = vmatpush3.bf16.msra.mxu0 %v33348_v28  ;;  %25381 = vmatprep.subr.bf16.mxu1 %v33273_v3  ;;  %v33349_v28 = vld [vmem:[#allocation65_spill] sm:$0xff] }
 0xa07   :  { %25532 = vmatprep.subr.bf16.mxu0 %v32957_v17  ;;  %v26808_v49 = vadd.f32 %v33350_v50, %v33349_v28 }
 0xa08   :  { %13232 = vmatmul.mubr.f32.vlgmr.msra.gmra.mrb[24].mxu1 %v30920_v59 }
 0xa09   :  { %22765 = vmatmul.mubr.f32.vlgmr.msra.gmra.mrb[22].mxu0 %v30920_v59  ;;  %25383 = vmatpush1.bf16.msra.mxu1 %v33274_v58 }
 0xa0a   :  { %25534 = vmatpush3.bf16.msra.mxu0 %v30254_v42  ;;  %25385 = vmatprep.subr.bf16.mxu1 %v33275_v33 }
 0xa0b   :  { %25535 = vmatprep.subr.bf16.mxu0 %v32957_v17  ;;  %v11280_v27 = vpop.f32.mrb[14].mxu0  ;;  %13334 = vmatprep.mubr.f32.mxu1 %v32773_v35 }
 0xa0c   :  { %22799 = vmatprep.mubr.msk.f32.mxu0 %vm27471_vm14, %v32773_v35  ;;  %v26825_v56 = vadd.f32 %v11280_v27, %v33351_v40  ;;  %v11282_v30 = vpop.f32.mrb[15].mxu0 }
 0xa0d   :  { %25387 = vmatpush1.bf16.msra.mxu1 %v33276_v45 }
 0xa0e   :  { %25537 = vmatpush3.bf16.msra.mxu0 %v30259_v19  ;;  %v11285_v38 = vadd.f32 %v26825_v56, %v26808_v49  ;;  %25389 = vmatprep.subr.bf16.mxu1 %v33277_v18 }
 0xa0f   :  { %25538 = vmatprep.subr.bf16.mxu0 %v32957_v17 }
 0xa10   :  { %v20771_v5 = vmul.f32 -1.442695, %v11285_v38  ;;  %v33352_v38 = vld [vmem:[#allocation58_spill] sm:$0xff] }
 0xa11   :  { %25391 = vmatpush1.bf16.msra.mxu1 %v33278_v10 }
 0xa12   :  { %25540 = vmatpush3.bf16.msra.mxu0 %v30265_v22  ;;  %27202 = vpow2.f32 %v20771_v5  ;;  %25393 = vmatprep.subr.bf16.mxu1 %v33279_v2 }
 0xa13   :  { %25541 = vmatprep.subr.bf16.mxu0 %v32957_v17 }
 0xa15   :  { %25395 = vmatpush1.bf16.msra.mxu1 %v33280_v29 }
 0xa16   :  { %25543 = vmatpush3.bf16.msra.mxu0 %v30273_v16  ;;  %25397 = vmatprep.subr.bf16.mxu1 %v33281_v12 }
 0xa17   :  { %25544 = vmatprep.subr.bf16.mxu0 %v32957_v17 }
 0xa19   :  { %25399 = vmatpush1.bf16.msra.mxu1 %v33282_v46 }
 0xa1a   :  { %25546 = vmatpush3.bf16.msra.mxu0 %v30291_v11  ;;  %25401 = vmatprep.subr.bf16.mxu1 %v33283_v13 }
 0xa1b   :  { %25547 = vmatprep.subr.bf16.mxu0 %v32957_v17  ;;  %v12029_v49 = vpop.f32.mrb[16].mxu0  ;;  %v12140_v50 = vpop.f32.mrb[26].mxu1 }
 0xa1c   :  { %v27203_v27 = vpop.eup %27202  ;;  %v12030_v5 = vadd.f32 %v12029_v49, %v33352_v38  ;;  %v22496_v56 = vpop.f32.mrb[17].mxu0 }
 0xa1d   :  { %v22515_v40 = vpop.f32.mrb[27].mxu1  ;;  %v11289_v28 = vadd.f32 1.0, %v27203_v27  ;;  %25403 = vmatpush1.bf16.msra.mxu1 %v33284_v31  ;;  %v33355_v27 = vld [vmem:[#allocation62_spill] sm:$0xff] }
 0xa1e   :  { %25549 = vmatpush3.bf16.msra.mxu0 %v30303_v55  ;;  %v12141_v20 = vadd.f32 %v12140_v50, %v12030_v5  ;;  %25405 = vmatprep.subr.bf16.mxu1 %v33285_v43  ;;  %v33353_v40 = vld [vmem:[#allocation68_spill] sm:$0xff]  ;;  %v33354_v50 = vld [vmem:[#allocation69_spill] sm:$0xff] }
 0xa1f   :  { %25550 = vmatprep.subr.bf16.mxu0 %v32957_v17  ;;  %27204 = vrcp.f32 %v11289_v28  ;;  %v26826_v49 = vadd.f32 %v11282_v30, %v33353_v40  ;;  %v26809_v5 = vadd.f32 %v33355_v27, %v33354_v50 }
 0xa21   :  { %25407 = vmatpush1.bf16.msra.mxu1 %v33286_v54 }
 0xa22   :  { %25552 = vmatpush3.bf16.msra.mxu0 %v30320_v48  ;;  %25409 = vmatprep.subr.bf16.mxu1 %v33287_v4 }
 0xa23   :  { %25553 = vmatprep.subr.bf16.mxu0 %v32957_v17 }
 0xa25   :  { %25411 = vmatpush1.bf16.msra.mxu1 %v33288_v26 }
 0xa26   :  { %25555 = vmatpush3.bf16.msra.mxu0 %v30351_v14  ;;  %25653 = vmatprep.subr.bf16.mxu1 %v33197_v37 }
 0xa27   :  { %25557 = vmatprep.subr.bf16.mxu0 %v33111_v62 }
 0xa28   :  { %13336 = vmatmul.mubr.f32.vlgmr.msra.gmra.mrb[24].mxu1 %v30920_v59 }
 0xa29   :  { %22800 = vmatmul.mubr.f32.vlgmr.msra.gmra.mrb[22].mxu0 %v30920_v59  ;;  %v27205_v28 = vpop.eup %27204  ;;  %25655 = vmatpush1.bf16.msra.mxu1 %v33198_v60 }
 0xa2a   :  { %25559 = vmatpush1.bf16.msra.mxu0 %v33112_v23  ;;  %v11292_v56 = vmul.f32 %v27205_v28, %v26826_v49  ;;  %25657 = vmatprep.subr.bf16.mxu1 %v33199_v7  ;;  %v11295_v57 = vsub.f32 1.0, %v27205_v28  ;;  %v11301_v51 = vmul.f32 %v27205_v28, %v33360_v36 }
 0xa2b   :  { %25561 = vmatprep.subr.bf16.mxu0 %v33113_v39  ;;  %v12309_v9 = vpop.f32.mrb[28].mxu1  ;;  %14089 = vmatprep.mubr.f32.mxu0 %v32773_v35 }
 0xa2c   :  { %v12228_v38 = vpop.f32.mrb[18].mxu0  ;;  %14754 = vmatprep.mubr.f32.mxu1 %v32773_v35  ;;  %v11293_v30 = vadd.f32 %v26809_v5, %v11292_v56  ;;  %v22553_v21 = vpop.f32.mrb[29].mxu1 }
 0xa2d   :  { %v12229_v59 = vadd.f32 %v12228_v38, %v12141_v20  ;;  %v22534_v40 = vpop.f32.mrb[19].mxu0  ;;  %25659 = vmatpush1.bf16.msra.mxu1 %v33200_v41  ;;  %v33356_v20 = vld [vmem:[#allocation33_spill] sm:$0xff]  ;;  %v33358_v38 = vld [vmem:[#allocation34_spill] sm:$0xff] }
 0xa2e   :  { %25563 = vmatpush1.bf16.msra.mxu0 %v33114_v1  ;;  %27206 = vtanh.f32 %v11293_v30  ;;  %25661 = vmatprep.subr.bf16.mxu1 %v33201_v61  ;;  %v33357_v21 = vld [vmem:[#allocation77_spill] sm:$0xff]  ;;  %v33359_v40 = vld [vmem:[#allocation79_spill] sm:$0xff] }
 0xa2f   :  { %v12310_v49 = vadd.f32 %v12309_v9, %v12229_v59  ;;  %25565 = vmatprep.subr.bf16.mxu0 %v33115_v47 }
 0xa31   :  { %25663 = vmatpush1.bf16.msra.mxu1 %v33202_v0 }
 0xa32   :  { %25567 = vmatpush1.bf16.msra.mxu0 %v33116_v6  ;;  %25665 = vmatprep.subr.bf16.mxu1 %v33205_v25 }
 0xa33   :  { %25569 = vmatprep.subr.bf16.mxu0 %v33117_v32 }
 0xa35   :  { %25667 = vmatpush1.bf16.msra.mxu1 %v33357_v21 }
 0xa36   :  { %25571 = vmatpush1.bf16.msra.mxu0 %v33356_v20  ;;  %25669 = vmatprep.subr.bf16.mxu1 %v33359_v40  ;;  %v33363_v40 = vld [vmem:[#allocation72_spill] sm:$0xff] }
 0xa37   :  { %25573 = vmatprep.subr.bf16.mxu0 %v33358_v38  ;;  %v33362_v38 = vld [vmem:[#allocation70_spill] sm:$0xff] }
 0xa38   :  { %v27207_v9 = vpop.eup %27206  ;;  %v31167_v63 = vadd.f32 %v33363_v40, %v33362_v38  ;;  %v33366_v38 = vld [vmem:[#allocation74_spill] sm:$0xff] }
 0xa39   :  { %11297 = vrot.lane.b32.xlu0 %v27207_v9, %s27469_s7  ;;  %v33364_v9 = vld [vmem:[#allocation71_spill] sm:$0xff] }
 0xa3b   :  { %v12483_v5 = vpop.f32.mrb[30].mxu1 }
 0xa3c   :  { %v12404_v27 = vpop.f32.mrb[20].mxu0  ;;  %v22591_v59 = vpop.f32.mrb[31].mxu1 }
 0xa3d   :  { %v12405_v56 = vadd.f32 %v12404_v27, %v12310_v49  ;;  %v22572_v30 = vpop.f32.mrb[21].mxu0  ;;  %v31171_v49 = vadd.f32 %v33365_v24, %v33364_v9 }
 0xa3f   :  { %v12484_v50 = vadd.f32 %v12483_v5, %v12405_v56 }
 0xaab   :  { %v11298_v53 = vpop.permute.xlu0 %11297 }
 0xaac   :  { %v11300_v15 = vmul.f32 %v11298_v53, %v11295_v57 }
 0xaae   :  { %v31161_v34 = vadd.f32 %v11301_v51, %v11300_v15 }
 0xab0   :  { %33361 = vst [vmem:[#allocation64_spill] sm:$0xff] %v31161_v34  ;;  %14005 = vrot.lane.b32.xlu1 %v31161_v34, %s27469_s7 }
 0xafb   :  { %v13337_v27 = vpop.f32.mrb[24].mxu1 }
 0xafc   :  { %v13979_v5 = vpop.f32.mrb[22].mxu0  ;;  %v26828_v56 = vadd.f32 %v31167_v63, %v13337_v27  ;;  %v13339_v30 = vpop.f32.mrb[25].mxu1 }
 0xafd   :  { %v22801_v36 = vpop.f32.mrb[23].mxu0  ;;  %v26830_v15 = vadd.f32 %v31171_v49, %v13339_v30  ;;  %v26831_v24 = vadd.f32 %v13979_v5, %v33366_v38 }
 0xafe   :  { %v20772_v53 = vmul.f32 -1.442695, %v26828_v56 }
 0xaff   :  { %v20773_v57 = vmul.f32 -1.442695, %v26830_v15 }
 0xb00   :  { %27208 = vpow2.f32 %v20772_v53 }
 0xb01   :  { %27210 = vpow2.f32 %v20773_v57 }
 0xb0a   :  { %v27209_v51 = vpop.eup %27208 }
 0xb0b   :  { %v13991_v28 = vadd.f32 1.0, %v27209_v51  ;;  %v27211_v40 = vpop.eup %27210 }
 0xb0c   :  { %v13992_v59 = vadd.f32 1.0, %v27211_v40 }
 0xb0d   :  { %27212 = vrcp.f32 %v13991_v28  ;;  %v33367_v28 = vld [vmem:[#allocation75_spill] sm:$0xff] }
 0xb0e   :  { %27214 = vrcp.f32 %v13992_v59 }
 0xb17   :  { %v27213_v9 = vpop.eup %27212 }
 0xb18   :  { %v13997_v34 = vmul.f32 %v27213_v9, %v26831_v24  ;;  %v27215_v27 = vpop.eup %27214  ;;  %v33369_v24 = vld [vmem:[#allocation96_spill] sm:$0xff] }
 0xb19   :  { %v14000_v53 = vsub.f32 1.0, %v27215_v27  ;;  %v14002_v40 = vmul.f32 %v27215_v27, %v33367_v28  ;;  %v33370_v9 = vld [vmem:[#allocation36_spill] sm:$0xff]  ;;  %v33371_v27 = vld [vmem:[#allocation97_spill] sm:$0xff] }
 0xb1a   :  { %v13998_v52 = vadd.f32 %v13997_v34, %v12484_v50  ;;  %v33368_v50 = vld [vmem:[#allocation35_spill] sm:$0xff]  ;;  %v33377_v28 = vld [vmem:[#allocation81_spill] sm:$0xff] }
 0xb1c   :  { %27216 = vtanh.f32 %v13998_v52 }
 0xb22   :  { %v14006_v36 = vpop.permute.xlu1 %14005 }
 0xb23   :  { %v14007_v56 = vsel %vm3836_vm13, %v14006_v36, 0  ;;  %v33372_v36 = vld [vmem:[#allocation37_spill] sm:$0xff] }
 0xb24   :  { %v31177_v30 = vand.u32 4294901760, %v14007_v56 }
 0xb26   :  { %v27217_v15 = vpop.eup %27216  ;;  %v31180_v57 = vsub.f32 %v14007_v56, %v31177_v30  ;;  %v33373_v56 = vld [vmem:[#allocation98_spill] sm:$0xff] }
 0xb27   :  { %v14001_v51 = vmul.f32 %v27217_v15, %v14000_v53  ;;  %v33374_v53 = vld [vmem:[#allocation38_spill] sm:$0xff]  ;;  %v33375_v15 = vld [vmem:[#allocation80_spill] sm:$0xff] }
 0xb28   :  { %v31184_v5 = vand.u32 4294901760, %v31180_v57 }
 0xb29   :  { %v31186_v59 = vadd.f32 %v14002_v40, %v14001_v51  ;;  %v33376_v51 = vld [vmem:[#allocation39_spill] sm:$0xff]  ;;  %v33378_v40 = vld [vmem:[#allocation40_spill] sm:$0xff] }
 0xb2a   :  { %v14093_v34 = vsub.f32 %v31180_v57, %v31184_v5 }
 0xb2c   :  { %v31190_v52 = vand.u32 4294901760, %v14093_v34  ;;  %v33379_v34 = vld [vmem:[#allocation82_spill] sm:$0xff] }
 0xb2e   :  { %14095 = vmatmul.mubr.f32.vlgmr.msra.gmra.mrb[24].mxu0 %v31190_v52  ;;  %14760 = vmatmul.mubr.f32.vlgmr.msra.gmra.mrb[32].mxu1 %v31190_v52 }
 0xb2f   :  { %25575 = vmatpush1.bf16.msra.mxu0 %v33368_v50  ;;  %25671 = vmatpush1.bf16.msra.mxu1 %v33369_v24  ;;  %v33380_v50 = vld [vmem:[#allocation41_spill] sm:$0xff] }
 0xb30   :  { %25577 = vmatprep.subr.bf16.mxu0 %v33370_v9  ;;  %25673 = vmatprep.subr.bf16.mxu1 %v33371_v27  ;;  %v33381_v9 = vld [vmem:[#allocation84_spill] sm:$0xff]  ;;  %v33382_v27 = vld [vmem:[#allocation42_spill] sm:$0xff] }
 0xb31   :  { %14245 = vmatprep.mubr.f32.mxu0 %v32773_v35  ;;  %14910 = vmatprep.mubr.f32.mxu1 %v32773_v35 }
 0xb33   :  { %25579 = vmatpush1.bf16.msra.mxu0 %v33372_v36  ;;  %25675 = vmatpush1.bf16.msra.mxu1 %v33373_v56  ;;  %v33383_v36 = vld [vmem:[#allocation83_spill] sm:$0xff] }
 0xb34   :  { %25581 = vmatprep.subr.bf16.mxu0 %v33374_v53  ;;  %25677 = vmatprep.subr.bf16.mxu1 %v33375_v15  ;;  %v33384_v53 = vld [vmem:[#allocation43_spill] sm:$0xff]  ;;  %v33397_v15 = vld [vmem:[#allocation88_spill] sm:$0xff] }
 0xb37   :  { %25583 = vmatpush1.bf16.msra.mxu0 %v33376_v51  ;;  %25679 = vmatpush1.bf16.msra.mxu1 %v33377_v28  ;;  %v33385_v51 = vld [vmem:[#allocation99_spill] sm:$0xff]  ;;  %v33386_v28 = vld [vmem:[#allocation44_spill] sm:$0xff] }
 0xb38   :  { %25585 = vmatprep.subr.bf16.mxu0 %v33378_v40  ;;  %25681 = vmatprep.subr.bf16.mxu1 %v33379_v34  ;;  %v33387_v40 = vld [vmem:[#allocation100_spill] sm:$0xff]  ;;  %v33392_v34 = vld [vmem:[#allocation47_spill] sm:$0xff] }
 0xb3b   :  { %25587 = vmatpush1.bf16.msra.mxu0 %v33380_v50  ;;  %25683 = vmatpush1.bf16.msra.mxu1 %v33381_v9  ;;  %v33388_v50 = vld [vmem:[#allocation45_spill] sm:$0xff] }
 0xb3c   :  { %25589 = vmatprep.subr.bf16.mxu0 %v33382_v27  ;;  %25685 = vmatprep.subr.bf16.mxu1 %v33383_v36  ;;  %v33389_v27 = vld [vmem:[#allocation101_spill] sm:$0xff]  ;;  %v33390_v36 = vld [vmem:[#allocation46_spill] sm:$0xff] }
 0xb3d   :  { %v33391_v9 = vld [vmem:[#allocation85_spill] sm:$0xff] }
 0xb3e   :  { %14247 = vmatmul.mubr.f32.vlgmr.msra.gmra.mrb[24].mxu0 %v31177_v30  ;;  %14912 = vmatmul.mubr.f32.vlgmr.msra.gmra.mrb[32].mxu1 %v31177_v30 }
 0xb3f   :  { %25591 = vmatpush1.bf16.msra.mxu0 %v33384_v53  ;;  %25687 = vmatpush1.bf16.msra.mxu1 %v33385_v51  ;;  %v33393_v53 = vld [vmem:[#allocation86_spill] sm:$0xff]  ;;  %v33394_v51 = vld [vmem:[#allocation48_spill] sm:$0xff] }
 0xb40   :  { %25593 = vmatprep.subr.bf16.mxu0 %v33386_v28  ;;  %25689 = vmatprep.subr.bf16.mxu1 %v33387_v40  ;;  %v33395_v28 = vld [vmem:[#allocation87_spill] sm:$0xff]  ;;  %v33396_v40 = vld [vmem:[#allocation49_spill] sm:$0xff] }
 0xb41   :  { %14349 = vmatprep.mubr.f32.mxu0 %v32773_v35  ;;  %15014 = vmatprep.mubr.f32.mxu1 %v32773_v35 }
 0xb43   :  { %25595 = vmatpush1.bf16.msra.mxu0 %v33388_v50  ;;  %25691 = vmatpush1.bf16.msra.mxu1 %v33389_v27  ;;  %v33402_v50 = vld [vmem:[#allocation52_spill] sm:$0xff]  ;;  %v33413_v27 = vld [vmem:[#allocation93_spill] sm:$0xff] }
 0xb44   :  { %25597 = vmatprep.subr.bf16.mxu0 %v33390_v36  ;;  %25693 = vmatprep.subr.bf16.mxu1 %v33391_v9  ;;  %v33399_v36 = vld [vmem:[#allocation89_spill] sm:$0xff]  ;;  %v33408_v9 = vld [vmem:[#allocation55_spill] sm:$0xff] }
 0xb47   :  { %25599 = vmatpush1.bf16.msra.mxu0 %v33392_v34  ;;  %25695 = vmatpush1.bf16.msra.mxu1 %v33393_v53  ;;  %v33398_v34 = vld [vmem:[#allocation50_spill] sm:$0xff] }
 0xb48   :  { %25601 = vmatprep.subr.bf16.mxu0 %v33394_v51  ;;  %25697 = vmatprep.subr.bf16.mxu1 %v33395_v28  ;;  %v33400_v51 = vld [vmem:[#allocation51_spill] sm:$0xff]  ;;  %v33404_v28 = vld [vmem:[#allocation53_spill] sm:$0xff]  ;;  %v33407_v53 = vld [vmem:[#allocation90_spill] sm:$0xff] }
 0xb4b   :  { %25603 = vmatpush1.bf16.msra.mxu0 %v33396_v40  ;;  %25699 = vmatpush1.bf16.msra.mxu1 %v33397_v15  ;;  %v33401_v40 = vld [vmem:[#allocation102_spill] sm:$0xff]  ;;  %v33403_v15 = vld [vmem:[#allocation103_spill] sm:$0xff] }
 0xb4c   :  { %25605 = vmatprep.subr.bf16.mxu0 %v33111_v62  ;;  %25701 = vmatprep.subr.bf16.mxu1 %v33197_v37 }
 0xb4e   :  { %14352 = vmatmul.mubr.f32.vlgmr.msra.gmra.mrb[24].mxu0 %v31180_v57  ;;  %15017 = vmatmul.mubr.f32.vlgmr.msra.gmra.mrb[32].mxu1 %v31180_v57 }
 0xb4f   :  { %25607 = vmatpush1.bf16.msra.mxu0 %v33112_v23  ;;  %25703 = vmatpush1.bf16.msra.mxu1 %v33198_v60 }
 0xb50   :  { %25609 = vmatprep.subr.bf16.mxu0 %v33113_v39  ;;  %25705 = vmatprep.subr.bf16.mxu1 %v33199_v7 }
 0xb51   :  { %14438 = vmatprep.mubr.f32.mxu0 %v32773_v35  ;;  %15103 = vmatprep.mubr.f32.mxu1 %v32773_v35 }
 0xb53   :  { %25611 = vmatpush1.bf16.msra.mxu0 %v33114_v1  ;;  %25707 = vmatpush1.bf16.msra.mxu1 %v33200_v41 }
 0xb54   :  { %25613 = vmatprep.subr.bf16.mxu0 %v33115_v47  ;;  %25709 = vmatprep.subr.bf16.mxu1 %v33201_v61 }
 0xb57   :  { %25615 = vmatpush1.bf16.msra.mxu0 %v33116_v6  ;;  %25711 = vmatpush1.bf16.msra.mxu1 %v33202_v0 }
 0xb58   :  { %25617 = vmatprep.subr.bf16.mxu0 %v33117_v32  ;;  %25713 = vmatprep.subr.bf16.mxu1 %v33205_v25 }
 0xb5b   :  { %25619 = vmatpush1.bf16.msra.mxu0 %v33356_v20  ;;  %25715 = vmatpush1.bf16.msra.mxu1 %v33357_v21 }
 0xb5c   :  { %25621 = vmatprep.subr.bf16.mxu0 %v33398_v34  ;;  %25717 = vmatprep.subr.bf16.mxu1 %v33399_v36  ;;  %v33405_v34 = vld [vmem:[#allocation104_spill] sm:$0xff]  ;;  %v33406_v36 = vld [vmem:[#allocation54_spill] sm:$0xff] }
 0xb5e   :  { %14442 = vmatmul.mubr.f32.vlgmr.msra.gmra.mrb[24].mxu0 %v31184_v5  ;;  %15107 = vmatmul.mubr.f32.vlgmr.msra.gmra.mrb[32].mxu1 %v31184_v5 }
 0xb5f   :  { %25623 = vmatpush1.bf16.msra.mxu0 %v33400_v51  ;;  %25719 = vmatpush1.bf16.msra.mxu1 %v33401_v40  ;;  %v33409_v51 = vld [vmem:[#allocation91_spill] sm:$0xff]  ;;  %v33410_v40 = vld [vmem:[#allocation56_spill] sm:$0xff] }
 0xb60   :  { %25625 = vmatprep.subr.bf16.mxu0 %v33402_v50  ;;  %25721 = vmatprep.subr.bf16.mxu1 %v33403_v15  ;;  %v33411_v50 = vld [vmem:[#allocation92_spill] sm:$0xff]  ;;  %v33412_v15 = vld [vmem:[#allocation57_spill] sm:$0xff] }
 0xb61   :  { %14560 = vmatprep.mubr.f32.mxu0 %v32773_v35  ;;  %15225 = vmatprep.mubr.f32.mxu1 %v32773_v35 }
 0xb63   :  { %25627 = vmatpush1.bf16.msra.mxu0 %v33404_v28  ;;  %25723 = vmatpush1.bf16.msra.mxu1 %v33405_v34  ;;  %v33425_v28 = vld [vmem:[#allocation111_spill] sm:$0xff]  ;;  %v33433_v34 = vld [vmem:[#allocation137_spill] sm:$0xff] }
 0xb64   :  { %25629 = vmatprep.subr.bf16.mxu0 %v33406_v36  ;;  %25725 = vmatprep.subr.bf16.mxu1 %v33407_v53  ;;  %v33426_v36 = vld [vmem:[#allocation105_spill] sm:$0xff]  ;;  %v33431_v53 = vld [vmem:[#allocation136_spill] sm:$0xff] }
 0xb67   :  { %25631 = vmatpush1.bf16.msra.mxu0 %v33408_v9  ;;  %25727 = vmatpush1.bf16.msra.mxu1 %v33409_v51  ;;  %v33423_v9 = vld [vmem:[#allocation122_spill] sm:$0xff] }
 0xb68   :  { %25633 = vmatprep.subr.bf16.mxu0 %v33410_v40  ;;  %25729 = vmatprep.subr.bf16.mxu1 %v33411_v50  ;;  %v33427_v40 = vld [vmem:[#allocation106_spill] sm:$0xff] }
 0xb69   :  { %v33430_v51 = vld [vmem:[#allocation134_spill] sm:$0xff] }
 0xb6b   :  { %25635 = vmatpush1.bf16.msra.mxu0 %v33412_v15  ;;  %25731 = vmatpush1.bf16.msra.mxu1 %v33413_v27  ;;  %v33422_v15 = vld [vmem:[#allocation121_spill] sm:$0xff] }
 0xb6c   :  { %25637 = vmatprep.subr.bf16.mxu0 %v33111_v62  ;;  %25733 = vmatprep.subr.bf16.mxu1 %v33197_v37  ;;  %v33417_v62 = vld [vmem:[#allocation118_spill] sm:$0xff] }
 0xb6e   :  { %14562 = vmatmul.mubr.f32.vlgmr.msra.gmra.mrb[24].mxu0 %v31177_v30  ;;  %15227 = vmatmul.mubr.f32.vlgmr.msra.gmra.mrb[32].mxu1 %v31177_v30 }
 0xb6f   :  { %25639 = vmatpush1.bf16.msra.mxu0 %v33112_v23  ;;  %25735 = vmatpush1.bf16.msra.mxu1 %v33198_v60  ;;  %v33418_v23 = vld [vmem:[#allocation115_spill] sm:$0xff] }
 0xb70   :  { %25641 = vmatprep.subr.bf16.mxu0 %v33113_v39  ;;  %25737 = vmatprep.subr.bf16.mxu1 %v33199_v7  ;;  %v33419_v39 = vld [vmem:[#allocation119_spill] sm:$0xff] }
 0xb71   :  { %14648 = vmatprep.mubr.f32.mxu0 %v32773_v35  ;;  %15313 = vmatprep.mubr.f32.mxu1 %v32773_v35 }
 0xb73   :  { %25643 = vmatpush1.bf16.msra.mxu0 %v33114_v1  ;;  %25739 = vmatpush1.bf16.msra.mxu1 %v33200_v41  ;;  %v33420_v1 = vld [vmem:[#allocation116_spill] sm:$0xff] }
 0xb74   :  { %25645 = vmatprep.subr.bf16.mxu0 %v33115_v47  ;;  %25741 = vmatprep.subr.bf16.mxu1 %v33201_v61  ;;  %v33414_v47 = vld [vmem:[#allocation113_spill] sm:$0xff] }
 0xb77   :  { %25647 = vmatpush1.bf16.msra.mxu0 %v33116_v6  ;;  %25743 = vmatpush1.bf16.msra.mxu1 %v33202_v0  ;;  %v33415_v6 = vld [vmem:[#allocation117_spill] sm:$0xff] }
 0xb78   :  { %25649 = vmatprep.subr.bf16.mxu0 %v33117_v32  ;;  %25745 = vmatprep.subr.bf16.mxu1 %v33205_v25  ;;  %v33416_v32 = vld [vmem:[#allocation114_spill] sm:$0xff] }
 0xb7b   :  { %25651 = vmatpush1.bf16.msra.mxu0 %v33356_v20  ;;  %25747 = vmatpush1.bf16.msra.mxu1 %v33357_v21  ;;  %v33421_v20 = vld [vmem:[#allocation120_spill] sm:$0xff] }
 0xb7c   :  { %25748 = vmatprep.subr.bf16.mxu0 %v32957_v17  ;;  %25760 = vmatprep.subr.bf16.mxu1 %v32957_v17 }
 0xb7e   :  { %14650 = vmatmul.mubr.f32.vlgmr.msra.gmra.mrb[24].mxu0 %v31177_v30  ;;  %15315 = vmatmul.mubr.f32.vlgmr.msra.gmra.mrb[32].mxu1 %v31177_v30 }
 0xb7f   :  { %25750 = vmatpush3.bf16.msra.mxu0 %v33414_v47  ;;  %25762 = vmatpush3.bf16.msra.mxu1 %v33415_v6 }
 0xb80   :  { %25751 = vmatprep.subr.bf16.mxu0 %v32957_v17  ;;  %25763 = vmatprep.subr.bf16.mxu1 %v32957_v17 }
 0xb81   :  { %22818 = vmatprep.mubr.msk.f32.mxu0 %vm27471_vm14, %v32773_v35  ;;  %22837 = vmatprep.mubr.msk.f32.mxu1 %vm27471_vm14, %v32773_v35 }
 0xb83   :  { %25753 = vmatpush3.bf16.msra.mxu0 %v33416_v32  ;;  %25765 = vmatpush3.bf16.msra.mxu1 %v33417_v62 }
 0xb84   :  { %25754 = vmatprep.subr.bf16.mxu0 %v32957_v17  ;;  %25766 = vmatprep.subr.bf16.mxu1 %v32957_v17 }
 0xb87   :  { %25756 = vmatpush3.bf16.msra.mxu0 %v33418_v23  ;;  %25768 = vmatpush3.bf16.msra.mxu1 %v33419_v39 }
 0xb88   :  { %25757 = vmatprep.subr.bf16.mxu0 %v32957_v17  ;;  %25769 = vmatprep.subr.bf16.mxu1 %v32957_v17 }
 0xb8b   :  { %25759 = vmatpush3.bf16.msra.mxu0 %v33420_v1  ;;  %25771 = vmatpush3.bf16.msra.mxu1 %v33421_v20 }
 0xb8c   :  { %25772 = vmatprep.subr.bf16.mxu0 %v32957_v17  ;;  %25784 = vmatprep.subr.bf16.mxu1 %v32957_v17 }
 0xb8e   :  { %22819 = vmatmul.mubr.f32.vlgmr.msra.gmra.mrb[26].mxu0 %v31190_v52  ;;  %22838 = vmatmul.mubr.f32.vlgmr.msra.gmra.mrb[34].mxu1 %v31177_v30  ;;  %v33424_v52 = vld [vmem:[#allocation109_spill] sm:$0xff] }
 0xb8f   :  { %25774 = vmatpush3.bf16.msra.mxu0 %v33422_v15  ;;  %25786 = vmatpush3.bf16.msra.mxu1 %v33414_v47 }
 0xb90   :  { %25775 = vmatprep.subr.bf16.mxu0 %v32957_v17  ;;  %25787 = vmatprep.subr.bf16.mxu1 %v32957_v17 }
 0xb91   :  { %22856 = vmatprep.mubr.msk.f32.mxu0 %vm27471_vm14, %v32773_v35  ;;  %22875 = vmatprep.mubr.msk.f32.mxu1 %vm27471_vm14, %v32773_v35 }
 0xb93   :  { %25777 = vmatpush3.bf16.msra.mxu0 %v33423_v9  ;;  %25789 = vmatpush3.bf16.msra.mxu1 %v33416_v32 }
 0xb94   :  { %25778 = vmatprep.subr.bf16.mxu0 %v32957_v17  ;;  %25790 = vmatprep.subr.bf16.mxu1 %v32957_v17 }
 0xb97   :  { %25780 = vmatpush3.bf16.msra.mxu0 %v33424_v52  ;;  %25792 = vmatpush3.bf16.msra.mxu1 %v33418_v23 }
 0xb98   :  { %25781 = vmatprep.subr.bf16.mxu0 %v32957_v17  ;;  %25793 = vmatprep.subr.bf16.mxu1 %v32957_v17 }
 0xb9b   :  { %25783 = vmatpush3.bf16.msra.mxu0 %v33425_v28  ;;  %25795 = vmatpush3.bf16.msra.mxu1 %v33420_v1 }
 0xb9c   :  { %25796 = vmatprep.subr.bf16.mxu0 %v32957_v17  ;;  %25808 = vmatprep.subr.bf16.mxu1 %v32957_v17 }
 0xb9e   :  { %22857 = vmatmul.mubr.f32.vlgmr.msra.gmra.mrb[28].mxu0 %v31180_v57  ;;  %22876 = vmatmul.mubr.f32.vlgmr.msra.gmra.mrb[36].mxu1 %v31184_v5  ;;  %v33428_v57 = vld [vmem:[#allocation95_spill] sm:$0xff] }
 0xb9f   :  { %25798 = vmatpush3.bf16.msra.mxu0 %v33426_v36  ;;  %25810 = vmatpush3.bf16.msra.mxu1 %v33414_v47  ;;  %v33429_v5 = vld [vmem:[#allocation107_spill] sm:$0xff]  ;;  %v33436_v36 = vld [vmem:[#allocation141_spill] sm:$0xff] }
 0xba0   :  { %25799 = vmatprep.subr.bf16.mxu0 %v32957_v17  ;;  %25811 = vmatprep.subr.bf16.mxu1 %v32957_v17 }
 0xba1   :  { %22894 = vmatprep.mubr.msk.f32.mxu0 %vm27471_vm14, %v32773_v35  ;;  %22913 = vmatprep.mubr.msk.f32.mxu1 %vm27471_vm14, %v32773_v35 }
 0xba3   :  { %25801 = vmatpush3.bf16.msra.mxu0 %v33427_v40  ;;  %25813 = vmatpush3.bf16.msra.mxu1 %v33416_v32  ;;  %v33432_v40 = vld [vmem:[#allocation28_spill] sm:$0xff] }
 0xba4   :  { %25802 = vmatprep.subr.bf16.mxu0 %v32957_v17  ;;  %25814 = vmatprep.subr.bf16.mxu1 %v32957_v17 }
 0xba7   :  { %25804 = vmatpush3.bf16.msra.mxu0 %v33428_v57  ;;  %25816 = vmatpush3.bf16.msra.mxu1 %v33418_v23 }
 0xba8   :  { %25805 = vmatprep.subr.bf16.mxu0 %v32957_v17  ;;  %25817 = vmatprep.subr.bf16.mxu1 %v32957_v17 }
 0xbab   :  { %25807 = vmatpush3.bf16.msra.mxu0 %v33429_v5  ;;  %25819 = vmatpush3.bf16.msra.mxu1 %v33420_v1 }
 0xbac   :  { %25821 = vmatprep.subr.bf16.mxu1 %v33273_v3  ;;  %26012 = vmatprep.subr.bf16.mxu0 %v32957_v17 }
 0xbae   :  { %22895 = vmatmul.mubr.f32.vlgmr.msra.gmra.mrb[30].mxu0 %v31177_v30  ;;  %22914 = vmatmul.mubr.f32.vlgmr.msra.gmra.mrb[38].mxu1 %v31177_v30  ;;  %v31378_v30 = vand.u32 4294901760, %v31186_v59 }
 0xbaf   :  { %25823 = vmatpush1.bf16.msra.mxu1 %v33274_v58  ;;  %26014 = vmatpush3.bf16.msra.mxu0 %v30254_v42 }
 0xbb0   :  { %25825 = vmatprep.subr.bf16.mxu1 %v33275_v33  ;;  %26015 = vmatprep.subr.bf16.mxu0 %v32957_v17  ;;  %v31388_v5 = vsub.f32 %v31186_v59, %v31378_v30 }
 0xbb1   :  { %15954 = vmatprep.mubr.f32.mxu1 %v32773_v35  ;;  %22948 = vmatprep.mubr.msk.f32.mxu0 %vm27471_vm14, %v32773_v35 }
 0xbb2   :  { %v31395_v27 = vand.u32 4294901760, %v31388_v5 }
 0xbb3   :  { %25827 = vmatpush1.bf16.msra.mxu1 %v33276_v45  ;;  %26017 = vmatpush3.bf16.msra.mxu0 %v30259_v19 }
 0xbb4   :  { %25829 = vmatprep.subr.bf16.mxu1 %v33277_v18  ;;  %26018 = vmatprep.subr.bf16.mxu0 %v32957_v17  ;;  %v15958_v50 = vsub.f32 %v31388_v5, %v31395_v27 }
 0xbb6   :  { %v15959_v57 = vand.u32 4294901760, %v15958_v50  ;;  %v33434_v50 = vld [vmem:[#allocation138_spill] sm:$0xff] }
 0xbb7   :  { %25831 = vmatpush1.bf16.msra.mxu1 %v33278_v10  ;;  %26020 = vmatpush3.bf16.msra.mxu0 %v30265_v22 }
 0xbb8   :  { %25833 = vmatprep.subr.bf16.mxu1 %v33279_v2  ;;  %26021 = vmatprep.subr.bf16.mxu0 %v32957_v17 }
 0xbbb   :  { %25835 = vmatpush1.bf16.msra.mxu1 %v33280_v29  ;;  %26023 = vmatpush3.bf16.msra.mxu0 %v30273_v16 }
 0xbbc   :  { %25837 = vmatprep.subr.bf16.mxu1 %v33281_v12  ;;  %26024 = vmatprep.subr.bf16.mxu0 %v32957_v17 }
 0xbbf   :  { %25839 = vmatpush1.bf16.msra.mxu1 %v33282_v46  ;;  %26026 = vmatpush3.bf16.msra.mxu0 %v30291_v11 }
 0xbc0   :  { %25841 = vmatprep.subr.bf16.mxu1 %v33283_v13  ;;  %26027 = vmatprep.subr.bf16.mxu0 %v32957_v17 }
 0xbc3   :  { %25843 = vmatpush1.bf16.msra.mxu1 %v33284_v31  ;;  %26029 = vmatpush3.bf16.msra.mxu0 %v30303_v55 }
 0xbc4   :  { %25845 = vmatprep.subr.bf16.mxu1 %v33285_v43  ;;  %26030 = vmatprep.subr.bf16.mxu0 %v32957_v17 }
 0xbc7   :  { %25847 = vmatpush1.bf16.msra.mxu1 %v33286_v54  ;;  %26032 = vmatpush3.bf16.msra.mxu0 %v30320_v48 }
 0xbc8   :  { %25849 = vmatprep.subr.bf16.mxu1 %v33287_v4  ;;  %26033 = vmatprep.subr.bf16.mxu0 %v32957_v17 }
 0xbcb   :  { %25851 = vmatpush1.bf16.msra.mxu1 %v33288_v26  ;;  %26035 = vmatpush3.bf16.msra.mxu0 %v30351_v14 }
 0xbcc   :  { %25853 = vmatprep.subr.bf16.mxu1 %v33430_v51  ;;  %26036 = vmatprep.subr.bf16.mxu0 %v32957_v17  ;;  %v33435_v51 = vld [vmem:[#allocation29_spill] sm:$0xff] }
 0xbce   :  { %15960 = vmatmul.mubr.f32.vlgmr.msra.gmra.mrb[32].mxu1 %v15959_v57  ;;  %22949 = vmatmul.mubr.f32.vlgmr.msra.gmra.mrb[32].mxu0 %v15959_v57  ;;  %v33437_v57 = vld [vmem:[#allocation30_spill] sm:$0xff] }
 0xbcf   :  { %25855 = vmatpush1.bf16.msra.mxu1 %v33431_v53  ;;  %26038 = vmatpush3.bf16.msra.mxu0 %v33432_v40  ;;  %v33439_v40 = vld [vmem:[#allocation31_spill] sm:$0xff]  ;;  %v33440_v53 = vld [vmem:[#allocation146_spill] sm:$0xff] }
 0xbd0   :  { %25857 = vmatprep.subr.bf16.mxu1 %v33433_v34  ;;  %26039 = vmatprep.subr.bf16.mxu0 %v32957_v17  ;;  %v33438_v34 = vld [vmem:[#allocation143_spill] sm:$0xff] }
 0xbd1   :  { %16190 = vmatprep.mubr.f32.mxu1 %v32773_v35  ;;  %22983 = vmatprep.mubr.msk.f32.mxu0 %vm27471_vm14, %v32773_v35 }
 0xbd3   :  { %25859 = vmatpush1.bf16.msra.mxu1 %v33434_v50  ;;  %26041 = vmatpush3.bf16.msra.mxu0 %v33435_v51  ;;  %v33441_v51 = vld [vmem:[#allocation147_spill] sm:$0xff]  ;;  %v33443_v50 = vld [vmem:[#allocation149_spill] sm:$0xff] }
 0xbd4   :  { %25861 = vmatprep.subr.bf16.mxu1 %v33436_v36  ;;  %26042 = vmatprep.subr.bf16.mxu0 %v32957_v17  ;;  %v33442_v36 = vld [vmem:[#allocation32_spill] sm:$0xff] }
 0xbd7   :  { %25863 = vmatpush1.bf16.msra.mxu1 %v33296_v44  ;;  %26044 = vmatpush3.bf16.msra.mxu0 %v33437_v57  ;;  %v33444_v57 = vld [vmem:[#allocation151_spill] sm:$0xff]  ;;  %v33446_v44 = vld [vmem:[#allocation153_spill] sm:$0xff] }
 0xbd8   :  { %25865 = vmatprep.subr.bf16.mxu1 %v33438_v34  ;;  %26045 = vmatprep.subr.bf16.mxu0 %v32957_v17  ;;  %v33445_v34 = vld [vmem:[#allocation25_spill] sm:$0xff] }
 0xbdb   :  { %25867 = vmatpush1.bf16.msra.mxu1 %v33299_v8  ;;  %26047 = vmatpush3.bf16.msra.mxu0 %v33439_v40  ;;  %v33447_v40 = vld [vmem:[#allocation156_spill] sm:$0xff]  ;;  %v33449_v8 = vld [vmem:[#allocation158_spill] sm:$0xff] }
 0xbdc   :  { %25869 = vmatprep.subr.bf16.mxu1 %v33440_v53  ;;  %26048 = vmatprep.subr.bf16.mxu0 %v32957_v17  ;;  %v33448_v53 = vld [vmem:[#allocation59_spill] sm:$0xff] }
 0xbdf   :  { %25871 = vmatpush1.bf16.msra.mxu1 %v33441_v51  ;;  %26050 = vmatpush3.bf16.msra.mxu0 %v33442_v36  ;;  %v33450_v36 = vld [vmem:[#allocation165_spill] sm:$0xff]  ;;  %v33452_v51 = vld [vmem:[#allocation155_spill] sm:$0xff] }
 0xbe0   :  { %25873 = vmatprep.subr.bf16.mxu1 %v33443_v50  ;;  %26051 = vmatprep.subr.bf16.mxu0 %v32957_v17  ;;  %v33451_v50 = vld [vmem:[#allocation184_spill] sm:$0xff] }
 0xbe3   :  { %25875 = vmatpush1.bf16.msra.mxu1 %v33444_v57  ;;  %26053 = vmatpush3.bf16.msra.mxu0 %v33445_v34  ;;  %v33463_v34 = vld [vmem:[#allocation188_spill] sm:$0xff]  ;;  %v33464_v57 = vld [vmem:[#allocation170_spill] sm:$0xff] }
 0xbe4   :  { %25877 = vmatprep.subr.bf16.mxu1 %v33446_v44  ;;  %26054 = vmatprep.subr.bf16.mxu0 %v32957_v17  ;;  %v33453_v44 = vld [vmem:[#allocation157_spill] sm:$0xff] }
 0xbe7   :  { %25879 = vmatpush1.bf16.msra.mxu1 %v33447_v40  ;;  %26056 = vmatpush3.bf16.msra.mxu0 %v33448_v53  ;;  %v33454_v40 = vld [vmem:[#allocation185_spill] sm:$0xff]  ;;  %v33455_v53 = vld [vmem:[#allocation159_spill] sm:$0xff] }
 0xbe8   :  { %25881 = vmatprep.subr.bf16.mxu1 %v33449_v8  ;;  %26057 = vmatprep.subr.bf16.mxu0 %v32957_v17  ;;  %v33462_v8 = vld [vmem:[#allocation167_spill] sm:$0xff] }
 0xbeb   :  { %25883 = vmatpush1.bf16.msra.mxu1 %v33450_v36  ;;  %26059 = vmatpush3.bf16.msra.mxu0 %v33451_v50  ;;  %v33457_v50 = vld [vmem:[#allocation186_spill] sm:$0xff] }
 0xbec   :  { %25885 = vmatprep.subr.bf16.mxu1 %v33452_v51  ;;  %26060 = vmatprep.subr.bf16.mxu0 %v32957_v17  ;;  %v33456_v51 = vld [vmem:[#allocation160_spill] sm:$0xff]  ;;  %v33458_v36 = vld [vmem:[#allocation110_spill] sm:$0xff] }
 0xbee   :  { %16192 = vmatmul.mubr.f32.vlgmr.msra.gmra.mrb[32].mxu1 %v31378_v30  ;;  %22984 = vmatmul.mubr.f32.vlgmr.msra.gmra.mrb[32].mxu0 %v31378_v30 }
 0xbef   :  { %25887 = vmatpush1.bf16.msra.mxu1 %v33453_v44  ;;  %26062 = vmatpush3.bf16.msra.mxu0 %v33454_v40  ;;  %v33459_v44 = vld [vmem:[#allocation163_spill] sm:$0xff] }
 0xbf0   :  { %25889 = vmatprep.subr.bf16.mxu1 %v33455_v53  ;;  %26063 = vmatprep.subr.bf16.mxu0 %v32957_v17  ;;  %v33460_v40 = vld [vmem:[#allocation187_spill] sm:$0xff]  ;;  %v33461_v53 = vld [vmem:[#allocation112_spill] sm:$0xff] }
 0xbf1   :  { %16326 = vmatprep.mubr.f32.mxu1 %v32773_v35  ;;  %23018 = vmatprep.mubr.msk.f32.mxu0 %vm27471_vm14, %v32773_v35 }
 0xbf3   :  { %25891 = vmatpush1.bf16.msra.mxu1 %v33456_v51  ;;  %26065 = vmatpush3.bf16.msra.mxu0 %v33457_v50  ;;  %v33465_v50 = vld [vmem:[#allocation171_spill] sm:$0xff]  ;;  %v33467_v51 = vld [vmem:[#allocation173_spill] sm:$0xff] }
 0xbf4   :  { %25893 = vmatprep.subr.bf16.mxu1 %v33458_v36  ;;  %26066 = vmatprep.subr.bf16.mxu0 %v32957_v17  ;;  %v33466_v36 = vld [vmem:[#allocation189_spill] sm:$0xff] }
 0xbf7   :  { %25895 = vmatpush1.bf16.msra.mxu1 %v33459_v44  ;;  %26068 = vmatpush3.bf16.msra.mxu0 %v33460_v40  ;;  %v33468_v40 = vld [vmem:[#allocation174_spill] sm:$0xff]  ;;  %v33470_v44 = vld [vmem:[#allocation177_spill] sm:$0xff] }
 0xbf8   :  { %25897 = vmatprep.subr.bf16.mxu1 %v33461_v53  ;;  %26069 = vmatprep.subr.bf16.mxu0 %v32957_v17  ;;  %v33469_v53 = vld [vmem:[#allocation190_spill] sm:$0xff] }
 0xbfb   :  { %25899 = vmatpush1.bf16.msra.mxu1 %v33462_v8  ;;  %26071 = vmatpush3.bf16.msra.mxu0 %v33463_v34  ;;  %v33471_v34 = vld [vmem:[#allocation178_spill] sm:$0xff]  ;;  %v33473_v8 = vld [vmem:[#allocation181_spill] sm:$0xff] }
 0xbfc   :  { %25901 = vmatprep.subr.bf16.mxu1 %v33464_v57  ;;  %26072 = vmatprep.subr.bf16.mxu0 %v32957_v17  ;;  %v33472_v57 = vld [vmem:[#allocation191_spill] sm:$0xff] }
 0xbff   :  { %25903 = vmatpush1.bf16.msra.mxu1 %v33465_v50  ;;  %26074 = vmatpush3.bf16.msra.mxu0 %v33466_v36  ;;  %v33474_v36 = vld [vmem:[#allocation182_spill] sm:$0xff] }
 0xc00   :  { %25905 = vmatprep.subr.bf16.mxu1 %v33467_v51  ;;  %26075 = vmatprep.subr.bf16.mxu0 %v32957_v17  ;;  %v33475_v51 = vld [vmem:[#allocation192_spill] sm:$0xff] }
 0xc03   :  { %25907 = vmatpush1.bf16.msra.mxu1 %v33468_v40  ;;  %26077 = vmatpush3.bf16.msra.mxu0 %v33469_v53  ;;  %v33488_v53 = vld [vmem:[#allocation169_spill] sm:$0xff] }
 0xc04   :  { %25909 = vmatprep.subr.bf16.mxu1 %v33470_v44  ;;  %26078 = vmatprep.subr.bf16.mxu0 %v32957_v17  ;;  %v33487_v44 = vld [vmem:[#allocation196_spill] sm:$0xff] }
 0xc07   :  { %25911 = vmatpush1.bf16.msra.mxu1 %v33471_v34  ;;  %26080 = vmatpush3.bf16.msra.mxu0 %v33472_v57  ;;  %v33481_v57 = vld [vmem:[#allocation194_spill] sm:$0xff] }
 0xc08   :  { %25913 = vmatprep.subr.bf16.mxu1 %v33473_v8  ;;  %26081 = vmatprep.subr.bf16.mxu0 %v32957_v17  ;;  %v33479_v8 = vld [vmem:[#allocation154_spill] sm:$0xff] }
 0xc09   :  { %v33482_v34 = vld [vmem:[#allocation162_spill] sm:$0xff] }
 0xc0b   :  { %25915 = vmatpush1.bf16.msra.mxu1 %v33474_v36  ;;  %26083 = vmatpush3.bf16.msra.mxu0 %v33475_v51  ;;  %v33477_v51 = vld [vmem:[#allocation152_spill] sm:$0xff]  ;;  %v33478_v36 = vld [vmem:[#allocation193_spill] sm:$0xff] }
 0xc0c   :  { %25917 = vmatprep.subr.bf16.mxu1 %v33273_v3  ;;  %26084 = vmatprep.subr.bf16.mxu0 %v32957_v17 }
 0xc0e   :  { %16329 = vmatmul.mubr.f32.vlgmr.msra.gmra.mrb[32].mxu1 %v31388_v5  ;;  %23019 = vmatmul.mubr.f32.vlgmr.msra.gmra.mrb[32].mxu0 %v31388_v5  ;;  %v33476_v5 = vld [vmem:[#allocation148_spill] sm:$0xff] }
 0xc0f   :  { %25919 = vmatpush1.bf16.msra.mxu1 %v33274_v58  ;;  %26086 = vmatpush3.bf16.msra.mxu0 %v30254_v42 }
 0xc10   :  { %25921 = vmatprep.subr.bf16.mxu1 %v33275_v33  ;;  %26087 = vmatprep.subr.bf16.mxu0 %v32957_v17 }
 0xc11   :  { %16431 = vmatprep.mubr.f32.mxu1 %v32773_v35  ;;  %23053 = vmatprep.mubr.msk.f32.mxu0 %vm27471_vm14, %v32773_v35 }
 0xc13   :  { %25923 = vmatpush1.bf16.msra.mxu1 %v33276_v45  ;;  %26089 = vmatpush3.bf16.msra.mxu0 %v30259_v19 }
 0xc14   :  { %25925 = vmatprep.subr.bf16.mxu1 %v33277_v18  ;;  %26090 = vmatprep.subr.bf16.mxu0 %v32957_v17 }
 0xc17   :  { %25927 = vmatpush1.bf16.msra.mxu1 %v33278_v10  ;;  %26092 = vmatpush3.bf16.msra.mxu0 %v30265_v22 }
 0xc18   :  { %25929 = vmatprep.subr.bf16.mxu1 %v33279_v2  ;;  %26093 = vmatprep.subr.bf16.mxu0 %v32957_v17 }
 0xc1b   :  { %25931 = vmatpush1.bf16.msra.mxu1 %v33280_v29  ;;  %26095 = vmatpush3.bf16.msra.mxu0 %v30273_v16 }
 0xc1c   :  { %25933 = vmatprep.subr.bf16.mxu1 %v33281_v12  ;;  %26096 = vmatprep.subr.bf16.mxu0 %v32957_v17 }
 0xc1f   :  { %25935 = vmatpush1.bf16.msra.mxu1 %v33282_v46  ;;  %26098 = vmatpush3.bf16.msra.mxu0 %v30291_v11 }
 0xc20   :  { %25937 = vmatprep.subr.bf16.mxu1 %v33283_v13  ;;  %26099 = vmatprep.subr.bf16.mxu0 %v32957_v17 }
 0xc23   :  { %25939 = vmatpush1.bf16.msra.mxu1 %v33284_v31  ;;  %26101 = vmatpush3.bf16.msra.mxu0 %v30303_v55 }
 0xc24   :  { %25941 = vmatprep.subr.bf16.mxu1 %v33285_v43  ;;  %26102 = vmatprep.subr.bf16.mxu0 %v32957_v17 }
 0xc27   :  { %25943 = vmatpush1.bf16.msra.mxu1 %v33286_v54  ;;  %26104 = vmatpush3.bf16.msra.mxu0 %v30320_v48 }
 0xc28   :  { %25945 = vmatprep.subr.bf16.mxu1 %v33287_v4  ;;  %26105 = vmatprep.subr.bf16.mxu0 %v32957_v17 }
 0xc2b   :  { %25947 = vmatpush1.bf16.msra.mxu1 %v33288_v26  ;;  %26107 = vmatpush3.bf16.msra.mxu0 %v30351_v14 }
 0xc2c   :  { %25949 = vmatprep.subr.bf16.mxu1 %v33476_v5  ;;  %26108 = vmatprep.subr.bf16.mxu0 %v32957_v17  ;;  %v33480_v5 = vld [vmem:[#allocation161_spill] sm:$0xff] }
 0xc2e   :  { %16435 = vmatmul.mubr.f32.vlgmr.msra.gmra.mrb[32].mxu1 %v31395_v27  ;;  %23054 = vmatmul.mubr.f32.vlgmr.msra.gmra.mrb[32].mxu0 %v31395_v27  ;;  %v33483_v27 = vld [vmem:[#allocation164_spill] sm:$0xff] }
 0xc2f   :  { %25951 = vmatpush1.bf16.msra.mxu1 %v33477_v51  ;;  %26110 = vmatpush3.bf16.msra.mxu0 %v33478_v36  ;;  %v33484_v36 = vld [vmem:[#allocation195_spill] sm:$0xff]  ;;  %v33486_v51 = vld [vmem:[#allocation168_spill] sm:$0xff] }
 0xc30   :  { %25953 = vmatprep.subr.bf16.mxu1 %v33479_v8  ;;  %26111 = vmatprep.subr.bf16.mxu0 %v32957_v17  ;;  %v33485_v8 = vld [vmem:[#allocation166_spill] sm:$0xff] }
 0xc31   :  { %16601 = vmatprep.mubr.f32.mxu1 %v32773_v35  ;;  %23088 = vmatprep.mubr.msk.f32.mxu0 %vm27471_vm14, %v32773_v35 }
 0xc33   :  { %25955 = vmatpush1.bf16.msra.mxu1 %v33480_v5  ;;  %26113 = vmatpush3.bf16.msra.mxu0 %v33481_v57  ;;  %v33489_v57 = vld [vmem:[#allocation172_spill] sm:$0xff]  ;;  %v33491_v5 = vld [vmem:[#allocation94_spill] sm:$0xff] }
 0xc34   :  { %25957 = vmatprep.subr.bf16.mxu1 %v33482_v34  ;;  %26114 = vmatprep.subr.bf16.mxu0 %v32957_v17  ;;  %v33490_v34 = vld [vmem:[#allocation197_spill] sm:$0xff] }
 0xc37   :  { %25959 = vmatpush1.bf16.msra.mxu1 %v33483_v27  ;;  %26116 = vmatpush3.bf16.msra.mxu0 %v33484_v36  ;;  %v33492_v36 = vld [vmem:[#allocation175_spill] sm:$0xff]  ;;  %v33494_v27 = vld [vmem:[#allocation176_spill] sm:$0xff] }
 0xc38   :  { %25961 = vmatprep.subr.bf16.mxu1 %v33485_v8  ;;  %26117 = vmatprep.subr.bf16.mxu0 %v32957_v17  ;;  %v33493_v8 = vld [vmem:[#allocation198_spill] sm:$0xff] }
 0xc3b   :  { %25963 = vmatpush1.bf16.msra.mxu1 %v33486_v51  ;;  %26119 = vmatpush3.bf16.msra.mxu0 %v33487_v44  ;;  %v33495_v44 = vld [vmem:[#allocation179_spill] sm:$0xff]  ;;  %v33497_v51 = vld [vmem:[#allocation180_spill] sm:$0xff] }
 0xc3c   :  { %25965 = vmatprep.subr.bf16.mxu1 %v33488_v53  ;;  %26120 = vmatprep.subr.bf16.mxu0 %v32957_v17  ;;  %v33496_v53 = vld [vmem:[#allocation199_spill] sm:$0xff] }
 0xc3f   :  { %25967 = vmatpush1.bf16.msra.mxu1 %v33489_v57  ;;  %26122 = vmatpush3.bf16.msra.mxu0 %v33490_v34  ;;  %v33498_v34 = vld [vmem:[#allocation183_spill] sm:$0xff] }
 0xc40   :  { %25969 = vmatprep.subr.bf16.mxu1 %v33491_v5  ;;  %26123 = vmatprep.subr.bf16.mxu0 %v32957_v17  ;;  %v33499_v5 = vld [vmem:[#allocation200_spill] sm:$0xff] }
 0xc43   :  { %25971 = vmatpush1.bf16.msra.mxu1 %v33492_v36  ;;  %26125 = vmatpush3.bf16.msra.mxu0 %v33493_v8 }
 0xc44   :  { %25973 = vmatprep.subr.bf16.mxu1 %v33494_v27  ;;  %26126 = vmatprep.subr.bf16.mxu0 %v32957_v17 }
 0xc47   :  { %25975 = vmatpush1.bf16.msra.mxu1 %v33495_v44  ;;  %26128 = vmatpush3.bf16.msra.mxu0 %v33496_v53  ;;  %v33502_v44 = vld [vmem:[#allocation66_spill] sm:$0xff] }
 0xc48   :  { %25977 = vmatprep.subr.bf16.mxu1 %v33497_v51  ;;  %26129 = vmatprep.subr.bf16.mxu0 %v32957_v17 }
 0xc4b   :  { %25979 = vmatpush1.bf16.msra.mxu1 %v33498_v34  ;;  %26131 = vmatpush3.bf16.msra.mxu0 %v33499_v5  ;;  %v33500_v5 = vld [vmem:[#allocation65_spill] sm:$0xff] }
 0xc4c   :  { %25981 = vmatprep.subr.bf16.mxu1 %v33273_v3  ;;  %26132 = vmatprep.subr.bf16.mxu0 %v32957_v17  ;;  %v33501_v34 = vld [vmem:[#allocation61_spill] sm:$0xff] }
 0xc4d   :  { %v26810_v53 = vadd.f32 %v33501_v34, %v33500_v5 }
 0xc4e   :  { %16603 = vmatmul.mubr.f32.vlgmr.msra.gmra.mrb[32].mxu1 %v31378_v30  ;;  %23089 = vmatmul.mubr.f32.vlgmr.msra.gmra.mrb[32].mxu0 %v31378_v30 }
 0xc4f   :  { %25983 = vmatpush1.bf16.msra.mxu1 %v33274_v58  ;;  %26134 = vmatpush3.bf16.msra.mxu0 %v30254_v42 }
 0xc50   :  { %25985 = vmatprep.subr.bf16.mxu1 %v33275_v33  ;;  %26135 = vmatprep.subr.bf16.mxu0 %v32957_v17 }
 0xc51   :  { %v14651_v51 = vpop.f32.mrb[24].mxu0  ;;  %16705 = vmatprep.mubr.f32.mxu1 %v32773_v35  ;;  %23123 = vmatprep.mubr.msk.f32.mxu0 %vm27471_vm14, %v32773_v35 }
 0xc52   :  { %v26832_v27 = vadd.f32 %v14651_v51, %v33502_v44  ;;  %v14653_v8 = vpop.f32.mrb[25].mxu0  ;;  %v33503_v51 = vld [vmem:[#allocation58_spill] sm:$0xff] }
 0xc53   :  { %25987 = vmatpush1.bf16.msra.mxu1 %v33276_v45  ;;  %26137 = vmatpush3.bf16.msra.mxu0 %v30259_v19 }
 0xc54   :  { %v14656_v36 = vadd.f32 %v26832_v27, %v26810_v53  ;;  %25989 = vmatprep.subr.bf16.mxu1 %v33277_v18  ;;  %26138 = vmatprep.subr.bf16.mxu0 %v32957_v17 }
 0xc56   :  { %v20774_v57 = vmul.f32 -1.442695, %v14656_v36 }
 0xc57   :  { %25991 = vmatpush1.bf16.msra.mxu1 %v33278_v10  ;;  %26140 = vmatpush3.bf16.msra.mxu0 %v30265_v22 }
 0xc58   :  { %27218 = vpow2.f32 %v20774_v57  ;;  %25993 = vmatprep.subr.bf16.mxu1 %v33279_v2  ;;  %26141 = vmatprep.subr.bf16.mxu0 %v32957_v17 }
 0xc5b   :  { %25995 = vmatpush1.bf16.msra.mxu1 %v33280_v29  ;;  %26143 = vmatpush3.bf16.msra.mxu0 %v30273_v16 }
 0xc5c   :  { %25997 = vmatprep.subr.bf16.mxu1 %v33281_v12  ;;  %26144 = vmatprep.subr.bf16.mxu0 %v32957_v17 }
 0xc5f   :  { %25999 = vmatpush1.bf16.msra.mxu1 %v33282_v46  ;;  %26146 = vmatpush3.bf16.msra.mxu0 %v30291_v11 }
 0xc60   :  { %26001 = vmatprep.subr.bf16.mxu1 %v33283_v13  ;;  %26147 = vmatprep.subr.bf16.mxu0 %v32957_v17 }
 0xc61   :  { %v15400_v44 = vpop.f32.mrb[26].mxu0  ;;  %v15511_v53 = vpop.f32.mrb[34].mxu1 }
 0xc62   :  { %v27219_v34 = vpop.eup %27218  ;;  %v15401_v36 = vadd.f32 %v15400_v44, %v33503_v51  ;;  %v22820_v57 = vpop.f32.mrb[27].mxu0  ;;  %v33504_v44 = vld [vmem:[#allocation68_spill] sm:$0xff] }
 0xc63   :  { %v22839_v5 = vpop.f32.mrb[35].mxu1  ;;  %v14660_v27 = vadd.f32 1.0, %v27219_v34  ;;  %26003 = vmatpush1.bf16.msra.mxu1 %v33284_v31  ;;  %26149 = vmatpush3.bf16.msra.mxu0 %v30303_v55  ;;  %v33506_v57 = vld [vmem:[#allocation63_spill] sm:$0xff] }
 0xc64   :  { %v15512_v40 = vadd.f32 %v15511_v53, %v15401_v36  ;;  %26005 = vmatprep.subr.bf16.mxu1 %v33285_v43  ;;  %26150 = vmatprep.subr.bf16.mxu0 %v32957_v17  ;;  %v26833_v53 = vadd.f32 %v14653_v8, %v33504_v44  ;;  %v33505_v36 = vld [vmem:[#allocation69_spill] sm:$0xff] }
 0xc65   :  { %27220 = vrcp.f32 %v14660_v27  ;;  %v26811_v5 = vadd.f32 %v33506_v57, %v33505_v36 }
 0xc67   :  { %26007 = vmatpush1.bf16.msra.mxu1 %v33286_v54  ;;  %26152 = vmatpush3.bf16.msra.mxu0 %v30320_v48 }
 0xc68   :  { %26009 = vmatprep.subr.bf16.mxu1 %v33287_v4  ;;  %26153 = vmatprep.subr.bf16.mxu0 %v32957_v17 }
 0xc6b   :  { %26011 = vmatpush1.bf16.msra.mxu1 %v33288_v26  ;;  %26155 = vmatpush3.bf16.msra.mxu0 %v30351_v14 }
 0xc6c   :  { %26157 = vmatprep.subr.bf16.mxu0 %v33197_v37  ;;  %26252 = vmatprep.subr.bf16.mxu1 %v32957_v17 }
 0xc6e   :  { %16707 = vmatmul.mubr.f32.vlgmr.msra.gmra.mrb[32].mxu1 %v31378_v30  ;;  %23124 = vmatmul.mubr.f32.vlgmr.msra.gmra.mrb[32].mxu0 %v31378_v30 }
 0xc6f   :  { %v27221_v34 = vpop.eup %27220  ;;  %26159 = vmatpush1.bf16.msra.mxu0 %v33198_v60  ;;  %26254 = vmatpush3.bf16.msra.mxu1 %v33414_v47 }
 0xc70   :  { %v14663_v27 = vmul.f32 %v27221_v34, %v26833_v53  ;;  %26161 = vmatprep.subr.bf16.mxu0 %v33199_v7  ;;  %26255 = vmatprep.subr.bf16.mxu1 %v32957_v17 }
 0xc71   :  { %v15599_v51 = vpop.f32.mrb[28].mxu0  ;;  %v15680_v50 = vpop.f32.mrb[36].mxu1  ;;  %17460 = vmatprep.mubr.f32.mxu0 %v32773_v35  ;;  %23142 = vmatprep.mubr.msk.f32.mxu1 %vm27471_vm14, %v32773_v35 }
 0xc72   :  { %v14664_v8 = vadd.f32 %v26811_v5, %v14663_v27  ;;  %v15600_v30 = vadd.f32 %v15599_v51, %v15512_v40  ;;  %v22858_v44 = vpop.f32.mrb[29].mxu0  ;;  %v22877_v14 = vpop.f32.mrb[37].mxu1 }
 0xc73   :  { %26163 = vmatpush1.bf16.msra.mxu0 %v33200_v41  ;;  %26257 = vmatpush3.bf16.msra.mxu1 %v33416_v32  ;;  %v33507_v14 = vld [vmem:[#allocation79_spill] sm:$0xff]  ;;  %v33508_v44 = vld [vmem:[#allocation64_spill] sm:$0xff] }
 0xc74   :  { %27222 = vtanh.f32 %v14664_v8  ;;  %v15681_v53 = vadd.f32 %v15680_v50, %v15600_v30  ;;  %26165 = vmatprep.subr.bf16.mxu0 %v33201_v61  ;;  %26258 = vmatprep.subr.bf16.mxu1 %v32957_v17  ;;  %v14666_v8 = vsub.f32 1.0, %v27221_v34  ;;  %v14672_v26 = vmul.f32 %v27221_v34, %v33508_v44 }
 0xc77   :  { %26167 = vmatpush1.bf16.msra.mxu0 %v33202_v0  ;;  %26260 = vmatpush3.bf16.msra.mxu1 %v33418_v23 }
 0xc78   :  { %26169 = vmatprep.subr.bf16.mxu0 %v33205_v25  ;;  %26261 = vmatprep.subr.bf16.mxu1 %v32957_v17 }
 0xc7b   :  { %26171 = vmatpush1.bf16.msra.mxu0 %v33357_v21  ;;  %26263 = vmatpush3.bf16.msra.mxu1 %v33420_v1 }
 0xc7c   :  { %26173 = vmatprep.subr.bf16.mxu0 %v33507_v14  ;;  %26264 = vmatprep.subr.bf16.mxu1 %v32957_v17 }
 0xc7e   :  { %v27223_v40 = vpop.eup %27222 }
 0xc7f   :  { %14668 = vrot.lane.b32.xlu0 %v27223_v40, %s27469_s7 }
 0xc81   :  { %v15775_v50 = vpop.f32.mrb[30].mxu0  ;;  %v15854_v51 = vpop.f32.mrb[38].mxu1 }
 0xc82   :  { %v15776_v36 = vadd.f32 %v15775_v50, %v15681_v53  ;;  %v22896_v57 = vpop.f32.mrb[31].mxu0  ;;  %v22915_v5 = vpop.f32.mrb[39].mxu1 }
 0xc84   :  { %v15855_v27 = vadd.f32 %v15854_v51, %v15776_v36 }
 0xcf1   :  { %v14669_v30 = vpop.permute.xlu0 %14668 }
 0xcf2   :  { %v14671_v4 = vmul.f32 %v14669_v30, %v14666_v8 }
 0xcf4   :  { %v14673_v48 = vadd.f32 %v14672_v26, %v14671_v4 }
 0xcf6   :  { %17376 = vrot.lane.b32.xlu1 %v14673_v48, %s27469_s7 }
 0xd41   :  { %v16708_v14 = vpop.f32.mrb[32].mxu1  ;;  %v17350_v54 = vpop.f32.mrb[32].mxu0 }
 0xd42   :  { %v26835_v43 = vadd.f32 %v31167_v63, %v16708_v14  ;;  %v16710_v55 = vpop.f32.mrb[33].mxu1  ;;  %v23125_v40 = vpop.f32.mrb[33].mxu0  ;;  %v26838_v4 = vadd.f32 %v17350_v54, %v33366_v38 }
 0xd43   :  { %v26837_v53 = vadd.f32 %v31171_v49, %v16710_v55 }
 0xd44   :  { %v20775_v31 = vmul.f32 -1.442695, %v26835_v43 }
 0xd45   :  { %v20776_v50 = vmul.f32 -1.442695, %v26837_v53 }
 0xd46   :  { %27224 = vpow2.f32 %v20775_v31 }
 0xd47   :  { %27226 = vpow2.f32 %v20776_v50 }
 0xd50   :  { %v27225_v51 = vpop.eup %27224 }
 0xd51   :  { %v17362_v36 = vadd.f32 1.0, %v27225_v51  ;;  %v27227_v34 = vpop.eup %27226 }
 0xd52   :  { %v17363_v57 = vadd.f32 1.0, %v27227_v34  ;;  %v33513_v34 = vld [vmem:[#allocation84_spill] sm:$0xff] }
 0xd53   :  { %27228 = vrcp.f32 %v17362_v36  ;;  %v33509_v36 = vld [vmem:[#allocation97_spill] sm:$0xff] }
 0xd54   :  { %27230 = vrcp.f32 %v17363_v57  ;;  %v33514_v57 = vld [vmem:[#allocation83_spill] sm:$0xff] }
 0xd5d   :  { %v27229_v48 = vpop.eup %27228 }
 0xd5e   :  { %v17368_v26 = vmul.f32 %v27229_v48, %v26838_v4  ;;  %v27231_v8 = vpop.eup %27230  ;;  %v33519_v4 = vld [vmem:[#allocation86_spill] sm:$0xff]  ;;  %v33521_v48 = vld [vmem:[#allocation88_spill] sm:$0xff] }
 0xd5f   :  { %v17371_v31 = vsub.f32 1.0, %v27231_v8  ;;  %v17373_v53 = vmul.f32 %v27231_v8, %v31186_v59  ;;  %v33510_v59 = vld [vmem:[#allocation80_spill] sm:$0xff]  ;;  %v33527_v8 = vld [vmem:[#allocation106_spill] sm:$0xff] }
 0xd60   :  { %v17369_v5 = vadd.f32 %v17368_v26, %v15855_v27  ;;  %v33525_v26 = vld [vmem:[#allocation103_spill] sm:$0xff] }
 0xd62   :  { %27232 = vtanh.f32 %v17369_v5  ;;  %v33526_v5 = vld [vmem:[#allocation104_spill] sm:$0xff] }
 0xd68   :  { %v17377_v30 = vpop.permute.xlu1 %17376 }
 0xd69   :  { %v17378_v43 = vsel %vm3836_vm13, %v17377_v30, 0  ;;  %v33528_v30 = vld [vmem:[#allocation90_spill] sm:$0xff] }
 0xd6a   :  { %v31625_v55 = vand.u32 4294901760, %v17378_v43 }
 0xd6c   :  { %v27233_v44 = vpop.eup %27232  ;;  %v17462_v14 = vsub.f32 %v17378_v43, %v31625_v55  ;;  %v33529_v43 = vld [vmem:[#allocation91_spill] sm:$0xff] }
 0xd6d   :  { %v17372_v40 = vmul.f32 %v27233_v44, %v17371_v31  ;;  %v33530_v31 = vld [vmem:[#allocation95_spill] sm:$0xff]  ;;  %v33531_v44 = vld [vmem:[#allocation92_spill] sm:$0xff] }
 0xd6e   :  { %v31629_v50 = vand.u32 4294901760, %v17462_v14 }
 0xd6f   :  { %v31631_v54 = vadd.f32 %v17373_v53, %v17372_v40  ;;  %v33533_v40 = vld [vmem:[#allocation107_spill] sm:$0xff]  ;;  %v33542_v53 = vld [vmem:[#allocation134_spill] sm:$0xff] }
 0xd70   :  { %v17464_v27 = vsub.f32 %v17462_v14, %v31629_v50 }
 0xd72   :  { %v17465_v51 = vand.u32 4294901760, %v17464_v27  ;;  %v33544_v27 = vld [vmem:[#allocation28_spill] sm:$0xff] }
 0xd74   :  { %17466 = vmatmul.mubr.f32.vlgmr.msra.gmra.mrb[34].mxu0 %v17465_v51  ;;  %23143 = vmatmul.mubr.f32.vlgmr.msra.gmra.mrb[40].mxu1 %v17465_v51  ;;  %v33545_v51 = vld [vmem:[#allocation137_spill] sm:$0xff] }
 0xd75   :  { %26175 = vmatpush1.bf16.msra.mxu0 %v33369_v24  ;;  %26266 = vmatpush3.bf16.msra.mxu1 %v33415_v6  ;;  %v33511_v24 = vld [vmem:[#allocation81_spill] sm:$0xff]  ;;  %v33512_v6 = vld [vmem:[#allocation82_spill] sm:$0xff] }
 0xd76   :  { %26177 = vmatprep.subr.bf16.mxu0 %v33509_v36  ;;  %26267 = vmatprep.subr.bf16.mxu1 %v32957_v17  ;;  %v33546_v36 = vld [vmem:[#allocation138_spill] sm:$0xff] }
 0xd77   :  { %17616 = vmatprep.mubr.f32.mxu0 %v32773_v35  ;;  %23161 = vmatprep.mubr.msk.f32.mxu1 %vm27471_vm14, %v32773_v35 }
 0xd79   :  { %26179 = vmatpush1.bf16.msra.mxu0 %v33373_v56  ;;  %26269 = vmatpush3.bf16.msra.mxu1 %v33417_v62  ;;  %v33515_v56 = vld [vmem:[#allocation99_spill] sm:$0xff]  ;;  %v33516_v62 = vld [vmem:[#allocation100_spill] sm:$0xff] }
 0xd7a   :  { %26181 = vmatprep.subr.bf16.mxu0 %v33510_v59  ;;  %26270 = vmatprep.subr.bf16.mxu1 %v32957_v17  ;;  %v33547_v59 = vld [vmem:[#allocation29_spill] sm:$0xff] }
 0xd7d   :  { %26183 = vmatpush1.bf16.msra.mxu0 %v33511_v24  ;;  %26272 = vmatpush3.bf16.msra.mxu1 %v33419_v39  ;;  %v33517_v39 = vld [vmem:[#allocation101_spill] sm:$0xff] }
 0xd7e   :  { %26185 = vmatprep.subr.bf16.mxu0 %v33512_v6  ;;  %26273 = vmatprep.subr.bf16.mxu1 %v32957_v17  ;;  %v33548_v24 = vld [vmem:[#allocation141_spill] sm:$0xff]  ;;  %v33549_v6 = vld [vmem:[#allocation142_spill] sm:$0xff] }
 0xd81   :  { %26187 = vmatpush1.bf16.msra.mxu0 %v33513_v34  ;;  %26275 = vmatpush3.bf16.msra.mxu1 %v33421_v20  ;;  %v33518_v20 = vld [vmem:[#allocation85_spill] sm:$0xff]  ;;  %v33550_v34 = vld [vmem:[#allocation30_spill] sm:$0xff] }
 0xd82   :  { %26189 = vmatprep.subr.bf16.mxu0 %v33514_v57  ;;  %26276 = vmatprep.subr.bf16.mxu1 %v32957_v17  ;;  %v33551_v57 = vld [vmem:[#allocation143_spill] sm:$0xff] }
 0xd84   :  { %17618 = vmatmul.mubr.f32.vlgmr.msra.gmra.mrb[34].mxu0 %v31625_v55  ;;  %23162 = vmatmul.mubr.f32.vlgmr.msra.gmra.mrb[42].mxu1 %v31625_v55 }
 0xd85   :  { %26191 = vmatpush1.bf16.msra.mxu0 %v33515_v56  ;;  %26278 = vmatpush3.bf16.msra.mxu1 %v33422_v15  ;;  %v33520_v15 = vld [vmem:[#allocation87_spill] sm:$0xff]  ;;  %v33552_v56 = vld [vmem:[#allocation144_spill] sm:$0xff] }
 0xd86   :  { %26193 = vmatprep.subr.bf16.mxu0 %v33516_v62  ;;  %26279 = vmatprep.subr.bf16.mxu1 %v32957_v17  ;;  %v33553_v62 = vld [vmem:[#allocation31_spill] sm:$0xff] }
 0xd87   :  { %17720 = vmatprep.mubr.f32.mxu0 %v32773_v35  ;;  %23180 = vmatprep.mubr.msk.f32.mxu1 %vm27471_vm14, %v32773_v35 }
 0xd89   :  { %26195 = vmatpush1.bf16.msra.mxu0 %v33517_v39  ;;  %26281 = vmatpush3.bf16.msra.mxu1 %v33423_v9  ;;  %v33522_v9 = vld [vmem:[#allocation89_spill] sm:$0xff]  ;;  %v33554_v39 = vld [vmem:[#allocation146_spill] sm:$0xff] }
 0xd8a   :  { %26197 = vmatprep.subr.bf16.mxu0 %v33518_v20  ;;  %26282 = vmatprep.subr.bf16.mxu1 %v32957_v17  ;;  %v33555_v20 = vld [vmem:[#allocation147_spill] sm:$0xff] }
 0xd8d   :  { %26199 = vmatpush1.bf16.msra.mxu0 %v33519_v4  ;;  %26284 = vmatpush3.bf16.msra.mxu1 %v33424_v52  ;;  %v33523_v52 = vld [vmem:[#allocation102_spill] sm:$0xff]  ;;  %v33556_v4 = vld [vmem:[#allocation32_spill] sm:$0xff] }
 0xd8e   :  { %26201 = vmatprep.subr.bf16.mxu0 %v33520_v15  ;;  %26285 = vmatprep.subr.bf16.mxu1 %v32957_v17  ;;  %v33557_v15 = vld [vmem:[#allocation149_spill] sm:$0xff] }
 0xd91   :  { %26203 = vmatpush1.bf16.msra.mxu0 %v33521_v48  ;;  %26287 = vmatpush3.bf16.msra.mxu1 %v33425_v28  ;;  %v33524_v28 = vld [vmem:[#allocation105_spill] sm:$0xff]  ;;  %v33558_v48 = vld [vmem:[#allocation151_spill] sm:$0xff] }
 0xd92   :  { %26205 = vmatprep.subr.bf16.mxu0 %v33197_v37  ;;  %26288 = vmatprep.subr.bf16.mxu1 %v32957_v17 }
 0xd94   :  { %17723 = vmatmul.mubr.f32.vlgmr.msra.gmra.mrb[34].mxu0 %v17462_v14  ;;  %23181 = vmatmul.mubr.f32.vlgmr.msra.gmra.mrb[44].mxu1 %v17462_v14  ;;  %v33532_v14 = vld [vmem:[#allocation93_spill] sm:$0xff] }
 0xd95   :  { %26207 = vmatpush1.bf16.msra.mxu0 %v33198_v60  ;;  %26290 = vmatpush3.bf16.msra.mxu1 %v33414_v47 }
 0xd96   :  { %26209 = vmatprep.subr.bf16.mxu0 %v33199_v7  ;;  %26291 = vmatprep.subr.bf16.mxu1 %v32957_v17 }
 0xd97   :  { %17809 = vmatprep.mubr.f32.mxu0 %v32773_v35  ;;  %23199 = vmatprep.mubr.msk.f32.mxu1 %vm27471_vm14, %v32773_v35 }
 0xd99   :  { %26211 = vmatpush1.bf16.msra.mxu0 %v33200_v41  ;;  %26293 = vmatpush3.bf16.msra.mxu1 %v33416_v32 }
 0xd9a   :  { %26213 = vmatprep.subr.bf16.mxu0 %v33201_v61  ;;  %26294 = vmatprep.subr.bf16.mxu1 %v32957_v17 }
 0xd9d   :  { %26215 = vmatpush1.bf16.msra.mxu0 %v33202_v0  ;;  %26296 = vmatpush3.bf16.msra.mxu1 %v33418_v23 }
 0xd9e   :  { %26217 = vmatprep.subr.bf16.mxu0 %v33205_v25  ;;  %26297 = vmatprep.subr.bf16.mxu1 %v32957_v17 }
 0xda1   :  { %26219 = vmatpush1.bf16.msra.mxu0 %v33357_v21  ;;  %26299 = vmatpush3.bf16.msra.mxu1 %v33420_v1 }
 0xda2   :  { %26221 = vmatprep.subr.bf16.mxu0 %v33522_v9  ;;  %26300 = vmatprep.subr.bf16.mxu1 %v32957_v17  ;;  %v33559_v9 = vld [vmem:[#allocation25_spill] sm:$0xff] }
 0xda4   :  { %17813 = vmatmul.mubr.f32.vlgmr.msra.gmra.mrb[34].mxu0 %v31629_v50  ;;  %23200 = vmatmul.mubr.f32.vlgmr.msra.gmra.mrb[46].mxu1 %v31629_v50  ;;  %v33543_v50 = vld [vmem:[#allocation136_spill] sm:$0xff] }
 0xda5   :  { %26223 = vmatpush1.bf16.msra.mxu0 %v33523_v52  ;;  %26302 = vmatpush3.bf16.msra.mxu1 %v33524_v28  ;;  %v33560_v52 = vld [vmem:[#allocation153_spill] sm:$0xff]  ;;  %v33561_v28 = vld [vmem:[#allocation156_spill] sm:$0xff] }
 0xda6   :  { %26225 = vmatprep.subr.bf16.mxu0 %v33525_v26  ;;  %26303 = vmatprep.subr.bf16.mxu1 %v32957_v17  ;;  %v33562_v26 = vld [vmem:[#allocation59_spill] sm:$0xff] }
 0xda7   :  { %17931 = vmatprep.mubr.f32.mxu0 %v32773_v35  ;;  %23218 = vmatprep.mubr.msk.f32.mxu1 %vm27471_vm14, %v32773_v35 }
 0xda9   :  { %26227 = vmatpush1.bf16.msra.mxu0 %v33526_v5  ;;  %26305 = vmatpush3.bf16.msra.mxu1 %v33527_v8  ;;  %v33563_v5 = vld [vmem:[#allocation158_spill] sm:$0xff]  ;;  %v33564_v8 = vld [vmem:[#allocation165_spill] sm:$0xff] }
 0xdaa   :  { %26229 = vmatprep.subr.bf16.mxu0 %v33528_v30  ;;  %26306 = vmatprep.subr.bf16.mxu1 %v32957_v17  ;;  %v33565_v30 = vld [vmem:[#allocation184_spill] sm:$0xff] }
 0xdad   :  { %26231 = vmatpush1.bf16.msra.mxu0 %v33529_v43  ;;  %26308 = vmatpush3.bf16.msra.mxu1 %v33530_v31  ;;  %v33566_v43 = vld [vmem:[#allocation155_spill] sm:$0xff]  ;;  %v33567_v31 = vld [vmem:[#allocation157_spill] sm:$0xff] }
 0xdae   :  { %26233 = vmatprep.subr.bf16.mxu0 %v33531_v44  ;;  %26309 = vmatprep.subr.bf16.mxu1 %v32957_v17  ;;  %v33568_v44 = vld [vmem:[#allocation185_spill] sm:$0xff] }
 0xdb1   :  { %26235 = vmatpush1.bf16.msra.mxu0 %v33532_v14  ;;  %26311 = vmatpush3.bf16.msra.mxu1 %v33533_v40  ;;  %v33569_v14 = vld [vmem:[#allocation159_spill] sm:$0xff]  ;;  %v33570_v40 = vld [vmem:[#allocation160_spill] sm:$0xff] }
 0xdb2   :  { %26237 = vmatprep.subr.bf16.mxu0 %v33197_v37  ;;  %26312 = vmatprep.subr.bf16.mxu1 %v32957_v17  ;;  %v31755_v37 = vand.u32 4294901760, %v31631_v54 }
 0xdb4   :  { %17933 = vmatmul.mubr.f32.vlgmr.msra.gmra.mrb[34].mxu0 %v31625_v55  ;;  %23219 = vmatmul.mubr.f32.vlgmr.msra.gmra.mrb[48].mxu1 %v31625_v55 }
 0xdb5   :  { %26239 = vmatpush1.bf16.msra.mxu0 %v33198_v60  ;;  %26314 = vmatpush3.bf16.msra.mxu1 %v33414_v47  ;;  %v31765_v60 = vsub.f32 %v31631_v54, %v31755_v37  ;;  %v33539_v47 = vld [vmem:[#allocation145_spill] sm:$0xff] }
 0xdb6   :  { %26241 = vmatprep.subr.bf16.mxu0 %v33199_v7  ;;  %26315 = vmatprep.subr.bf16.mxu1 %v32957_v17  ;;  %v33534_v7 = vld [vmem:[#allocation135_spill] sm:$0xff] }
 0xdb7   :  { %18019 = vmatprep.mubr.f32.mxu0 %v32773_v35  ;;  %23237 = vmatprep.mubr.msk.f32.mxu1 %vm27471_vm14, %v32773_v35 }
 0xdb9   :  { %26243 = vmatpush1.bf16.msra.mxu0 %v33200_v41  ;;  %26317 = vmatpush3.bf16.msra.mxu1 %v33416_v32  ;;  %v33535_v41 = vld [vmem:[#allocation108_spill] sm:$0xff] }
 0xdba   :  { %26245 = vmatprep.subr.bf16.mxu0 %v33201_v61  ;;  %26318 = vmatprep.subr.bf16.mxu1 %v32957_v17  ;;  %v33536_v61 = vld [vmem:[#allocation139_spill] sm:$0xff] }
 0xdbd   :  { %26247 = vmatpush1.bf16.msra.mxu0 %v33202_v0  ;;  %26320 = vmatpush3.bf16.msra.mxu1 %v33418_v23  ;;  %v31772_v0 = vand.u32 4294901760, %v31765_v60  ;;  %v33540_v23 = vld [vmem:[#allocation150_spill] sm:$0xff] }
 0xdbe   :  { %26249 = vmatprep.subr.bf16.mxu0 %v33205_v25  ;;  %26321 = vmatprep.subr.bf16.mxu1 %v32957_v17  ;;  %v33537_v25 = vld [vmem:[#allocation140_spill] sm:$0xff] }
 0xdbf   :  { %v18664_v32 = vsub.f32 %v31765_v60, %v31772_v0 }
 0xdc1   :  { %26251 = vmatpush1.bf16.msra.mxu0 %v33357_v21  ;;  %26323 = vmatpush3.bf16.msra.mxu1 %v33420_v1  ;;  %v33538_v21 = vld [vmem:[#allocation26_spill] sm:$0xff]  ;;  %v33541_v1 = vld [vmem:[#allocation27_spill] sm:$0xff] }
 0xdc2   :  { %26325 = vmatprep.subr.bf16.mxu0 %v33273_v3  ;;  %26516 = vmatprep.subr.bf16.mxu1 %v32957_v17 }
 0xdc4   :  { %18021 = vmatmul.mubr.f32.vlgmr.msra.gmra.mrb[34].mxu0 %v31625_v55  ;;  %23238 = vmatmul.mubr.f32.vlgmr.msra.gmra.mrb[50].mxu1 %v31625_v55  ;;  %v18665_v55 = vand.u32 4294901760, %v18664_v32  ;;  %v33571_v32 = vld [vmem:[#allocation186_spill] sm:$0xff] }
 0xdc5   :  { %26327 = vmatpush1.bf16.msra.mxu0 %v33274_v58  ;;  %26518 = vmatpush3.bf16.msra.mxu1 %v30254_v42 }
 0xdc6   :  { %26329 = vmatprep.subr.bf16.mxu0 %v33275_v33  ;;  %26519 = vmatprep.subr.bf16.mxu1 %v32957_v17 }
 0xdc7   :  { %18660 = vmatprep.mubr.f32.mxu0 %v32773_v35  ;;  %23272 = vmatprep.mubr.msk.f32.mxu1 %vm27471_vm14, %v32773_v35 }
 0xdc9   :  { %26331 = vmatpush1.bf16.msra.mxu0 %v33276_v45  ;;  %26521 = vmatpush3.bf16.msra.mxu1 %v30259_v19 }
 0xdca   :  { %26333 = vmatprep.subr.bf16.mxu0 %v33277_v18  ;;  %26522 = vmatprep.subr.bf16.mxu1 %v32957_v17 }
 0xdcd   :  { %26335 = vmatpush1.bf16.msra.mxu0 %v33278_v10  ;;  %26524 = vmatpush3.bf16.msra.mxu1 %v30265_v22 }
 0xdce   :  { %26337 = vmatprep.subr.bf16.mxu0 %v33279_v2  ;;  %26525 = vmatprep.subr.bf16.mxu1 %v32957_v17 }
 0xdd1   :  { %26339 = vmatpush1.bf16.msra.mxu0 %v33280_v29  ;;  %26527 = vmatpush3.bf16.msra.mxu1 %v30273_v16 }
 0xdd2   :  { %26341 = vmatprep.subr.bf16.mxu0 %v33281_v12  ;;  %26528 = vmatprep.subr.bf16.mxu1 %v32957_v17 }
 0xdd5   :  { %26343 = vmatpush1.bf16.msra.mxu0 %v33282_v46  ;;  %26530 = vmatpush3.bf16.msra.mxu1 %v30291_v11 }
 0xdd6   :  { %26345 = vmatprep.subr.bf16.mxu0 %v33283_v13  ;;  %26531 = vmatprep.subr.bf16.mxu1 %v32957_v17 }
 0xdd9   :  { %26347 = vmatpush1.bf16.msra.mxu0 %v33534_v7  ;;  %26533 = vmatpush3.bf16.msra.mxu1 %v33535_v41 }
 0xdda   :  { %26349 = vmatprep.subr.bf16.mxu0 %v33536_v61  ;;  %26534 = vmatprep.subr.bf16.mxu1 %v32957_v17 }
 0xddd   :  { %26351 = vmatpush1.bf16.msra.mxu0 %v33537_v25  ;;  %26536 = vmatpush3.bf16.msra.mxu1 %v33538_v21 }
 0xdde   :  { %26353 = vmatprep.subr.bf16.mxu0 %v33539_v47  ;;  %26537 = vmatprep.subr.bf16.mxu1 %v32957_v17 }
 0xde1   :  { %26355 = vmatpush1.bf16.msra.mxu0 %v33540_v23  ;;  %26539 = vmatpush3.bf16.msra.mxu1 %v33541_v1 }
 0xde2   :  { %26357 = vmatprep.subr.bf16.mxu0 %v33542_v53  ;;  %26540 = vmatprep.subr.bf16.mxu1 %v32957_v17  ;;  %v33573_v53 = vld [vmem:[#allocation163_spill] sm:$0xff] }
 0xde4   :  { %18666 = vmatmul.mubr.f32.vlgmr.msra.gmra.mrb[34].mxu0 %v18665_v55  ;;  %23273 = vmatmul.mubr.f32.vlgmr.msra.gmra.mrb[52].mxu1 %v18665_v55  ;;  %v33572_v55 = vld [vmem:[#allocation110_spill] sm:$0xff] }
 0xde5   :  { %26359 = vmatpush1.bf16.msra.mxu0 %v33543_v50  ;;  %26542 = vmatpush3.bf16.msra.mxu1 %v33544_v27  ;;  %v33574_v50 = vld [vmem:[#allocation187_spill] sm:$0xff]  ;;  %v33575_v27 = vld [vmem:[#allocation112_spill] sm:$0xff] }
 0xde6   :  { %26361 = vmatprep.subr.bf16.mxu0 %v33545_v51  ;;  %26543 = vmatprep.subr.bf16.mxu1 %v32957_v17  ;;  %v33576_v51 = vld [vmem:[#allocation167_spill] sm:$0xff] }
 0xde7   :  { %18896 = vmatprep.mubr.f32.mxu0 %v32773_v35  ;;  %23307 = vmatprep.mubr.msk.f32.mxu1 %vm27471_vm14, %v32773_v35 }
 0xde9   :  { %26363 = vmatpush1.bf16.msra.mxu0 %v33546_v36  ;;  %26545 = vmatpush3.bf16.msra.mxu1 %v33547_v59  ;;  %v33577_v36 = vld [vmem:[#allocation188_spill] sm:$0xff]  ;;  %v33578_v59 = vld [vmem:[#allocation170_spill] sm:$0xff] }
 0xdea   :  { %26365 = vmatprep.subr.bf16.mxu0 %v33548_v24  ;;  %26546 = vmatprep.subr.bf16.mxu1 %v32957_v17  ;;  %v33579_v24 = vld [vmem:[#allocation171_spill] sm:$0xff] }
 0xded   :  { %26367 = vmatpush1.bf16.msra.mxu0 %v33549_v6  ;;  %26548 = vmatpush3.bf16.msra.mxu1 %v33550_v34  ;;  %v33580_v6 = vld [vmem:[#allocation189_spill] sm:$0xff] }
 0xdee   :  { %26369 = vmatprep.subr.bf16.mxu0 %v33551_v57  ;;  %26549 = vmatprep.subr.bf16.mxu1 %v32957_v17  ;;  %v33581_v34 = vld [vmem:[#allocation173_spill] sm:$0xff]  ;;  %v33582_v57 = vld [vmem:[#allocation174_spill] sm:$0xff] }
 0xdf1   :  { %26371 = vmatpush1.bf16.msra.mxu0 %v33552_v56  ;;  %26551 = vmatpush3.bf16.msra.mxu1 %v33553_v62  ;;  %v33583_v56 = vld [vmem:[#allocation190_spill] sm:$0xff]  ;;  %v33584_v62 = vld [vmem:[#allocation177_spill] sm:$0xff] }
 0xdf2   :  { %26373 = vmatprep.subr.bf16.mxu0 %v33554_v39  ;;  %26552 = vmatprep.subr.bf16.mxu1 %v32957_v17  ;;  %v33585_v39 = vld [vmem:[#allocation178_spill] sm:$0xff] }
 0xdf5   :  { %26375 = vmatpush1.bf16.msra.mxu0 %v33555_v20  ;;  %26554 = vmatpush3.bf16.msra.mxu1 %v33556_v4  ;;  %v33586_v20 = vld [vmem:[#allocation191_spill] sm:$0xff]  ;;  %v33587_v4 = vld [vmem:[#allocation181_spill] sm:$0xff] }
 0xdf6   :  { %26377 = vmatprep.subr.bf16.mxu0 %v33557_v15  ;;  %26555 = vmatprep.subr.bf16.mxu1 %v32957_v17  ;;  %v33588_v15 = vld [vmem:[#allocation182_spill] sm:$0xff] }
 0xdf9   :  { %26379 = vmatpush1.bf16.msra.mxu0 %v33558_v48  ;;  %26557 = vmatpush3.bf16.msra.mxu1 %v33559_v9  ;;  %v33589_v48 = vld [vmem:[#allocation192_spill] sm:$0xff] }
 0xdfa   :  { %26381 = vmatprep.subr.bf16.mxu0 %v33560_v52  ;;  %26558 = vmatprep.subr.bf16.mxu1 %v32957_v17  ;;  %v33591_v9 = vld [vmem:[#allocation152_spill] sm:$0xff]  ;;  %v33592_v52 = vld [vmem:[#allocation193_spill] sm:$0xff] }
 0xdfd   :  { %26383 = vmatpush1.bf16.msra.mxu0 %v33561_v28  ;;  %26560 = vmatpush3.bf16.msra.mxu1 %v33562_v26  ;;  %v33593_v28 = vld [vmem:[#allocation154_spill] sm:$0xff] }
 0xdfe   :  { %26385 = vmatprep.subr.bf16.mxu0 %v33563_v5  ;;  %26561 = vmatprep.subr.bf16.mxu1 %v32957_v17 }
 0xe01   :  { %26387 = vmatpush1.bf16.msra.mxu0 %v33564_v8  ;;  %26563 = vmatpush3.bf16.msra.mxu1 %v33565_v30  ;;  %v33594_v8 = vld [vmem:[#allocation161_spill] sm:$0xff]  ;;  %v33595_v30 = vld [vmem:[#allocation194_spill] sm:$0xff] }
 0xe02   :  { %26389 = vmatprep.subr.bf16.mxu0 %v33566_v43  ;;  %26564 = vmatprep.subr.bf16.mxu1 %v32957_v17  ;;  %v33597_v43 = vld [vmem:[#allocation164_spill] sm:$0xff] }
 0xe04   :  { %18898 = vmatmul.mubr.f32.vlgmr.msra.gmra.mrb[34].mxu0 %v31755_v37  ;;  %23308 = vmatmul.mubr.f32.vlgmr.msra.gmra.mrb[52].mxu1 %v31755_v37 }
 0xe05   :  { %26391 = vmatpush1.bf16.msra.mxu0 %v33567_v31  ;;  %26566 = vmatpush3.bf16.msra.mxu1 %v33568_v44  ;;  %v33598_v31 = vld [vmem:[#allocation195_spill] sm:$0xff]  ;;  %v33599_v44 = vld [vmem:[#allocation166_spill] sm:$0xff] }
 0xe06   :  { %26393 = vmatprep.subr.bf16.mxu0 %v33569_v14  ;;  %26567 = vmatprep.subr.bf16.mxu1 %v32957_v17  ;;  %v33600_v14 = vld [vmem:[#allocation168_spill] sm:$0xff] }
 0xe07   :  { %19032 = vmatprep.mubr.f32.mxu0 %v32773_v35  ;;  %23342 = vmatprep.mubr.msk.f32.mxu1 %vm27471_vm14, %v32773_v35 }
 0xe09   :  { %26395 = vmatpush1.bf16.msra.mxu0 %v33570_v40  ;;  %26569 = vmatpush3.bf16.msra.mxu1 %v33571_v32  ;;  %v33601_v40 = vld [vmem:[#allocation196_spill] sm:$0xff]  ;;  %v33602_v32 = vld [vmem:[#allocation169_spill] sm:$0xff] }
 0xe0a   :  { %26397 = vmatprep.subr.bf16.mxu0 %v33572_v55  ;;  %26570 = vmatprep.subr.bf16.mxu1 %v32957_v17  ;;  %v33603_v55 = vld [vmem:[#allocation172_spill] sm:$0xff] }
 0xe0d   :  { %26399 = vmatpush1.bf16.msra.mxu0 %v33573_v53  ;;  %26572 = vmatpush3.bf16.msra.mxu1 %v33574_v50  ;;  %v33604_v53 = vld [vmem:[#allocation197_spill] sm:$0xff]  ;;  %v33605_v50 = vld [vmem:[#allocation58_spill] sm:$0xff] }
 0xe0e   :  { %26401 = vmatprep.subr.bf16.mxu0 %v33575_v27  ;;  %26573 = vmatprep.subr.bf16.mxu1 %v32957_v17 }
 0xe11   :  { %26403 = vmatpush1.bf16.msra.mxu0 %v33576_v51  ;;  %26575 = vmatpush3.bf16.msra.mxu1 %v33577_v36  ;;  %v33606_v51 = vld [vmem:[#allocation94_spill] sm:$0xff] }
 0xe12   :  { %26405 = vmatprep.subr.bf16.mxu0 %v33578_v59  ;;  %26576 = vmatprep.subr.bf16.mxu1 %v32957_v17 }
 0xe15   :  { %26407 = vmatpush1.bf16.msra.mxu0 %v33579_v24  ;;  %26578 = vmatpush3.bf16.msra.mxu1 %v33580_v6  ;;  %v33607_v6 = vld [vmem:[#allocation175_spill] sm:$0xff] }
 0xe16   :  { %26409 = vmatprep.subr.bf16.mxu0 %v33581_v34  ;;  %26579 = vmatprep.subr.bf16.mxu1 %v32957_v17  ;;  %v33608_v34 = vld [vmem:[#allocation198_spill] sm:$0xff] }
 0xe19   :  { %26411 = vmatpush1.bf16.msra.mxu0 %v33582_v57  ;;  %26581 = vmatpush3.bf16.msra.mxu1 %v33583_v56  ;;  %v33609_v57 = vld [vmem:[#allocation176_spill] sm:$0xff]  ;;  %v33610_v56 = vld [vmem:[#allocation179_spill] sm:$0xff] }
 0xe1a   :  { %26413 = vmatprep.subr.bf16.mxu0 %v33584_v62  ;;  %26582 = vmatprep.subr.bf16.mxu1 %v32957_v17  ;;  %v33611_v62 = vld [vmem:[#allocation199_spill] sm:$0xff] }
 0xe1d   :  { %26415 = vmatpush1.bf16.msra.mxu0 %v33585_v39  ;;  %26584 = vmatpush3.bf16.msra.mxu1 %v33586_v20  ;;  %v33612_v39 = vld [vmem:[#allocation180_spill] sm:$0xff]  ;;  %v33613_v20 = vld [vmem:[#allocation183_spill] sm:$0xff] }
 0xe1e   :  { %26417 = vmatprep.subr.bf16.mxu0 %v33587_v4  ;;  %26585 = vmatprep.subr.bf16.mxu1 %v32957_v17  ;;  %v33614_v4 = vld [vmem:[#allocation200_spill] sm:$0xff] }
 0xe21   :  { %26419 = vmatpush1.bf16.msra.mxu0 %v33588_v15  ;;  %26587 = vmatpush3.bf16.msra.mxu1 %v33589_v48 }
 0xe22   :  { %26421 = vmatprep.subr.bf16.mxu0 %v33273_v3  ;;  %26588 = vmatprep.subr.bf16.mxu1 %v32957_v17 }
 0xe24   :  { %19035 = vmatmul.mubr.f32.vlgmr.msra.gmra.mrb[34].mxu0 %v31765_v60  ;;  %23343 = vmatmul.mubr.f32.vlgmr.msra.gmra.mrb[52].mxu1 %v31765_v60  ;;  %v33590_v60 = vld [vmem:[#allocation148_spill] sm:$0xff] }
 0xe25   :  { %26423 = vmatpush1.bf16.msra.mxu0 %v33274_v58  ;;  %26590 = vmatpush3.bf16.msra.mxu1 %v30254_v42 }
 0xe26   :  { %26425 = vmatprep.subr.bf16.mxu0 %v33275_v33  ;;  %26591 = vmatprep.subr.bf16.mxu1 %v32957_v17 }
 0xe27   :  { %19137 = vmatprep.mubr.f32.mxu0 %v32773_v35  ;;  %23377 = vmatprep.mubr.msk.f32.mxu1 %vm27471_vm14, %v32773_v35 }
 0xe29   :  { %26427 = vmatpush1.bf16.msra.mxu0 %v33276_v45  ;;  %26593 = vmatpush3.bf16.msra.mxu1 %v30259_v19 }
 0xe2a   :  { %26429 = vmatprep.subr.bf16.mxu0 %v33277_v18  ;;  %26594 = vmatprep.subr.bf16.mxu1 %v32957_v17 }
 0xe2d   :  { %26431 = vmatpush1.bf16.msra.mxu0 %v33278_v10  ;;  %26596 = vmatpush3.bf16.msra.mxu1 %v30265_v22 }
 0xe2e   :  { %26433 = vmatprep.subr.bf16.mxu0 %v33279_v2  ;;  %26597 = vmatprep.subr.bf16.mxu1 %v32957_v17 }
 0xe31   :  { %26435 = vmatpush1.bf16.msra.mxu0 %v33280_v29  ;;  %26599 = vmatpush3.bf16.msra.mxu1 %v30273_v16 }
 0xe32   :  { %26437 = vmatprep.subr.bf16.mxu0 %v33281_v12  ;;  %26600 = vmatprep.subr.bf16.mxu1 %v32957_v17 }
 0xe35   :  { %26439 = vmatpush1.bf16.msra.mxu0 %v33282_v46  ;;  %26602 = vmatpush3.bf16.msra.mxu1 %v30291_v11 }
 0xe36   :  { %26441 = vmatprep.subr.bf16.mxu0 %v33283_v13  ;;  %26603 = vmatprep.subr.bf16.mxu1 %v32957_v17 }
 0xe39   :  { %26443 = vmatpush1.bf16.msra.mxu0 %v33534_v7  ;;  %26605 = vmatpush3.bf16.msra.mxu1 %v33535_v41 }
 0xe3a   :  { %26445 = vmatprep.subr.bf16.mxu0 %v33536_v61  ;;  %26606 = vmatprep.subr.bf16.mxu1 %v32957_v17 }
 0xe3d   :  { %26447 = vmatpush1.bf16.msra.mxu0 %v33537_v25  ;;  %26608 = vmatpush3.bf16.msra.mxu1 %v33538_v21 }
 0xe3e   :  { %26449 = vmatprep.subr.bf16.mxu0 %v33539_v47  ;;  %26609 = vmatprep.subr.bf16.mxu1 %v32957_v17 }
 0xe41   :  { %26451 = vmatpush1.bf16.msra.mxu0 %v33540_v23  ;;  %26611 = vmatpush3.bf16.msra.mxu1 %v33541_v1 }
 0xe42   :  { %26453 = vmatprep.subr.bf16.mxu0 %v33590_v60  ;;  %26612 = vmatprep.subr.bf16.mxu1 %v32957_v17 }
 0xe44   :  { %19141 = vmatmul.mubr.f32.vlgmr.msra.gmra.mrb[34].mxu0 %v31772_v0  ;;  %23378 = vmatmul.mubr.f32.vlgmr.msra.gmra.mrb[52].mxu1 %v31772_v0  ;;  %v33596_v0 = vld [vmem:[#allocation162_spill] sm:$0xff] }
 0xe45   :  { %26455 = vmatpush1.bf16.msra.mxu0 %v33591_v9  ;;  %26614 = vmatpush3.bf16.msra.mxu1 %v33592_v52 }
 0xe46   :  { %26457 = vmatprep.subr.bf16.mxu0 %v33593_v28  ;;  %26615 = vmatprep.subr.bf16.mxu1 %v32957_v17 }
 0xe47   :  { %v18106_v26 = vpop.f32.mrb[40].mxu1  ;;  %19307 = vmatprep.mubr.f32.mxu0 %v32773_v35  ;;  %23412 = vmatprep.mubr.msk.f32.mxu1 %vm27471_vm14, %v32773_v35 }
 0xe48   :  { %v23144_v5 = vpop.f32.mrb[41].mxu1  ;;  %v18107_v27 = vadd.f32 %v18106_v26, %v33605_v50  ;;  %v20087_v26 = vld [vmem:[#allocation16 + $0x30] sm:$0xff] }
 0xe49   :  { %26459 = vmatpush1.bf16.msra.mxu0 %v33594_v8  ;;  %26617 = vmatpush3.bf16.msra.mxu1 %v33595_v30  ;;  %v20088_v5 = vld [vmem:[#allocation16 + $0x38] sm:$0xff]  ;;  %v20089_v8 = vld [vmem:[#allocation16 + $0x40] sm:$0xff] }
 0xe4a   :  { %26461 = vmatprep.subr.bf16.mxu0 %v33596_v0  ;;  %26618 = vmatprep.subr.bf16.mxu1 %v32957_v17 }
 0xe4d   :  { %26463 = vmatpush1.bf16.msra.mxu0 %v33597_v43  ;;  %26620 = vmatpush3.bf16.msra.mxu1 %v33598_v31  ;;  %v20123_v43 = vand.u32 4294901760, %v20087_v26  ;;  %v20126_v31 = vand.u32 4294901760, %v20088_v5 }
 0xe4e   :  { %26465 = vmatprep.subr.bf16.mxu0 %v33599_v44  ;;  %26621 = vmatprep.subr.bf16.mxu1 %v32957_v17  ;;  %v20090_v44 = vld [vmem:[#allocation16 + $0x48] sm:$0xff] }
 0xe51   :  { %26467 = vmatpush1.bf16.msra.mxu0 %v33600_v14  ;;  %26623 = vmatpush3.bf16.msra.mxu1 %v33601_v40  ;;  %v20091_v14 = vld [vmem:[#allocation16 + $0x50] sm:$0xff]  ;;  %v20092_v40 = vld [vmem:[#allocation16 + $0x58] sm:$0xff] }
 0xe52   :  { %26469 = vmatprep.subr.bf16.mxu0 %v33602_v32  ;;  %26624 = vmatprep.subr.bf16.mxu1 %v32957_v17  ;;  %v20129_v32 = vand.u32 4294901760, %v20089_v8  ;;  %v20138_v50 = vand.u32 4294901760, %v20092_v40 }
 0xe55   :  { %26471 = vmatpush1.bf16.msra.mxu0 %v33603_v55  ;;  %26626 = vmatpush3.bf16.msra.mxu1 %v33604_v53  ;;  %v20132_v55 = vand.u32 4294901760, %v20090_v44  ;;  %v20135_v53 = vand.u32 4294901760, %v20091_v14 }
 0xe56   :  { %26473 = vmatprep.subr.bf16.mxu0 %v33606_v51  ;;  %26627 = vmatprep.subr.bf16.mxu1 %v32957_v17  ;;  %v20094_v51 = vld [vmem:[#allocation16 + $0x68] sm:$0xff] }
 0xe57   :  { %v18217_v36 = vpop.f32.mrb[42].mxu1 }
 0xe58   :  { %v18218_v59 = vadd.f32 %v18217_v36, %v18107_v27  ;;  %v23163_v24 = vpop.f32.mrb[43].mxu1  ;;  %v20093_v27 = vld [vmem:[#allocation16 + $0x60] sm:$0xff]  ;;  %v31997_v36 = vpack.c.bf16 %v20126_v31, %v20123_v43 }
 0xe59   :  { %26475 = vmatpush1.bf16.msra.mxu0 %v33607_v6  ;;  %26629 = vmatpush3.bf16.msra.mxu1 %v33608_v34  ;;  %v32001_v24 = vsub.f32 %v20088_v5, %v20126_v31  ;;  %v20141_v6 = vand.u32 4294901760, %v20093_v27  ;;  %v20095_v34 = vld [vmem:[#allocation16 + $0x70] sm:$0xff] }
 0xe5a   :  { %26477 = vmatprep.subr.bf16.mxu0 %v33609_v57  ;;  %26630 = vmatprep.subr.bf16.mxu1 %v32957_v17  ;;  %v20096_v57 = vld [vmem:[#allocation16 + $0x78] sm:$0xff] }
 0xe5d   :  { %26479 = vmatpush1.bf16.msra.mxu0 %v33610_v56  ;;  %26632 = vmatpush3.bf16.msra.mxu1 %v33611_v62  ;;  %v32003_v56 = vpack.c.bf16 %v20132_v55, %v20129_v32  ;;  %v32005_v62 = vsub.f32 %v20089_v8, %v20129_v32  ;;  %v32759_v32 = vand.u32 4294901760, %v32001_v24 }
 0xe5e   :  { %26481 = vmatprep.subr.bf16.mxu0 %v33612_v39  ;;  %26633 = vmatprep.subr.bf16.mxu1 %v32957_v17  ;;  %v32007_v39 = vsub.f32 %v20090_v44, %v20132_v55 }
 0xe61   :  { %26483 = vmatpush1.bf16.msra.mxu0 %v33613_v20  ;;  %26635 = vmatpush3.bf16.msra.mxu1 %v33614_v4  ;;  %v32010_v20 = vsub.f32 %v20091_v14, %v20135_v53  ;;  %v32012_v4 = vsub.f32 %v20092_v40, %v20138_v50 }
 0xe62   :  { %26485 = vmatprep.subr.bf16.mxu0 %v33273_v3  ;;  %26636 = vmatprep.subr.bf16.mxu1 %v32957_v17 }
 0xe64   :  { %19309 = vmatmul.mubr.f32.vlgmr.msra.gmra.mrb[34].mxu0 %v31755_v37  ;;  %23413 = vmatmul.mubr.f32.vlgmr.msra.gmra.mrb[52].mxu1 %v31755_v37 }
 0xe65   :  { %26487 = vmatpush1.bf16.msra.mxu0 %v33274_v58  ;;  %26638 = vmatpush3.bf16.msra.mxu1 %v30254_v42  ;;  %v20082_v58 = vld [vmem:[#allocation16 + $0x8] sm:$0xff] }
 0xe66   :  { %26489 = vmatprep.subr.bf16.mxu0 %v33275_v33  ;;  %26639 = vmatprep.subr.bf16.mxu1 %v32957_v17 }
 0xe67   :  { %v18305_v15 = vpop.f32.mrb[44].mxu1  ;;  %19411 = vmatprep.mubr.f32.mxu0 %v32773_v35  ;;  %23447 = vmatprep.mubr.msk.f32.mxu1 %vm27471_vm14, %v32773_v35 }
 0xe68   :  { %v18306_v3 = vadd.f32 %v18305_v15, %v18218_v59  ;;  %v23182_v48 = vpop.f32.mrb[45].mxu1  ;;  %v31999_v59 = vsub.f32 %v20087_v26, %v20123_v43  ;;  %v20144_v15 = vand.u32 4294901760, %v20094_v51 }
 0xe69   :  { %26491 = vmatpush1.bf16.msra.mxu0 %v33276_v45  ;;  %26641 = vmatpush3.bf16.msra.mxu1 %v30259_v19  ;;  %v20108_v45 = vand.u32 4294901760, %v20082_v58  ;;  %v20147_v48 = vand.u32 4294901760, %v20095_v34 }
 0xe6a   :  { %26493 = vmatprep.subr.bf16.mxu0 %v33277_v18  ;;  %26642 = vmatprep.subr.bf16.mxu1 %v32957_v17  ;;  %v32760_v40 = vand.u32 4294901760, %v31999_v59 }
 0xe6b   :  { %v31985_v9 = vsub.f32 %v20082_v58, %v20108_v45 }
 0xe6d   :  { %26495 = vmatpush1.bf16.msra.mxu0 %v33278_v10  ;;  %26644 = vmatpush3.bf16.msra.mxu1 %v30265_v22  ;;  %v20083_v10 = vld [vmem:[#allocation16 + $0x10] sm:$0xff] }
 0xe6e   :  { %26497 = vmatprep.subr.bf16.mxu0 %v33279_v2  ;;  %26645 = vmatprep.subr.bf16.mxu1 %v32957_v17  ;;  %v20081_v2 = vld [vmem:[#allocation16] sm:$0xff] }
 0xe6f   :  { %v20105_v33 = vand.u32 4294901760, %v20081_v2 }
 0xe71   :  { %26499 = vmatpush1.bf16.msra.mxu0 %v33280_v29  ;;  %26647 = vmatpush3.bf16.msra.mxu1 %v30273_v16  ;;  %v31973_v18 = vpack.c.bf16 %v20108_v45, %v20105_v33  ;;  %v31983_v60 = vsub.f32 %v20081_v2, %v20105_v33  ;;  %v20205_v2 = vand.u32 4294901760, %v31985_v9 }
 0xe72   :  { %26501 = vmatprep.subr.bf16.mxu0 %v33281_v12  ;;  %26648 = vmatprep.subr.bf16.mxu1 %v32957_v17 }
 0xe73   :  { %v20206_v33 = vsub.f32 %v31985_v9, %v20205_v2 }
 0xe75   :  { %26503 = vmatpush1.bf16.msra.mxu0 %v33282_v46  ;;  %26650 = vmatpush3.bf16.msra.mxu1 %v30291_v11 }
 0xe76   :  { %26505 = vmatprep.subr.bf16.mxu0 %v33283_v13  ;;  %26651 = vmatprep.subr.bf16.mxu1 %v32957_v17 }
 0xe77   :  { %v18386_v22 = vpop.f32.mrb[46].mxu1 }
 0xe78   :  { %v18387_v42 = vadd.f32 %v18386_v22, %v18306_v3  ;;  %v23201_v19 = vpop.f32.mrb[47].mxu1  ;;  %v32014_v3 = vsub.f32 %v20093_v27, %v20141_v6  ;;  %v20150_v22 = vand.u32 4294901760, %v20096_v57 }
 0xe79   :  { %26507 = vmatpush1.bf16.msra.mxu0 %v33534_v7  ;;  %26653 = vmatpush3.bf16.msra.mxu1 %v33535_v41  ;;  %v20084_v7 = vld [vmem:[#allocation16 + $0x18] sm:$0xff]  ;;  %v32019_v19 = vsub.f32 %v20095_v34, %v20147_v48  ;;  %v32757_v34 = vand.u32 4294901760, %v32007_v39 }
 0xe7a   :  { %26509 = vmatprep.subr.bf16.mxu0 %v33536_v61  ;;  %26654 = vmatprep.subr.bf16.mxu1 %v32957_v17  ;;  %v20114_v41 = vand.u32 4294901760, %v20084_v7 }
 0xe7c   :  { %v31989_v28 = vsub.f32 %v20084_v7, %v20114_v41 }
 0xe7d   :  { %26511 = vmatpush1.bf16.msra.mxu0 %v33537_v25  ;;  %26656 = vmatpush3.bf16.msra.mxu1 %v33538_v21  ;;  %v20085_v25 = vld [vmem:[#allocation16 + $0x20] sm:$0xff]  ;;  %v20086_v21 = vld [vmem:[#allocation16 + $0x28] sm:$0xff] }
 0xe7e   :  { %26513 = vmatprep.subr.bf16.mxu0 %v33539_v47  ;;  %26657 = vmatprep.subr.bf16.mxu1 %v32957_v17  ;;  %v20117_v47 = vand.u32 4294901760, %v20085_v25 }
 0xe80   :  { %v31992_v30 = vsub.f32 %v20085_v25, %v20117_v47 }
 0xe81   :  { %26515 = vmatpush1.bf16.msra.mxu0 %v33540_v23  ;;  %26659 = vmatpush3.bf16.msra.mxu1 %v33541_v1  ;;  %v20120_v23 = vand.u32 4294901760, %v20086_v21 }
 0xe82   :  { %26660 = vmatprep.subr.bf16.mxu0 %v32957_v17  ;;  %v32762_v26 = vand.u32 4294901760, %v31992_v30 }
 0xe83   :  { %v31981_v1 = vpack.c.bf16 %v20120_v23, %v20117_v47  ;;  %v31994_v0 = vsub.f32 %v20086_v21, %v20120_v23 }
 0xe84   :  { %19413 = vmatmul.mubr.f32.vlgmr.msra.gmra.mrb[34].mxu0 %v31755_v37  ;;  %23448 = vmatmul.mubr.f32.vlgmr.msra.gmra.mrb[52].mxu1 %v31755_v37  ;;  %v20111_v37 = vand.u32 4294901760, %v20083_v10  ;;  %v20227_v43 = vsub.f32 %v31992_v30, %v32762_v26 }
 0xe85   :  { %23482 = vmatprep.mubr.msk.f32.mxu0 %vm27471_vm14, %v32773_v35  ;;  %26662 = vmatpush3.bf16.msra.mxu0 %v31973_v18  ;;  %v32761_v5 = vand.u32 4294901760, %v31994_v0 }
 0xe86   :  { %26663 = vmatprep.subr.bf16.mxu0 %v32957_v17  ;;  %v31977_v61 = vpack.c.bf16 %v20114_v41, %v20111_v37  ;;  %v31987_v52 = vsub.f32 %v20083_v10, %v20111_v37  ;;  %v20207_v10 = vand.u32 4294901760, %v20206_v33  ;;  %v32763_v37 = vand.u32 4294901760, %v31989_v28 }
 0xe87   :  { %v18481_v11 = vpop.f32.mrb[48].mxu1  ;;  %v20234_v31 = vsub.f32 %v31994_v0, %v32761_v5  ;;  %v20228_v44 = vand.u32 4294901760, %v20227_v43  ;;  %v32756_v33 = vand.u32 4294901760, %v32010_v20  ;;  %v32754_v43 = vand.u32 4294901760, %v32014_v3 }
 0xe88   :  { %v18482_v16 = vadd.f32 %v18481_v11, %v18387_v42  ;;  %v23220_v13 = vpop.f32.mrb[49].mxu1  ;;  %v32017_v42 = vsub.f32 %v20094_v51, %v20144_v15  ;;  %v32021_v11 = vsub.f32 %v20096_v57, %v20150_v22  ;;  %v32764_v7 = vand.u32 4294901760, %v31987_v52 }
 0xe89   :  { %26665 = vmatpush3.bf16.msra.mxu0 %v31977_v61  ;;  %v32028_v13 = vpack.c.bf16 %v20144_v15, %v20141_v6  ;;  %v20220_v21 = vsub.f32 %v31989_v28, %v32763_v37  ;;  %v20235_v14 = vand.u32 4294901760, %v20234_v31  ;;  %v32758_v6 = vand.u32 4294901760, %v32005_v62 }
 0xe8a   :  { %26666 = vmatprep.subr.bf16.mxu0 %v32957_v17  ;;  %v20213_v25 = vsub.f32 %v31987_v52, %v32764_v7  ;;  %v32753_v31 = vand.u32 4294901760, %v32017_v42 }
 0xe8b   :  { %v20221_v23 = vand.u32 4294901760, %v20220_v21  ;;  %v32067_v55 = vpack.c.bf16 %v20235_v14, %v20228_v44  ;;  %v20255_v15 = vsub.f32 %v32005_v62, %v32758_v6  ;;  %v20283_v14 = vsub.f32 %v32014_v3, %v32754_v43 }
 0xe8c   :  { %v20214_v47 = vand.u32 4294901760, %v20213_v25  ;;  %v20269_v25 = vsub.f32 %v32010_v20, %v32756_v33 }
 0xe8d   :  { %26668 = vmatpush3.bf16.msra.mxu0 %v31981_v1 }
 0xe8e   :  { %26669 = vmatprep.subr.bf16.mxu0 %v32957_v17  ;;  %v32057_v8 = vpack.c.bf16 %v20221_v23, %v20214_v47  ;;  %v20270_v47 = vand.u32 4294901760, %v20269_v25 }
 0xe91   :  { %26671 = vmatpush3.bf16.msra.mxu0 %v31997_v36 }
 0xe92   :  { %26672 = vmatprep.subr.bf16.mxu0 %v32957_v17 }
 0xe95   :  { %26674 = vmatpush3.bf16.msra.mxu0 %v32003_v56 }
 0xe96   :  { %26675 = vmatprep.subr.bf16.mxu0 %v32957_v17 }
 0xe97   :  { %v18560_v46 = vpop.f32.mrb[50].mxu1 }
 0xe98   :  { %v31971_v12 = vadd.f32 %v18560_v46, %v18482_v16  ;;  %v23239_v29 = vpop.f32.mrb[51].mxu1  ;;  %v32024_v16 = vpack.c.bf16 %v20138_v50, %v20135_v53  ;;  %v32032_v46 = vpack.c.bf16 %v20150_v22, %v20147_v48  ;;  %v20241_v53 = vsub.f32 %v31999_v59, %v32760_v40 }
 0xe99   :  { %v20198_v29 = vand.u32 4294901760, %v31983_v60  ;;  %v20248_v50 = vsub.f32 %v32001_v24, %v32759_v32  ;;  %v20262_v48 = vsub.f32 %v32007_v39, %v32757_v34  ;;  %v20256_v22 = vand.u32 4294901760, %v20255_v15 }
 0xe9a   :  { %26677 = vmatpush3.bf16.msra.mxu0 %v32024_v16  ;;  %v20242_v27 = vand.u32 4294901760, %v20241_v53  ;;  %v20290_v53 = vsub.f32 %v32017_v42, %v32753_v31  ;;  %v32751_v15 = vand.u32 4294901760, %v32021_v11 }
 0xe9b   :  { %26678 = vmatprep.subr.bf16.mxu0 %v32957_v17  ;;  %v20199_v58 = vsub.f32 %v31983_v60, %v20198_v29  ;;  %v20249_v51 = vand.u32 4294901760, %v20248_v50  ;;  %v20284_v50 = vand.u32 4294901760, %v20283_v14  ;;  %v26712_v14 = vpack.c.bf16 %v31989_v28, %v31987_v52 }
 0xe9d   :  { %v20200_v45 = vand.u32 4294901760, %v20199_v58  ;;  %v32077_v57 = vpack.c.bf16 %v20249_v51, %v20242_v27  ;;  %v20263_v58 = vand.u32 4294901760, %v20262_v48  ;;  %v20291_v27 = vand.u32 4294901760, %v20290_v53 }
 0xe9e   :  { %26680 = vmatpush3.bf16.msra.mxu0 %v32028_v13  ;;  %v32752_v51 = vand.u32 4294901760, %v32019_v19  ;;  %v26715_v53 = vpack.c.bf16 %v31994_v0, %v31992_v30 }
 0xe9f   :  { %26681 = vmatprep.subr.bf16.mxu0 %v32957_v17  ;;  %v32047_v41 = vpack.c.bf16 %v20207_v10, %v20200_v45  ;;  %v32755_v45 = vand.u32 4294901760, %v32012_v4  ;;  %v32087_v10 = vpack.c.bf16 %v20263_v58, %v20256_v22  ;;  %v26703_v48 = vpack.c.bf16 %v20291_v27, %v20284_v50 }
 0xea0   :  { %v20297_v22 = vsub.f32 %v32019_v19, %v32752_v51  ;;  %v20304_v58 = vsub.f32 %v32021_v11, %v32751_v15  ;;  %v26718_v50 = vpack.c.bf16 %v32001_v24, %v31999_v59  ;;  %v26721_v27 = vpack.c.bf16 %v32007_v39, %v32005_v62 }
 0xea1   :  { %v20276_v21 = vsub.f32 %v32012_v4, %v32755_v45 }
 0xea2   :  { %26683 = vmatpush3.bf16.msra.mxu0 %v32032_v46  ;;  %v20298_v25 = vand.u32 4294901760, %v20297_v22  ;;  %v26724_v22 = vpack.c.bf16 %v32012_v4, %v32010_v20 }
 0xea3   :  { %26684 = vmatprep.subr.bf16.mxu0 %v32957_v17  ;;  %v20277_v23 = vand.u32 4294901760, %v20276_v21  ;;  %v20305_v21 = vand.u32 4294901760, %v20304_v58  ;;  %v26727_v58 = vpack.c.bf16 %v32017_v42, %v32014_v3 }
 0xea5   :  { %v32097_v44 = vpack.c.bf16 %v20277_v23, %v20270_v47  ;;  %v26706_v47 = vpack.c.bf16 %v20305_v21, %v20298_v25  ;;  %v26709_v23 = vpack.c.bf16 %v31985_v9, %v31983_v60  ;;  %v26730_v25 = vpack.c.bf16 %v32021_v11, %v32019_v19 }
 0xea6   :  { %v33617_v60 = vand.u32 4294901760, %v31992_v30  ;;  %v33618_v9 = vand.u32 4294901760, %v31994_v0  ;;  %v33623_v30 = vand.u32 4294901760, %v32010_v20  ;;  %v33624_v0 = vand.u32 4294901760, %v32012_v4 }
 0xf57   :  { %v19414_v21 = vpop.f32.mrb[34].mxu0  ;;  %v20056_v15 = vpop.f32.mrb[52].mxu1 }
 0xf58   :  { %v26840_v51 = vadd.f32 %v31167_v63, %v19414_v21  ;;  %v19416_v31 = vpop.f32.mrb[35].mxu0  ;;  %v23449_v43 = vpop.f32.mrb[53].mxu1  ;;  %v26843_v26 = vadd.f32 %v20056_v15, %v33366_v38 }
 0xf59   :  { %v26842_v33 = vadd.f32 %v31171_v49, %v19416_v31 }
 0xf5a   :  { %v20777_v45 = vmul.f32 -1.442695, %v26840_v51 }
 0xf5b   :  { %v20778_v34 = vmul.f32 -1.442695, %v26842_v33 }
 0xf5c   :  { %27234 = vpow2.f32 %v20777_v45 }
 0xf5d   :  { %27236 = vpow2.f32 %v20778_v34 }
 0xf66   :  { %v27235_v6 = vpop.eup %27234 }
 0xf67   :  { %v20068_v32 = vadd.f32 1.0, %v27235_v6  ;;  %v27237_v40 = vpop.eup %27236 }
 0xf68   :  { %v20069_v5 = vadd.f32 1.0, %v27237_v40 }
 0xf69   :  { %27238 = vrcp.f32 %v20068_v32 }
 0xf6a   :  { %27240 = vrcp.f32 %v20069_v5 }
 0xf73   :  { %v27239_v37 = vpop.eup %27238 }
 0xf74   :  { %v20074_v7 = vmul.f32 %v27239_v37, %v26843_v26  ;;  %v27241_v43 = vpop.eup %27240  ;;  %v33622_v26 = vand.u32 4294901760, %v32007_v39  ;;  %v33628_v39 = vand.u32 4294901760, %v32021_v11 }
 0xf75   :  { %v20077_v51 = vsub.f32 1.0, %v27241_v43  ;;  %v20079_v49 = vmul.f32 %v27241_v43, %v31631_v54  ;;  %v26757_v54 = vpack.c.bf16 %v20205_v2, %v20198_v29  ;;  %v26763_v29 = vpack.c.bf16 %v33618_v9, %v33617_v60 }
 0xf76   :  { %v20075_v63 = vadd.f32 %v20074_v7, %v31971_v12  ;;  %v33615_v12 = vand.u32 4294901760, %v31987_v52  ;;  %v33616_v7 = vand.u32 4294901760, %v31989_v28  ;;  %v33619_v2 = vand.u32 4294901760, %v31999_v59 }
 0xf77   :  { %v33620_v52 = vand.u32 4294901760, %v32001_v24  ;;  %v33625_v59 = vand.u32 4294901760, %v32014_v3  ;;  %v33626_v24 = vand.u32 4294901760, %v32017_v42 }
 0xf78   :  { %27242 = vtanh.f32 %v20075_v63  ;;  %v26760_v37 = vpack.c.bf16 %v33616_v7, %v33615_v12 }
 0xf79   :  { %v26766_v28 = vpack.c.bf16 %v33620_v52, %v33619_v2 }
 0xf82   :  { %v27243_v21 = vpop.eup %27242 }
 0xf83   :  { %v20078_v33 = vmul.f32 %v27243_v21, %v20077_v51 }
 0xf85   :  { %v20080_v34 = vadd.f32 %v20079_v49, %v20078_v33 }
 0xf87   :  { %v32134_v45 = vand.u32 4294901760, %v20080_v34 }
 0xf89   :  { %v20186_v32 = vsub.f32 %v20080_v34, %v32134_v45 }
 0xf8b   :  { %v20187_v40 = vand.u32 4294901760, %v20186_v32 }
 0xf8d   :  { %v20188_v6 = vsub.f32 %v20186_v32, %v20187_v40 }
 0xf8f   :  { %v20189_v38 = vand.u32 4294901760, %v20188_v6 }
 0xf91   :  { %23483 = vmatmul.mubr.f32.vlgmr.msra.gmra.mrb[36].mxu0 %v20189_v38 }
 0xf92   :  { %26686 = vmatpush3.bf16.msra.mxu0 %v32047_v41  ;;  %23517 = vmatprep.mubr.msk.f32.mxu0 %vm27471_vm14, %v32773_v35  ;;  %v33621_v41 = vand.u32 4294901760, %v32005_v62  ;;  %v33627_v62 = vand.u32 4294901760, %v32019_v19 }
 0xf93   :  { %26687 = vmatprep.subr.bf16.mxu0 %v32957_v17 }
 0xf94   :  { %v26769_v5 = vpack.c.bf16 %v33622_v26, %v33621_v41 }
 0xf96   :  { %26689 = vmatpush3.bf16.msra.mxu0 %v32057_v8  ;;  %v26772_v8 = vpack.c.bf16 %v33624_v0, %v33623_v30 }
 0xf97   :  { %26690 = vmatprep.subr.bf16.mxu0 %v32957_v17 }
 0xf9a   :  { %26692 = vmatpush3.bf16.msra.mxu0 %v32067_v55  ;;  %v26775_v55 = vpack.c.bf16 %v33626_v24, %v33625_v59 }
 0xf9b   :  { %26693 = vmatprep.subr.bf16.mxu0 %v32957_v17 }
 0xf9e   :  { %26695 = vmatpush3.bf16.msra.mxu0 %v32077_v57  ;;  %v26778_v57 = vpack.c.bf16 %v33628_v39, %v33627_v62 }
 0xf9f   :  { %26696 = vmatprep.subr.bf16.mxu0 %v32957_v17 }
 0xfa2   :  { %26698 = vmatpush3.bf16.msra.mxu0 %v32087_v10 }
 0xfa3   :  { %26699 = vmatprep.subr.bf16.mxu0 %v32957_v17 }
 0xfa6   :  { %26701 = vmatpush3.bf16.msra.mxu0 %v32097_v44 }
 0xfa7   :  { %26702 = vmatprep.subr.bf16.mxu0 %v32957_v17 }
 0xfaa   :  { %26704 = vmatpush3.bf16.msra.mxu0 %v26703_v48 }
 0xfab   :  { %26705 = vmatprep.subr.bf16.mxu0 %v32957_v17 }
 0xfae   :  { %26707 = vmatpush3.bf16.msra.mxu0 %v26706_v47 }
 0xfaf   :  { %26708 = vmatprep.subr.bf16.mxu0 %v32957_v17 }
 0xfb1   :  { %23518 = vmatmul.mubr.f32.vlgmr.msra.gmra.mrb[36].mxu0 %v32134_v45 }
 0xfb2   :  { %26710 = vmatpush3.bf16.msra.mxu0 %v26709_v23  ;;  %23552 = vmatprep.mubr.msk.f32.mxu0 %vm27471_vm14, %v32773_v35 }
 0xfb3   :  { %26711 = vmatprep.subr.bf16.mxu0 %v32957_v17 }
 0xfb6   :  { %26713 = vmatpush3.bf16.msra.mxu0 %v26712_v14 }
 0xfb7   :  { %26714 = vmatprep.subr.bf16.mxu0 %v32957_v17 }
 0xfba   :  { %26716 = vmatpush3.bf16.msra.mxu0 %v26715_v53 }
 0xfbb   :  { %26717 = vmatprep.subr.bf16.mxu0 %v32957_v17 }
 0xfbe   :  { %26719 = vmatpush3.bf16.msra.mxu0 %v26718_v50 }
 0xfbf   :  { %26720 = vmatprep.subr.bf16.mxu0 %v32957_v17 }
 0xfc2   :  { %26722 = vmatpush3.bf16.msra.mxu0 %v26721_v27 }
 0xfc3   :  { %26723 = vmatprep.subr.bf16.mxu0 %v32957_v17 }
 0xfc6   :  { %26725 = vmatpush3.bf16.msra.mxu0 %v26724_v22 }
 0xfc7   :  { %26726 = vmatprep.subr.bf16.mxu0 %v32957_v17 }
 0xfca   :  { %26728 = vmatpush3.bf16.msra.mxu0 %v26727_v58 }
 0xfcb   :  { %26729 = vmatprep.subr.bf16.mxu0 %v32957_v17 }
 0xfce   :  { %26731 = vmatpush3.bf16.msra.mxu0 %v26730_v25 }
 0xfcf   :  { %26732 = vmatprep.subr.bf16.mxu0 %v32957_v17 }
 0xfd1   :  { %23553 = vmatmul.mubr.f32.vlgmr.msra.gmra.mrb[36].mxu0 %v20186_v32 }
 0xfd2   :  { %26734 = vmatpush3.bf16.msra.mxu0 %v31973_v18  ;;  %23587 = vmatprep.mubr.msk.f32.mxu0 %vm27471_vm14, %v32773_v35 }
 0xfd3   :  { %26735 = vmatprep.subr.bf16.mxu0 %v32957_v17 }
 0xfd6   :  { %26737 = vmatpush3.bf16.msra.mxu0 %v31977_v61 }
 0xfd7   :  { %26738 = vmatprep.subr.bf16.mxu0 %v32957_v17 }
 0xfda   :  { %26740 = vmatpush3.bf16.msra.mxu0 %v31981_v1 }
 0xfdb   :  { %26741 = vmatprep.subr.bf16.mxu0 %v32957_v17 }
 0xfde   :  { %26743 = vmatpush3.bf16.msra.mxu0 %v31997_v36 }
 0xfdf   :  { %26744 = vmatprep.subr.bf16.mxu0 %v32957_v17 }
 0xfe2   :  { %26746 = vmatpush3.bf16.msra.mxu0 %v32003_v56 }
 0xfe3   :  { %26747 = vmatprep.subr.bf16.mxu0 %v32957_v17 }
 0xfe6   :  { %26749 = vmatpush3.bf16.msra.mxu0 %v32024_v16 }
 0xfe7   :  { %26750 = vmatprep.subr.bf16.mxu0 %v32957_v17 }
 0xfea   :  { %26752 = vmatpush3.bf16.msra.mxu0 %v32028_v13 }
 0xfeb   :  { %26753 = vmatprep.subr.bf16.mxu0 %v32957_v17 }
 0xfee   :  { %26755 = vmatpush3.bf16.msra.mxu0 %v32032_v46 }
 0xfef   :  { %26756 = vmatprep.subr.bf16.mxu0 %v32957_v17 }
 0xff1   :  { %23588 = vmatmul.mubr.f32.vlgmr.msra.gmra.mrb[36].mxu0 %v20187_v40 }
 0xff2   :  { %26758 = vmatpush3.bf16.msra.mxu0 %v26757_v54  ;;  %23622 = vmatprep.mubr.msk.f32.mxu0 %vm27471_vm14, %v32773_v35 }
 0xff3   :  { %26759 = vmatprep.subr.bf16.mxu0 %v32957_v17 }
 0xff6   :  { %26761 = vmatpush3.bf16.msra.mxu0 %v26760_v37 }
 0xff7   :  { %26762 = vmatprep.subr.bf16.mxu0 %v32957_v17 }
 0xffa   :  { %26764 = vmatpush3.bf16.msra.mxu0 %v26763_v29 }
 0xffb   :  { %26765 = vmatprep.subr.bf16.mxu0 %v32957_v17 }
 0xffe   :  { %26767 = vmatpush3.bf16.msra.mxu0 %v26766_v28 }
 0xfff   :  { %26768 = vmatprep.subr.bf16.mxu0 %v32957_v17 }
0x1002   :  { %26770 = vmatpush3.bf16.msra.mxu0 %v26769_v5 }
0x1003   :  { %26771 = vmatprep.subr.bf16.mxu0 %v32957_v17 }
0x1006   :  { %26773 = vmatpush3.bf16.msra.mxu0 %v26772_v8 }
0x1007   :  { %26774 = vmatprep.subr.bf16.mxu0 %v32957_v17 }
0x100a   :  { %26776 = vmatpush3.bf16.msra.mxu0 %v26775_v55 }
0x100b   :  { %26777 = vmatprep.subr.bf16.mxu0 %v32957_v17 }
0x100e   :  { %26779 = vmatpush3.bf16.msra.mxu0 %v26778_v57 }
0x100f   :  { %26780 = vmatprep.subr.bf16.mxu0 %v32957_v17 }
0x1011   :  { %23623 = vmatmul.mubr.f32.vlgmr.msra.gmra.mrb[36].mxu0 %v32134_v45 }
0x1012   :  { %26782 = vmatpush3.bf16.msra.mxu0 %v31973_v18  ;;  %23657 = vmatprep.mubr.msk.f32.mxu0 %vm27471_vm14, %v32773_v35  ;;  %v20779_v35 = vld [vmem:[%s32284_s14] ss:$0 sm:$0xff] }
0x1013   :  { %26783 = vmatprep.subr.bf16.mxu0 %v32957_v17 }
0x1016   :  { %26785 = vmatpush3.bf16.msra.mxu0 %v31977_v61 }
0x1017   :  { %26786 = vmatprep.subr.bf16.mxu0 %v32957_v17 }
0x101a   :  { %26788 = vmatpush3.bf16.msra.mxu0 %v31981_v1 }
0x101b   :  { %26789 = vmatprep.subr.bf16.mxu0 %v32957_v17 }
0x101e   :  { %26791 = vmatpush3.bf16.msra.mxu0 %v31997_v36 }
0x101f   :  { %26792 = vmatprep.subr.bf16.mxu0 %v32957_v17 }
0x1022   :  { %26794 = vmatpush3.bf16.msra.mxu0 %v32003_v56 }
0x1023   :  { %26795 = vmatprep.subr.bf16.mxu0 %v32957_v17 }
0x1026   :  { %26797 = vmatpush3.bf16.msra.mxu0 %v32024_v16 }
0x1027   :  { %26798 = vmatprep.subr.bf16.mxu0 %v32957_v17 }
0x102a   :  { %26800 = vmatpush3.bf16.msra.mxu0 %v32028_v13 }
0x102b   :  { %26801 = vmatprep.subr.bf16.mxu0 %v32957_v17 }
0x102e   :  { %26803 = vmatpush3.bf16.msra.mxu0 %v32032_v46 }
0x1031   :  { %23658 = vmatmul.mubr.f32.vlgmr.msra.gmra.mrb[36].mxu0 %v32134_v45 }
0x1104   :  { %v20741_v18 = vpop.f32.mrb[36].mxu0 }
0x1105   :  { %v26844_v61 = vadd.f32 %v20779_v35, %v20741_v18  ;;  %v23659_v1 = vpop.f32.mrb[37].mxu0 }
0x1107   :  { %20745 = vst [vmem:[#allocation18] sm:$0x3] %v26844_v61 }
0x1108   :  { %27431 = shalt.err (!%p27428_p12)
}
0x1109   :  { %s27432_s19 = scalar_lea.hbm %s32285_s15, 32 }
0x110a   :  { %p27433_p13 = scmp.ne.s32.totalorder %s32285_s15, %s27432_s19  ;;  %p27436_p0 = scmp.lt.u32.totalorder %s27432_s19, %s32285_s15 }
0x110c   :  { %p27438_p1 = pnand %p27436_p0, %p27433_p13 }
0x110e   :  { %27441 = shalt.err (!%p27438_p1)
}
0x110f   :  { %20755 = dma.vmem_to_hbm [thread:$0]  %s20753_s22, 32, %s32285_s15, [#allocation6]  }
0x1110   :  { %27452 = dma.done.wait [#allocation6], 32  }
0x1111   :  { %27453 = vsyncadd [#allocation6], 4294967264 }
0x1112   :  { %20759 = vsyncpa [#allocation5], 1 }
0x1113   :  { %20760 = vsyncpa [#allocation8], 1 }
0x1114   :  { %20761 = vsyncpa [#allocation11], 1 }
0x1115   :  { %20762 = vsyncpa [#allocation14], 1 }
0x1116   :  { %20763 = vsyncpa [#allocation17], 1 }
0x1117   :  { %20764 = vsyncpa [#allocation6], 1 }

</bundles_post_ra>
